<compile_context>
chip_gen: v7x
topology: tpu7x:2x2x1
jax: 0.10.0
libtpu: 0.0.40
codegen_flags: <defaults>
</compile_context>

<pallas_src>
import functools

import numpy as np
import jax
import jax.numpy as jnp
from jax.experimental import pallas as pl
from jax.experimental.pallas import tpu as pltpu


# ---------------------------------------------------------------------------
# Fused conv(5x5, pad=2) + bias + ReLU + maxpool(2x2) kernel, one image/step.
# ---------------------------------------------------------------------------
def _conv_relu_pool_kernel(x_ref, w_ref, b_ref, s_ref, o_ref, scr_ref, *,
                           cin, cout, wp, f_in, m_in, taps, f_out, out_margin):
    """x_ref  : [1, cin, m_in + f_in + m_in] flat padded frame (zero margins)
       w_ref  : [cout, KH*KW*cin]            per-tap weight columns
       b_ref  : [cout, 1]
       s_ref  : [f_in, f_out]                0/1 pool-downsample + re-pad matrix
       o_ref  : [1, cout, out_width]
       scr_ref: [cout, f_in + wp + 2]        scratch for shifted-max pooling."""
    # ---- conv: accumulate 25 statically shifted taps (in-kernel im2col) ----
    acc = jnp.zeros((cout, f_in), jnp.float32)
    for t, d in enumerate(taps):
        lo = m_in + d
        xs = x_ref[0, :, lo:lo + f_in]                  # [cin, f_in]
        wt = w_ref[:, t * cin:(t + 1) * cin]            # [cout, cin]
        if cin == 1:
            acc = acc + wt * xs                         # VPU broadcast MAC
        else:
            acc = acc + jnp.dot(wt, xs, preferred_element_type=jnp.float32)
    acc = jnp.maximum(acc + b_ref[...], 0.0)            # bias + ReLU (f32)

    # ---- 2x2 max-pool: max over window offsets {0, 1, wp, wp+1} ----
    scr_ref[:, :f_in] = acc
    scr_ref[:, f_in:] = jnp.zeros((cout, wp + 2), jnp.float32)
    z = jnp.maximum(
        jnp.maximum(scr_ref[:, 0:f_in], scr_ref[:, 1:1 + f_in]),
        jnp.maximum(scr_ref[:, wp:wp + f_in], scr_ref[:, wp + 1:wp + 1 + f_in]))

    # ---- downsample + re-pad into next layer's frame: one MXU matmul ----
    pooled = jnp.dot(z, s_ref[...], preferred_element_type=jnp.float32)  # [cout, f_out]

    if out_margin > 0:
        o_ref[...] = jnp.zeros_like(o_ref)              # zero margins once
        o_ref[0, :, out_margin:out_margin + f_out] = pooled
    else:
        o_ref[0] = pooled


def conv_relu_pool(x_flat, w, b, pool_sel, *, wp, out_margin):
    """x_flat: [N, Cin, m_in + Hp*Wp + m_in] -> [N, Cout, f_out + 2*out_margin]."""
    n, cin, in_width = x_flat.shape
    cout, _, kh, kw = w.shape
    f_in, f_out = pool_sel.shape
    m_in = 2 * wp + 2
    assert in_width == f_in + 2 * m_in
    out_width = f_out + 2 * out_margin

    taps = tuple((i - kh // 2) * wp + (j - kw // 2)
                 for i in range(kh) for j in range(kw))
    # weight columns ordered as (kh, kw, cin) to match `taps`
    w_cols = w.transpose(0, 2, 3, 1).reshape(cout, kh * kw * cin)

    kernel = functools.partial(
        _conv_relu_pool_kernel, cin=cin, cout=cout, wp=wp, f_in=f_in,
        m_in=m_in, taps=taps, f_out=f_out, out_margin=out_margin)

    return pl.pallas_call(
        kernel,
        grid=(n,),
        in_specs=[
            pl.BlockSpec((1, cin, in_width), lambda i: (i, 0, 0)),
            pl.BlockSpec((cout, kh * kw * cin), lambda i: (0, 0)),
            pl.BlockSpec((cout, 1), lambda i: (0, 0)),
            pl.BlockSpec((f_in, f_out), lambda i: (0, 0)),
        ],
        out_specs=pl.BlockSpec((1, cout, out_width), lambda i: (i, 0, 0)),
        out_shape=jax.ShapeDtypeStruct((n, cout, out_width), jnp.float32),
        scratch_shapes=[pltpu.VMEM((cout, f_in + wp + 2), jnp.float32)],
        compiler_params=pltpu.CompilerParams(dimension_semantics=("parallel",)),
    )(x_flat, w_cols, b.reshape(cout, 1), pool_sel)


# ---------------------------------------------------------------------------
# Final Linear layer: single un-tiled Pallas matmul (no row padding / slicing).
# ---------------------------------------------------------------------------
def _linear_kernel(x_ref, w_ref, b_ref, o_ref):
    o_ref[...] = (jnp.dot(x_ref[...], w_ref[...],
                          preferred_element_type=jnp.float32)
                  + b_ref[...]).astype(o_ref.dtype)


def linear(x, w, b):
    n = x.shape[0]
    m = w.shape[0]
    return pl.pallas_call(
        _linear_kernel,
        out_shape=jax.ShapeDtypeStruct((n, m), jnp.float32),
    )(x, w.T, b.reshape(1, m))


# ---------------------------------------------------------------------------
# Glue helpers (tiny, run once per forward).
# ---------------------------------------------------------------------------
def _pool_select_matrix(hp, wp, ho, wo, pad_cur, pad_next):
    """0/1 matrix: flat padded conv frame -> flat (re-padded) pooled frame."""
    wn = wo + 2 * pad_next
    hn = ho + 2 * pad_next
    s = np.zeros((hp * wp, hn * wn), np.float32)
    for i in range(ho):
        for j in range(wo):
            p = (2 * i + pad_cur) * wp + (2 * j + pad_cur)
            q = (i + pad_next) * wn + (j + pad_next)
            s[p, q] = 1.0
    return jnp.asarray(s)


def _to_flat_frames(x, pad, margin):
    """[N, C, H, W] -> [N, C, margin + (H+2p)*(W+2p) + margin] (zero borders)."""
    n, c, h, w = x.shape
    xp = jnp.pad(x, ((0, 0), (0, 0), (pad, pad), (pad, pad)))
    flat = xp.reshape(n, c, (h + 2 * pad) * (w + 2 * pad))
    return jnp.pad(flat, ((0, 0), (0, 0), (margin, margin)))


def init_params(key):
    k1, k2, k3, k4, k5, k6 = jax.random.split(key, 6)
    s = 0.05
    return {
        "w1": jax.random.normal(k1, (16, 1, 5, 5), jnp.float32) * s,
        "b1": jax.random.normal(k2, (16,), jnp.float32) * s,
        "w2": jax.random.normal(k3, (32, 16, 5, 5), jnp.float32) * s,
        "b2": jax.random.normal(k4, (32,), jnp.float32) * s,
        "w_out": jax.random.normal(k5, (10, 32 * 7 * 7), jnp.float32) * s,
        "b_out": jax.random.normal(k6, (10,), jnp.float32) * s,
    }


def cnn_forward(params, x):
    n, _, h1, w1 = x.shape
    p = 2
    wp1, hp1 = w1 + 2 * p, h1 + 2 * p          # 32, 32
    ho1, wo1 = h1 // 2, w1 // 2                # 14, 14
    wp2, hp2 = wo1 + 2 * p, ho1 + 2 * p        # 18, 18
    ho2, wo2 = ho1 // 2, wo1 // 2              # 7, 7
    m1, m2 = 2 * wp1 + 2, 2 * wp2 + 2          # 66, 38

    s1 = _pool_select_matrix(hp1, wp1, ho1, wo1, p, p)   # [1024, 324]
    s2 = _pool_select_matrix(hp2, wp2, ho2, wo2, p, 0)   # [324, 49]

    a1 = _to_flat_frames(x, p, m1)                       # [N, 1, 1156]
    # conv1 + ReLU + pool -> emitted directly in conv2's flat padded layout
    a2 = conv_relu_pool(a1, params["w1"], params["b1"], s1, wp=wp1, out_margin=m2)
    # conv2 + ReLU + pool -> [N, 32, 49] (NCHW flatten order)
    p2 = conv_relu_pool(a2, params["w2"], params["b2"], s2, wp=wp2, out_margin=0)

    flat = p2.reshape(n, -1)                             # matches x.view(N, -1) on NCHW
    out = linear(flat, params["w_out"], params["b_out"])  # [N, 10]
    return out, flat


if __name__ == "__main__":
    key = jax.random.PRNGKey(0)
    pkey, xkey = jax.random.split(key)
    params = init_params(pkey)
    # MNIST-like input implied by the module: [N, 1, 28, 28]
    x = jax.random.normal(xkey, (2, 1, 28, 28), jnp.float32)
    out, flat = jax.jit(cnn_forward)(params, x)
    jax.block_until_ready((out, flat))
    assert out.shape == (2, 10) and flat.shape == (2, 32 * 7 * 7)
    assert out.dtype == jnp.float32 and flat.dtype == jnp.float32
    print("KERNEL_OK")
</pallas_src>

<mosaic_0001>
module attributes {stable_mosaic.version = 11 : i64} {
  func.func @_conv_relu_pool_kernel(%arg0: i32, %arg1: memref<1x1x1156xf32, #tpu.memory_space<vmem>>, %arg2: memref<16x25xf32, #tpu.memory_space<vmem>>, %arg3: memref<16x1xf32, #tpu.memory_space<vmem>>, %arg4: memref<1024x324xf32, #tpu.memory_space<vmem>>, %arg5: memref<1x16x400xf32, #tpu.memory_space<vmem>>, %arg6: memref<16x1058xf32, #tpu.memory_space<vmem>>) attributes {dimension_semantics = [#tpu.dimension_semantics<parallel>], iteration_bounds = array<i64: 2>, scalar_prefetch = 0 : i64, scratch_operands = 1 : i64, tpu.core_type = #tpu.core_type<tc>, window_params = [{transform_indices = @transform_0, window_bounds = array<i64: 1, 1, 1156>}, {pipeline_mode = #tpu.pipeline_mode<synchronous>, transform_indices = @transform_1, window_bounds = array<i64: 16, 25>}, {pipeline_mode = #tpu.pipeline_mode<synchronous>, transform_indices = @transform_2, window_bounds = array<i64: 16, 1>}, {pipeline_mode = #tpu.pipeline_mode<synchronous>, transform_indices = @transform_3, window_bounds = array<i64: 1024, 324>}, {transform_indices = @transform_4, window_bounds = array<i64: 1, 16, 400>}]} {
    %cst = arith.constant 0.000000e+00 : f32
    %0 = vector.broadcast %cst : f32 to vector<16x1024xf32>
    %c0 = arith.constant 0 : index
    %c0_0 = arith.constant 0 : index
    %c0_1 = arith.constant 0 : index
    %1 = vector.load %arg1[%c0, %c0_0, %c0_1] : memref<1x1x1156xf32, #tpu.memory_space<vmem>>, vector<1x1x1024xf32>
    %2 = vector.shape_cast %1 : vector<1x1x1024xf32> to vector<1x1024xf32>
    %c0_2 = arith.constant 0 : index
    %c0_3 = arith.constant 0 : index
    %3 = vector.load %arg2[%c0_2, %c0_3] : memref<16x25xf32, #tpu.memory_space<vmem>>, vector<16x1xf32>
    %4 = vector.broadcast %3 : vector<16x1xf32> to vector<16x1024xf32>
    %5 = vector.broadcast %2 : vector<1x1024xf32> to vector<16x1024xf32>
    %6 = arith.mulf %4, %5 : vector<16x1024xf32>
    %7 = arith.addf %0, %6 : vector<16x1024xf32>
    %c0_4 = arith.constant 0 : index
    %c0_5 = arith.constant 0 : index
    %c1 = arith.constant 1 : index
    %8 = vector.load %arg1[%c0_4, %c0_5, %c1] : memref<1x1x1156xf32, #tpu.memory_space<vmem>>, vector<1x1x1024xf32>
    %9 = vector.shape_cast %8 : vector<1x1x1024xf32> to vector<1x1024xf32>
    %c0_6 = arith.constant 0 : index
    %c1_7 = arith.constant 1 : index
    %10 = vector.load %arg2[%c0_6, %c1_7] : memref<16x25xf32, #tpu.memory_space<vmem>>, vector<16x1xf32>
    %11 = vector.broadcast %10 : vector<16x1xf32> to vector<16x1024xf32>
    %12 = vector.broadcast %9 : vector<1x1024xf32> to vector<16x1024xf32>
    %13 = arith.mulf %11, %12 : vector<16x1024xf32>
    %14 = arith.addf %7, %13 : vector<16x1024xf32>
    %c0_8 = arith.constant 0 : index
    %c0_9 = arith.constant 0 : index
    %c2 = arith.constant 2 : index
    %15 = vector.load %arg1[%c0_8, %c0_9, %c2] : memref<1x1x1156xf32, #tpu.memory_space<vmem>>, vector<1x1x1024xf32>
    %16 = vector.shape_cast %15 : vector<1x1x1024xf32> to vector<1x1024xf32>
    %c0_10 = arith.constant 0 : index
    %c2_11 = arith.constant 2 : index
    %17 = vector.load %arg2[%c0_10, %c2_11] : memref<16x25xf32, #tpu.memory_space<vmem>>, vector<16x1xf32>
    %18 = vector.broadcast %17 : vector<16x1xf32> to vector<16x1024xf32>
    %19 = vector.broadcast %16 : vector<1x1024xf32> to vector<16x1024xf32>
    %20 = arith.mulf %18, %19 : vector<16x1024xf32>
    %21 = arith.addf %14, %20 : vector<16x1024xf32>
    %c0_12 = arith.constant 0 : index
    %c0_13 = arith.constant 0 : index
    %c3 = arith.constant 3 : index
    %22 = vector.load %arg1[%c0_12, %c0_13, %c3] : memref<1x1x1156xf32, #tpu.memory_space<vmem>>, vector<1x1x1024xf32>
    %23 = vector.shape_cast %22 : vector<1x1x1024xf32> to vector<1x1024xf32>
    %c0_14 = arith.constant 0 : index
    %c3_15 = arith.constant 3 : index
    %24 = vector.load %arg2[%c0_14, %c3_15] : memref<16x25xf32, #tpu.memory_space<vmem>>, vector<16x1xf32>
    %25 = vector.broadcast %24 : vector<16x1xf32> to vector<16x1024xf32>
    %26 = vector.broadcast %23 : vector<1x1024xf32> to vector<16x1024xf32>
    %27 = arith.mulf %25, %26 : vector<16x1024xf32>
    %28 = arith.addf %21, %27 : vector<16x1024xf32>
    %c0_16 = arith.constant 0 : index
    %c0_17 = arith.constant 0 : index
    %c4 = arith.constant 4 : index
    %29 = vector.load %arg1[%c0_16, %c0_17, %c4] : memref<1x1x1156xf32, #tpu.memory_space<vmem>>, vector<1x1x1024xf32>
    %30 = vector.shape_cast %29 : vector<1x1x1024xf32> to vector<1x1024xf32>
    %c0_18 = arith.constant 0 : index
    %c4_19 = arith.constant 4 : index
    %31 = vector.load %arg2[%c0_18, %c4_19] : memref<16x25xf32, #tpu.memory_space<vmem>>, vector<16x1xf32>
    %32 = vector.broadcast %31 : vector<16x1xf32> to vector<16x1024xf32>
    %33 = vector.broadcast %30 : vector<1x1024xf32> to vector<16x1024xf32>
    %34 = arith.mulf %32, %33 : vector<16x1024xf32>
    %35 = arith.addf %28, %34 : vector<16x1024xf32>
    %c0_20 = arith.constant 0 : index
    %c0_21 = arith.constant 0 : index
    %c32 = arith.constant 32 : index
    %36 = vector.load %arg1[%c0_20, %c0_21, %c32] : memref<1x1x1156xf32, #tpu.memory_space<vmem>>, vector<1x1x1024xf32>
    %37 = vector.shape_cast %36 : vector<1x1x1024xf32> to vector<1x1024xf32>
    %c0_22 = arith.constant 0 : index
    %c5 = arith.constant 5 : index
    %38 = vector.load %arg2[%c0_22, %c5] : memref<16x25xf32, #tpu.memory_space<vmem>>, vector<16x1xf32>
    %39 = vector.broadcast %38 : vector<16x1xf32> to vector<16x1024xf32>
    %40 = vector.broadcast %37 : vector<1x1024xf32> to vector<16x1024xf32>
    %41 = arith.mulf %39, %40 : vector<16x1024xf32>
    %42 = arith.addf %35, %41 : vector<16x1024xf32>
    %c0_23 = arith.constant 0 : index
    %c0_24 = arith.constant 0 : index
    %c33 = arith.constant 33 : index
    %43 = vector.load %arg1[%c0_23, %c0_24, %c33] : memref<1x1x1156xf32, #tpu.memory_space<vmem>>, vector<1x1x1024xf32>
    %44 = vector.shape_cast %43 : vector<1x1x1024xf32> to vector<1x1024xf32>
    %c0_25 = arith.constant 0 : index
    %c6 = arith.constant 6 : index
    %45 = vector.load %arg2[%c0_25, %c6] : memref<16x25xf32, #tpu.memory_space<vmem>>, vector<16x1xf32>
    %46 = vector.broadcast %45 : vector<16x1xf32> to vector<16x1024xf32>
    %47 = vector.broadcast %44 : vector<1x1024xf32> to vector<16x1024xf32>
    %48 = arith.mulf %46, %47 : vector<16x1024xf32>
    %49 = arith.addf %42, %48 : vector<16x1024xf32>
    %c0_26 = arith.constant 0 : index
    %c0_27 = arith.constant 0 : index
    %c34 = arith.constant 34 : index
    %50 = vector.load %arg1[%c0_26, %c0_27, %c34] : memref<1x1x1156xf32, #tpu.memory_space<vmem>>, vector<1x1x1024xf32>
    %51 = vector.shape_cast %50 : vector<1x1x1024xf32> to vector<1x1024xf32>
    %c0_28 = arith.constant 0 : index
    %c7 = arith.constant 7 : index
    %52 = vector.load %arg2[%c0_28, %c7] : memref<16x25xf32, #tpu.memory_space<vmem>>, vector<16x1xf32>
    %53 = vector.broadcast %52 : vector<16x1xf32> to vector<16x1024xf32>
    %54 = vector.broadcast %51 : vector<1x1024xf32> to vector<16x1024xf32>
    %55 = arith.mulf %53, %54 : vector<16x1024xf32>
    %56 = arith.addf %49, %55 : vector<16x1024xf32>
    %c0_29 = arith.constant 0 : index
    %c0_30 = arith.constant 0 : index
    %c35 = arith.constant 35 : index
    %57 = vector.load %arg1[%c0_29, %c0_30, %c35] : memref<1x1x1156xf32, #tpu.memory_space<vmem>>, vector<1x1x1024xf32>
    %58 = vector.shape_cast %57 : vector<1x1x1024xf32> to vector<1x1024xf32>
    %c0_31 = arith.constant 0 : index
    %c8 = arith.constant 8 : index
    %59 = vector.load %arg2[%c0_31, %c8] : memref<16x25xf32, #tpu.memory_space<vmem>>, vector<16x1xf32>
    %60 = vector.broadcast %59 : vector<16x1xf32> to vector<16x1024xf32>
    %61 = vector.broadcast %58 : vector<1x1024xf32> to vector<16x1024xf32>
    %62 = arith.mulf %60, %61 : vector<16x1024xf32>
    %63 = arith.addf %56, %62 : vector<16x1024xf32>
    %c0_32 = arith.constant 0 : index
    %c0_33 = arith.constant 0 : index
    %c36 = arith.constant 36 : index
    %64 = vector.load %arg1[%c0_32, %c0_33, %c36] : memref<1x1x1156xf32, #tpu.memory_space<vmem>>, vector<1x1x1024xf32>
    %65 = vector.shape_cast %64 : vector<1x1x1024xf32> to vector<1x1024xf32>
    %c0_34 = arith.constant 0 : index
    %c9 = arith.constant 9 : index
    %66 = vector.load %arg2[%c0_34, %c9] : memref<16x25xf32, #tpu.memory_space<vmem>>, vector<16x1xf32>
    %67 = vector.broadcast %66 : vector<16x1xf32> to vector<16x1024xf32>
    %68 = vector.broadcast %65 : vector<1x1024xf32> to vector<16x1024xf32>
    %69 = arith.mulf %67, %68 : vector<16x1024xf32>
    %70 = arith.addf %63, %69 : vector<16x1024xf32>
    %c0_35 = arith.constant 0 : index
    %c0_36 = arith.constant 0 : index
    %c64 = arith.constant 64 : index
    %71 = vector.load %arg1[%c0_35, %c0_36, %c64] : memref<1x1x1156xf32, #tpu.memory_space<vmem>>, vector<1x1x1024xf32>
    %72 = vector.shape_cast %71 : vector<1x1x1024xf32> to vector<1x1024xf32>
    %c0_37 = arith.constant 0 : index
    %c10 = arith.constant 10 : index
    %73 = vector.load %arg2[%c0_37, %c10] : memref<16x25xf32, #tpu.memory_space<vmem>>, vector<16x1xf32>
    %74 = vector.broadcast %73 : vector<16x1xf32> to vector<16x1024xf32>
    %75 = vector.broadcast %72 : vector<1x1024xf32> to vector<16x1024xf32>
    %76 = arith.mulf %74, %75 : vector<16x1024xf32>
    %77 = arith.addf %70, %76 : vector<16x1024xf32>
    %c0_38 = arith.constant 0 : index
    %c0_39 = arith.constant 0 : index
    %c65 = arith.constant 65 : index
    %78 = vector.load %arg1[%c0_38, %c0_39, %c65] : memref<1x1x1156xf32, #tpu.memory_space<vmem>>, vector<1x1x1024xf32>
    %79 = vector.shape_cast %78 : vector<1x1x1024xf32> to vector<1x1024xf32>
    %c0_40 = arith.constant 0 : index
    %c11 = arith.constant 11 : index
    %80 = vector.load %arg2[%c0_40, %c11] : memref<16x25xf32, #tpu.memory_space<vmem>>, vector<16x1xf32>
    %81 = vector.broadcast %80 : vector<16x1xf32> to vector<16x1024xf32>
    %82 = vector.broadcast %79 : vector<1x1024xf32> to vector<16x1024xf32>
    %83 = arith.mulf %81, %82 : vector<16x1024xf32>
    %84 = arith.addf %77, %83 : vector<16x1024xf32>
    %c0_41 = arith.constant 0 : index
    %c0_42 = arith.constant 0 : index
    %c66 = arith.constant 66 : index
    %85 = vector.load %arg1[%c0_41, %c0_42, %c66] : memref<1x1x1156xf32, #tpu.memory_space<vmem>>, vector<1x1x1024xf32>
    %86 = vector.shape_cast %85 : vector<1x1x1024xf32> to vector<1x1024xf32>
    %c0_43 = arith.constant 0 : index
    %c12 = arith.constant 12 : index
    %87 = vector.load %arg2[%c0_43, %c12] : memref<16x25xf32, #tpu.memory_space<vmem>>, vector<16x1xf32>
    %88 = vector.broadcast %87 : vector<16x1xf32> to vector<16x1024xf32>
    %89 = vector.broadcast %86 : vector<1x1024xf32> to vector<16x1024xf32>
    %90 = arith.mulf %88, %89 : vector<16x1024xf32>
    %91 = arith.addf %84, %90 : vector<16x1024xf32>
    %c0_44 = arith.constant 0 : index
    %c0_45 = arith.constant 0 : index
    %c67 = arith.constant 67 : index
    %92 = vector.load %arg1[%c0_44, %c0_45, %c67] : memref<1x1x1156xf32, #tpu.memory_space<vmem>>, vector<1x1x1024xf32>
    %93 = vector.shape_cast %92 : vector<1x1x1024xf32> to vector<1x1024xf32>
    %c0_46 = arith.constant 0 : index
    %c13 = arith.constant 13 : index
    %94 = vector.load %arg2[%c0_46, %c13] : memref<16x25xf32, #tpu.memory_space<vmem>>, vector<16x1xf32>
    %95 = vector.broadcast %94 : vector<16x1xf32> to vector<16x1024xf32>
    %96 = vector.broadcast %93 : vector<1x1024xf32> to vector<16x1024xf32>
    %97 = arith.mulf %95, %96 : vector<16x1024xf32>
    %98 = arith.addf %91, %97 : vector<16x1024xf32>
    %c0_47 = arith.constant 0 : index
    %c0_48 = arith.constant 0 : index
    %c68 = arith.constant 68 : index
    %99 = vector.load %arg1[%c0_47, %c0_48, %c68] : memref<1x1x1156xf32, #tpu.memory_space<vmem>>, vector<1x1x1024xf32>
    %100 = vector.shape_cast %99 : vector<1x1x1024xf32> to vector<1x1024xf32>
    %c0_49 = arith.constant 0 : index
    %c14 = arith.constant 14 : index
    %101 = vector.load %arg2[%c0_49, %c14] : memref<16x25xf32, #tpu.memory_space<vmem>>, vector<16x1xf32>
    %102 = vector.broadcast %101 : vector<16x1xf32> to vector<16x1024xf32>
    %103 = vector.broadcast %100 : vector<1x1024xf32> to vector<16x1024xf32>
    %104 = arith.mulf %102, %103 : vector<16x1024xf32>
    %105 = arith.addf %98, %104 : vector<16x1024xf32>
    %c0_50 = arith.constant 0 : index
    %c0_51 = arith.constant 0 : index
    %c96 = arith.constant 96 : index
    %106 = vector.load %arg1[%c0_50, %c0_51, %c96] : memref<1x1x1156xf32, #tpu.memory_space<vmem>>, vector<1x1x1024xf32>
    %107 = vector.shape_cast %106 : vector<1x1x1024xf32> to vector<1x1024xf32>
    %c0_52 = arith.constant 0 : index
    %c15 = arith.constant 15 : index
    %108 = vector.load %arg2[%c0_52, %c15] : memref<16x25xf32, #tpu.memory_space<vmem>>, vector<16x1xf32>
    %109 = vector.broadcast %108 : vector<16x1xf32> to vector<16x1024xf32>
    %110 = vector.broadcast %107 : vector<1x1024xf32> to vector<16x1024xf32>
    %111 = arith.mulf %109, %110 : vector<16x1024xf32>
    %112 = arith.addf %105, %111 : vector<16x1024xf32>
    %c0_53 = arith.constant 0 : index
    %c0_54 = arith.constant 0 : index
    %c97 = arith.constant 97 : index
    %113 = vector.load %arg1[%c0_53, %c0_54, %c97] : memref<1x1x1156xf32, #tpu.memory_space<vmem>>, vector<1x1x1024xf32>
    %114 = vector.shape_cast %113 : vector<1x1x1024xf32> to vector<1x1024xf32>
    %c0_55 = arith.constant 0 : index
    %c16 = arith.constant 16 : index
    %115 = vector.load %arg2[%c0_55, %c16] : memref<16x25xf32, #tpu.memory_space<vmem>>, vector<16x1xf32>
    %116 = vector.broadcast %115 : vector<16x1xf32> to vector<16x1024xf32>
    %117 = vector.broadcast %114 : vector<1x1024xf32> to vector<16x1024xf32>
    %118 = arith.mulf %116, %117 : vector<16x1024xf32>
    %119 = arith.addf %112, %118 : vector<16x1024xf32>
    %c0_56 = arith.constant 0 : index
    %c0_57 = arith.constant 0 : index
    %c98 = arith.constant 98 : index
    %120 = vector.load %arg1[%c0_56, %c0_57, %c98] : memref<1x1x1156xf32, #tpu.memory_space<vmem>>, vector<1x1x1024xf32>
    %121 = vector.shape_cast %120 : vector<1x1x1024xf32> to vector<1x1024xf32>
    %c0_58 = arith.constant 0 : index
    %c17 = arith.constant 17 : index
    %122 = vector.load %arg2[%c0_58, %c17] : memref<16x25xf32, #tpu.memory_space<vmem>>, vector<16x1xf32>
    %123 = vector.broadcast %122 : vector<16x1xf32> to vector<16x1024xf32>
    %124 = vector.broadcast %121 : vector<1x1024xf32> to vector<16x1024xf32>
    %125 = arith.mulf %123, %124 : vector<16x1024xf32>
    %126 = arith.addf %119, %125 : vector<16x1024xf32>
    %c0_59 = arith.constant 0 : index
    %c0_60 = arith.constant 0 : index
    %c99 = arith.constant 99 : index
    %127 = vector.load %arg1[%c0_59, %c0_60, %c99] : memref<1x1x1156xf32, #tpu.memory_space<vmem>>, vector<1x1x1024xf32>
    %128 = vector.shape_cast %127 : vector<1x1x1024xf32> to vector<1x1024xf32>
    %c0_61 = arith.constant 0 : index
    %c18 = arith.constant 18 : index
    %129 = vector.load %arg2[%c0_61, %c18] : memref<16x25xf32, #tpu.memory_space<vmem>>, vector<16x1xf32>
    %130 = vector.broadcast %129 : vector<16x1xf32> to vector<16x1024xf32>
    %131 = vector.broadcast %128 : vector<1x1024xf32> to vector<16x1024xf32>
    %132 = arith.mulf %130, %131 : vector<16x1024xf32>
    %133 = arith.addf %126, %132 : vector<16x1024xf32>
    %c0_62 = arith.constant 0 : index
    %c0_63 = arith.constant 0 : index
    %c100 = arith.constant 100 : index
    %134 = vector.load %arg1[%c0_62, %c0_63, %c100] : memref<1x1x1156xf32, #tpu.memory_space<vmem>>, vector<1x1x1024xf32>
    %135 = vector.shape_cast %134 : vector<1x1x1024xf32> to vector<1x1024xf32>
    %c0_64 = arith.constant 0 : index
    %c19 = arith.constant 19 : index
    %136 = vector.load %arg2[%c0_64, %c19] : memref<16x25xf32, #tpu.memory_space<vmem>>, vector<16x1xf32>
    %137 = vector.broadcast %136 : vector<16x1xf32> to vector<16x1024xf32>
    %138 = vector.broadcast %135 : vector<1x1024xf32> to vector<16x1024xf32>
    %139 = arith.mulf %137, %138 : vector<16x1024xf32>
    %140 = arith.addf %133, %139 : vector<16x1024xf32>
    %c0_65 = arith.constant 0 : index
    %c0_66 = arith.constant 0 : index
    %c128 = arith.constant 128 : index
    %141 = vector.load %arg1[%c0_65, %c0_66, %c128] : memref<1x1x1156xf32, #tpu.memory_space<vmem>>, vector<1x1x1024xf32>
    %142 = vector.shape_cast %141 : vector<1x1x1024xf32> to vector<1x1024xf32>
    %c0_67 = arith.constant 0 : index
    %c20 = arith.constant 20 : index
    %143 = vector.load %arg2[%c0_67, %c20] : memref<16x25xf32, #tpu.memory_space<vmem>>, vector<16x1xf32>
    %144 = vector.broadcast %143 : vector<16x1xf32> to vector<16x1024xf32>
    %145 = vector.broadcast %142 : vector<1x1024xf32> to vector<16x1024xf32>
    %146 = arith.mulf %144, %145 : vector<16x1024xf32>
    %147 = arith.addf %140, %146 : vector<16x1024xf32>
    %c0_68 = arith.constant 0 : index
    %c0_69 = arith.constant 0 : index
    %c129 = arith.constant 129 : index
    %148 = vector.load %arg1[%c0_68, %c0_69, %c129] : memref<1x1x1156xf32, #tpu.memory_space<vmem>>, vector<1x1x1024xf32>
    %149 = vector.shape_cast %148 : vector<1x1x1024xf32> to vector<1x1024xf32>
    %c0_70 = arith.constant 0 : index
    %c21 = arith.constant 21 : index
    %150 = vector.load %arg2[%c0_70, %c21] : memref<16x25xf32, #tpu.memory_space<vmem>>, vector<16x1xf32>
    %151 = vector.broadcast %150 : vector<16x1xf32> to vector<16x1024xf32>
    %152 = vector.broadcast %149 : vector<1x1024xf32> to vector<16x1024xf32>
    %153 = arith.mulf %151, %152 : vector<16x1024xf32>
    %154 = arith.addf %147, %153 : vector<16x1024xf32>
    %c0_71 = arith.constant 0 : index
    %c0_72 = arith.constant 0 : index
    %c130 = arith.constant 130 : index
    %155 = vector.load %arg1[%c0_71, %c0_72, %c130] : memref<1x1x1156xf32, #tpu.memory_space<vmem>>, vector<1x1x1024xf32>
    %156 = vector.shape_cast %155 : vector<1x1x1024xf32> to vector<1x1024xf32>
    %c0_73 = arith.constant 0 : index
    %c22 = arith.constant 22 : index
    %157 = vector.load %arg2[%c0_73, %c22] : memref<16x25xf32, #tpu.memory_space<vmem>>, vector<16x1xf32>
    %158 = vector.broadcast %157 : vector<16x1xf32> to vector<16x1024xf32>
    %159 = vector.broadcast %156 : vector<1x1024xf32> to vector<16x1024xf32>
    %160 = arith.mulf %158, %159 : vector<16x1024xf32>
    %161 = arith.addf %154, %160 : vector<16x1024xf32>
    %c0_74 = arith.constant 0 : index
    %c0_75 = arith.constant 0 : index
    %c131 = arith.constant 131 : index
    %162 = vector.load %arg1[%c0_74, %c0_75, %c131] : memref<1x1x1156xf32, #tpu.memory_space<vmem>>, vector<1x1x1024xf32>
    %163 = vector.shape_cast %162 : vector<1x1x1024xf32> to vector<1x1024xf32>
    %c0_76 = arith.constant 0 : index
    %c23 = arith.constant 23 : index
    %164 = vector.load %arg2[%c0_76, %c23] : memref<16x25xf32, #tpu.memory_space<vmem>>, vector<16x1xf32>
    %165 = vector.broadcast %164 : vector<16x1xf32> to vector<16x1024xf32>
    %166 = vector.broadcast %163 : vector<1x1024xf32> to vector<16x1024xf32>
    %167 = arith.mulf %165, %166 : vector<16x1024xf32>
    %168 = arith.addf %161, %167 : vector<16x1024xf32>
    %c0_77 = arith.constant 0 : index
    %c0_78 = arith.constant 0 : index
    %c132 = arith.constant 132 : index
    %169 = vector.load %arg1[%c0_77, %c0_78, %c132] : memref<1x1x1156xf32, #tpu.memory_space<vmem>>, vector<1x1x1024xf32>
    %170 = vector.shape_cast %169 : vector<1x1x1024xf32> to vector<1x1024xf32>
    %c0_79 = arith.constant 0 : index
    %c24 = arith.constant 24 : index
    %171 = vector.load %arg2[%c0_79, %c24] : memref<16x25xf32, #tpu.memory_space<vmem>>, vector<16x1xf32>
    %172 = vector.broadcast %171 : vector<16x1xf32> to vector<16x1024xf32>
    %173 = vector.broadcast %170 : vector<1x1024xf32> to vector<16x1024xf32>
    %174 = arith.mulf %172, %173 : vector<16x1024xf32>
    %175 = arith.addf %168, %174 : vector<16x1024xf32>
    %c0_80 = arith.constant 0 : index
    %c0_81 = arith.constant 0 : index
    %176 = vector.load %arg3[%c0_80, %c0_81] : memref<16x1xf32, #tpu.memory_space<vmem>>, vector<16x1xf32>
    %177 = vector.broadcast %176 : vector<16x1xf32> to vector<16x1024xf32>
    %178 = arith.addf %175, %177 : vector<16x1024xf32>
    %cst_82 = arith.constant 0.000000e+00 : f32
    %179 = vector.broadcast %cst_82 : f32 to vector<16x1024xf32>
    %180 = arith.maximumf %178, %179 : vector<16x1024xf32>
    %c0_83 = arith.constant 0 : index
    %c0_84 = arith.constant 0 : index
    %181 = vector.load %arg6[%c0_83, %c0_84] : memref<16x1058xf32, #tpu.memory_space<vmem>>, vector<16x1024xf32>
    tpu.vector_store %arg6[%c0_83, %c0_84], %180 {strides = array<i32>} : memref<16x1058xf32, #tpu.memory_space<vmem>>, vector<16x1024xf32>,
    %cst_85 = arith.constant 0.000000e+00 : f32
    %182 = vector.broadcast %cst_85 : f32 to vector<16x34xf32>
    %c0_86 = arith.constant 0 : index
    %c1024 = arith.constant 1024 : index
    %183 = vector.load %arg6[%c0_86, %c1024] : memref<16x1058xf32, #tpu.memory_space<vmem>>, vector<16x34xf32>
    tpu.vector_store %arg6[%c0_86, %c1024], %182 {strides = array<i32>} : memref<16x1058xf32, #tpu.memory_space<vmem>>, vector<16x34xf32>,
    %c0_87 = arith.constant 0 : index
    %c0_88 = arith.constant 0 : index
    %184 = vector.load %arg6[%c0_87, %c0_88] : memref<16x1058xf32, #tpu.memory_space<vmem>>, vector<16x1024xf32>
    %c0_89 = arith.constant 0 : index
    %c1_90 = arith.constant 1 : index
    %185 = vector.load %arg6[%c0_89, %c1_90] : memref<16x1058xf32, #tpu.memory_space<vmem>>, vector<16x1024xf32>
    %186 = arith.maximumf %184, %185 : vector<16x1024xf32>
    %c0_91 = arith.constant 0 : index
    %c32_92 = arith.constant 32 : index
    %187 = vector.load %arg6[%c0_91, %c32_92] : memref<16x1058xf32, #tpu.memory_space<vmem>>, vector<16x1024xf32>
    %c0_93 = arith.constant 0 : index
    %c33_94 = arith.constant 33 : index
    %188 = vector.load %arg6[%c0_93, %c33_94] : memref<16x1058xf32, #tpu.memory_space<vmem>>, vector<16x1024xf32>
    %189 = arith.maximumf %187, %188 : vector<16x1024xf32>
    %190 = arith.maximumf %186, %189 : vector<16x1024xf32>
    %c0_95 = arith.constant 0 : index
    %c0_96 = arith.constant 0 : index
    %191 = vector.load %arg4[%c0_95, %c0_96] : memref<1024x324xf32, #tpu.memory_space<vmem>>, vector<1024x324xf32>
    %cst_97 = arith.constant dense<0.000000e+00> : vector<16x324xf32>
    %192 = tpu.matmul %190, %191, %cst_97 {dimension_numbers = #tpu.dot_dimension_numbers<[1], [0], [0], [1], [0, 0, 1, 1], [], []>} : vector<16x1024xf32>, vector<1024x324xf32>, vector<16x324xf32> -> vector<16x324xf32>
    %cst_98 = arith.constant 0.000000e+00 : f32
    %193 = vector.broadcast %cst_98 : f32 to vector<1x16x400xf32>
    %c0_99 = arith.constant 0 : index
    %c0_100 = arith.constant 0 : index
    %c0_101 = arith.constant 0 : index
    %194 = vector.load %arg5[%c0_99, %c0_100, %c0_101] : memref<1x16x400xf32, #tpu.memory_space<vmem>>, vector<1x16x400xf32>
    tpu.vector_store %arg5[%c0_99, %c0_100, %c0_101], %193 {strides = array<i32>} : memref<1x16x400xf32, #tpu.memory_space<vmem>>, vector<1x16x400xf32>,
    %c0_102 = arith.constant 0 : index
    %c0_103 = arith.constant 0 : index
    %c38 = arith.constant 38 : index
    %195 = vector.load %arg5[%c0_102, %c0_103, %c38] : memref<1x16x400xf32, #tpu.memory_space<vmem>>, vector<1x16x324xf32>
    %196 = vector.shape_cast %195 : vector<1x16x324xf32> to vector<16x324xf32>
    %197 = vector.shape_cast %192 : vector<16x324xf32> to vector<1x16x324xf32>
    tpu.vector_store %arg5[%c0_102, %c0_103, %c38], %197 {strides = array<i32>} : memref<1x16x400xf32, #tpu.memory_space<vmem>>, vector<1x16x324xf32>,
    return
  }
  func.func @transform_0(%arg0: i32) -> (i32, i32, i32) {
    %c0_i32 = arith.constant 0 : i32
    %c0_i32_0 = arith.constant 0 : i32
    %c0_i32_1 = arith.constant 0 : i32
    return %arg0, %c0_i32, %c0_i32_0 : i32, i32, i32
  }
  func.func @transform_1(%arg0: i32) -> (i32, i32) {
    %c0_i32 = arith.constant 0 : i32
    %c0_i32_0 = arith.constant 0 : i32
    %c0_i32_1 = arith.constant 0 : i32
    return %c0_i32, %c0_i32_0 : i32, i32
  }
  func.func @transform_2(%arg0: i32) -> (i32, i32) {
    %c0_i32 = arith.constant 0 : i32
    %c0_i32_0 = arith.constant 0 : i32
    %c0_i32_1 = arith.constant 0 : i32
    return %c0_i32, %c0_i32_0 : i32, i32
  }
  func.func @transform_3(%arg0: i32) -> (i32, i32) {
    %c0_i32 = arith.constant 0 : i32
    %c0_i32_0 = arith.constant 0 : i32
    %c0_i32_1 = arith.constant 0 : i32
    return %c0_i32, %c0_i32_0 : i32, i32
  }
  func.func @transform_4(%arg0: i32) -> (i32, i32, i32) {
    %c0_i32 = arith.constant 0 : i32
    %c0_i32_0 = arith.constant 0 : i32
    %c0_i32_1 = arith.constant 0 : i32
    return %arg0, %c0_i32, %c0_i32_0 : i32, i32, i32
  }
}

module attributes {stable_mosaic.version = 11 : i64} {
  func.func @_conv_relu_pool_kernel(%arg0: i32, %arg1: memref<1x16x400xf32, #tpu.memory_space<vmem>>, %arg2: memref<32x400xf32, #tpu.memory_space<vmem>>, %arg3: memref<32x1xf32, #tpu.memory_space<vmem>>, %arg4: memref<324x49xf32, #tpu.memory_space<vmem>>, %arg5: memref<1x32x49xf32, #tpu.memory_space<vmem>>, %arg6: memref<32x344xf32, #tpu.memory_space<vmem>>) attributes {dimension_semantics = [#tpu.dimension_semantics<parallel>], iteration_bounds = array<i64: 2>, scalar_prefetch = 0 : i64, scratch_operands = 1 : i64, tpu.core_type = #tpu.core_type<tc>, window_params = [{transform_indices = @transform_0, window_bounds = array<i64: 1, 16, 400>}, {pipeline_mode = #tpu.pipeline_mode<synchronous>, transform_indices = @transform_1, window_bounds = array<i64: 32, 400>}, {pipeline_mode = #tpu.pipeline_mode<synchronous>, transform_indices = @transform_2, window_bounds = array<i64: 32, 1>}, {pipeline_mode = #tpu.pipeline_mode<synchronous>, transform_indices = @transform_3, window_bounds = array<i64: 324, 49>}, {transform_indices = @transform_4, window_bounds = array<i64: 1, 32, 49>}]} {
    %cst = arith.constant 0.000000e+00 : f32
    %0 = vector.broadcast %cst : f32 to vector<32x324xf32>
    %c0 = arith.constant 0 : index
    %c0_0 = arith.constant 0 : index
    %c0_1 = arith.constant 0 : index
    %1 = vector.load %arg1[%c0, %c0_0, %c0_1] : memref<1x16x400xf32, #tpu.memory_space<vmem>>, vector<1x16x324xf32>
    %2 = vector.shape_cast %1 : vector<1x16x324xf32> to vector<16x324xf32>
    %c0_2 = arith.constant 0 : index
    %c0_3 = arith.constant 0 : index
    %3 = vector.load %arg2[%c0_2, %c0_3] : memref<32x400xf32, #tpu.memory_space<vmem>>, vector<32x16xf32>
    %cst_4 = arith.constant dense<0.000000e+00> : vector<32x324xf32>
    %4 = tpu.matmul %3, %2, %cst_4 {dimension_numbers = #tpu.dot_dimension_numbers<[1], [0], [0], [1], [0, 0, 1, 1], [], []>} : vector<32x16xf32>, vector<16x324xf32>, vector<32x324xf32> -> vector<32x324xf32>
    %5 = arith.addf %0, %4 : vector<32x324xf32>
    %c0_5 = arith.constant 0 : index
    %c0_6 = arith.constant 0 : index
    %c1 = arith.constant 1 : index
    %6 = vector.load %arg1[%c0_5, %c0_6, %c1] : memref<1x16x400xf32, #tpu.memory_space<vmem>>, vector<1x16x324xf32>
    %7 = vector.shape_cast %6 : vector<1x16x324xf32> to vector<16x324xf32>
    %c0_7 = arith.constant 0 : index
    %c16 = arith.constant 16 : index
    %8 = vector.load %arg2[%c0_7, %c16] : memref<32x400xf32, #tpu.memory_space<vmem>>, vector<32x16xf32>
    %cst_8 = arith.constant dense<0.000000e+00> : vector<32x324xf32>
    %9 = tpu.matmul %8, %7, %cst_8 {dimension_numbers = #tpu.dot_dimension_numbers<[1], [0], [0], [1], [0, 0, 1, 1], [], []>} : vector<32x16xf32>, vector<16x324xf32>, vector<32x324xf32> -> vector<32x324xf32>
    %10 = arith.addf %5, %9 : vector<32x324xf32>
    %c0_9 = arith.constant 0 : index
    %c0_10 = arith.constant 0 : index
    %c2 = arith.constant 2 : index
    %11 = vector.load %arg1[%c0_9, %c0_10, %c2] : memref<1x16x400xf32, #tpu.memory_space<vmem>>, vector<1x16x324xf32>
    %12 = vector.shape_cast %11 : vector<1x16x324xf32> to vector<16x324xf32>
    %c0_11 = arith.constant 0 : index
    %c32 = arith.constant 32 : index
    %13 = vector.load %arg2[%c0_11, %c32] : memref<32x400xf32, #tpu.memory_space<vmem>>, vector<32x16xf32>
    %cst_12 = arith.constant dense<0.000000e+00> : vector<32x324xf32>
    %14 = tpu.matmul %13, %12, %cst_12 {dimension_numbers = #tpu.dot_dimension_numbers<[1], [0], [0], [1], [0, 0, 1, 1], [], []>} : vector<32x16xf32>, vector<16x324xf32>, vector<32x324xf32> -> vector<32x324xf32>
    %15 = arith.addf %10, %14 : vector<32x324xf32>
    %c0_13 = arith.constant 0 : index
    %c0_14 = arith.constant 0 : index
    %c3 = arith.constant 3 : index
    %16 = vector.load %arg1[%c0_13, %c0_14, %c3] : memref<1x16x400xf32, #tpu.memory_space<vmem>>, vector<1x16x324xf32>
    %17 = vector.shape_cast %16 : vector<1x16x324xf32> to vector<16x324xf32>
    %c0_15 = arith.constant 0 : index
    %c48 = arith.constant 48 : index
    %18 = vector.load %arg2[%c0_15, %c48] : memref<32x400xf32, #tpu.memory_space<vmem>>, vector<32x16xf32>
    %cst_16 = arith.constant dense<0.000000e+00> : vector<32x324xf32>
    %19 = tpu.matmul %18, %17, %cst_16 {dimension_numbers = #tpu.dot_dimension_numbers<[1], [0], [0], [1], [0, 0, 1, 1], [], []>} : vector<32x16xf32>, vector<16x324xf32>, vector<32x324xf32> -> vector<32x324xf32>
    %20 = arith.addf %15, %19 : vector<32x324xf32>
    %c0_17 = arith.constant 0 : index
    %c0_18 = arith.constant 0 : index
    %c4 = arith.constant 4 : index
    %21 = vector.load %arg1[%c0_17, %c0_18, %c4] : memref<1x16x400xf32, #tpu.memory_space<vmem>>, vector<1x16x324xf32>
    %22 = vector.shape_cast %21 : vector<1x16x324xf32> to vector<16x324xf32>
    %c0_19 = arith.constant 0 : index
    %c64 = arith.constant 64 : index
    %23 = vector.load %arg2[%c0_19, %c64] : memref<32x400xf32, #tpu.memory_space<vmem>>, vector<32x16xf32>
    %cst_20 = arith.constant dense<0.000000e+00> : vector<32x324xf32>
    %24 = tpu.matmul %23, %22, %cst_20 {dimension_numbers = #tpu.dot_dimension_numbers<[1], [0], [0], [1], [0, 0, 1, 1], [], []>} : vector<32x16xf32>, vector<16x324xf32>, vector<32x324xf32> -> vector<32x324xf32>
    %25 = arith.addf %20, %24 : vector<32x324xf32>
    %c0_21 = arith.constant 0 : index
    %c0_22 = arith.constant 0 : index
    %c18 = arith.constant 18 : index
    %26 = vector.load %arg1[%c0_21, %c0_22, %c18] : memref<1x16x400xf32, #tpu.memory_space<vmem>>, vector<1x16x324xf32>
    %27 = vector.shape_cast %26 : vector<1x16x324xf32> to vector<16x324xf32>
    %c0_23 = arith.constant 0 : index
    %c80 = arith.constant 80 : index
    %28 = vector.load %arg2[%c0_23, %c80] : memref<32x400xf32, #tpu.memory_space<vmem>>, vector<32x16xf32>
    %cst_24 = arith.constant dense<0.000000e+00> : vector<32x324xf32>
    %29 = tpu.matmul %28, %27, %cst_24 {dimension_numbers = #tpu.dot_dimension_numbers<[1], [0], [0], [1], [0, 0, 1, 1], [], []>} : vector<32x16xf32>, vector<16x324xf32>, vector<32x324xf32> -> vector<32x324xf32>
    %30 = arith.addf %25, %29 : vector<32x324xf32>
    %c0_25 = arith.constant 0 : index
    %c0_26 = arith.constant 0 : index
    %c19 = arith.constant 19 : index
    %31 = vector.load %arg1[%c0_25, %c0_26, %c19] : memref<1x16x400xf32, #tpu.memory_space<vmem>>, vector<1x16x324xf32>
    %32 = vector.shape_cast %31 : vector<1x16x324xf32> to vector<16x324xf32>
    %c0_27 = arith.constant 0 : index
    %c96 = arith.constant 96 : index
    %33 = vector.load %arg2[%c0_27, %c96] : memref<32x400xf32, #tpu.memory_space<vmem>>, vector<32x16xf32>
    %cst_28 = arith.constant dense<0.000000e+00> : vector<32x324xf32>
    %34 = tpu.matmul %33, %32, %cst_28 {dimension_numbers = #tpu.dot_dimension_numbers<[1], [0], [0], [1], [0, 0, 1, 1], [], []>} : vector<32x16xf32>, vector<16x324xf32>, vector<32x324xf32> -> vector<32x324xf32>
    %35 = arith.addf %30, %34 : vector<32x324xf32>
    %c0_29 = arith.constant 0 : index
    %c0_30 = arith.constant 0 : index
    %c20 = arith.constant 20 : index
    %36 = vector.load %arg1[%c0_29, %c0_30, %c20] : memref<1x16x400xf32, #tpu.memory_space<vmem>>, vector<1x16x324xf32>
    %37 = vector.shape_cast %36 : vector<1x16x324xf32> to vector<16x324xf32>
    %c0_31 = arith.constant 0 : index
    %c112 = arith.constant 112 : index
    %38 = vector.load %arg2[%c0_31, %c112] : memref<32x400xf32, #tpu.memory_space<vmem>>, vector<32x16xf32>
    %cst_32 = arith.constant dense<0.000000e+00> : vector<32x324xf32>
    %39 = tpu.matmul %38, %37, %cst_32 {dimension_numbers = #tpu.dot_dimension_numbers<[1], [0], [0], [1], [0, 0, 1, 1], [], []>} : vector<32x16xf32>, vector<16x324xf32>, vector<32x324xf32> -> vector<32x324xf32>
    %40 = arith.addf %35, %39 : vector<32x324xf32>
    %c0_33 = arith.constant 0 : index
    %c0_34 = arith.constant 0 : index
    %c21 = arith.constant 21 : index
    %41 = vector.load %arg1[%c0_33, %c0_34, %c21] : memref<1x16x400xf32, #tpu.memory_space<vmem>>, vector<1x16x324xf32>
    %42 = vector.shape_cast %41 : vector<1x16x324xf32> to vector<16x324xf32>
    %c0_35 = arith.constant 0 : index
    %c128 = arith.constant 128 : index
    %43 = vector.load %arg2[%c0_35, %c128] : memref<32x400xf32, #tpu.memory_space<vmem>>, vector<32x16xf32>
    %cst_36 = arith.constant dense<0.000000e+00> : vector<32x324xf32>
    %44 = tpu.matmul %43, %42, %cst_36 {dimension_numbers = #tpu.dot_dimension_numbers<[1], [0], [0], [1], [0, 0, 1, 1], [], []>} : vector<32x16xf32>, vector<16x324xf32>, vector<32x324xf32> -> vector<32x324xf32>
    %45 = arith.addf %40, %44 : vector<32x324xf32>
    %c0_37 = arith.constant 0 : index
    %c0_38 = arith.constant 0 : index
    %c22 = arith.constant 22 : index
    %46 = vector.load %arg1[%c0_37, %c0_38, %c22] : memref<1x16x400xf32, #tpu.memory_space<vmem>>, vector<1x16x324xf32>
    %47 = vector.shape_cast %46 : vector<1x16x324xf32> to vector<16x324xf32>
    %c0_39 = arith.constant 0 : index
    %c144 = arith.constant 144 : index
    %48 = vector.load %arg2[%c0_39, %c144] : memref<32x400xf32, #tpu.memory_space<vmem>>, vector<32x16xf32>
    %cst_40 = arith.constant dense<0.000000e+00> : vector<32x324xf32>
    %49 = tpu.matmul %48, %47, %cst_40 {dimension_numbers = #tpu.dot_dimension_numbers<[1], [0], [0], [1], [0, 0, 1, 1], [], []>} : vector<32x16xf32>, vector<16x324xf32>, vector<32x324xf32> -> vector<32x324xf32>
    %50 = arith.addf %45, %49 : vector<32x324xf32>
    %c0_41 = arith.constant 0 : index
    %c0_42 = arith.constant 0 : index
    %c36 = arith.constant 36 : index
    %51 = vector.load %arg1[%c0_41, %c0_42, %c36] : memref<1x16x400xf32, #tpu.memory_space<vmem>>, vector<1x16x324xf32>
    %52 = vector.shape_cast %51 : vector<1x16x324xf32> to vector<16x324xf32>
    %c0_43 = arith.constant 0 : index
    %c160 = arith.constant 160 : index
    %53 = vector.load %arg2[%c0_43, %c160] : memref<32x400xf32, #tpu.memory_space<vmem>>, vector<32x16xf32>
    %cst_44 = arith.constant dense<0.000000e+00> : vector<32x324xf32>
    %54 = tpu.matmul %53, %52, %cst_44 {dimension_numbers = #tpu.dot_dimension_numbers<[1], [0], [0], [1], [0, 0, 1, 1], [], []>} : vector<32x16xf32>, vector<16x324xf32>, vector<32x324xf32> -> vector<32x324xf32>
    %55 = arith.addf %50, %54 : vector<32x324xf32>
    %c0_45 = arith.constant 0 : index
    %c0_46 = arith.constant 0 : index
    %c37 = arith.constant 37 : index
    %56 = vector.load %arg1[%c0_45, %c0_46, %c37] : memref<1x16x400xf32, #tpu.memory_space<vmem>>, vector<1x16x324xf32>
    %57 = vector.shape_cast %56 : vector<1x16x324xf32> to vector<16x324xf32>
    %c0_47 = arith.constant 0 : index
    %c176 = arith.constant 176 : index
    %58 = vector.load %arg2[%c0_47, %c176] : memref<32x400xf32, #tpu.memory_space<vmem>>, vector<32x16xf32>
    %cst_48 = arith.constant dense<0.000000e+00> : vector<32x324xf32>
    %59 = tpu.matmul %58, %57, %cst_48 {dimension_numbers = #tpu.dot_dimension_numbers<[1], [0], [0], [1], [0, 0, 1, 1], [], []>} : vector<32x16xf32>, vector<16x324xf32>, vector<32x324xf32> -> vector<32x324xf32>
    %60 = arith.addf %55, %59 : vector<32x324xf32>
    %c0_49 = arith.constant 0 : index
    %c0_50 = arith.constant 0 : index
    %c38 = arith.constant 38 : index
    %61 = vector.load %arg1[%c0_49, %c0_50, %c38] : memref<1x16x400xf32, #tpu.memory_space<vmem>>, vector<1x16x324xf32>
    %62 = vector.shape_cast %61 : vector<1x16x324xf32> to vector<16x324xf32>
    %c0_51 = arith.constant 0 : index
    %c192 = arith.constant 192 : index
    %63 = vector.load %arg2[%c0_51, %c192] : memref<32x400xf32, #tpu.memory_space<vmem>>, vector<32x16xf32>
    %cst_52 = arith.constant dense<0.000000e+00> : vector<32x324xf32>
    %64 = tpu.matmul %63, %62, %cst_52 {dimension_numbers = #tpu.dot_dimension_numbers<[1], [0], [0], [1], [0, 0, 1, 1], [], []>} : vector<32x16xf32>, vector<16x324xf32>, vector<32x324xf32> -> vector<32x324xf32>
    %65 = arith.addf %60, %64 : vector<32x324xf32>
    %c0_53 = arith.constant 0 : index
    %c0_54 = arith.constant 0 : index
    %c39 = arith.constant 39 : index
    %66 = vector.load %arg1[%c0_53, %c0_54, %c39] : memref<1x16x400xf32, #tpu.memory_space<vmem>>, vector<1x16x324xf32>
    %67 = vector.shape_cast %66 : vector<1x16x324xf32> to vector<16x324xf32>
    %c0_55 = arith.constant 0 : index
    %c208 = arith.constant 208 : index
    %68 = vector.load %arg2[%c0_55, %c208] : memref<32x400xf32, #tpu.memory_space<vmem>>, vector<32x16xf32>
    %cst_56 = arith.constant dense<0.000000e+00> : vector<32x324xf32>
    %69 = tpu.matmul %68, %67, %cst_56 {dimension_numbers = #tpu.dot_dimension_numbers<[1], [0], [0], [1], [0, 0, 1, 1], [], []>} : vector<32x16xf32>, vector<16x324xf32>, vector<32x324xf32> -> vector<32x324xf32>
    %70 = arith.addf %65, %69 : vector<32x324xf32>
    %c0_57 = arith.constant 0 : index
    %c0_58 = arith.constant 0 : index
    %c40 = arith.constant 40 : index
    %71 = vector.load %arg1[%c0_57, %c0_58, %c40] : memref<1x16x400xf32, #tpu.memory_space<vmem>>, vector<1x16x324xf32>
    %72 = vector.shape_cast %71 : vector<1x16x324xf32> to vector<16x324xf32>
    %c0_59 = arith.constant 0 : index
    %c224 = arith.constant 224 : index
    %73 = vector.load %arg2[%c0_59, %c224] : memref<32x400xf32, #tpu.memory_space<vmem>>, vector<32x16xf32>
    %cst_60 = arith.constant dense<0.000000e+00> : vector<32x324xf32>
    %74 = tpu.matmul %73, %72, %cst_60 {dimension_numbers = #tpu.dot_dimension_numbers<[1], [0], [0], [1], [0, 0, 1, 1], [], []>} : vector<32x16xf32>, vector<16x324xf32>, vector<32x324xf32> -> vector<32x324xf32>
    %75 = arith.addf %70, %74 : vector<32x324xf32>
    %c0_61 = arith.constant 0 : index
    %c0_62 = arith.constant 0 : index
    %c54 = arith.constant 54 : index
    %76 = vector.load %arg1[%c0_61, %c0_62, %c54] : memref<1x16x400xf32, #tpu.memory_space<vmem>>, vector<1x16x324xf32>
    %77 = vector.shape_cast %76 : vector<1x16x324xf32> to vector<16x324xf32>
    %c0_63 = arith.constant 0 : index
    %c240 = arith.constant 240 : index
    %78 = vector.load %arg2[%c0_63, %c240] : memref<32x400xf32, #tpu.memory_space<vmem>>, vector<32x16xf32>
    %cst_64 = arith.constant dense<0.000000e+00> : vector<32x324xf32>
    %79 = tpu.matmul %78, %77, %cst_64 {dimension_numbers = #tpu.dot_dimension_numbers<[1], [0], [0], [1], [0, 0, 1, 1], [], []>} : vector<32x16xf32>, vector<16x324xf32>, vector<32x324xf32> -> vector<32x324xf32>
    %80 = arith.addf %75, %79 : vector<32x324xf32>
    %c0_65 = arith.constant 0 : index
    %c0_66 = arith.constant 0 : index
    %c55 = arith.constant 55 : index
    %81 = vector.load %arg1[%c0_65, %c0_66, %c55] : memref<1x16x400xf32, #tpu.memory_space<vmem>>, vector<1x16x324xf32>
    %82 = vector.shape_cast %81 : vector<1x16x324xf32> to vector<16x324xf32>
    %c0_67 = arith.constant 0 : index
    %c256 = arith.constant 256 : index
    %83 = vector.load %arg2[%c0_67, %c256] : memref<32x400xf32, #tpu.memory_space<vmem>>, vector<32x16xf32>
    %cst_68 = arith.constant dense<0.000000e+00> : vector<32x324xf32>
    %84 = tpu.matmul %83, %82, %cst_68 {dimension_numbers = #tpu.dot_dimension_numbers<[1], [0], [0], [1], [0, 0, 1, 1], [], []>} : vector<32x16xf32>, vector<16x324xf32>, vector<32x324xf32> -> vector<32x324xf32>
    %85 = arith.addf %80, %84 : vector<32x324xf32>
    %c0_69 = arith.constant 0 : index
    %c0_70 = arith.constant 0 : index
    %c56 = arith.constant 56 : index
    %86 = vector.load %arg1[%c0_69, %c0_70, %c56] : memref<1x16x400xf32, #tpu.memory_space<vmem>>, vector<1x16x324xf32>
    %87 = vector.shape_cast %86 : vector<1x16x324xf32> to vector<16x324xf32>
    %c0_71 = arith.constant 0 : index
    %c272 = arith.constant 272 : index
    %88 = vector.load %arg2[%c0_71, %c272] : memref<32x400xf32, #tpu.memory_space<vmem>>, vector<32x16xf32>
    %cst_72 = arith.constant dense<0.000000e+00> : vector<32x324xf32>
    %89 = tpu.matmul %88, %87, %cst_72 {dimension_numbers = #tpu.dot_dimension_numbers<[1], [0], [0], [1], [0, 0, 1, 1], [], []>} : vector<32x16xf32>, vector<16x324xf32>, vector<32x324xf32> -> vector<32x324xf32>
    %90 = arith.addf %85, %89 : vector<32x324xf32>
    %c0_73 = arith.constant 0 : index
    %c0_74 = arith.constant 0 : index
    %c57 = arith.constant 57 : index
    %91 = vector.load %arg1[%c0_73, %c0_74, %c57] : memref<1x16x400xf32, #tpu.memory_space<vmem>>, vector<1x16x324xf32>
    %92 = vector.shape_cast %91 : vector<1x16x324xf32> to vector<16x324xf32>
    %c0_75 = arith.constant 0 : index
    %c288 = arith.constant 288 : index
    %93 = vector.load %arg2[%c0_75, %c288] : memref<32x400xf32, #tpu.memory_space<vmem>>, vector<32x16xf32>
    %cst_76 = arith.constant dense<0.000000e+00> : vector<32x324xf32>
    %94 = tpu.matmul %93, %92, %cst_76 {dimension_numbers = #tpu.dot_dimension_numbers<[1], [0], [0], [1], [0, 0, 1, 1], [], []>} : vector<32x16xf32>, vector<16x324xf32>, vector<32x324xf32> -> vector<32x324xf32>
    %95 = arith.addf %90, %94 : vector<32x324xf32>
    %c0_77 = arith.constant 0 : index
    %c0_78 = arith.constant 0 : index
    %c58 = arith.constant 58 : index
    %96 = vector.load %arg1[%c0_77, %c0_78, %c58] : memref<1x16x400xf32, #tpu.memory_space<vmem>>, vector<1x16x324xf32>
    %97 = vector.shape_cast %96 : vector<1x16x324xf32> to vector<16x324xf32>
    %c0_79 = arith.constant 0 : index
    %c304 = arith.constant 304 : index
    %98 = vector.load %arg2[%c0_79, %c304] : memref<32x400xf32, #tpu.memory_space<vmem>>, vector<32x16xf32>
    %cst_80 = arith.constant dense<0.000000e+00> : vector<32x324xf32>
    %99 = tpu.matmul %98, %97, %cst_80 {dimension_numbers = #tpu.dot_dimension_numbers<[1], [0], [0], [1], [0, 0, 1, 1], [], []>} : vector<32x16xf32>, vector<16x324xf32>, vector<32x324xf32> -> vector<32x324xf32>
    %100 = arith.addf %95, %99 : vector<32x324xf32>
    %c0_81 = arith.constant 0 : index
    %c0_82 = arith.constant 0 : index
    %c72 = arith.constant 72 : index
    %101 = vector.load %arg1[%c0_81, %c0_82, %c72] : memref<1x16x400xf32, #tpu.memory_space<vmem>>, vector<1x16x324xf32>
    %102 = vector.shape_cast %101 : vector<1x16x324xf32> to vector<16x324xf32>
    %c0_83 = arith.constant 0 : index
    %c320 = arith.constant 320 : index
    %103 = vector.load %arg2[%c0_83, %c320] : memref<32x400xf32, #tpu.memory_space<vmem>>, vector<32x16xf32>
    %cst_84 = arith.constant dense<0.000000e+00> : vector<32x324xf32>
    %104 = tpu.matmul %103, %102, %cst_84 {dimension_numbers = #tpu.dot_dimension_numbers<[1], [0], [0], [1], [0, 0, 1, 1], [], []>} : vector<32x16xf32>, vector<16x324xf32>, vector<32x324xf32> -> vector<32x324xf32>
    %105 = arith.addf %100, %104 : vector<32x324xf32>
    %c0_85 = arith.constant 0 : index
    %c0_86 = arith.constant 0 : index
    %c73 = arith.constant 73 : index
    %106 = vector.load %arg1[%c0_85, %c0_86, %c73] : memref<1x16x400xf32, #tpu.memory_space<vmem>>, vector<1x16x324xf32>
    %107 = vector.shape_cast %106 : vector<1x16x324xf32> to vector<16x324xf32>
    %c0_87 = arith.constant 0 : index
    %c336 = arith.constant 336 : index
    %108 = vector.load %arg2[%c0_87, %c336] : memref<32x400xf32, #tpu.memory_space<vmem>>, vector<32x16xf32>
    %cst_88 = arith.constant dense<0.000000e+00> : vector<32x324xf32>
    %109 = tpu.matmul %108, %107, %cst_88 {dimension_numbers = #tpu.dot_dimension_numbers<[1], [0], [0], [1], [0, 0, 1, 1], [], []>} : vector<32x16xf32>, vector<16x324xf32>, vector<32x324xf32> -> vector<32x324xf32>
    %110 = arith.addf %105, %109 : vector<32x324xf32>
    %c0_89 = arith.constant 0 : index
    %c0_90 = arith.constant 0 : index
    %c74 = arith.constant 74 : index
    %111 = vector.load %arg1[%c0_89, %c0_90, %c74] : memref<1x16x400xf32, #tpu.memory_space<vmem>>, vector<1x16x324xf32>
    %112 = vector.shape_cast %111 : vector<1x16x324xf32> to vector<16x324xf32>
    %c0_91 = arith.constant 0 : index
    %c352 = arith.constant 352 : index
    %113 = vector.load %arg2[%c0_91, %c352] : memref<32x400xf32, #tpu.memory_space<vmem>>, vector<32x16xf32>
    %cst_92 = arith.constant dense<0.000000e+00> : vector<32x324xf32>
    %114 = tpu.matmul %113, %112, %cst_92 {dimension_numbers = #tpu.dot_dimension_numbers<[1], [0], [0], [1], [0, 0, 1, 1], [], []>} : vector<32x16xf32>, vector<16x324xf32>, vector<32x324xf32> -> vector<32x324xf32>
    %115 = arith.addf %110, %114 : vector<32x324xf32>
    %c0_93 = arith.constant 0 : index
    %c0_94 = arith.constant 0 : index
    %c75 = arith.constant 75 : index
    %116 = vector.load %arg1[%c0_93, %c0_94, %c75] : memref<1x16x400xf32, #tpu.memory_space<vmem>>, vector<1x16x324xf32>
    %117 = vector.shape_cast %116 : vector<1x16x324xf32> to vector<16x324xf32>
    %c0_95 = arith.constant 0 : index
    %c368 = arith.constant 368 : index
    %118 = vector.load %arg2[%c0_95, %c368] : memref<32x400xf32, #tpu.memory_space<vmem>>, vector<32x16xf32>
    %cst_96 = arith.constant dense<0.000000e+00> : vector<32x324xf32>
    %119 = tpu.matmul %118, %117, %cst_96 {dimension_numbers = #tpu.dot_dimension_numbers<[1], [0], [0], [1], [0, 0, 1, 1], [], []>} : vector<32x16xf32>, vector<16x324xf32>, vector<32x324xf32> -> vector<32x324xf32>
    %120 = arith.addf %115, %119 : vector<32x324xf32>
    %c0_97 = arith.constant 0 : index
    %c0_98 = arith.constant 0 : index
    %c76 = arith.constant 76 : index
    %121 = vector.load %arg1[%c0_97, %c0_98, %c76] : memref<1x16x400xf32, #tpu.memory_space<vmem>>, vector<1x16x324xf32>
    %122 = vector.shape_cast %121 : vector<1x16x324xf32> to vector<16x324xf32>
    %c0_99 = arith.constant 0 : index
    %c384 = arith.constant 384 : index
    %123 = vector.load %arg2[%c0_99, %c384] : memref<32x400xf32, #tpu.memory_space<vmem>>, vector<32x16xf32>
    %cst_100 = arith.constant dense<0.000000e+00> : vector<32x324xf32>
    %124 = tpu.matmul %123, %122, %cst_100 {dimension_numbers = #tpu.dot_dimension_numbers<[1], [0], [0], [1], [0, 0, 1, 1], [], []>} : vector<32x16xf32>, vector<16x324xf32>, vector<32x324xf32> -> vector<32x324xf32>
    %125 = arith.addf %120, %124 : vector<32x324xf32>
    %c0_101 = arith.constant 0 : index
    %c0_102 = arith.constant 0 : index
    %126 = vector.load %arg3[%c0_101, %c0_102] : memref<32x1xf32, #tpu.memory_space<vmem>>, vector<32x1xf32>
    %127 = vector.broadcast %126 : vector<32x1xf32> to vector<32x324xf32>
    %128 = arith.addf %125, %127 : vector<32x324xf32>
    %cst_103 = arith.constant 0.000000e+00 : f32
    %129 = vector.broadcast %cst_103 : f32 to vector<32x324xf32>
    %130 = arith.maximumf %128, %129 : vector<32x324xf32>
    %c0_104 = arith.constant 0 : index
    %c0_105 = arith.constant 0 : index
    %131 = vector.load %arg6[%c0_104, %c0_105] : memref<32x344xf32, #tpu.memory_space<vmem>>, vector<32x324xf32>
    tpu.vector_store %arg6[%c0_104, %c0_105], %130 {strides = array<i32>} : memref<32x344xf32, #tpu.memory_space<vmem>>, vector<32x324xf32>,
    %cst_106 = arith.constant 0.000000e+00 : f32
    %132 = vector.broadcast %cst_106 : f32 to vector<32x20xf32>
    %c0_107 = arith.constant 0 : index
    %c324 = arith.constant 324 : index
    %133 = vector.load %arg6[%c0_107, %c324] : memref<32x344xf32, #tpu.memory_space<vmem>>, vector<32x20xf32>
    tpu.vector_store %arg6[%c0_107, %c324], %132 {strides = array<i32>} : memref<32x344xf32, #tpu.memory_space<vmem>>, vector<32x20xf32>,
    %c0_108 = arith.constant 0 : index
    %c0_109 = arith.constant 0 : index
    %134 = vector.load %arg6[%c0_108, %c0_109] : memref<32x344xf32, #tpu.memory_space<vmem>>, vector<32x324xf32>
    %c0_110 = arith.constant 0 : index
    %c1_111 = arith.constant 1 : index
    %135 = vector.load %arg6[%c0_110, %c1_111] : memref<32x344xf32, #tpu.memory_space<vmem>>, vector<32x324xf32>
    %136 = arith.maximumf %134, %135 : vector<32x324xf32>
    %c0_112 = arith.constant 0 : index
    %c18_113 = arith.constant 18 : index
    %137 = vector.load %arg6[%c0_112, %c18_113] : memref<32x344xf32, #tpu.memory_space<vmem>>, vector<32x324xf32>
    %c0_114 = arith.constant 0 : index
    %c19_115 = arith.constant 19 : index
    %138 = vector.load %arg6[%c0_114, %c19_115] : memref<32x344xf32, #tpu.memory_space<vmem>>, vector<32x324xf32>
    %139 = arith.maximumf %137, %138 : vector<32x324xf32>
    %140 = arith.maximumf %136, %139 : vector<32x324xf32>
    %c0_116 = arith.constant 0 : index
    %c0_117 = arith.constant 0 : index
    %141 = vector.load %arg4[%c0_116, %c0_117] : memref<324x49xf32, #tpu.memory_space<vmem>>, vector<324x49xf32>
    %cst_118 = arith.constant dense<0.000000e+00> : vector<32x49xf32>
    %142 = tpu.matmul %140, %141, %cst_118 {dimension_numbers = #tpu.dot_dimension_numbers<[1], [0], [0], [1], [0, 0, 1, 1], [], []>} : vector<32x324xf32>, vector<324x49xf32>, vector<32x49xf32> -> vector<32x49xf32>
    %c0_119 = arith.constant 0 : index
    %c0_120 = arith.constant 0 : index
    %c0_121 = arith.constant 0 : index
    %143 = vector.load %arg5[%c0_119, %c0_120, %c0_121] : memref<1x32x49xf32, #tpu.memory_space<vmem>>, vector<1x32x49xf32>
    %144 = vector.shape_cast %143 : vector<1x32x49xf32> to vector<32x49xf32>
    %145 = vector.shape_cast %142 : vector<32x49xf32> to vector<1x32x49xf32>
    tpu.vector_store %arg5[%c0_119, %c0_120, %c0_121], %145 {strides = array<i32>} : memref<1x32x49xf32, #tpu.memory_space<vmem>>, vector<1x32x49xf32>,
    return
  }
  func.func @transform_0(%arg0: i32) -> (i32, i32, i32) {
    %c0_i32 = arith.constant 0 : i32
    %c0_i32_0 = arith.constant 0 : i32
    %c0_i32_1 = arith.constant 0 : i32
    return %arg0, %c0_i32, %c0_i32_0 : i32, i32, i32
  }
  func.func @transform_1(%arg0: i32) -> (i32, i32) {
    %c0_i32 = arith.constant 0 : i32
    %c0_i32_0 = arith.constant 0 : i32
    %c0_i32_1 = arith.constant 0 : i32
    return %c0_i32, %c0_i32_0 : i32, i32
  }
  func.func @transform_2(%arg0: i32) -> (i32, i32) {
    %c0_i32 = arith.constant 0 : i32
    %c0_i32_0 = arith.constant 0 : i32
    %c0_i32_1 = arith.constant 0 : i32
    return %c0_i32, %c0_i32_0 : i32, i32
  }
  func.func @transform_3(%arg0: i32) -> (i32, i32) {
    %c0_i32 = arith.constant 0 : i32
    %c0_i32_0 = arith.constant 0 : i32
    %c0_i32_1 = arith.constant 0 : i32
    return %c0_i32, %c0_i32_0 : i32, i32
  }
  func.func @transform_4(%arg0: i32) -> (i32, i32, i32) {
    %c0_i32 = arith.constant 0 : i32
    %c0_i32_0 = arith.constant 0 : i32
    %c0_i32_1 = arith.constant 0 : i32
    return %arg0, %c0_i32, %c0_i32_0 : i32, i32, i32
  }
}

module attributes {stable_mosaic.version = 11 : i64} {
  func.func @_linear_kernel(%arg0: memref<2x1568xf32, #tpu.memory_space<vmem>>, %arg1: memref<1568x10xf32, #tpu.memory_space<vmem>>, %arg2: memref<1x10xf32, #tpu.memory_space<vmem>>, %arg3: memref<2x10xf32, #tpu.memory_space<vmem>>) attributes {dimension_semantics = [], scalar_prefetch = 0 : i64, scratch_operands = 0 : i64, tpu.core_type = #tpu.core_type<tc>} {
    %c0 = arith.constant 0 : index
    %c0_0 = arith.constant 0 : index
    %0 = vector.load %arg0[%c0, %c0_0] : memref<2x1568xf32, #tpu.memory_space<vmem>>, vector<2x1568xf32>
    %c0_1 = arith.constant 0 : index
    %c0_2 = arith.constant 0 : index
    %1 = vector.load %arg1[%c0_1, %c0_2] : memref<1568x10xf32, #tpu.memory_space<vmem>>, vector<1568x10xf32>
    %cst = arith.constant dense<0.000000e+00> : vector<2x10xf32>
    %2 = tpu.matmul %0, %1, %cst {dimension_numbers = #tpu.dot_dimension_numbers<[1], [0], [0], [1], [0, 0, 1, 1], [], []>} : vector<2x1568xf32>, vector<1568x10xf32>, vector<2x10xf32> -> vector<2x10xf32>
    %c0_3 = arith.constant 0 : index
    %c0_4 = arith.constant 0 : index
    %3 = vector.load %arg2[%c0_3, %c0_4] : memref<1x10xf32, #tpu.memory_space<vmem>>, vector<1x10xf32>
    %4 = vector.broadcast %3 : vector<1x10xf32> to vector<2x10xf32>
    %5 = arith.addf %2, %4 : vector<2x10xf32>
    %c0_5 = arith.constant 0 : index
    %c0_6 = arith.constant 0 : index
    %6 = vector.load %arg3[%c0_5, %c0_6] : memref<2x10xf32, #tpu.memory_space<vmem>>, vector<2x10xf32>
    tpu.vector_store %arg3[%c0_5, %c0_6], %5 {strides = array<i32>} : memref<2x10xf32, #tpu.memory_space<vmem>>, vector<2x10xf32>,
    return
  }
}

</mosaic_0001>

<bundles_post_ra>
// kernel: cnn_forward.5
= control target key start
LH: loop header
LB: loop body
LE: loop exit
PB: predicated region body
PF: predicated region fallthrough
CT: control target
= control target key end

     0   :  { %v1264_v43 = vmov 1983009808   ;;  %v230_v45 = vlaneseq  ;;  %s1932_s0 = inlined_call_operand.vmem [shape: f32[2,1568], index: 0, kind: input, shape index: {}]   ;;  %s1933_s1 = inlined_call_operand.vmem [shape: f32[1568,10], index: 1, kind: input, shape index: {}]   ;;  %s1934_s2 = inlined_call_operand.vmem [shape: f32[1,10], index: 2, kind: input, shape index: {}]   ;;  %s1935_s3 = inlined_call_operand.hbm [shape: f32[2,10], index: 3, kind: output, shape index: {}]  }
   0x1   :  { %v35_v0 = vld [vmem:[%s1933_s1 + $0x80] sm:$0xff]  ;;  %v36_v1 = vld [vmem:[%s1933_s1 + $0x88] sm:$0xff]  ;;  %v37_v11 = vld [vmem:[%s1933_s1 + $0x90] sm:$0xff]  ;;  %v228_v44 = vunpack.c.l.s4 %v1264_v43 }
   0x2   :  { %v19_v2 = vld [vmem:[%s1933_s1] sm:$0xff]  ;;  %v1034_v3 = vpack.c.bf16 %v36_v1, %v35_v0  ;;  %v20_v4 = vld [vmem:[%s1933_s1 + $0x8] sm:$0xff]  ;;  %v38_v13 = vld [vmem:[%s1933_s1 + $0x98] sm:$0xff]  ;;  %v231_v60 = vshrl.u32 %v230_v45, 7 }
   0x3   :  { %v67_v5 = vld [vmem:[%s1933_s1 + $0x180] sm:$0xff]  ;;  %v68_v6 = vld [vmem:[%s1933_s1 + $0x188] sm:$0xff]  ;;  %v1036_v7 = vpack.c.bf16 %v20_v4, %v19_v2  ;;  %v21_v14 = vld [vmem:[%s1933_s1 + $0x10] sm:$0xff]  ;;  %v1038_v16 = vpack.c.bf16 %v38_v13, %v37_v11  ;;  %v229_v59 = vunpack.c.0.s8 %v228_v44 }
   0x4   :  { %v1066_v8 = vpack.c.bf16 %v68_v6, %v67_v5  ;;  %v51_v9 = vld [vmem:[%s1933_s1 + $0x100] sm:$0xff]  ;;  %v52_v10 = vld [vmem:[%s1933_s1 + $0x108] sm:$0xff]  ;;  %1035 = vmatprep.subr.bf16.mxu0 %v1034_v3  ;;  %v22_v15 = vld [vmem:[%s1933_s1 + $0x18] sm:$0xff] }
   0x5   :  { %v1068_v12 = vpack.c.bf16 %v52_v10, %v51_v9  ;;  %1037 = vmatpush3.bf16.msra.mxu0 %v1036_v7  ;;  %v1040_v17 = vpack.c.bf16 %v22_v15, %v21_v14  ;;  %v69_v18 = vld [vmem:[%s1933_s1 + $0x190] sm:$0xff]  ;;  %v70_v19 = vld [vmem:[%s1933_s1 + $0x198] sm:$0xff]  ;;  %v39_v23 = vld [vmem:[%s1933_s1 + $0xa0] sm:$0xff]  ;;  %v1433_v10 = vsub.s32 %v229_v59, %v231_v60 }
   0x6   :  { %1067 = vmatprep.subr.bf16.mxu1 %v1066_v8  ;;  %v53_v20 = vld [vmem:[%s1933_s1 + $0x110] sm:$0xff]  ;;  %v1070_v21 = vpack.c.bf16 %v70_v19, %v69_v18  ;;  %v54_v22 = vld [vmem:[%s1933_s1 + $0x118] sm:$0xff]  ;;  %v40_v24 = vld [vmem:[%s1933_s1 + $0xa8] sm:$0xff]  ;;  %1039 = vmatprep.subr.bf16.mxu0 %v1038_v16 }
   0x7   :  { %1069 = vmatpush3.bf16.msra.mxu1 %v1068_v12  ;;  %v1072_v25 = vpack.c.bf16 %v54_v22, %v53_v20  ;;  %v1042_v26 = vpack.c.bf16 %v40_v24, %v39_v23  ;;  %v23_v27 = vld [vmem:[%s1933_s1 + $0x20] sm:$0xff]  ;;  %v24_v28 = vld [vmem:[%s1933_s1 + $0x28] sm:$0xff]  ;;  %v41_v35 = vld [vmem:[%s1933_s1 + $0xb0] sm:$0xff] }
   0x8   :  { %v71_v29 = vld [vmem:[%s1933_s1 + $0x1a0] sm:$0xff]  ;;  %1071 = vmatprep.subr.bf16.mxu1 %v1070_v21  ;;  %v72_v30 = vld [vmem:[%s1933_s1 + $0x1a8] sm:$0xff]  ;;  %v1044_v33 = vpack.c.bf16 %v24_v28, %v23_v27  ;;  %v42_v36 = vld [vmem:[%s1933_s1 + $0xb8] sm:$0xff] }
   0x9   :  { %v55_v31 = vld [vmem:[%s1933_s1 + $0x120] sm:$0xff]  ;;  %v56_v32 = vld [vmem:[%s1933_s1 + $0x128] sm:$0xff]  ;;  %1041 = vmatpush3.bf16.msra.mxu0 %v1040_v17  ;;  %v1074_v34 = vpack.c.bf16 %v72_v30, %v71_v29  ;;  %v25_v37 = vld [vmem:[%s1933_s1 + $0x30] sm:$0xff]  ;;  %v1046_v39 = vpack.c.bf16 %v42_v36, %v41_v35 }
   0xa   :  { %1043 = vmatprep.subr.bf16.mxu0 %v1042_v26  ;;  %v1076_v38 = vpack.c.bf16 %v56_v32, %v55_v31  ;;  %v26_v40 = vld [vmem:[%s1933_s1 + $0x38] sm:$0xff]  ;;  %v73_v41 = vld [vmem:[%s1933_s1 + $0x1b0] sm:$0xff]  ;;  %v43_v49 = vld [vmem:[%s1933_s1 + $0xc0] sm:$0xff] }
   0xb   :  { %1073 = vmatpush3.bf16.msra.mxu1 %v1072_v25  ;;  %v74_v42 = vld [vmem:[%s1933_s1 + $0x1b8] sm:$0xff]  ;;  %v57_v47 = vld [vmem:[%s1933_s1 + $0x130] sm:$0xff]  ;;  %v44_v50 = vld [vmem:[%s1933_s1 + $0xc8] sm:$0xff]  ;;  %v1048_v51 = vpack.c.bf16 %v26_v40, %v25_v37 }
   0xc   :  { %1075 = vmatprep.subr.bf16.mxu1 %v1074_v34  ;;  %v1078_v46 = vpack.c.bf16 %v74_v42, %v73_v41  ;;  %v58_v48 = vld [vmem:[%s1933_s1 + $0x138] sm:$0xff]  ;;  %v75_v52 = vld [vmem:[%s1933_s1 + $0x1c0] sm:$0xff]  ;;  %v76_v53 = vld [vmem:[%s1933_s1 + $0x1c8] sm:$0xff]  ;;  %v1050_v55 = vpack.c.bf16 %v44_v50, %v43_v49 }
   0xd   :  { %1045 = vmatpush3.bf16.msra.mxu0 %v1044_v33  ;;  %v1080_v54 = vpack.c.bf16 %v58_v48, %v57_v47  ;;  %v27_v56 = vld [vmem:[%s1933_s1 + $0x40] sm:$0xff]  ;;  %v28_v57 = vld [vmem:[%s1933_s1 + $0x48] sm:$0xff]  ;;  %v1082_v61 = vpack.c.bf16 %v76_v53, %v75_v52  ;;  %v45_v63 = vld [vmem:[%s1933_s1 + $0xd0] sm:$0xff] }
   0xe   :  { %1047 = vmatprep.subr.bf16.mxu0 %v1046_v39  ;;  %v59_v58 = vld [vmem:[%s1933_s1 + $0x140] sm:$0xff]  ;;  %v60_v62 = vld [vmem:[%s1933_s1 + $0x148] sm:$0xff]  ;;  %v46_v0 = vld [vmem:[%s1933_s1 + $0xd8] sm:$0xff]  ;;  %v1052_v3 = vpack.c.bf16 %v28_v57, %v27_v56 }
   0xf   :  { %1077 = vmatpush3.bf16.msra.mxu1 %v1076_v38  ;;  %v77_v1 = vld [vmem:[%s1933_s1 + $0x1d0] sm:$0xff]  ;;  %v78_v2 = vld [vmem:[%s1933_s1 + $0x1d8] sm:$0xff]  ;;  %v1084_v5 = vpack.c.bf16 %v60_v62, %v59_v58  ;;  %v1054_v6 = vpack.c.bf16 %v46_v0, %v45_v63  ;;  %v47_v12 = vld [vmem:[%s1933_s1 + $0xe0] sm:$0xff] }
  0x10   :  { %1079 = vmatprep.subr.bf16.mxu1 %v1078_v46  ;;  %v29_v4 = vld [vmem:[%s1933_s1 + $0x50] sm:$0xff]  ;;  %v30_v7 = vld [vmem:[%s1933_s1 + $0x58] sm:$0xff]  ;;  %v1086_v11 = vpack.c.bf16 %v78_v2, %v77_v1  ;;  %v48_v13 = vld [vmem:[%s1933_s1 + $0xe8] sm:$0xff] }
  0x11   :  { %1049 = vmatpush3.bf16.msra.mxu0 %v1048_v51  ;;  %v61_v8 = vld [vmem:[%s1933_s1 + $0x150] sm:$0xff]  ;;  %v62_v9 = vld [vmem:[%s1933_s1 + $0x158] sm:$0xff]  ;;  %v79_v14 = vld [vmem:[%s1933_s1 + $0x1e0] sm:$0xff]  ;;  %v1056_v16 = vpack.c.bf16 %v30_v7, %v29_v4  ;;  %v1058_v19 = vpack.c.bf16 %v48_v13, %v47_v12 }
  0x12   :  { %1051 = vmatprep.subr.bf16.mxu0 %v1050_v55  ;;  %v80_v15 = vld [vmem:[%s1933_s1 + $0x1e8] sm:$0xff]  ;;  %v1088_v17 = vpack.c.bf16 %v62_v9, %v61_v8  ;;  %v15_v18 = vld [vmem:[%s1932_s0] sm:$0xff]  ;;  %v49_v27 = vld [vmem:[%s1933_s1 + $0xf0] sm:$0xff] }
  0x13   :  { %1081 = vmatpush3.bf16.msra.mxu1 %v1080_v54  ;;  %v31_v20 = vld [vmem:[%s1933_s1 + $0x60] sm:$0xff]  ;;  %v32_v21 = vld [vmem:[%s1933_s1 + $0x68] sm:$0xff]  ;;  %v233_v23 = vrot.slane %v15_v18, %v1433_v10  ;;  %v226_v24 = vcombine.high %v15_v18, %v15_v18  ;;  %v1090_v25 = vpack.c.bf16 %v80_v15, %v79_v14  ;;  %v50_v28 = vld [vmem:[%s1933_s1 + $0xf8] sm:$0xff] }
  0x14   :  { %1083 = vmatprep.subr.bf16.mxu1 %v1082_v61  ;;  %v63_v22 = vld [vmem:[%s1933_s1 + $0x160] sm:$0xff]  ;;  %v64_v26 = vld [vmem:[%s1933_s1 + $0x168] sm:$0xff]  ;;  %v81_v29 = vld [vmem:[%s1933_s1 + $0x1f0] sm:$0xff]  ;;  %v1060_v33 = vpack.c.bf16 %v32_v21, %v31_v20  ;;  %v1062_v35 = vpack.c.bf16 %v50_v28, %v49_v27 }
  0x15   :  { %1053 = vmatpush3.bf16.msra.mxu0 %v1052_v3  ;;  %v82_v30 = vld [vmem:[%s1933_s1 + $0x1f8] sm:$0xff]  ;;  %v241_v31 = vcombine.high %v233_v23, %v233_v23  ;;  %v240_v32 = vrot.slane %v226_v24, %v1433_v10  ;;  %v1092_v34 = vpack.c.bf16 %v64_v26, %v63_v22  ;;  %v33_v36 = vld [vmem:[%s1933_s1 + $0x70] sm:$0xff]  ;;  %v99_v42 = vld [vmem:[%s1933_s1 + $0x280] sm:$0xff] }
  0x16   :  { %1055 = vmatprep.subr.bf16.mxu0 %v1054_v6  ;;  %v34_v37 = vld [vmem:[%s1933_s1 + $0x78] sm:$0xff]  ;;  %v65_v38 = vld [vmem:[%s1933_s1 + $0x170] sm:$0xff]  ;;  %v1094_v40 = vpack.c.bf16 %v82_v30, %v81_v29  ;;  %v100_v43 = vld [vmem:[%s1933_s1 + $0x288] sm:$0xff] }
  0x17   :  { %1085 = vmatpush3.bf16.msra.mxu1 %v1084_v5  ;;  %v242_v39 = vcombine.high %v240_v32, %v240_v32  ;;  %363 = vmatprep.mubr.f32.mxu0 %v241_v31  ;;  %v66_v41 = vld [vmem:[%s1933_s1 + $0x178] sm:$0xff]  ;;  %v131_v44 = vld [vmem:[%s1933_s1 + $0x380] sm:$0xff]  ;;  %v132_v45 = vld [vmem:[%s1933_s1 + $0x388] sm:$0xff]  ;;  %v1064_v46 = vpack.c.bf16 %v34_v37, %v33_v36  ;;  %v1098_v48 = vpack.c.bf16 %v100_v43, %v99_v42 }
  0x18   :  { %1087 = vmatprep.subr.bf16.mxu1 %v1086_v11  ;;  %v1096_v47 = vpack.c.bf16 %v66_v41, %v65_v38  ;;  %v83_v49 = vld [vmem:[%s1933_s1 + $0x200] sm:$0xff]  ;;  %v84_v50 = vld [vmem:[%s1933_s1 + $0x208] sm:$0xff]  ;;  %v1130_v52 = vpack.c.bf16 %v132_v45, %v131_v44  ;;  %v101_v54 = vld [vmem:[%s1933_s1 + $0x290] sm:$0xff] }
  0x19   :  { %1057 = vmatpush3.bf16.msra.mxu0 %v1056_v16  ;;  %433 = vmatprep.mubr.f32.mxu1 %v242_v39  ;;  %v115_v51 = vld [vmem:[%s1933_s1 + $0x300] sm:$0xff]  ;;  %v116_v53 = vld [vmem:[%s1933_s1 + $0x308] sm:$0xff]  ;;  %v102_v55 = vld [vmem:[%s1933_s1 + $0x298] sm:$0xff]  ;;  %v1100_v58 = vpack.c.bf16 %v84_v50, %v83_v49 }
  0x1a   :  { %1059 = vmatprep.subr.bf16.mxu0 %v1058_v19  ;;  %v133_v56 = vld [vmem:[%s1933_s1 + $0x390] sm:$0xff]  ;;  %v134_v57 = vld [vmem:[%s1933_s1 + $0x398] sm:$0xff]  ;;  %v1132_v59 = vpack.c.bf16 %v116_v53, %v115_v51  ;;  %v1102_v60 = vpack.c.bf16 %v102_v55, %v101_v54  ;;  %v103_v2 = vld [vmem:[%s1933_s1 + $0x2a0] sm:$0xff] }
  0x1b   :  { %1089 = vmatpush3.bf16.msra.mxu1 %v1088_v17  ;;  %v85_v61 = vld [vmem:[%s1933_s1 + $0x210] sm:$0xff]  ;;  %v86_v62 = vld [vmem:[%s1933_s1 + $0x218] sm:$0xff]  ;;  %v1134_v0 = vpack.c.bf16 %v134_v57, %v133_v56  ;;  %v104_v3 = vld [vmem:[%s1933_s1 + $0x2a8] sm:$0xff] }
  0x1c   :  { %1091 = vmatprep.subr.bf16.mxu1 %v1090_v25  ;;  %v117_v63 = vld [vmem:[%s1933_s1 + $0x310] sm:$0xff]  ;;  %v118_v1 = vld [vmem:[%s1933_s1 + $0x318] sm:$0xff]  ;;  %v135_v4 = vld [vmem:[%s1933_s1 + $0x3a0] sm:$0xff]  ;;  %v1104_v6 = vpack.c.bf16 %v86_v62, %v85_v61  ;;  %v1106_v8 = vpack.c.bf16 %v104_v3, %v103_v2 }
  0x1d   :  { %1061 = vmatpush3.bf16.msra.mxu0 %v1060_v33  ;;  %v136_v5 = vld [vmem:[%s1933_s1 + $0x3a8] sm:$0xff]  ;;  %v1136_v7 = vpack.c.bf16 %v118_v1, %v117_v63  ;;  %v87_v9 = vld [vmem:[%s1933_s1 + $0x220] sm:$0xff]  ;;  %v105_v15 = vld [vmem:[%s1933_s1 + $0x2b0] sm:$0xff] }
  0x1e   :  { %1063 = vmatprep.subr.bf16.mxu0 %v1062_v35  ;;  %v88_v11 = vld [vmem:[%s1933_s1 + $0x228] sm:$0xff]  ;;  %v119_v12 = vld [vmem:[%s1933_s1 + $0x320] sm:$0xff]  ;;  %v1138_v13 = vpack.c.bf16 %v136_v5, %v135_v4  ;;  %v106_v16 = vld [vmem:[%s1933_s1 + $0x2b8] sm:$0xff] }
  0x1f   :  { %1093 = vmatpush3.bf16.msra.mxu1 %v1092_v34  ;;  %v120_v14 = vld [vmem:[%s1933_s1 + $0x328] sm:$0xff]  ;;  %v137_v17 = vld [vmem:[%s1933_s1 + $0x3b0] sm:$0xff]  ;;  %v138_v18 = vld [vmem:[%s1933_s1 + $0x3b8] sm:$0xff]  ;;  %v1108_v19 = vpack.c.bf16 %v88_v11, %v87_v9  ;;  %v1110_v22 = vpack.c.bf16 %v106_v16, %v105_v15 }
  0x20   :  { %1095 = vmatprep.subr.bf16.mxu1 %v1094_v40  ;;  %v89_v20 = vld [vmem:[%s1933_s1 + $0x230] sm:$0xff]  ;;  %v1140_v21 = vpack.c.bf16 %v120_v14, %v119_v12  ;;  %v122_v25 = vld [vmem:[%s1933_s1 + $0x338] sm:$0xff]  ;;  %v1142_v26 = vpack.c.bf16 %v138_v18, %v137_v17  ;;  %v107_v27 = vld [vmem:[%s1933_s1 + $0x2c0] sm:$0xff] }
  0x21   :  { %1065 = vmatpush3.bf16.msra.mxu0 %v1064_v46  ;;  %v121_v24 = vld [vmem:[%s1933_s1 + $0x330] sm:$0xff]  ;;  %v108_v28 = vld [vmem:[%s1933_s1 + $0x2c8] sm:$0xff]  ;;  %v139_v30 = vld [vmem:[%s1933_s1 + $0x3c0] sm:$0xff] }
  0x22   :  { %1099 = vmatprep.subr.bf16.mxu0 %v1098_v48  ;;  %v16_v29 = vld [vmem:[%s1932_s0 + $0x8] sm:$0xff]  ;;  %v1144_v35 = vpack.c.bf16 %v122_v25, %v121_v24  ;;  %v1114_v36 = vpack.c.bf16 %v108_v28, %v107_v27  ;;  %v91_v37 = vld [vmem:[%s1933_s1 + $0x240] sm:$0xff]  ;;  %v109_v44 = vld [vmem:[%s1933_s1 + $0x2d0] sm:$0xff] }
  0x23   :  { %1097 = vmatpush3.bf16.msra.mxu1 %v1096_v47  ;;  %v140_v31 = vld [vmem:[%s1933_s1 + $0x3c8] sm:$0xff]  ;;  %v243_v33 = vcombine.high %v16_v29, %v16_v29  ;;  %v123_v39 = vld [vmem:[%s1933_s1 + $0x340] sm:$0xff]  ;;  %v110_v45 = vld [vmem:[%s1933_s1 + $0x2d8] sm:$0xff] }
  0x24   :  { %1131 = vmatprep.subr.bf16.mxu1 %v1130_v52  ;;  %364 = vmatmul.mubr.f32.vlgmr.msra.gmra.mrb[0].mxu0 %v233_v23  ;;  %v90_v23 = vld [vmem:[%s1933_s1 + $0x238] sm:$0xff]  ;;  %v92_v38 = vld [vmem:[%s1933_s1 + $0x248] sm:$0xff]  ;;  %v1146_v42 = vpack.c.bf16 %v140_v31, %v139_v30  ;;  %v141_v46 = vld [vmem:[%s1933_s1 + $0x3d0] sm:$0xff]  ;;  %v1118_v51 = vpack.c.bf16 %v110_v45, %v109_v44 }
  0x25   :  { %1101 = vmatpush3.bf16.msra.mxu0 %v1100_v58  ;;  %v1112_v34 = vpack.c.bf16 %v90_v23, %v89_v20  ;;  %v1614_v41 = vrot.slane %v243_v33, %v1433_v10  ;;  %v124_v43 = vld [vmem:[%s1933_s1 + $0x348] sm:$0xff]  ;;  %v142_v47 = vld [vmem:[%s1933_s1 + $0x3d8] sm:$0xff]  ;;  %v1116_v49 = vpack.c.bf16 %v92_v38, %v91_v37  ;;  %v93_v52 = vld [vmem:[%s1933_s1 + $0x250] sm:$0xff] }
  0x26   :  { %434 = vmatmul.mubr.f32.vlgmr.msra.gmra.mrb[0].mxu1 %v240_v32  ;;  %1103 = vmatprep.subr.bf16.mxu0 %v1102_v60  ;;  %v1600_v32 = vrot.slane %v16_v29, %v1433_v10  ;;  %v1148_v50 = vpack.c.bf16 %v124_v43, %v123_v39  ;;  %v94_v53 = vld [vmem:[%s1933_s1 + $0x258] sm:$0xff]  ;;  %v125_v54 = vld [vmem:[%s1933_s1 + $0x350] sm:$0xff]  ;;  %v1150_v55 = vpack.c.bf16 %v142_v47, %v141_v46  ;;  %v111_v57 = vld [vmem:[%s1933_s1 + $0x2e0] sm:$0xff] }
  0x27   :  { %1133 = vmatpush3.bf16.msra.mxu1 %v1132_v59  ;;  %v259_v48 = vcombine.high %v1614_v41, %v1614_v41  ;;  %v126_v56 = vld [vmem:[%s1933_s1 + $0x358] sm:$0xff]  ;;  %v112_v58 = vld [vmem:[%s1933_s1 + $0x2e8] sm:$0xff]  ;;  %v143_v59 = vld [vmem:[%s1933_s1 + $0x3e0] sm:$0xff]  ;;  %v1120_v61 = vpack.c.bf16 %v94_v53, %v93_v52 }
  0x28   :  { %1135 = vmatprep.subr.bf16.mxu1 %v1134_v0  ;;  %v258_v40 = vcombine.high %v1600_v32, %v1600_v32  ;;  %v144_v60 = vld [vmem:[%s1933_s1 + $0x3e8] sm:$0xff]  ;;  %v1152_v62 = vpack.c.bf16 %v126_v56, %v125_v54  ;;  %v1122_v63 = vpack.c.bf16 %v112_v58, %v111_v57  ;;  %v95_v0 = vld [vmem:[%s1933_s1 + $0x260] sm:$0xff]  ;;  %v113_v5 = vld [vmem:[%s1933_s1 + $0x2f0] sm:$0xff] }
  0x29   :  { %1105 = vmatpush3.bf16.msra.mxu0 %v1104_v6  ;;  %573 = vmatprep.mubr.f32.mxu1 %v259_v48  ;;  %v96_v1 = vld [vmem:[%s1933_s1 + $0x268] sm:$0xff]  ;;  %v127_v2 = vld [vmem:[%s1933_s1 + $0x360] sm:$0xff]  ;;  %v1154_v3 = vpack.c.bf16 %v144_v60, %v143_v59  ;;  %v114_v6 = vld [vmem:[%s1933_s1 + $0x2f8] sm:$0xff] }
  0x2a   :  { %1107 = vmatprep.subr.bf16.mxu0 %v1106_v8  ;;  %503 = vmatprep.mubr.f32.mxu0 %v258_v40  ;;  %v128_v4 = vld [vmem:[%s1933_s1 + $0x368] sm:$0xff]  ;;  %v146_v8 = vld [vmem:[%s1933_s1 + $0x3f8] sm:$0xff]  ;;  %v1124_v9 = vpack.c.bf16 %v96_v1, %v95_v0  ;;  %v1126_v12 = vpack.c.bf16 %v114_v6, %v113_v5  ;;  %v129_v15 = vld [vmem:[%s1933_s1 + $0x370] sm:$0xff] }
  0x2b   :  { %1137 = vmatpush3.bf16.msra.mxu1 %v1136_v7  ;;  %v145_v7 = vld [vmem:[%s1933_s1 + $0x3f0] sm:$0xff]  ;;  %v1156_v11 = vpack.c.bf16 %v128_v4, %v127_v2  ;;  %v98_v14 = vld [vmem:[%s1933_s1 + $0x278] sm:$0xff]  ;;  %v163_v18 = vld [vmem:[%s1933_s1 + $0x480] sm:$0xff] }
  0x2c   :  { %1139 = vmatprep.subr.bf16.mxu1 %v1138_v13  ;;  %v97_v13 = vld [vmem:[%s1933_s1 + $0x270] sm:$0xff]  ;;  %v1158_v16 = vpack.c.bf16 %v146_v8, %v145_v7  ;;  %v130_v17 = vld [vmem:[%s1933_s1 + $0x378] sm:$0xff]  ;;  %v195_v20 = vld [vmem:[%s1933_s1 + $0x580] sm:$0xff] }
  0x2d   :  { %1109 = vmatpush3.bf16.msra.mxu0 %v1108_v19  ;;  %v164_v19 = vld [vmem:[%s1933_s1 + $0x488] sm:$0xff]  ;;  %v147_v23 = vld [vmem:[%s1933_s1 + $0x400] sm:$0xff]  ;;  %v1160_v24 = vpack.c.bf16 %v130_v17, %v129_v15  ;;  %v165_v30 = vld [vmem:[%s1933_s1 + $0x490] sm:$0xff] }
  0x2e   :  { %1111 = vmatprep.subr.bf16.mxu0 %v1110_v22  ;;  %v1128_v22 = vpack.c.bf16 %v98_v14, %v97_v13  ;;  %v1162_v25 = vpack.c.bf16 %v164_v19, %v163_v18  ;;  %v179_v27 = vld [vmem:[%s1933_s1 + $0x500] sm:$0xff]  ;;  %v180_v28 = vld [vmem:[%s1933_s1 + $0x508] sm:$0xff]  ;;  %v166_v31 = vld [vmem:[%s1933_s1 + $0x498] sm:$0xff] }
  0x2f   :  { %1141 = vmatpush3.bf16.msra.mxu1 %v1140_v21  ;;  %v196_v21 = vld [vmem:[%s1933_s1 + $0x588] sm:$0xff]  ;;  %v197_v33 = vld [vmem:[%s1933_s1 + $0x590] sm:$0xff]  ;;  %v1166_v38 = vpack.c.bf16 %v166_v31, %v165_v30  ;;  %v150_v40 = vld [vmem:[%s1933_s1 + $0x418] sm:$0xff] }
  0x30   :  { %1143 = vmatprep.subr.bf16.mxu1 %v1142_v26  ;;  %v148_v26 = vld [vmem:[%s1933_s1 + $0x408] sm:$0xff]  ;;  %v1194_v29 = vpack.c.bf16 %v196_v21, %v195_v20  ;;  %v17_v37 = vld [vmem:[%s1932_s0 + $0x10] sm:$0xff]  ;;  %v182_v46 = vld [vmem:[%s1933_s1 + $0x518] sm:$0xff] }
  0x31   :  { %1113 = vmatpush3.bf16.msra.mxu0 %v1112_v34  ;;  %v198_v34 = vld [vmem:[%s1933_s1 + $0x598] sm:$0xff]  ;;  %v149_v39 = vld [vmem:[%s1933_s1 + $0x410] sm:$0xff]  ;;  %v1742_v43 = vrot.slane %v17_v37, %v1433_v10  ;;  %v260_v44 = vcombine.high %v17_v37, %v17_v37  ;;  %v167_v47 = vld [vmem:[%s1933_s1 + $0x4a0] sm:$0xff] }
  0x32   :  { %1115 = vmatprep.subr.bf16.mxu0 %v1114_v36  ;;  %v1196_v36 = vpack.c.bf16 %v180_v28, %v179_v27  ;;  %v1198_v45 = vpack.c.bf16 %v198_v34, %v197_v33  ;;  %v168_v48 = vld [vmem:[%s1933_s1 + $0x4a8] sm:$0xff] }
  0x33   :  { %1145 = vmatpush3.bf16.msra.mxu1 %v1144_v35  ;;  %v1164_v35 = vpack.c.bf16 %v148_v26, %v147_v23  ;;  %v1763_v52 = vrot.slane %v260_v44, %v1433_v10 }
  0x34   :  { %1147 = vmatprep.subr.bf16.mxu1 %v1146_v42  ;;  %v181_v42 = vld [vmem:[%s1933_s1 + $0x510] sm:$0xff] }
  0x35   :  { %1117 = vmatpush3.bf16.msra.mxu0 %v1116_v49  ;;  %v199_v49 = vld [vmem:[%s1933_s1 + $0x5a0] sm:$0xff] }
  0x36   :  { %1119 = vmatprep.subr.bf16.mxu0 %v1118_v51  ;;  %v275_v51 = vcombine.high %v1742_v43, %v1742_v43 }
  0x37   :  { %1149 = vmatpush3.bf16.msra.mxu1 %v1148_v50  ;;  %v200_v50 = vld [vmem:[%s1933_s1 + $0x5a8] sm:$0xff] }
  0x38   :  { %1151 = vmatprep.subr.bf16.mxu1 %v1150_v55 }
  0x39   :  { %1121 = vmatpush3.bf16.msra.mxu0 %v1120_v61 }
  0x3a   :  { %1123 = vmatprep.subr.bf16.mxu0 %v1122_v63 }
  0x3b   :  { %1153 = vmatpush3.bf16.msra.mxu1 %v1152_v62 }
  0x3c   :  { %1155 = vmatprep.subr.bf16.mxu1 %v1154_v3 }
  0x3d   :  { %1125 = vmatpush3.bf16.msra.mxu0 %v1124_v9 }
  0x3e   :  { %1127 = vmatprep.subr.bf16.mxu0 %v1126_v12 }
  0x3f   :  { %1157 = vmatpush3.bf16.msra.mxu1 %v1156_v11 }
  0x40   :  { %1159 = vmatprep.subr.bf16.mxu1 %v1158_v16 }
  0x41   :  { %1129 = vmatpush3.bf16.msra.mxu0 %v1128_v22 }
  0x42   :  { %1163 = vmatprep.subr.bf16.mxu0 %v1162_v25 }
  0x43   :  { %1161 = vmatpush3.bf16.msra.mxu1 %v1160_v24 }
  0x44   :  { %1195 = vmatprep.subr.bf16.mxu1 %v1194_v29  ;;  %504 = vmatmul.mubr.f32.vlgmr.msra.gmra.mrb[2].mxu0 %v1600_v32 }
  0x45   :  { %8 = vsyncpa [#allocation3], 0  ;;  %1165 = vmatpush3.bf16.msra.mxu0 %v1164_v35  ;;  %v1168_v53 = vpack.c.bf16 %v150_v40, %v149_v39  ;;  %v1200_v32 = vpack.c.bf16 %v182_v46, %v181_v42  ;;  %v1170_v54 = vpack.c.bf16 %v168_v48, %v167_v47  ;;  %v151_v55 = vld [vmem:[%s1933_s1 + $0x420] sm:$0xff]  ;;  %v152_v56 = vld [vmem:[%s1933_s1 + $0x428] sm:$0xff]  ;;  %v1202_v57 = vpack.c.bf16 %v200_v50, %v199_v49 }
  0x46   :  { %574 = vmatmul.mubr.f32.vlgmr.msra.gmra.mrb[2].mxu1 %v1614_v41  ;;  %1167 = vmatprep.subr.bf16.mxu0 %v1166_v38  ;;  %v183_v10 = vld [vmem:[%s1933_s1 + $0x520] sm:$0xff]  ;;  %v276_v41 = vcombine.high %v1763_v52, %v1763_v52  ;;  %v184_v58 = vld [vmem:[%s1933_s1 + $0x528] sm:$0xff]  ;;  %v169_v59 = vld [vmem:[%s1933_s1 + $0x4b0] sm:$0xff]  ;;  %v1172_v63 = vpack.c.bf16 %v152_v56, %v151_v55  ;;  %vm1266_vm0 = vmmov 0   ;;  %vm296_vm1 = vcmask 261120  }
  0x47   :  { %1197 = vmatpush3.bf16.msra.mxu1 %v1196_v36  ;;  %v170_v60 = vld [vmem:[%s1933_s1 + $0x4b8] sm:$0xff]  ;;  %643 = vmatprep.mubr.f32.mxu0 %v275_v51  ;;  %v201_v61 = vld [vmem:[%s1933_s1 + $0x5b0] sm:$0xff]  ;;  %v1204_v0 = vpack.c.bf16 %v184_v58, %v183_v10  ;;  %v171_v7 = vld [vmem:[%s1933_s1 + $0x4c0] sm:$0xff]  ;;  %vm789_vm2 = vcmask 74752  }
  0x48   :  { %1199 = vmatprep.subr.bf16.mxu1 %v1198_v45  ;;  %v202_v62 = vld [vmem:[%s1933_s1 + $0x5b8] sm:$0xff]  ;;  %713 = vmatprep.mubr.f32.mxu1 %v276_v41  ;;  %v1174_v1 = vpack.c.bf16 %v170_v60, %v169_v59  ;;  %v153_v2 = vld [vmem:[%s1933_s1 + $0x430] sm:$0xff]  ;;  %v172_v8 = vld [vmem:[%s1933_s1 + $0x4c8] sm:$0xff] }
  0x49   :  { %1169 = vmatpush3.bf16.msra.mxu0 %v1168_v53  ;;  %v154_v3 = vld [vmem:[%s1933_s1 + $0x438] sm:$0xff]  ;;  %v185_v4 = vld [vmem:[%s1933_s1 + $0x530] sm:$0xff]  ;;  %v1206_v5 = vpack.c.bf16 %v202_v62, %v201_v61  ;;  %v203_v9 = vld [vmem:[%s1933_s1 + $0x5c0] sm:$0xff]  ;;  %v1178_v14 = vpack.c.bf16 %v172_v8, %v171_v7  ;;  %v1265_v62 = vmov 0.0|0.0  }
  0x4a   :  { %1171 = vmatprep.subr.bf16.mxu0 %v1170_v54  ;;  %v186_v6 = vld [vmem:[%s1933_s1 + $0x538] sm:$0xff]  ;;  %v204_v11 = vld [vmem:[%s1933_s1 + $0x5c8] sm:$0xff]  ;;  %v1176_v12 = vpack.c.bf16 %v154_v3, %v153_v2  ;;  %v155_v15 = vld [vmem:[%s1933_s1 + $0x440] sm:$0xff]  ;;  %v1267_v2 = vmov 0.0  }
  0x4b   :  { %1201 = vmatpush3.bf16.msra.mxu1 %v1200_v32  ;;  %v1208_v13 = vpack.c.bf16 %v186_v6, %v185_v4  ;;  %v156_v16 = vld [vmem:[%s1933_s1 + $0x448] sm:$0xff]  ;;  %v187_v17 = vld [vmem:[%s1933_s1 + $0x540] sm:$0xff]  ;;  %v1210_v18 = vpack.c.bf16 %v204_v11, %v203_v9  ;;  %v173_v20 = vld [vmem:[%s1933_s1 + $0x4d0] sm:$0xff] }
  0x4c   :  { %1203 = vmatprep.subr.bf16.mxu1 %v1202_v57  ;;  %v188_v19 = vld [vmem:[%s1933_s1 + $0x548] sm:$0xff]  ;;  %v174_v21 = vld [vmem:[%s1933_s1 + $0x4d8] sm:$0xff]  ;;  %v205_v22 = vld [vmem:[%s1933_s1 + $0x5d0] sm:$0xff]  ;;  %v1180_v24 = vpack.c.bf16 %v156_v16, %v155_v15 }
  0x4d   :  { %1173 = vmatpush3.bf16.msra.mxu0 %v1172_v63  ;;  %v206_v23 = vld [vmem:[%s1933_s1 + $0x5d8] sm:$0xff]  ;;  %v1212_v25 = vpack.c.bf16 %v188_v19, %v187_v17  ;;  %v1182_v26 = vpack.c.bf16 %v174_v21, %v173_v20  ;;  %v157_v27 = vld [vmem:[%s1933_s1 + $0x450] sm:$0xff]  ;;  %v175_v33 = vld [vmem:[%s1933_s1 + $0x4e0] sm:$0xff] }
  0x4e   :  { %1175 = vmatprep.subr.bf16.mxu0 %v1174_v1  ;;  %v158_v28 = vld [vmem:[%s1933_s1 + $0x458] sm:$0xff]  ;;  %v189_v29 = vld [vmem:[%s1933_s1 + $0x550] sm:$0xff]  ;;  %v1214_v30 = vpack.c.bf16 %v206_v23, %v205_v22  ;;  %v176_v34 = vld [vmem:[%s1933_s1 + $0x4e8] sm:$0xff] }
  0x4f   :  { %1205 = vmatpush3.bf16.msra.mxu1 %v1204_v0  ;;  %v190_v31 = vld [vmem:[%s1933_s1 + $0x558] sm:$0xff]  ;;  %v207_v35 = vld [vmem:[%s1933_s1 + $0x5e0] sm:$0xff]  ;;  %v208_v36 = vld [vmem:[%s1933_s1 + $0x5e8] sm:$0xff]  ;;  %v1184_v37 = vpack.c.bf16 %v158_v28, %v157_v27  ;;  %v1186_v39 = vpack.c.bf16 %v176_v34, %v175_v33 }
  0x50   :  { %1207 = vmatprep.subr.bf16.mxu1 %v1206_v5  ;;  %v1216_v38 = vpack.c.bf16 %v190_v31, %v189_v29  ;;  %v159_v40 = vld [vmem:[%s1933_s1 + $0x460] sm:$0xff]  ;;  %v160_v42 = vld [vmem:[%s1933_s1 + $0x468] sm:$0xff]  ;;  %v1218_v45 = vpack.c.bf16 %v208_v36, %v207_v35  ;;  %v177_v47 = vld [vmem:[%s1933_s1 + $0x4f0] sm:$0xff] }
  0x51   :  { %1177 = vmatpush3.bf16.msra.mxu0 %v1176_v12  ;;  %v191_v44 = vld [vmem:[%s1933_s1 + $0x560] sm:$0xff]  ;;  %v192_v46 = vld [vmem:[%s1933_s1 + $0x568] sm:$0xff]  ;;  %v178_v48 = vld [vmem:[%s1933_s1 + $0x4f8] sm:$0xff]  ;;  %v1188_v51 = vpack.c.bf16 %v160_v42, %v159_v40 }
  0x52   :  { %1179 = vmatprep.subr.bf16.mxu0 %v1178_v14  ;;  %v209_v49 = vld [vmem:[%s1933_s1 + $0x5f0] sm:$0xff]  ;;  %v210_v50 = vld [vmem:[%s1933_s1 + $0x5f8] sm:$0xff]  ;;  %v1220_v53 = vpack.c.bf16 %v192_v46, %v191_v44  ;;  %v1190_v32 = vpack.c.bf16 %v178_v48, %v177_v47  ;;  %v211_v59 = vld [vmem:[%s1933_s1 + $0x600] sm:$0xff] }
  0x53   :  { %1209 = vmatpush3.bf16.msra.mxu1 %v1208_v13  ;;  %v161_v54 = vld [vmem:[%s1933_s1 + $0x470] sm:$0xff]  ;;  %v162_v55 = vld [vmem:[%s1933_s1 + $0x478] sm:$0xff]  ;;  %v1222_v56 = vpack.c.bf16 %v210_v50, %v209_v49  ;;  %v212_v60 = vld [vmem:[%s1933_s1 + $0x608] sm:$0xff] }
  0x54   :  { %1211 = vmatprep.subr.bf16.mxu1 %v1210_v18  ;;  %v193_v10 = vld [vmem:[%s1933_s1 + $0x570] sm:$0xff]  ;;  %v194_v41 = vld [vmem:[%s1933_s1 + $0x578] sm:$0xff]  ;;  %v1192_v57 = vpack.c.bf16 %v162_v55, %v161_v54  ;;  %v1227_v61 = vpack.c.bf16 %v212_v60, %v211_v59 }
  0x55   :  { %1181 = vmatpush3.bf16.msra.mxu0 %v1180_v24  ;;  %v1224_v58 = vpack.c.bf16 %v194_v41, %v193_v10  ;;  %v213_v63 = vld [vmem:[%s1933_s1 + $0x610] sm:$0xff]  ;;  %v214_v0 = vld [vmem:[%s1933_s1 + $0x618] sm:$0xff] }
  0x56   :  { %1183 = vmatprep.subr.bf16.mxu0 %v1182_v26  ;;  %v1230_v1 = vpack.c.bf16 %v214_v0, %v213_v63  ;;  %v806_v3 = vld.sshfl [vmem:[%s1932_s0 + $0x18] sm:$0x3 pattern:$0x76325410]  ;;  %s1268_s0 = smov [#allocation2]  }
  0x57   :  { %1213 = vmatpush3.bf16.msra.mxu1 %v1212_v25 }
  0x58   :  { %1215 = vmatprep.subr.bf16.mxu1 %v1214_v30 }
  0x59   :  { %1185 = vmatpush3.bf16.msra.mxu0 %v1184_v37 }
  0x5a   :  { %1187 = vmatprep.subr.bf16.mxu0 %v1186_v39 }
  0x5b   :  { %1217 = vmatpush3.bf16.msra.mxu1 %v1216_v38 }
  0x5c   :  { %1219 = vmatprep.subr.bf16.mxu1 %v1218_v45 }
  0x5d   :  { %1189 = vmatpush3.bf16.msra.mxu0 %v1188_v51 }
  0x5e   :  { %1191 = vmatprep.subr.bf16.mxu0 %v1190_v32 }
  0x5f   :  { %1221 = vmatpush3.bf16.msra.mxu1 %v1220_v53 }
  0x60   :  { %1223 = vmatprep.subr.bf16.mxu1 %v1222_v56 }
  0x61   :  { %1193 = vmatpush3.bf16.msra.mxu0 %v1192_v57 }
  0x62   :  { %1226 = vmatprep.subr.bf16.mxu0 %v1265_v62 }
  0x63   :  { %1225 = vmatpush3.bf16.msra.mxu1 %v1224_v58 }
  0x64   :  { %644 = vmatmul.mubr.f32.vlgmr.msra.gmra.mrb[4].mxu0 %v1742_v43  ;;  %v805_v43 = vld [vmem:[%s1934_s2] ss:$0 sm:$0xff]  ;;  %s797_s2 = sshll.u32 %s1268_s0, 4  ;;  %s798_s2 = int_to_ptr.vmem [resolvable:$true] %s797_s2 }
  0x65   :  { %1228 = vmatpush3.bf16.msra.mxu0 %v1227_v61  ;;  %1031 = vmatprep.mubr.msk.f32.mxu0 %vm1266_vm0, %v1267_v2  ;;  %s1240_s8 = scalar_lea.vmem %s798_s2, 32  ;;  %p1245_p1 = scmp.lt.s32.totalorder %s798_s2, %s798_s2 }
  0x66   :  { %714 = vmatmul.mubr.f32.vlgmr.msra.gmra.mrb[4].mxu1 %v1763_v52  ;;  %1229 = vmatprep.subr.bf16.mxu0 %v1265_v62  ;;  %p1241_p0 = scmp.ne.s32.totalorder %s798_s2, %s1240_s8  ;;  %p1246_p2 = scmp.lt.s32.totalorder %s1240_s8, %s1240_s8 }
  0x68   :  { %p1247_p3 = por %p1246_p2, %p1245_p1 }
  0x69   :  { %1231 = vmatpush3.bf16.msra.mxu0 %v1230_v1 }
  0x6a   :  { %p1248_p4 = pnand %p1247_p3, %p1241_p0 }
  0x6c   :  { %1032 = vmatmul.mubr.msk.f32.vlgmr.msra.gmra.mrb[6].mxu0 %vm296_vm1, %v806_v3 }
  0xf7   :  { %v840_v4 = vpop.f32.mrb[0].mxu0 }
  0xf8   :  { %v841_v5 = vpop.f32.mrb[1].mxu0 }
  0xf9   :  { %v875_v6 = vpop.f32.mrb[0].mxu1  ;;  %v842_v52 = vadd.f32 %v841_v5, %v840_v4 }
  0xfa   :  { %v876_v7 = vpop.f32.mrb[1].mxu1 }
  0xfb   :  { %v877_v8 = vadd.f32 %v876_v7, %v875_v6  ;;  %v366_v9 = vadd.f32 %v842_v52, %v805_v43 }
  0xfd   :  { %v436_v11 = vadd.f32 %v877_v8, %v366_v9 }
 0x117   :  { %v910_v12 = vpop.f32.mrb[2].mxu0 }
 0x118   :  { %v911_v13 = vpop.f32.mrb[3].mxu0 }
 0x119   :  { %v945_v14 = vpop.f32.mrb[2].mxu1  ;;  %v912_v15 = vadd.f32 %v911_v13, %v910_v12 }
 0x11a   :  { %v946_v16 = vpop.f32.mrb[3].mxu1 }
 0x11b   :  { %v947_v17 = vadd.f32 %v946_v16, %v945_v14  ;;  %v506_v18 = vadd.f32 %v912_v15, %v436_v11 }
 0x11d   :  { %v576_v19 = vadd.f32 %v947_v17, %v506_v18 }
 0x137   :  { %v980_v20 = vpop.f32.mrb[4].mxu0 }
 0x138   :  { %v981_v21 = vpop.f32.mrb[5].mxu0 }
 0x139   :  { %v1015_v22 = vpop.f32.mrb[4].mxu1  ;;  %v982_v23 = vadd.f32 %v981_v21, %v980_v20 }
 0x13a   :  { %v1016_v24 = vpop.f32.mrb[5].mxu1 }
 0x13b   :  { %v1017_v25 = vadd.f32 %v1016_v24, %v1015_v22  ;;  %v646_v26 = vadd.f32 %v982_v23, %v576_v19 }
 0x13d   :  { %v716_v27 = vadd.f32 %v1017_v25, %v646_v26 }
 0x13f   :  { %v785_v28 = vpop.f32.mrb[6].mxu0 }
 0x140   :  { %v786_v29 = vadd.f32 %v785_v28, %v716_v27  ;;  %v1033_v30 = vpop.f32.mrb[7].mxu0 }
 0x142   :  { %790 = vst.msk [vmem:[#allocation2] sm:$0x3] %vm789_vm2, %v786_v29 }
 0x143   :  { %1251 = shalt.err (!%p1248_p4)
}
 0x144   :  { %s1252_s11 = scalar_lea.hbm %s1935_s3, 32 }
 0x145   :  { %p1253_p5 = scmp.ne.s32.totalorder %s1935_s3, %s1252_s11  ;;  %p1256_p6 = scmp.lt.u32.totalorder %s1252_s11, %s1935_s3 }
 0x147   :  { %p1258_p7 = pnand %p1256_p6, %p1253_p5 }
 0x149   :  { %1261 = shalt.err (!%p1258_p7)
}
 0x14a   :  { %800 = dma.vmem_to_hbm [thread:$0]  %s798_s2, 32, %s1935_s3, [#allocation3]  }
 0x14b   :  { %1262 = dma.done.wait [#allocation3], 32  }
 0x14c   :  { %1263 = vsyncadd [#allocation3], 4294967264 }
 0x14d   :  { %804 = vsyncpa [#allocation3], 1 }

// kernel: cnn_forward.4
= control target key start
LH: loop header
LB: loop body
LE: loop exit
PB: predicated region body
PF: predicated region fallthrough
CT: control target
= control target key end

     0   :  { %s8119_s15 = smov 0   ;;  %s9718_s0 = inlined_call_operand.vmem [shape: f32[2,16,400], index: 0, kind: input, shape index: {}]   ;;  %s9719_s1 = inlined_call_operand.vmem [shape: f32[32,400], index: 1, kind: input, shape index: {}]   ;;  %s9720_s2 = inlined_call_operand.vmem [shape: f32[32,1], index: 2, kind: input, shape index: {}]   ;;  %s9721_s3 = inlined_call_operand.vmem [shape: f32[324,49], index: 3, kind: input, shape index: {}]   ;;  %s9722_s4 = inlined_call_operand.vmem [shape: f32[2,32,49], index: 4, kind: output, shape index: {}]  }
   0x1 LB: > { %s6336_s16 = sadd.s32 4294967295, %s8059_s15   ;;  %p6340_p0 = scmp.ge.s32.totalorder %s8059_s15, 1  ;;  %s8059_s15 = sphi %s8119_s15, %s14_s15  }
   0x2   : > { %p162_p1 = scmp.lt.s32.totalorder %s8059_s15, 3 }
   0x4   : > { %p163_p2 = pnand %p6340_p0, %p162_p1 }
   0x6   : > { %166 = sbr.rel (%p163_p2) target bundleno = 1181 (0x49d), region = 36 }
   0xd   : > { %v8130_v0 = vld [vmem:[%s9719_s1] sm:$0xff]  ;;  %p188_p3 = scmp.lt.s32.totalorder %s6336_s16, 1  ;;  %s8061_s19 = smov 64   ;;  %v9725_v10 = vmov 0.0   ;;  %v8250_v14 = vld [vmem:[%s9719_s1 + $0x28] sm:$0xff]  ;;  %vm1084_vm0 = vcmask 1014784  }
   0xe   : > { %1064 = vrot.lane.b32.xlu1 %v8130_v0, %s8061_s19  ;;  %s8062_s24 = smov 124   ;;  %s8063_s25 = smov 110   ;;  %1167 = vmatprep.mubr.f32.mxu0 %v9725_v10  ;;  %v8186_v11 = vld [vmem:[%s9719_s1 + $0x40] sm:$0xff]  ;;  %v8258_v15 = vld [vmem:[%s9719_s1 + $0x8] sm:$0xff]  ;;  %vm1309_vm1 = vcmask 900096   ;;  %vm249_vm2 = vcmask 130048  }
   0xf   : > { %s9748_s16 = smov (!%p188_p3, %s6336_s16), 1  ;;  %322 = vmatprep.mubr.f32.mxu1 %v9725_v10  ;;  %s8065_s26 = smov 48   ;;  %v8195_v12 = vld [vmem:[%s9719_s1 + $0x20] sm:$0xff]  ;;  %v8266_v16 = vld [vmem:[%s9719_s1 + $0x48] sm:$0xff]  ;;  %vm1534_vm3 = vcmask 891904   ;;  %vm1759_vm4 = vcmask 883712  }
  0x10   : > { %s6552_s20 = sshll.u32 %s9748_s16, 6  ;;  %s8066_s5 = smov 109   ;;  %v8203_v13 = vld [vmem:[%s9719_s1 + $0x60] sm:$0xff]  ;;  %v8276_v17 = vld [vmem:[%s9719_s1 + $0x68] sm:$0xff]  ;;  %vm238_vm5 = vcmask 1039360   ;;  %vm1980_vm6 = vcmask 875520  }
  0x11   : > { %s8140_s23 = scalar_lea.vmem %s9718_s0, %s6552_s20  ;;  %s8067_s8 = smov 32   ;;  %vm2209_vm7 = vcmask 867328   ;;  %vm2434_vm8 = vcmask 752640   ;;  %vm634_vm9 = vcmask 1031168   ;;  %vm2659_vm10 = vcmask 744448  }
  0x12   : > { %v8143_v1 = vld [vmem:[%s8140_s23 + $0x8] sm:$0xff]  ;;  %v8146_v2 = vld [vmem:[%s8140_s23 + $0x10] sm:$0xff]  ;;  %v8149_v3 = vld [vmem:[%s8140_s23] sm:$0xff]  ;;  %s8068_s9 = smov 108   ;;  %s8069_s10 = smov 127   ;;  %vm859_vm11 = vcmask 1022976  }
  0x13   : > { %v8153_v4 = vpack.i.bf16 %v8146_v2, %v8143_v1  ;;  %v8156_v5 = vld [vmem:[%s8140_s23 + $0x20] sm:$0xff]  ;;  %v8159_v6 = vld [vmem:[%s8140_s23 + $0x28] sm:$0xff]  ;;  %v8162_v7 = vld [vmem:[%s8140_s23 + $0x30] sm:$0xff]  ;;  %s8070_s11 = smov 16   ;;  %s8071_s12 = smov 112   ;;  %vm2884_vm12 = vcmask 736256  }
  0x14   : > { %v8166_v8 = vpack.i.bf16 %v8156_v5, %v8149_v3  ;;  %v8171_v9 = vpack.i.bf16 %v8162_v7, %v8159_v6  ;;  %s8072_s13 = smov 107   ;;  %s8073_s14 = smov 106   ;;  %vm3109_vm13 = vcmask 728064   ;;  %vm3334_vm14 = vcmask 719872  }
  0x15   : > { %7615 = vrot.lane.b32.xlu0 %v8153_v4, %s8062_s24  ;;  %s8074_s22 = smov 92   ;;  %s8075_s28 = smov 126   ;;  %vm3559_vm15 = vcmask 605184  }
  0x16   : > { %7625 = vrot.lane.b32.xlu1 %v8166_v8, %s8062_s24  ;;  %s8077_s6 = smov 91   ;;  %s8078_s7 = smov 80  }
  0x17   : > { %s8082_s17 = smov 88   ;;  %s8083_s18 = smov 74  }
  0x18   : > { %s8084_s20 = smov 73   ;;  %s8085_s21 = smov 72  }
  0x19   : > { %7620 = vrot.lane.b32.xlu0 %v8171_v9, %s8062_s24 }
  0x1a   : > { %7635 = vrot.lane.b32.xlu1 %v8171_v9, %s8063_s25 }
  0x1d   : > { %7630 = vrot.lane.b32.xlu0 %v8153_v4, %s8063_s25 }
  0x1e   : > { %1289 = vrot.lane.b32.xlu1 %v8130_v0, %s8065_s26 }
  0x21   : > { %7640 = vrot.lane.b32.xlu0 %v8166_v8, %s8063_s25 }
  0x22   : > { %1293 = vrot.lane.b32.xlu1 %v8186_v11, %s8065_s26 }
  0x25   : > { %1291 = vrot.lane.b32.xlu0 %v8195_v12, %s8065_s26 }
  0x26   : > { %7650 = vrot.lane.b32.xlu1 %v8171_v9, %s8066_s5 }
  0x29   : > { %7645 = vrot.lane.b32.xlu0 %v8153_v4, %s8066_s5 }
  0x2a   : > { %1295 = vrot.lane.b32.xlu1 %v8203_v13, %s8065_s26 }
  0x2d   : > { %7655 = vrot.lane.b32.xlu0 %v8166_v8, %s8066_s5  ;;  %s8076_s5 = smov 96  }
  0x2e   : > { %1516 = vrot.lane.b32.xlu1 %v8195_v12, %s8067_s8 }
  0x31   : > { %1514 = vrot.lane.b32.xlu0 %v8130_v0, %s8067_s8 }
  0x32   : > { %7660 = vrot.lane.b32.xlu1 %v8153_v4, %s8068_s9 }
  0x35   : > { %1518 = vrot.lane.b32.xlu0 %v8186_v11, %s8067_s8 }
  0x36   : > { %7670 = vrot.lane.b32.xlu1 %v8166_v8, %s8068_s9 }
  0x39   : > { %7665 = vrot.lane.b32.xlu0 %v8171_v9, %s8068_s9  ;;  %s8079_s9 = smov 125  }
  0x3a   : > { %7675 = vrot.lane.b32.xlu1 %v8153_v4, %s8069_s10 }
  0x3d   : > { %1520 = vrot.lane.b32.xlu0 %v8203_v13, %s8067_s8 }
  0x3e   : > { %7685 = vrot.lane.b32.xlu1 %v8166_v8, %s8069_s10 }
  0x41   : > { %7680 = vrot.lane.b32.xlu0 %v8171_v9, %s8069_s10 }
  0x42   : > { %1741 = vrot.lane.b32.xlu1 %v8195_v12, %s8070_s11 }
  0x45   : > { %1739 = vrot.lane.b32.xlu0 %v8130_v0, %s8070_s11 }
  0x46   : > { %1743 = vrot.lane.b32.xlu1 %v8186_v11, %s8070_s11 }
  0x49   : > { %212 = vrot.lane.b32.xlu0 %v8130_v0, %s8071_s12 }
  0x4a   : > { %7690 = vrot.lane.b32.xlu1 %v8153_v4, %s8072_s13 }
  0x4d   : > { %214 = vrot.lane.b32.xlu0 %v8195_v12, %s8071_s12 }
  0x4e   : > { %7700 = vrot.lane.b32.xlu1 %v8166_v8, %s8072_s13 }
  0x51   : > { %7695 = vrot.lane.b32.xlu0 %v8171_v9, %s8072_s13  ;;  %s8080_s13 = smov 90  }
  0x52   : > { %216 = vrot.lane.b32.xlu1 %v8186_v11, %s8071_s12 }
  0x55   : > { %1745 = vrot.lane.b32.xlu0 %v8203_v13, %s8070_s11 }
  0x56   : > { %7705 = vrot.lane.b32.xlu1 %v8153_v4, %s8073_s14 }
  0x59   : > { %218 = vrot.lane.b32.xlu0 %v8203_v13, %s8071_s12 }
  0x5a   : > { %7715 = vrot.lane.b32.xlu1 %v8166_v8, %s8073_s14 }
  0x5d   : > { %7710 = vrot.lane.b32.xlu0 %v8171_v9, %s8073_s14  ;;  %s8081_s14 = smov 89  }
  0x5e   : > { %2191 = vrot.lane.b32.xlu1 %v8250_v14, %s8071_s12 }
  0x61   : > { %2189 = vrot.lane.b32.xlu0 %v8258_v15, %s8071_s12 }
  0x62   : > { %7720 = vrot.lane.b32.xlu1 %v8153_v4, %s8074_s22 }
  0x65   : > { %2193 = vrot.lane.b32.xlu0 %v8266_v16, %s8071_s12 }
  0x66   : > { %7730 = vrot.lane.b32.xlu1 %v8166_v8, %s8074_s22 }
  0x69   : > { %7725 = vrot.lane.b32.xlu0 %v8171_v9, %s8074_s22 }
  0x6a   : > { %7735 = vrot.lane.b32.xlu1 %v8153_v4, %s8075_s28 }
  0x6d   : > { %2195 = vrot.lane.b32.xlu0 %v8276_v17, %s8071_s12 }
  0x6e   : > { %7745 = vrot.lane.b32.xlu1 %v8166_v8, %s8075_s28 }
  0x71   : > { %7740 = vrot.lane.b32.xlu0 %v8171_v9, %s8075_s28 }
  0x72   : > { %2416 = vrot.lane.b32.xlu1 %v8250_v14, %s8076_s5 }
  0x75   : > { %2414 = vrot.lane.b32.xlu0 %v8258_v15, %s8076_s5 }
  0x76   : > { %2418 = vrot.lane.b32.xlu1 %v8266_v16, %s8076_s5 }
  0x79   : > { %614 = vrot.lane.b32.xlu0 %v8130_v0, %s8076_s5 }
  0x7a   : > { %7750 = vrot.lane.b32.xlu1 %v8153_v4, %s8077_s6 }
  0x7d   : > { %616 = vrot.lane.b32.xlu0 %v8195_v12, %s8076_s5 }
  0x7e   : > { %7760 = vrot.lane.b32.xlu1 %v8166_v8, %s8077_s6 }
  0x80   : > { %v8297_v18 = vpop.permute.xlu1 %1064 }
  0x81   : > { %7755 = vrot.lane.b32.xlu0 %v8171_v9, %s8077_s6  ;;  %s8086_s6 = smov 71  }
  0x82   : > { %618 = vrot.lane.b32.xlu1 %v8186_v11, %s8076_s5 }
  0x85   : > { %2420 = vrot.lane.b32.xlu0 %v8276_v17, %s8076_s5 }
  0x86   : > { %620 = vrot.lane.b32.xlu1 %v8203_v13, %s8076_s5 }
  0x87   : > { %v7616_v19 = vpop.permute.xlu0 %7615 }
  0x88   : > { %v7626_v20 = vpop.permute.xlu1 %7625  ;;  %v7618_v21 = vunpack.i.h.bf16 %v7616_v19  ;;  %v7617_v22 = vunpack.i.l.bf16 %v7616_v19 }
  0x89   : > { %v7627_v23 = vunpack.i.l.bf16 %v7626_v20  ;;  %2639 = vrot.lane.b32.xlu0 %v8258_v15, %s8078_s7  ;;  %v7628_v25 = vunpack.i.h.bf16 %v7626_v20 }
  0x8a   : > { %7765 = vrot.lane.b32.xlu1 %v8153_v4, %s8079_s9  ;;  %v1086_v30 = vsel %vm1084_vm0, %v7617_v22, %v7618_v21 }
  0x8b   : > { %v7621_v24 = vpop.permute.xlu0 %7620  ;;  %v1085_v31 = vsel %vm1084_vm0, %v7627_v23, %v7617_v22 }
  0x8c   : > { %v7623_v26 = vunpack.i.h.bf16 %v7621_v24  ;;  %v7622_v27 = vunpack.i.l.bf16 %v7621_v24  ;;  %v7636_v28 = vpop.permute.xlu1 %7635 }
  0x8d   : > { %v7638_v29 = vunpack.i.h.bf16 %v7636_v28  ;;  %2641 = vrot.lane.b32.xlu0 %v8250_v14, %s8078_s7  ;;  %v7637_v32 = vunpack.i.l.bf16 %v7636_v28 }
  0x8e   : > { %7775 = vrot.lane.b32.xlu1 %v8166_v8, %s8079_s9  ;;  %v1088_v33 = vsel %vm1084_vm0, %v7622_v27, %v7623_v26  ;;  %v1087_v34 = vsel %vm1084_vm0, %v7628_v25, %v7622_v27  ;;  %v8309_v35 = vpack.c.bf16 %v7623_v26, %v7618_v21  ;;  %vm3780_vm0 = vcmask 596992  }
  0x8f   : > { %v7631_v36 = vpop.permute.xlu0 %7630  ;;  %v8311_v37 = vpack.c.bf16 %v1088_v33, %v1086_v30  ;;  %v8313_v38 = vpack.c.bf16 %v1087_v34, %v1085_v31  ;;  %v1313_v43 = vsel %vm1309_vm1, %v7637_v32, %v7638_v29 }
  0x90   : > { %v7633_v39 = vunpack.i.h.bf16 %v7631_v36  ;;  %v7632_v40 = vunpack.i.l.bf16 %v7631_v36  ;;  %v8315_v41 = vpop.permute.xlu1 %1289 }
  0x91   : > { %7068 = vmatprep.subr.bf16.mxu0 %v8311_v37  ;;  %7770 = vrot.lane.b32.xlu0 %v8171_v9, %s8079_s9 }
  0x92   : > { %7780 = vrot.lane.b32.xlu1 %v8153_v4, %s8080_s13  ;;  %7070 = vmatpush1.bf16.msra.mxu0 %v8313_v38  ;;  %v1311_v42 = vsel %vm1309_vm1, %v7632_v40, %v7633_v39  ;;  %v8323_v44 = vpack.c.bf16 %v7638_v29, %v7633_v39 }
  0x93   : > { %v7641_v45 = vpop.permute.xlu0 %7640  ;;  %v7075_v46 = vpack.c.bf16 %v1313_v43, %v1311_v42 }
  0x94   : > { %v7643_v47 = vunpack.i.h.bf16 %v7641_v45  ;;  %v7642_v48 = vunpack.i.l.bf16 %v7641_v45  ;;  %v8325_v49 = vpop.permute.xlu1 %1293 }
  0x95   : > { %2643 = vrot.lane.b32.xlu0 %v8266_v16, %s8078_s7  ;;  %6377 = vmatmul.mubr.msk.f32.vlgmr.msra.gmra.mrb[0].mxu0 %vm249_vm2, %v8297_v18 }
  0x96   : > { %v1310_v50 = vsel %vm1309_vm1, %v7642_v48, %v7632_v40  ;;  %v1312_v51 = vsel %vm1309_vm1, %v7643_v47, %v7637_v32  ;;  %7790 = vrot.lane.b32.xlu1 %v8166_v8, %s8080_s13  ;;  %7076 = vmatprep.subr.bf16.mxu0 %v7075_v46 }
  0x97   : > { %v8334_v52 = vpop.permute.xlu0 %1291  ;;  %v7077_v53 = vpack.c.bf16 %v1312_v51, %v1310_v50  ;;  %1392 = vmatprep.mubr.f32.mxu0 %v9725_v10 }
  0x98   : > { %v7651_v54 = vpop.permute.xlu1 %7650 }
  0x99   : > { %7785 = vrot.lane.b32.xlu0 %v8171_v9, %s8080_s13  ;;  %7078 = vmatpush1.bf16.msra.mxu0 %v7077_v53  ;;  %v7653_v55 = vunpack.i.h.bf16 %v7651_v54  ;;  %v7652_v56 = vunpack.i.l.bf16 %v7651_v54 }
  0x9a   : > { %839 = vrot.lane.b32.xlu1 %v8130_v0, %s8078_s7 }
  0x9b   : > { %v7646_v57 = vpop.permute.xlu0 %7645  ;;  %v1538_v62 = vsel %vm1534_vm3, %v7652_v56, %v7653_v55 }
  0x9c   : > { %v7648_v58 = vunpack.i.h.bf16 %v7646_v57  ;;  %v7647_v59 = vunpack.i.l.bf16 %v7646_v57  ;;  %v8340_v60 = vpop.permute.xlu1 %1295 }
  0x9d   : > { %2645 = vrot.lane.b32.xlu0 %v8276_v17, %s8078_s7  ;;  %6385 = vmatmul.mubr.msk.f32.vlgmr.msra.gmra.mrb[0].mxu0 %vm249_vm2, %v8315_v41 }
  0x9e   : > { %841 = vrot.lane.b32.xlu1 %v8195_v12, %s8078_s7  ;;  %1398 = vmatprep.mubr.f32.mxu0 %v9725_v10  ;;  %v1536_v61 = vsel %vm1534_vm3, %v7647_v59, %v7648_v58  ;;  %v8351_v63 = vpack.c.bf16 %v7653_v55, %v7648_v58 }
  0x9f   : > { %v7656_v19 = vpop.permute.xlu0 %7655  ;;  %v7083_v20 = vpack.c.bf16 %v1538_v62, %v1536_v61 }
  0xa0   : > { %v7658_v21 = vunpack.i.h.bf16 %v7656_v19  ;;  %v7657_v22 = vunpack.i.l.bf16 %v7656_v19  ;;  %v8353_v23 = vpop.permute.xlu1 %1516 }
  0xa1   : > { %2864 = vrot.lane.b32.xlu0 %v8258_v15, %s8061_s19  ;;  %6386 = vmatmul.mubr.msk.f32.gmra.mrb[2].mxu0 %vm249_vm2, %v8334_v52 }
  0xa2   : > { %v1535_v24 = vsel %vm1534_vm3, %v7657_v22, %v7647_v59  ;;  %v1537_v25 = vsel %vm1534_vm3, %v7658_v21, %v7652_v56  ;;  %843 = vrot.lane.b32.xlu1 %v8186_v11, %s8078_s7  ;;  %7084 = vmatprep.subr.bf16.mxu0 %v7083_v20  ;;  %vm4009_vm3 = vcmask 588800  }
  0xa3   : > { %v8363_v26 = vpop.permute.xlu0 %1514  ;;  %1404 = vmatprep.mubr.f32.mxu0 %v9725_v10  ;;  %v7085_v27 = vpack.c.bf16 %v1537_v25, %v1535_v24 }
  0xa4   : > { %v7661_v28 = vpop.permute.xlu1 %7660 }
  0xa5   : > { %2866 = vrot.lane.b32.xlu0 %v8250_v14, %s8061_s19  ;;  %6387 = vmatmul.mubr.msk.f32.gmra.mrb[4].mxu0 %vm249_vm2, %v8325_v49  ;;  %v7663_v31 = vunpack.i.h.bf16 %v7661_v28  ;;  %v7662_v32 = vunpack.i.l.bf16 %v7661_v28 }
  0xa6   : > { %845 = vrot.lane.b32.xlu1 %v8203_v13, %s8078_s7  ;;  %7086 = vmatpush1.bf16.msra.mxu0 %v7085_v27 }
  0xa7   : > { %v8372_v29 = vpop.permute.xlu0 %1518  ;;  %1410 = vmatprep.mubr.f32.mxu0 %v9725_v10  ;;  %v1761_v45 = vsel %vm1759_vm4, %v7662_v32, %v7663_v31 }
  0xa8   : > { %v7671_v30 = vpop.permute.xlu1 %7670 }
  0xa9   : > { %v7672_v33 = vunpack.i.l.bf16 %v7671_v30  ;;  %2868 = vrot.lane.b32.xlu0 %v8266_v16, %s8061_s19  ;;  %6388 = vmatmul.mubr.msk.f32.gmra.mrb[6].mxu0 %vm249_vm2, %v8340_v60  ;;  %v7673_v36 = vunpack.i.h.bf16 %v7671_v30 }
  0xaa   : > { %7800 = vrot.lane.b32.xlu1 %v8171_v9, %s8081_s14  ;;  %1617 = vmatprep.mubr.f32.mxu0 %v9725_v10 }
  0xab   : > { %v7666_v34 = vpop.permute.xlu0 %7665  ;;  %v1760_v43 = vsel %vm1759_vm4, %v7672_v33, %v7662_v32 }
  0xac   : > { %v7668_v39 = vunpack.i.h.bf16 %v7666_v34  ;;  %v7667_v40 = vunpack.i.l.bf16 %v7666_v34  ;;  %v7676_v42 = vpop.permute.xlu1 %7675  ;;  %v7043_v34 = vpack.c.bf16 %v8159_v6, %v8143_v1 }
  0xad   : > { %7795 = vrot.lane.b32.xlu0 %v8153_v4, %s8081_s14  ;;  %6393 = vmatmul.mubr.msk.f32.vlgmr.msra.gmra.mrb[0].mxu0 %vm249_vm2, %v8363_v26  ;;  %v7678_v55 = vunpack.i.h.bf16 %v7676_v42  ;;  %v7677_v56 = vunpack.i.l.bf16 %v7676_v42 }
  0xae   : > { %v1762_v46 = vsel %vm1759_vm4, %v7673_v36, %v7667_v40  ;;  %2870 = vrot.lane.b32.xlu1 %v8276_v17, %s8061_s19  ;;  %1623 = vmatprep.mubr.f32.mxu0 %v9725_v10  ;;  %v1763_v47 = vsel %vm1759_vm4, %v7667_v40, %v7668_v39  ;;  %v8391_v48 = vpack.c.bf16 %v7668_v39, %v7663_v31  ;;  %vm4234_vm4 = vcmask 580608  }
  0xaf   : > { %v8393_v50 = vpop.permute.xlu0 %1520  ;;  %v7091_v51 = vpack.c.bf16 %v1763_v47, %v1761_v45  ;;  %v7093_v53 = vpack.c.bf16 %v1762_v46, %v1760_v43  ;;  %v240_v20 = vsel %vm238_vm5, %v7677_v56, %v7678_v55 }
  0xb0   : > { %v7686_v54 = vpop.permute.xlu1 %7685 }
  0xb1   : > { %7805 = vrot.lane.b32.xlu0 %v8166_v8, %s8081_s14  ;;  %6394 = vmatmul.mubr.msk.f32.gmra.mrb[2].mxu0 %vm249_vm2, %v8353_v23  ;;  %v7687_v57 = vunpack.i.l.bf16 %v7686_v54  ;;  %v7688_v59 = vunpack.i.h.bf16 %v7686_v54 }
  0xb2   : > { %3091 = vrot.lane.b32.xlu1 %v8250_v14, %s8065_s26  ;;  %7092 = vmatprep.subr.bf16.mxu0 %v7091_v51 }
  0xb3   : > { %7094 = vmatpush1.bf16.msra.mxu0 %v7093_v53  ;;  %v7681_v58 = vpop.permute.xlu0 %7680  ;;  %1629 = vmatprep.mubr.f32.mxu0 %v9725_v10  ;;  %v239_v22 = vsel %vm238_vm5, %v7687_v57, %v7677_v56 }
  0xb4   : > { %v7683_v61 = vunpack.i.h.bf16 %v7681_v58  ;;  %v7682_v62 = vunpack.i.l.bf16 %v7681_v58  ;;  %v8401_v19 = vpop.permute.xlu1 %1741 }
  0xb5   : > { %3089 = vrot.lane.b32.xlu0 %v8258_v15, %s8065_s26  ;;  %6395 = vmatmul.mubr.msk.f32.gmra.mrb[4].mxu0 %vm249_vm2, %v8372_v29 }
  0xb6   : > { %3093 = vrot.lane.b32.xlu1 %v8266_v16, %s8065_s26  ;;  %1635 = vmatprep.mubr.f32.mxu0 %v9725_v10  ;;  %v242_v21 = vsel %vm238_vm5, %v7682_v62, %v7683_v61  ;;  %v241_v24 = vsel %vm238_vm5, %v7688_v59, %v7682_v62  ;;  %v7039_v31 = vpack.c.bf16 %v7683_v61, %v7678_v55 }
  0xb7   : > { %v8414_v25 = vpop.permute.xlu0 %1739  ;;  %v7035_v27 = vpack.c.bf16 %v242_v21, %v240_v20  ;;  %v7037_v28 = vpack.c.bf16 %v241_v24, %v239_v22 }
  0xb8   : > { %v8416_v30 = vpop.permute.xlu1 %1743 }
  0xb9   : > { %1066 = vrot.lane.b32.xlu0 %v8195_v12, %s8061_s19  ;;  %7036 = vmatprep.subr.bf16.mxu1 %v7035_v27  ;;  %v7045_v27 = vpack.c.bf16 %v8156_v5, %v8149_v3 }
  0xba   : > { %7810 = vrot.lane.b32.xlu1 %v8153_v4, %s8082_s17  ;;  %6396 = vmatmul.mubr.msk.f32.gmra.mrb[6].mxu0 %vm249_vm2, %v8393_v50 }
  0xbb   : > { %7038 = vmatpush1.bf16.msra.mxu1 %v7037_v28  ;;  %v213_v32 = vpop.permute.xlu0 %212  ;;  %1842 = vmatprep.mubr.f32.mxu0 %v9725_v10 }
  0xbc   : > { %v7691_v33 = vpop.permute.xlu1 %7690  ;;  %7040 = vmatprep.subr.bf16.mxu1 %v7039_v31 }
  0xbd   : > { %1068 = vrot.lane.b32.xlu0 %v8186_v11, %s8061_s19  ;;  %v7693_v40 = vunpack.i.h.bf16 %v7691_v33  ;;  %v7692_v42 = vunpack.i.l.bf16 %v7691_v33 }
  0xbe   : > { %7820 = vrot.lane.b32.xlu1 %v8166_v8, %s8082_s17  ;;  %6345 = vmatmul.mubr.msk.f32.vlgmr.msra.gmra.mrb[0].mxu1 %vm249_vm2, %v213_v32 }
  0xbf   : > { %6401 = vmatmul.mubr.msk.f32.vlgmr.msra.gmra.mrb[0].mxu0 %vm249_vm2, %v8414_v25  ;;  %7042 = vmatpush3.bf16.msra.mxu1 %v7039_v31  ;;  %v215_v36 = vpop.permute.xlu0 %214  ;;  %v1982_v53 = vsel %vm1980_vm6, %v7692_v42, %v7693_v40  ;;  %v7047_v31 = vpack.c.bf16 %v8162_v7, %v8146_v2 }
  0xc0   : > { %v7701_v39 = vpop.permute.xlu1 %7700  ;;  %328 = vmatprep.mubr.f32.mxu1 %v9725_v10  ;;  %1848 = vmatprep.mubr.f32.mxu0 %v9725_v10 }
  0xc1   : > { %v7702_v43 = vunpack.i.l.bf16 %v7701_v39  ;;  %7815 = vrot.lane.b32.xlu0 %v8171_v9, %s8082_s17  ;;  %7044 = vmatprep.subr.bf16.mxu1 %v7043_v34  ;;  %v7703_v6 = vunpack.i.h.bf16 %v7701_v39 }
  0xc2   : > { %1070 = vrot.lane.b32.xlu1 %v8203_v13, %s8061_s19  ;;  %6346 = vmatmul.mubr.msk.f32.gmra.mrb[2].mxu1 %vm249_vm2, %v215_v36 }
  0xc3   : > { %6402 = vmatmul.mubr.msk.f32.gmra.mrb[2].mxu0 %vm249_vm2, %v8401_v19  ;;  %v7696_v1 = vpop.permute.xlu0 %7695  ;;  %334 = vmatprep.mubr.f32.mxu1 %v9725_v10  ;;  %v1981_v51 = vsel %vm1980_vm6, %v7702_v43, %v7692_v42 }
  0xc4   : > { %v7698_v45 = vunpack.i.h.bf16 %v7696_v1  ;;  %v7697_v46 = vunpack.i.l.bf16 %v7696_v1  ;;  %v217_v47 = vpop.permute.xlu1 %216  ;;  %1854 = vmatprep.mubr.f32.mxu0 %v9725_v10 }
  0xc5   : > { %3095 = vrot.lane.b32.xlu0 %v8276_v17, %s8065_s26 }
  0xc6   : > { %v1983_v54 = vsel %vm1980_vm6, %v7703_v6, %v7697_v46  ;;  %3316 = vrot.lane.b32.xlu1 %v8250_v14, %s8067_s8  ;;  %6347 = vmatmul.mubr.msk.f32.gmra.mrb[4].mxu1 %vm249_vm2, %v217_v47  ;;  %v1984_v55 = vsel %vm1980_vm6, %v7697_v46, %v7698_v45  ;;  %v8451_v56 = vpack.c.bf16 %v7698_v45, %v7693_v40  ;;  %vm4459_vm6 = vcmask 572416  }
  0xc7   : > { %6403 = vmatmul.mubr.msk.f32.gmra.mrb[4].mxu0 %vm249_vm2, %v8416_v30  ;;  %v8455_v57 = vpop.permute.xlu0 %1745  ;;  %v7099_v58 = vpack.c.bf16 %v1984_v55, %v1982_v53  ;;  %v7101_v59 = vpack.c.bf16 %v1983_v54, %v1981_v51  ;;  %340 = vmatprep.mubr.f32.mxu1 %v9725_v10 }
  0xc8   : > { %v7706_v61 = vpop.permute.xlu1 %7705  ;;  %1860 = vmatprep.mubr.f32.mxu0 %v9725_v10 }
  0xc9   : > { %3314 = vrot.lane.b32.xlu0 %v8258_v15, %s8067_s8  ;;  %7100 = vmatprep.subr.bf16.mxu0 %v7099_v58  ;;  %v7708_v21 = vunpack.i.h.bf16 %v7706_v61  ;;  %v7707_v22 = vunpack.i.l.bf16 %v7706_v61 }
  0xca   : > { %7825 = vrot.lane.b32.xlu1 %v8153_v4, %s8083_s18  ;;  %7102 = vmatpush1.bf16.msra.mxu0 %v7101_v59 }
  0xcb   : > { %6404 = vmatmul.mubr.msk.f32.gmra.mrb[6].mxu0 %vm249_vm2, %v8455_v57  ;;  %v219_v62 = vpop.permute.xlu0 %218  ;;  %v2211_v3 = vsel %vm2209_vm7, %v7707_v22, %v7708_v21 }
  0xcc   : > { %v7716_v20 = vpop.permute.xlu1 %7715  ;;  %6348 = vmatmul.mubr.msk.f32.gmra.mrb[6].mxu1 %vm249_vm2, %v219_v62  ;;  %2067 = vmatprep.mubr.f32.mxu0 %v9725_v10 }
  0xcd   : > { %v7717_v24 = vunpack.i.l.bf16 %v7716_v20  ;;  %3318 = vrot.lane.b32.xlu0 %v8266_v16, %s8067_s8  ;;  %6765 = vmatprep.mubr.msk.f32.mxu1 %vm249_vm2, %v213_v32  ;;  %v7718_v33 = vunpack.i.h.bf16 %v7716_v20 }
  0xce   : > { %7835 = vrot.lane.b32.xlu1 %v8166_v8, %s8083_s18 }
  0xcf   : > { %6409 = vmatmul.mubr.msk.f32.vlgmr.msra.gmra.mrb[0].mxu0 %vm249_vm2, %v8258_v15  ;;  %v7711_v28 = vpop.permute.xlu0 %7710  ;;  %v2210_v32 = vsel %vm2209_vm7, %v7717_v24, %v7707_v22 }
  0xd0   : > { %v7713_v34 = vunpack.i.h.bf16 %v7711_v28  ;;  %v7712_v39 = vunpack.i.l.bf16 %v7711_v28  ;;  %v8476_v40 = vpop.permute.xlu1 %2191  ;;  %6766 = vmatmul.mubr.msk.f32.vlgmr.msra.gmra.mrb[8].mxu1 %vm249_vm2, %v215_v36  ;;  %2073 = vmatprep.mubr.f32.mxu0 %v9725_v10 }
  0xd1   : > { %7830 = vrot.lane.b32.xlu0 %v8171_v9, %s8083_s18  ;;  %6768 = vmatprep.mubr.msk.f32.mxu1 %vm249_vm2, %v217_v47 }
  0xd2   : > { %v2212_v5 = vsel %vm2209_vm7, %v7718_v33, %v7712_v39  ;;  %3539 = vrot.lane.b32.xlu1 %v8258_v15, %s8070_s11  ;;  %7046 = vmatpush1.bf16.msra.mxu1 %v7045_v27  ;;  %v2213_v2 = vsel %vm2209_vm7, %v7712_v39, %v7713_v34  ;;  %v8488_v7 = vpack.c.bf16 %v7713_v34, %v7708_v21  ;;  %v8542_v33 = vld [vmem:[%s9719_s1 + $0x10] sm:$0xff]  ;;  %vm4704_vm7 = vcmask 457728  }
  0xd3   : > { %6410 = vmatmul.mubr.msk.f32.gmra.mrb[2].mxu0 %vm249_vm2, %v8250_v14  ;;  %v8492_v36 = vpop.permute.xlu0 %2189  ;;  %v7107_v42 = vpack.c.bf16 %v2213_v2, %v2211_v3  ;;  %v7109_v43 = vpack.c.bf16 %v2212_v5, %v2210_v32  ;;  %7048 = vmatprep.subr.bf16.mxu1 %v7047_v31 }
  0xd4   : > { %v7721_v1 = vpop.permute.xlu1 %7720  ;;  %6769 = vmatmul.mubr.msk.f32.gmra.mrb[10].mxu1 %vm249_vm2, %v219_v62  ;;  %2079 = vmatprep.mubr.f32.mxu0 %v9725_v10 }
  0xd5   : > { %3320 = vrot.lane.b32.xlu0 %v8276_v17, %s8067_s8  ;;  %7108 = vmatprep.subr.bf16.mxu0 %v7107_v42  ;;  %v7723_v45 = vunpack.i.h.bf16 %v7721_v1  ;;  %v7722_v46 = vunpack.i.l.bf16 %v7721_v1 }
  0xd6   : > { %3543 = vrot.lane.b32.xlu1 %v8266_v16, %s8070_s11  ;;  %7110 = vmatpush1.bf16.msra.mxu0 %v7109_v43 }
  0xd7   : > { %6411 = vmatmul.mubr.msk.f32.gmra.mrb[4].mxu0 %vm249_vm2, %v8266_v16  ;;  %v8502_v15 = vpop.permute.xlu0 %2193  ;;  %504 = vmatprep.mubr.f32.mxu1 %v9725_v10 }
  0xd8   : > { %v7731_v6 = vpop.permute.xlu1 %7730  ;;  %6353 = vmatmul.mubr.msk.f32.vlgmr.msra.gmra.mrb[0].mxu1 %vm249_vm2, %v8130_v0  ;;  %2085 = vmatprep.mubr.f32.mxu0 %v9725_v10 }
  0xd9   : > { %3541 = vrot.lane.b32.xlu0 %v8250_v14, %s8070_s11  ;;  %510 = vmatprep.mubr.f32.mxu1 %v9725_v10  ;;  %v7732_v47 = vunpack.i.l.bf16 %v7731_v6  ;;  %v7733_v51 = vunpack.i.h.bf16 %v7731_v6  ;;  %v2436_v14 = vsel %vm2434_vm8, %v7722_v46, %v7723_v45 }
  0xda   : > { %7845 = vrot.lane.b32.xlu1 %v8171_v9, %s8084_s20  ;;  %7050 = vmatpush3.bf16.msra.mxu1 %v7047_v31 }
  0xdb   : > { %6412 = vmatmul.mubr.msk.f32.gmra.mrb[6].mxu0 %vm249_vm2, %v8276_v17  ;;  %v7726_v16 = vpop.permute.xlu0 %7725  ;;  %v2435_v58 = vsel %vm2434_vm8, %v7732_v47, %v7722_v46 }
  0xdc   : > { %v7728_v53 = vunpack.i.h.bf16 %v7726_v16  ;;  %v7727_v54 = vunpack.i.l.bf16 %v7726_v16  ;;  %v7736_v55 = vpop.permute.xlu1 %7735  ;;  %6354 = vmatmul.mubr.msk.f32.gmra.mrb[2].mxu1 %vm249_vm2, %v8195_v12  ;;  %2292 = vmatprep.mubr.f32.mxu0 %v9725_v10  ;;  %v8578_v16 = vld [vmem:[%s9719_s1 + $0x30] sm:$0xff] }
  0xdd   : > { %7840 = vrot.lane.b32.xlu0 %v8153_v4, %s8084_s20  ;;  %516 = vmatprep.mubr.f32.mxu1 %v9725_v10  ;;  %v7737_v27 = vunpack.i.l.bf16 %v7736_v55 }
  0xde   : > { %v2437_v59 = vsel %vm2434_vm8, %v7733_v51, %v7727_v54  ;;  %3545 = vrot.lane.b32.xlu1 %v8276_v17, %s8070_s11  ;;  %v2438_v61 = vsel %vm2434_vm8, %v7727_v54, %v7728_v53  ;;  %v8525_v62 = vpack.c.bf16 %v7728_v53, %v7723_v45  ;;  %v7738_v17 = vunpack.i.h.bf16 %v7736_v55 }
  0xdf   : > { %6417 = vmatmul.mubr.msk.f32.vlgmr.msra.gmra.mrb[0].mxu0 %vm249_vm2, %v8492_v36  ;;  %v8529_v20 = vpop.permute.xlu0 %2195  ;;  %v7115_v21 = vpack.c.bf16 %v2438_v61, %v2436_v14  ;;  %v7117_v22 = vpack.c.bf16 %v2437_v59, %v2435_v58  ;;  %vm4935_vm8 = vcmask 449536  }
  0xe0   : > { %v7746_v24 = vpop.permute.xlu1 %7745  ;;  %6355 = vmatmul.mubr.msk.f32.gmra.mrb[4].mxu1 %vm249_vm2, %v8186_v11  ;;  %2298 = vmatprep.mubr.f32.mxu0 %v9725_v10  ;;  %v636_v42 = vsel %vm634_vm9, %v7737_v27, %v7738_v17 }
  0xe1   : > { %7850 = vrot.lane.b32.xlu0 %v8166_v8, %s8084_s20  ;;  %7116 = vmatprep.subr.bf16.mxu0 %v7115_v21  ;;  %v7747_v28 = vunpack.i.l.bf16 %v7746_v24  ;;  %v7748_v34 = vunpack.i.h.bf16 %v7746_v24 }
  0xe2   : > { %7860 = vrot.lane.b32.xlu1 %v8171_v9, %s8085_s21  ;;  %7118 = vmatpush1.bf16.msra.mxu0 %v7117_v22 }
  0xe3   : > { %6418 = vmatmul.mubr.msk.f32.gmra.mrb[2].mxu0 %vm249_vm2, %v8476_v40  ;;  %v7741_v31 = vpop.permute.xlu0 %7740  ;;  %522 = vmatprep.mubr.f32.mxu1 %v9725_v10  ;;  %v635_v5 = vsel %vm634_vm9, %v7747_v28, %v7737_v27 }
  0xe4   : > { %v7743_v39 = vunpack.i.h.bf16 %v7741_v31  ;;  %v7742_v32 = vunpack.i.l.bf16 %v7741_v31  ;;  %v8544_v3 = vpop.permute.xlu1 %2416  ;;  %6356 = vmatmul.mubr.msk.f32.gmra.mrb[6].mxu1 %vm249_vm2, %v8203_v13  ;;  %2304 = vmatprep.mubr.f32.mxu0 %v9725_v10 }
  0xe5   : > { %7855 = vrot.lane.b32.xlu0 %v8153_v4, %s8085_s21  ;;  %6775 = vmatprep.mubr.msk.f32.mxu1 %vm249_vm2, %v8130_v0  ;;  %v8565_v0 = vld [vmem:[%s9719_s1 + $0x50] sm:$0xff] }
  0xe6   : > { %v637_v2 = vsel %vm634_vm9, %v7748_v34, %v7742_v32  ;;  %3989 = vrot.lane.b32.xlu1 %v8542_v33, %s8071_s12  ;;  %v638_v43 = vsel %vm634_vm9, %v7742_v32, %v7743_v39  ;;  %v7055_v47 = vpack.c.bf16 %v7743_v39, %v7738_v17  ;;  %v8041_v32 = vld [vmem:[%s8140_s23] sm:$0xff]  ;;  %vm5166_vm9 = vcmask 441344  }
  0xe7   : > { %6419 = vmatmul.mubr.msk.f32.gmra.mrb[4].mxu0 %vm249_vm2, %v8502_v15  ;;  %v8560_v1 = vpop.permute.xlu0 %2414  ;;  %v7051_v6 = vpack.c.bf16 %v638_v43, %v636_v42  ;;  %v7053_v45 = vpack.c.bf16 %v637_v2, %v635_v5  ;;  %v8042_v5 = vld [vmem:[%s8140_s23 + $0x20] sm:$0xff] }
  0xe8   : > { %v8567_v46 = vpop.permute.xlu1 %2418  ;;  %6776 = vmatmul.mubr.msk.f32.vlgmr.msra.gmra.mrb[8].mxu1 %vm249_vm2, %v8195_v12  ;;  %2310 = vmatprep.mubr.f32.mxu0 %v9725_v10  ;;  %v7894_v2 = vpack.i.bf16 %v8042_v5, %v8041_v32 }
  0xe9   : > { %7865 = vrot.lane.b32.xlu0 %v8166_v8, %s8085_s21  ;;  %7052 = vmatprep.subr.bf16.mxu1 %v7051_v6  ;;  %v8044_v6 = vld [vmem:[%s8140_s23 + $0x30] sm:$0xff] }
  0xea   : > { %3993 = vrot.lane.b32.xlu1 %v8565_v0, %s8071_s12  ;;  %7054 = vmatpush1.bf16.msra.mxu1 %v7053_v45 }
  0xeb   : > { %6420 = vmatmul.mubr.msk.f32.gmra.mrb[6].mxu0 %vm249_vm2, %v8529_v20  ;;  %v615_v51 = vpop.permute.xlu0 %614  ;;  %6778 = vmatprep.mubr.msk.f32.mxu1 %vm249_vm2, %v8186_v11  ;;  %v8596_v11 = vld [vmem:[%s9719_s1 + $0x70] sm:$0xff] }
  0xec   : > { %v7751_v12 = vpop.permute.xlu1 %7750  ;;  %7056 = vmatprep.subr.bf16.mxu1 %v7055_v47  ;;  %6779 = vmatmul.mubr.msk.f32.gmra.mrb[10].mxu1 %vm249_vm2, %v8203_v13 }
  0xed   : > { %2517 = vmatprep.mubr.f32.mxu0 %v9725_v10  ;;  %3991 = vrot.lane.b32.xlu0 %v8578_v16, %s8071_s12  ;;  %v7753_v54 = vunpack.i.h.bf16 %v7751_v12  ;;  %v7752_v55 = vunpack.i.l.bf16 %v7751_v12 }
  0xee   : > { %7875 = vrot.lane.b32.xlu1 %v8171_v9, %s8086_s6  ;;  %717 = vmatprep.mubr.f32.mxu1 %v9725_v10 }
  0xef   : > { %6425 = vmatmul.mubr.msk.f32.vlgmr.msra.gmra.mrb[0].mxu0 %vm249_vm2, %v8560_v1  ;;  %v617_v53 = vpop.permute.xlu0 %616  ;;  %v2661_v22 = vsel %vm2659_vm10, %v7752_v55, %v7753_v54 }
  0xf0   : > { %v7761_v13 = vpop.permute.xlu1 %7760  ;;  %6361 = vmatmul.mubr.msk.f32.vlgmr.msra.gmra.mrb[0].mxu1 %vm249_vm2, %v615_v51  ;;  %2523 = vmatprep.mubr.f32.mxu0 %v9725_v10 }
  0xf1   : > { %7058 = vmatpush3.bf16.msra.mxu1 %v7055_v47  ;;  %7870 = vrot.lane.b32.xlu0 %v8153_v4, %s8086_s6  ;;  %v7762_v9 = vunpack.i.l.bf16 %v7761_v13  ;;  %v7763_v58 = vunpack.i.h.bf16 %v7761_v13 }
  0xf2   : > { %3995 = vrot.lane.b32.xlu1 %v8596_v11, %s8071_s12  ;;  %723 = vmatprep.mubr.f32.mxu1 %v9725_v10  ;;  %s8087_s12 = smov 70  }
  0xf3   : > { %6426 = vmatmul.mubr.msk.f32.gmra.mrb[2].mxu0 %vm249_vm2, %v8544_v3  ;;  %v7756_v14 = vpop.permute.xlu0 %7755  ;;  %v2660_v24 = vsel %vm2659_vm10, %v7762_v9, %v7752_v55  ;;  %v4669_v55 = vld [vmem:[%s8140_s23 + $0x28] sm:$0xff]  ;;  %v4670_v9 = vld [vmem:[%s8140_s23 + $0x30] sm:$0xff] }
  0xf4   : > { %v7758_v59 = vunpack.i.h.bf16 %v7756_v14  ;;  %v7757_v61 = vunpack.i.l.bf16 %v7756_v14  ;;  %v619_v21 = vpop.permute.xlu1 %618  ;;  %6362 = vmatmul.mubr.msk.f32.gmra.mrb[2].mxu1 %vm249_vm2, %v617_v53  ;;  %2529 = vmatprep.mubr.f32.mxu0 %v9725_v10 }
  0xf5   : > { %7880 = vrot.lane.b32.xlu0 %v8166_v8, %s8086_s6  ;;  %729 = vmatprep.mubr.f32.mxu1 %v9725_v10 }
  0xf6   : > { %v2662_v17 = vsel %vm2659_vm10, %v7763_v58, %v7757_v61  ;;  %4216 = vrot.lane.b32.xlu1 %v8578_v16, %s8076_s5  ;;  %v2663_v27 = vsel %vm2659_vm10, %v7757_v61, %v7758_v59  ;;  %v8616_v28 = vpack.c.bf16 %v7758_v59, %v7753_v54  ;;  %vm5397_vm10 = vcmask 433152  }
  0xf7   : > { %6427 = vmatmul.mubr.msk.f32.gmra.mrb[4].mxu0 %vm249_vm2, %v8567_v46  ;;  %v8620_v8 = vpop.permute.xlu0 %2420  ;;  %v7123_v31 = vpack.c.bf16 %v2663_v27, %v2661_v22  ;;  %v7125_v34 = vpack.c.bf16 %v2662_v17, %v2660_v24  ;;  %v4665_v22 = vld [vmem:[%s8140_s23 + $0x8] sm:$0xff]  ;;  %v4666_v24 = vld [vmem:[%s8140_s23 + $0x10] sm:$0xff] }
  0xf8   : > { %v621_v39 = vpop.permute.xlu1 %620  ;;  %6363 = vmatmul.mubr.msk.f32.gmra.mrb[4].mxu1 %vm249_vm2, %v619_v21  ;;  %2535 = vmatprep.mubr.f32.mxu0 %v9725_v10 }
  0xf9   : > { %4214 = vrot.lane.b32.xlu0 %v8542_v33, %s8076_s5  ;;  %7124 = vmatprep.subr.bf16.mxu0 %v7123_v31 }
  0xfa   : > { %7885 = vrot.lane.b32.xlu1 %v8153_v4, %s8087_s12  ;;  %7126 = vmatpush1.bf16.msra.mxu0 %v7125_v34  ;;  %v8043_v4 = vld [vmem:[%s8140_s23 + $0x28] sm:$0xff] }
  0xfb   : > { %6428 = vmatmul.mubr.msk.f32.gmra.mrb[6].mxu0 %vm249_vm2, %v8620_v8  ;;  %v8631_v42 = vpop.permute.xlu0 %2639  ;;  %735 = vmatprep.mubr.f32.mxu1 %v9725_v10  ;;  %v7889_v45 = vpack.i.bf16 %v8044_v6, %v8043_v4 }
  0xfc   : > { %v7766_v43 = vpop.permute.xlu1 %7765  ;;  %6364 = vmatmul.mubr.msk.f32.gmra.mrb[6].mxu1 %vm249_vm2, %v621_v39  ;;  %2742 = vmatprep.mubr.f32.mxu0 %v9725_v10 }
  0xfd   : > { %4218 = vrot.lane.b32.xlu0 %v8565_v0, %s8076_s5  ;;  %6785 = vmatprep.mubr.msk.f32.mxu1 %vm249_vm2, %v615_v51  ;;  %v7768_v51 = vunpack.i.h.bf16 %v7766_v43  ;;  %v7767_v13 = vunpack.i.l.bf16 %v7766_v43  ;;  %v8673_v43 = vpack.i.bf16 %v4666_v24, %v4665_v22 }
  0xfe   : > { %7895 = vrot.lane.b32.xlu1 %v7894_v2, %s8087_s12 }
  0xff   : > { %6433 = vmatmul.mubr.msk.f32.vlgmr.msra.gmra.mrb[0].mxu0 %vm249_vm2, %v8631_v42  ;;  %v8643_v47 = vpop.permute.xlu0 %2641  ;;  %v861_v31 = vsel %vm859_vm11, %v7767_v13, %v7768_v51 }
 0x100   : > { %v7776_v12 = vpop.permute.xlu1 %7775  ;;  %6786 = vmatmul.mubr.msk.f32.vlgmr.msra.gmra.mrb[8].mxu1 %vm249_vm2, %v617_v53  ;;  %2748 = vmatprep.mubr.f32.mxu0 %v9725_v10 }
 0x101   : > { %7890 = vrot.lane.b32.xlu0 %v7889_v45, %s8087_s12  ;;  %6788 = vmatprep.mubr.msk.f32.mxu1 %vm249_vm2, %v619_v21  ;;  %v7777_v54 = vunpack.i.l.bf16 %v7776_v12  ;;  %v7778_v14 = vunpack.i.h.bf16 %v7776_v12  ;;  %v8658_v21 = vpack.i.bf16 %v4670_v9, %v4669_v55 }
 0x102   : > { %4439 = vrot.lane.b32.xlu1 %v8542_v33, %s8078_s7 }
 0x103   : > { %6434 = vmatmul.mubr.msk.f32.gmra.mrb[2].mxu0 %vm249_vm2, %v8643_v47  ;;  %v7771_v53 = vpop.permute.xlu0 %7770  ;;  %v860_v17 = vsel %vm859_vm11, %v7777_v54, %v7767_v13  ;;  %v8680_v13 = vld [vmem:[%s8140_s23] sm:$0xff] }
 0x104   : > { %v7773_v58 = vunpack.i.h.bf16 %v7771_v53  ;;  %v7772_v59 = vunpack.i.l.bf16 %v7771_v53  ;;  %v7781_v61 = vpop.permute.xlu1 %7780  ;;  %6789 = vmatmul.mubr.msk.f32.gmra.mrb[10].mxu1 %vm249_vm2, %v621_v39  ;;  %2754 = vmatprep.mubr.f32.mxu0 %v9725_v10  ;;  %v8683_v54 = vld [vmem:[%s8140_s23 + $0x20] sm:$0xff] }
 0x105   : > { %4220 = vrot.lane.b32.xlu0 %v8596_v11, %s8076_s5  ;;  %942 = vmatprep.mubr.f32.mxu1 %v9725_v10  ;;  %v7783_v4 = vunpack.i.h.bf16 %v7781_v61  ;;  %v7782_v6 = vunpack.i.l.bf16 %v7781_v61  ;;  %s8088_s5 = smov 56  }
 0x106   : > { %v862_v27 = vsel %vm859_vm11, %v7778_v14, %v7772_v59  ;;  %4443 = vrot.lane.b32.xlu1 %v8565_v0, %s8078_s7  ;;  %v863_v34 = vsel %vm859_vm11, %v7772_v59, %v7773_v58  ;;  %v7063_v12 = vpack.c.bf16 %v7773_v58, %v7768_v51  ;;  %v8692_v58 = vpack.i.bf16 %v8683_v54, %v8680_v13 }
 0x107   : > { %v8669_v39 = vpop.permute.xlu0 %2643  ;;  %v7059_v32 = vpack.c.bf16 %v863_v34, %v861_v31  ;;  %v7061_v5 = vpack.c.bf16 %v862_v27, %v860_v17  ;;  %v2886_v61 = vsel %vm2884_vm12, %v7782_v6, %v7783_v4  ;;  %vm5624_vm11 = vcmask 424960  }
 0x108   : > { %v7791_v2 = vpop.permute.xlu1 %7790  ;;  %6435 = vmatmul.mubr.msk.f32.gmra.mrb[4].mxu0 %vm249_vm2, %v8669_v39 }
 0x109   : > { %v7792_v45 = vunpack.i.l.bf16 %v7791_v2  ;;  %4441 = vrot.lane.b32.xlu0 %v8578_v16, %s8078_s7  ;;  %7060 = vmatprep.subr.bf16.mxu1 %v7059_v32  ;;  %v7793_v9 = vunpack.i.h.bf16 %v7791_v2 }
 0x10a   : > { %7905 = vrot.lane.b32.xlu1 %v8658_v21, %s8088_s5  ;;  %7062 = vmatpush1.bf16.msra.mxu1 %v7061_v5 }
 0x10b   : > { %v7786_v55 = vpop.permute.xlu0 %7785  ;;  %7064 = vmatprep.subr.bf16.mxu1 %v7063_v12  ;;  %2760 = vmatprep.mubr.f32.mxu0 %v9725_v10  ;;  %v2885_v51 = vsel %vm2884_vm12, %v7792_v45, %v7782_v6 }
 0x10c   : > { %v7788_v53 = vunpack.i.h.bf16 %v7786_v55  ;;  %v7787_v14 = vunpack.i.l.bf16 %v7786_v55  ;;  %v840_v59 = vpop.permute.xlu1 %839 }
 0x10d   : > { %7900 = vrot.lane.b32.xlu0 %v8673_v43, %s8088_s5  ;;  %6369 = vmatmul.mubr.msk.f32.vlgmr.msra.gmra.mrb[0].mxu1 %vm249_vm2, %v840_v59 }
 0x10e   : > { %v2887_v22 = vsel %vm2884_vm12, %v7793_v9, %v7787_v14  ;;  %4445 = vrot.lane.b32.xlu1 %v8596_v11, %s8078_s7  ;;  %7066 = vmatpush3.bf16.msra.mxu1 %v7063_v12  ;;  %v2888_v24 = vsel %vm2884_vm12, %v7787_v14, %v7788_v53  ;;  %v8699_v17 = vpack.c.bf16 %v7788_v53, %v7783_v4  ;;  %s8089_s7 = smov 55   ;;  %vm5885_vm12 = vcmask 556032  }
 0x10f   : > { %v8701_v27 = vpop.permute.xlu0 %2645  ;;  %7283 = vmatprep.subr.bf16.mxu1 %v8311_v37  ;;  %948 = vmatprep.mubr.f32.mxu1 %v9725_v10  ;;  %v7131_v31 = vpack.c.bf16 %v2888_v24, %v2886_v61  ;;  %v7133_v34 = vpack.c.bf16 %v2887_v22, %v2885_v51 }
 0x110   : > { %v842_v32 = vpop.permute.xlu1 %841  ;;  %6436 = vmatmul.mubr.msk.f32.gmra.mrb[6].mxu0 %vm249_vm2, %v8701_v27 }
 0x111   : > { %7910 = vrot.lane.b32.xlu0 %v8692_v58, %s8088_s5  ;;  %6370 = vmatmul.mubr.msk.f32.gmra.mrb[2].mxu1 %vm249_vm2, %v842_v32 }
 0x112   : > { %7132 = vmatprep.subr.bf16.mxu0 %v7131_v31  ;;  %4674 = vrot.lane.b32.xlu1 %v8578_v16, %s8061_s19 }
 0x113   : > { %7134 = vmatpush1.bf16.msra.mxu0 %v7133_v34  ;;  %v8712_v5 = vpop.permute.xlu0 %2864  ;;  %954 = vmatprep.mubr.f32.mxu1 %v9725_v10 }
 0x114   : > { %9732 = vst [vmem:[#allocation3_spill] sm:$0xff] %v8712_v5  ;;  %v844_v37 = vpop.permute.xlu1 %843  ;;  %2967 = vmatprep.mubr.f32.mxu0 %v9725_v10 }
 0x115   : > { %4672 = vrot.lane.b32.xlu0 %v8542_v33, %s8061_s19  ;;  %6371 = vmatmul.mubr.msk.f32.gmra.mrb[4].mxu1 %vm249_vm2, %v844_v37 }
 0x116   : > { %6441 = vmatmul.mubr.msk.f32.vlgmr.msra.gmra.mrb[0].mxu0 %vm249_vm2, %v8712_v5  ;;  %7915 = vrot.lane.b32.xlu1 %v8673_v43, %s8089_s7 }
 0x117   : > { %v8723_v2 = vpop.permute.xlu0 %2866  ;;  %960 = vmatprep.mubr.f32.mxu1 %v9725_v10  ;;  %2973 = vmatprep.mubr.f32.mxu0 %v9725_v10 }
 0x118   : > { %9733 = vst [vmem:[#allocation4_spill] sm:$0xff] %v8723_v2  ;;  %v846_v4 = vpop.permute.xlu1 %845 }
 0x119   : > { %4676 = vrot.lane.b32.xlu0 %v8565_v0, %s8061_s19  ;;  %6372 = vmatmul.mubr.msk.f32.gmra.mrb[6].mxu1 %vm249_vm2, %v846_v4 }
 0x11a   : > { %6442 = vmatmul.mubr.msk.f32.gmra.mrb[2].mxu0 %vm249_vm2, %v8723_v2  ;;  %7925 = vrot.lane.b32.xlu1 %v8692_v58, %s8089_s7 }
 0x11b   : > { %6795 = vmatprep.mubr.msk.f32.mxu1 %vm249_vm2, %v840_v59  ;;  %v8735_v6 = vpop.permute.xlu0 %2868  ;;  %2979 = vmatprep.mubr.f32.mxu0 %v9725_v10 }
 0x11c   : > { %9734 = vst [vmem:[#allocation5_spill] sm:$0xff] %v8735_v6  ;;  %v7801_v45 = vpop.permute.xlu1 %7800 }
 0x11d   : > { %7920 = vrot.lane.b32.xlu0 %v8658_v21, %s8089_s7  ;;  %6796 = vmatmul.mubr.msk.f32.vlgmr.msra.gmra.mrb[8].mxu1 %vm249_vm2, %v842_v32  ;;  %v7803_v12 = vunpack.i.h.bf16 %v7801_v45  ;;  %v7802_v55 = vunpack.i.l.bf16 %v7801_v45  ;;  %v8771_v45 = vld [vmem:[%s8140_s23 + $0x18] sm:$0xff] }
 0x11e   : > { %7284 = vmatpush1.bf16.msra.mxu1 %v8313_v38  ;;  %6443 = vmatmul.mubr.msk.f32.gmra.mrb[4].mxu0 %vm249_vm2, %v8735_v6 }
 0x11f   : > { %4911 = vrot.lane.b32.xlu1 %v8542_v33, %s8065_s26  ;;  %6798 = vmatprep.mubr.msk.f32.mxu1 %vm249_vm2, %v844_v37  ;;  %v7796_v9 = vpop.permute.xlu0 %7795  ;;  %v3113_v51 = vsel %vm3109_vm13, %v7802_v55, %v7803_v12 }
 0x120   : > { %7072 = vmatprep.subr.bf16.mxu1 %v8309_v35  ;;  %v7798_v53 = vunpack.i.h.bf16 %v7796_v9  ;;  %v7797_v14 = vunpack.i.l.bf16 %v7796_v9  ;;  %v8748_v59 = vpop.permute.xlu1 %2870  ;;  %2985 = vmatprep.mubr.f32.mxu0 %v9725_v10 }
 0x121   : > { %9735 = vst [vmem:[#allocation6_spill] sm:$0xff] %v8748_v59  ;;  %4678 = vrot.lane.b32.xlu0 %v8596_v11, %s8061_s19  ;;  %6799 = vmatmul.mubr.msk.f32.gmra.mrb[10].mxu1 %vm249_vm2, %v846_v4  ;;  %s8090_s19 = smov 54  }
 0x122   : > { %6444 = vmatmul.mubr.msk.f32.gmra.mrb[6].mxu0 %vm249_vm2, %v8748_v59  ;;  %v3111_v38 = vsel %vm3109_vm13, %v7797_v14, %v7798_v53  ;;  %1173 = vmatprep.mubr.f32.mxu1 %v9725_v10  ;;  %v8759_v61 = vpack.c.bf16 %v7803_v12, %v7798_v53  ;;  %v8774_v12 = vld [vmem:[%s8140_s23 + $0x38] sm:$0xff]  ;;  %s8091_s23 = smov 53  }
 0x123   : > { %4915 = vrot.lane.b32.xlu1 %v8565_v0, %s8065_s26  ;;  %v7806_v22 = vpop.permute.xlu0 %7805  ;;  %v7139_v24 = vpack.c.bf16 %v3113_v51, %v3111_v38  ;;  %3192 = vmatprep.mubr.f32.mxu0 %v9725_v10 }
 0x124   : > { %v7808_v31 = vunpack.i.h.bf16 %v7806_v22  ;;  %v7807_v34 = vunpack.i.l.bf16 %v7806_v22  ;;  %v8764_v32 = vpop.permute.xlu1 %3091 }
 0x125   : > { %9736 = vst [vmem:[#allocation7_spill] sm:$0xff] %v8764_v32  ;;  %4913 = vrot.lane.b32.xlu0 %v8578_v16, %s8065_s26  ;;  %7140 = vmatprep.subr.bf16.mxu0 %v7139_v24 }
 0x126   : > { %v3110_v37 = vsel %vm3109_vm13, %v7807_v34, %v7797_v14  ;;  %v3112_v4 = vsel %vm3109_vm13, %v7808_v31, %v7802_v55  ;;  %v8786_v55 = vpack.i.bf16 %v8774_v12, %v8771_v45  ;;  %vm5896_vm13 = vcmask 720416  }
 0x127   : > { %7935 = vrot.lane.b32.xlu1 %v8658_v21, %s8090_s19  ;;  %v8778_v9 = vpop.permute.xlu0 %3089  ;;  %v7141_v53 = vpack.c.bf16 %v3112_v4, %v3110_v37 }
 0x128   : > { %9737 = vst [vmem:[#allocation8_spill] sm:$0xff] %v8778_v9  ;;  %v8780_v38 = vpop.permute.xlu1 %3093 }
 0x129   : > { %9738 = vst [vmem:[#allocation9_spill] sm:$0xff] %v8780_v38  ;;  %7930 = vrot.lane.b32.xlu0 %v8673_v43, %s8090_s19  ;;  %7142 = vmatpush1.bf16.msra.mxu0 %v7141_v53 }
 0x12b   : > { %7945 = vrot.lane.b32.xlu1 %v8692_v58, %s8090_s19  ;;  %v1067_v14 = vpop.permute.xlu0 %1066 }
 0x12c   : > { %v7811_v51 = vpop.permute.xlu1 %7810  ;;  %6378 = vmatmul.mubr.msk.f32.vlgmr.msra.gmra.mrb[2].mxu1 %vm249_vm2, %v1067_v14  ;;  %6449 = vmatmul.mubr.msk.f32.vlgmr.msra.gmra.mrb[0].mxu0 %vm249_vm2, %v8778_v9 }
 0x12d   : > { %7074 = vmatpush3.bf16.msra.mxu1 %v8309_v35  ;;  %7940 = vrot.lane.b32.xlu0 %v8786_v55, %s8088_s5  ;;  %v7813_v35 = vunpack.i.h.bf16 %v7811_v51  ;;  %v7812_v31 = vunpack.i.l.bf16 %v7811_v51 }
 0x12e   : > { %7080 = vmatprep.subr.bf16.mxu1 %v8323_v44  ;;  %1179 = vmatprep.mubr.f32.mxu1 %v9725_v10 }
 0x12f   : > { %5142 = vrot.lane.b32.xlu1 %v8542_v33, %s8067_s8  ;;  %v1069_v22 = vpop.permute.xlu0 %1068  ;;  %3198 = vmatprep.mubr.f32.mxu0 %v9725_v10  ;;  %v3336_v51 = vsel %vm3334_vm14, %v7812_v31, %v7813_v35 }
 0x130   : > { %v7821_v24 = vpop.permute.xlu1 %7820  ;;  %6379 = vmatmul.mubr.msk.f32.gmra.mrb[4].mxu1 %vm249_vm2, %v1069_v22  ;;  %6450 = vmatmul.mubr.msk.f32.gmra.mrb[2].mxu0 %vm249_vm2, %v8764_v32 }
 0x131   : > { %4917 = vrot.lane.b32.xlu0 %v8596_v11, %s8065_s26  ;;  %1185 = vmatprep.mubr.f32.mxu1 %v9725_v10  ;;  %v7822_v34 = vunpack.i.l.bf16 %v7821_v24  ;;  %v7823_v4 = vunpack.i.h.bf16 %v7821_v24  ;;  %v9739_v24 = vmov 0.0   ;;  %s8092_s26 = smov 52  }
 0x132   : > { %3204 = vmatprep.mubr.f32.mxu0 %v9725_v10 }
 0x133   : > { %5144 = vrot.lane.b32.xlu1 %v8578_v16, %s8067_s8  ;;  %v7816_v37 = vpop.permute.xlu0 %7815 }
 0x134   : > { %v7818_v53 = vunpack.i.h.bf16 %v7816_v37  ;;  %v7817_v9 = vunpack.i.l.bf16 %v7816_v37  ;;  %v1071_v59 = vpop.permute.xlu1 %1070  ;;  %6451 = vmatmul.mubr.msk.f32.gmra.mrb[4].mxu0 %vm249_vm2, %v8780_v38  ;;  %v3335_v38 = vsel %vm3334_vm14, %v7822_v34, %v7812_v31 }
 0x135   : > { %6380 = vmatmul.mubr.msk.f32.gmra.mrb[6].mxu1 %vm249_vm2, %v1071_v59  ;;  %7950 = vrot.lane.b32.xlu0 %v8786_v55, %s8089_s7 }
 0x136   : > { %v3337_v10 = vsel %vm3334_vm14, %v7823_v4, %v7817_v9  ;;  %v8817_v32 = vpack.c.bf16 %v7818_v53, %v7813_v35  ;;  %6805 = vmatprep.mubr.msk.f32.mxu1 %vm249_vm2, %v8297_v18  ;;  %3210 = vmatprep.mubr.f32.mxu0 %v9739_v24  ;;  %v3338_v37 = vsel %vm3334_vm14, %v7817_v9, %v7818_v53 }
 0x137   : > { %7955 = vrot.lane.b32.xlu1 %v8673_v43, %s8091_s23  ;;  %v8826_v6 = vpop.permute.xlu0 %3095  ;;  %v7147_v2 = vpack.c.bf16 %v3338_v37, %v3336_v51  ;;  %v7149_v5 = vpack.c.bf16 %v3337_v10, %v3335_v38 }
 0x138   : > { %v8828_v4 = vpop.permute.xlu1 %3316  ;;  %6452 = vmatmul.mubr.msk.f32.gmra.mrb[6].mxu0 %vm249_vm2, %v8826_v6 }
 0x139   : > { %6806 = vmatmul.mubr.msk.f32.vlgmr.msra.gmra.mrb[8].mxu1 %vm249_vm2, %v1067_v14  ;;  %7148 = vmatprep.subr.bf16.mxu0 %v7147_v2 }
 0x13a   : > { %7082 = vmatpush3.bf16.msra.mxu1 %v8323_v44  ;;  %6808 = vmatprep.mubr.msk.f32.mxu1 %vm249_vm2, %v1069_v22 }
 0x13b   : > { %7088 = vmatprep.subr.bf16.mxu1 %v8351_v63  ;;  %7965 = vrot.lane.b32.xlu1 %v8786_v55, %s8090_s19  ;;  %v8838_v18 = vpop.permute.xlu0 %3314 }
 0x13c   : > { %7150 = vmatpush1.bf16.msra.mxu0 %v7149_v5  ;;  %v8840_v10 = vpop.permute.xlu1 %7825  ;;  %3417 = vmatprep.mubr.f32.mxu0 %v9739_v24 }
 0x13d   : > { %6809 = vmatmul.mubr.msk.f32.gmra.mrb[10].mxu1 %vm249_vm2, %v1071_v59  ;;  %5146 = vrot.lane.b32.xlu0 %v8565_v0, %s8067_s8  ;;  %v7828_v2 = vunpack.i.h.bf16 %v8840_v10 }
 0x13e   : > { %6815 = vmatprep.mubr.msk.f32.mxu1 %vm249_vm2, %v8315_v41  ;;  %v7827_v41 = vunpack.i.l.bf16 %v8840_v10 }
 0x13f   : > { %6457 = vmatmul.mubr.msk.f32.vlgmr.msra.gmra.mrb[0].mxu0 %vm249_vm2, %v8838_v18  ;;  %v8850_v44 = vpop.permute.xlu0 %3318  ;;  %5148 = vrot.lane.b32.xlu1 %v8596_v11, %s8067_s8  ;;  %s6553_s8 = sshll.u32 %s9748_s16, 5 }
 0x140   : > { %v7836_v5 = vpop.permute.xlu1 %7835  ;;  %3423 = vmatprep.mubr.f32.mxu0 %v9739_v24  ;;  %s197_s18 = scalar_lea.vmem %s9722_s4, %s6553_s8 }
 0x141   : > { %6816 = vmatmul.mubr.msk.f32.vlgmr.msra.gmra.mrb[8].mxu1 %vm249_vm2, %v8334_v52  ;;  %7960 = vrot.lane.b32.xlu0 %v8658_v21, %s8091_s23  ;;  %v7838_v59 = vunpack.i.h.bf16 %v7836_v5  ;;  %v7837_v9 = vunpack.i.l.bf16 %v7836_v5 }
 0x142   : > { %7090 = vmatpush3.bf16.msra.mxu1 %v8351_v63  ;;  %6818 = vmatprep.mubr.msk.f32.mxu1 %vm249_vm2, %v8325_v49  ;;  %v3561_v63 = vsel %vm3559_vm15, %v7827_v41, %v7828_v2 }
 0x143   : > { %7096 = vmatprep.subr.bf16.mxu1 %v8391_v48  ;;  %6458 = vmatmul.mubr.msk.f32.gmra.mrb[2].mxu0 %vm249_vm2, %v8828_v4  ;;  %v8867_v52 = vpop.permute.xlu0 %7830 }
 0x144   : > { %v7833_v38 = vunpack.i.h.bf16 %v8867_v52  ;;  %v7832_v14 = vunpack.i.l.bf16 %v8867_v52  ;;  %v8871_v22 = vpop.permute.xlu1 %3539  ;;  %3429 = vmatprep.mubr.f32.mxu0 %v9739_v24  ;;  %7975 = vrot.lane.b32.xlu1 %v8786_v55, %s8091_s23  ;;  %v3560_v55 = vsel %vm3559_vm15, %v7837_v9, %v7827_v41 }
 0x145   : > { %6819 = vmatmul.mubr.msk.f32.gmra.mrb[10].mxu1 %vm249_vm2, %v8340_v60  ;;  %7970 = vrot.lane.b32.xlu0 %v8692_v58, %s8091_s23 }
 0x146   : > { %v3562_v49 = vsel %vm3559_vm15, %v7838_v59, %v7832_v14  ;;  %6825 = vmatprep.mubr.msk.f32.mxu1 %vm249_vm2, %v8363_v26  ;;  %v3563_v35 = vsel %vm3559_vm15, %v7832_v14, %v7833_v38 }
 0x147   : > { %6459 = vmatmul.mubr.msk.f32.gmra.mrb[4].mxu0 %vm249_vm2, %v8850_v44  ;;  %v8892_v60 = vpop.permute.xlu0 %3320  ;;  %v7155_v58 = vpack.c.bf16 %v3563_v35, %v3561_v63  ;;  %v7157_v31 = vpack.c.bf16 %v3562_v49, %v3560_v55  ;;  %v8045_v49 = vld [vmem:[%s9719_s1 + $0x8] sm:$0xff] }
 0x148   : > { %v8894_v34 = vpop.permute.xlu1 %3543  ;;  %3435 = vmatprep.mubr.f32.mxu0 %v9739_v24  ;;  %5377 = vrot.lane.b32.xlu1 %v8565_v0, %s8070_s11 }
 0x149   : > { %6826 = vmatmul.mubr.msk.f32.vlgmr.msra.gmra.mrb[8].mxu1 %vm249_vm2, %v8353_v23  ;;  %7156 = vmatprep.subr.bf16.mxu0 %v7155_v58 }
 0x14a   : > { %7098 = vmatpush3.bf16.msra.mxu1 %v8391_v48  ;;  %6828 = vmatprep.mubr.msk.f32.mxu1 %vm249_vm2, %v8372_v29 }
 0x14b   : > { %7104 = vmatprep.subr.bf16.mxu1 %v8451_v56  ;;  %6460 = vmatmul.mubr.msk.f32.gmra.mrb[6].mxu0 %vm249_vm2, %v8892_v60  ;;  %v8907_v26 = vpop.permute.xlu0 %3541 }
 0x14c   : > { %7158 = vmatpush1.bf16.msra.mxu0 %v7157_v31  ;;  %v8909_v53 = vpop.permute.xlu1 %7845  ;;  %3642 = vmatprep.mubr.f32.mxu0 %v9739_v24  ;;  %v7989_v31 = vpack.i.bf16 %v8771_v45, %v8680_v13 }
 0x14d   : > { %v7848_v23 = vunpack.i.h.bf16 %v8909_v53  ;;  %v7847_v51 = vunpack.i.l.bf16 %v8909_v53  ;;  %6829 = vmatmul.mubr.msk.f32.gmra.mrb[10].mxu1 %vm249_vm2, %v8393_v50  ;;  %5373 = vrot.lane.b32.xlu0 %v8542_v33, %s8070_s11 }
 0x14e   : > { %6835 = vmatprep.mubr.msk.f32.mxu1 %vm249_vm2, %v8414_v25  ;;  %7985 = vrot.lane.b32.xlu1 %v8658_v21, %s8092_s26  ;;  %v7994_v21 = vpack.i.bf16 %v8774_v12, %v8683_v54 }
 0x14f   : > { %6465 = vmatmul.mubr.msk.f32.vlgmr.msra.gmra.mrb[0].mxu0 %vm249_vm2, %v8871_v22  ;;  %v8924_v29 = vpop.permute.xlu0 %7840  ;;  %v3784_v25 = vsel %vm3780_vm0, %v7847_v51, %v7848_v23 }
 0x150   : > { %v7843_v48 = vunpack.i.h.bf16 %v8924_v29  ;;  %v7842_v50 = vunpack.i.l.bf16 %v8924_v29  ;;  %v8928_v37 = vpop.permute.xlu1 %3545  ;;  %3648 = vmatprep.mubr.f32.mxu0 %v9739_v24 }
 0x151   : > { %6836 = vmatmul.mubr.msk.f32.vlgmr.msra.gmra.mrb[8].mxu1 %vm249_vm2, %v8401_v19  ;;  %5375 = vrot.lane.b32.xlu0 %v8578_v16, %s8070_s11 }
 0x152   : > { %7106 = vmatpush3.bf16.msra.mxu1 %v8451_v56  ;;  %6838 = vmatprep.mubr.msk.f32.mxu1 %vm249_vm2, %v8416_v30  ;;  %v3782_v5 = vsel %vm3780_vm0, %v7842_v50, %v7843_v48 }
 0x153   : > { %7112 = vmatprep.subr.bf16.mxu1 %v8488_v7  ;;  %6466 = vmatmul.mubr.msk.f32.gmra.mrb[2].mxu0 %vm249_vm2, %v8907_v26  ;;  %v7851_v54 = vpop.permute.xlu0 %7850  ;;  %v7163_v12 = vpack.c.bf16 %v3784_v25, %v3782_v5 }
 0x154   : > { %v7853_v19 = vunpack.i.h.bf16 %v7851_v54  ;;  %v7852_v41 = vunpack.i.l.bf16 %v7851_v54  ;;  %v8949_v59 = vpop.permute.xlu1 %7860  ;;  %3654 = vmatprep.mubr.f32.mxu0 %v9739_v24  ;;  %7995 = vrot.lane.b32.xlu1 %v7994_v21, %s8092_s26  ;;  %v8048_v54 = vld [vmem:[%s9719_s1 + $0x68] sm:$0xff] }
 0x155   : > { %v7863_v30 = vunpack.i.h.bf16 %v8949_v59  ;;  %v7862_v56 = vunpack.i.l.bf16 %v8949_v59  ;;  %6839 = vmatmul.mubr.msk.f32.gmra.mrb[10].mxu1 %vm249_vm2, %v8455_v57  ;;  %7164 = vmatprep.subr.bf16.mxu0 %v7163_v12 }
 0x156   : > { %v3781_v9 = vsel %vm3780_vm0, %v7852_v41, %v7842_v50  ;;  %v3783_v14 = vsel %vm3780_vm0, %v7853_v19, %v7847_v51  ;;  %6845 = vmatprep.mubr.msk.f32.mxu1 %vm249_vm2, %v8045_v49  ;;  %7980 = vrot.lane.b32.xlu0 %v8673_v43, %s8092_s26  ;;  %v8046_v51 = vld [vmem:[%s9719_s1 + $0x28] sm:$0xff] }
 0x157   : > { %v7165_v63 = vpack.c.bf16 %v3783_v14, %v3781_v9  ;;  %6467 = vmatmul.mubr.msk.f32.gmra.mrb[4].mxu0 %vm249_vm2, %v8894_v34  ;;  %v8967_v57 = vpop.permute.xlu0 %7855  ;;  %v4013_v43 = vsel %vm4009_vm3, %v7862_v56, %v7863_v30  ;;  %v8047_v50 = vld [vmem:[%s9719_s1 + $0x48] sm:$0xff] }
 0x158   : > { %v7858_v35 = vunpack.i.h.bf16 %v8967_v57  ;;  %v7857_v55 = vunpack.i.l.bf16 %v8967_v57  ;;  %v8971_v58 = vpop.permute.xlu1 %3989  ;;  %3660 = vmatprep.mubr.f32.mxu0 %v9739_v24 }
 0x159   : > { %6846 = vmatmul.mubr.msk.f32.vlgmr.msra.gmra.mrb[8].mxu1 %vm249_vm2, %v8046_v51  ;;  %7166 = vmatpush1.bf16.msra.mxu0 %v7165_v63 }
 0x15a   : > { %7114 = vmatpush3.bf16.msra.mxu1 %v8488_v7  ;;  %6848 = vmatprep.mubr.msk.f32.mxu1 %vm249_vm2, %v8047_v50  ;;  %v4011_v13 = vsel %vm4009_vm3, %v7857_v55, %v7858_v35 }
 0x15b   : > { %7120 = vmatprep.subr.bf16.mxu1 %v8525_v62  ;;  %6468 = vmatmul.mubr.msk.f32.gmra.mrb[6].mxu0 %vm249_vm2, %v8928_v37  ;;  %v7866_v45 = vpop.permute.xlu0 %7865  ;;  %v7171_v25 = vpack.c.bf16 %v4013_v43, %v4011_v13 }
 0x15c   : > { %v7868_v21 = vunpack.i.h.bf16 %v7866_v45  ;;  %v7867_v5 = vunpack.i.l.bf16 %v7866_v45  ;;  %7990 = vrot.lane.b32.xlu0 %v7989_v31, %s8092_s26  ;;  %v8995_v7 = vpop.permute.xlu1 %3993  ;;  %3867 = vmatprep.mubr.f32.mxu0 %v9739_v24 }
 0x15d   : > { %6849 = vmatmul.mubr.msk.f32.gmra.mrb[10].mxu1 %vm249_vm2, %v8048_v54  ;;  %7172 = vmatprep.subr.bf16.mxu0 %v7171_v25 }
 0x15e   : > { %v4010_v12 = vsel %vm4009_vm3, %v7867_v5, %v7857_v55  ;;  %v4012_v19 = vsel %vm4009_vm3, %v7868_v21, %v7862_v56  ;;  %6855 = vmatprep.mubr.msk.f32.mxu1 %vm249_vm2, %v8492_v36  ;;  %v9740_v21 = vld [vmem:[#allocation3_spill] sm:$0xff] }
 0x15f   : > { %v7173_v41 = vpack.c.bf16 %v4012_v19, %v4010_v12  ;;  %6473 = vmatmul.mubr.msk.f32.vlgmr.msra.gmra.mrb[0].mxu0 %vm249_vm2, %v8542_v33  ;;  %v9008_v9 = vpop.permute.xlu0 %3991 }
 0x160   : > { %v9010_v14 = vpop.permute.xlu1 %7875  ;;  %3873 = vmatprep.mubr.f32.mxu0 %v9739_v24  ;;  %5379 = vrot.lane.b32.xlu0 %v8596_v11, %s8070_s11 }
 0x161   : > { %v7878_v49 = vunpack.i.h.bf16 %v9010_v14  ;;  %v7877_v56 = vunpack.i.l.bf16 %v9010_v14  ;;  %6856 = vmatmul.mubr.msk.f32.vlgmr.msra.gmra.mrb[8].mxu1 %vm249_vm2, %v8476_v40  ;;  %7174 = vmatpush1.bf16.msra.mxu0 %v7173_v41  ;;  %v8051_v14 = vld [vmem:[%s9719_s1 + $0x50] sm:$0xff] }
 0x162   : > { %7122 = vmatpush3.bf16.msra.mxu1 %v8525_v62  ;;  %6858 = vmatprep.mubr.msk.f32.mxu1 %vm249_vm2, %v8502_v15 }
 0x163   : > { %7128 = vmatprep.subr.bf16.mxu1 %v8616_v28  ;;  %6474 = vmatmul.mubr.msk.f32.gmra.mrb[2].mxu0 %vm249_vm2, %v8578_v16  ;;  %v9025_v36 = vpop.permute.xlu0 %7870  ;;  %v4238_v40 = vsel %vm4234_vm4, %v7877_v56, %v7878_v49 }
 0x164   : > { %v7873_v33 = vunpack.i.h.bf16 %v9025_v36  ;;  %v7872_v63 = vunpack.i.l.bf16 %v9025_v36  ;;  %v9029_v55 = vpop.permute.xlu1 %3995  ;;  %3879 = vmatprep.mubr.f32.mxu0 %v9739_v24 }
 0x165   : > { %6859 = vmatmul.mubr.msk.f32.gmra.mrb[10].mxu1 %vm249_vm2, %v8529_v20 }
 0x166   : > { %6865 = vmatprep.mubr.msk.f32.mxu1 %vm249_vm2, %v8560_v1  ;;  %v4236_v15 = vsel %vm4234_vm4, %v7872_v63, %v7873_v33 }
 0x167   : > { %6475 = vmatmul.mubr.msk.f32.gmra.mrb[4].mxu0 %vm249_vm2, %v8565_v0  ;;  %v7881_v62 = vpop.permute.xlu0 %7880  ;;  %v7179_v16 = vpack.c.bf16 %v4238_v40, %v4236_v15 }
 0x168   : > { %v7883_v31 = vunpack.i.h.bf16 %v7881_v62  ;;  %v7882_v43 = vunpack.i.l.bf16 %v7881_v62  ;;  %v9044_v51 = vpop.permute.xlu1 %4216  ;;  %3885 = vmatprep.mubr.f32.mxu0 %v9739_v24 }
 0x169   : > { %6866 = vmatmul.mubr.msk.f32.vlgmr.msra.gmra.mrb[8].mxu1 %vm249_vm2, %v8544_v3  ;;  %7180 = vmatprep.subr.bf16.mxu0 %v7179_v16 }
 0x16a   : > { %v4235_v20 = vsel %vm4234_vm4, %v7882_v43, %v7872_v63  ;;  %v4237_v1 = vsel %vm4234_vm4, %v7883_v31, %v7877_v56  ;;  %7130 = vmatpush3.bf16.msra.mxu1 %v8616_v28  ;;  %6868 = vmatprep.mubr.msk.f32.mxu1 %vm249_vm2, %v8567_v46  ;;  %v9741_v56 = vld [vmem:[#allocation4_spill] sm:$0xff]  ;;  %v9742_v63 = vld [vmem:[#allocation5_spill] sm:$0xff] }
 0x16b   : > { %7136 = vmatprep.subr.bf16.mxu1 %v8699_v17  ;;  %6476 = vmatmul.mubr.msk.f32.gmra.mrb[6].mxu0 %vm249_vm2, %v8596_v11  ;;  %v9057_v0 = vpop.permute.xlu0 %4214  ;;  %v7181_v50 = vpack.c.bf16 %v4237_v1, %v4235_v20  ;;  %v9744_v43 = vld [vmem:[#allocation8_spill] sm:$0xff] }
 0x16c   : > { %v9059_v13 = vpop.permute.xlu1 %7885  ;;  %4092 = vmatprep.mubr.f32.mxu0 %v9739_v24 }
 0x16d   : > { %6869 = vmatmul.mubr.msk.f32.gmra.mrb[10].mxu1 %vm249_vm2, %v8620_v8  ;;  %v7888_v46 = vunpack.i.h.bf16 %v9059_v13  ;;  %v7887_v11 = vunpack.i.l.bf16 %v9059_v13 }
 0x16e   : > { %6875 = vmatprep.mubr.msk.f32.mxu1 %vm249_vm2, %v8631_v42 }
 0x16f   : > { %6481 = vmatmul.mubr.msk.f32.vlgmr.msra.gmra.mrb[0].mxu0 %vm249_vm2, %v8971_v58  ;;  %v9068_v3 = vpop.permute.xlu0 %4218 }
 0x170   : > { %v7896_v28 = vpop.permute.xlu1 %7895  ;;  %4098 = vmatprep.mubr.f32.mxu0 %v9739_v24  ;;  %7182 = vmatpush1.bf16.msra.mxu0 %v7181_v50 }
 0x171   : > { %6876 = vmatmul.mubr.msk.f32.vlgmr.msra.gmra.mrb[8].mxu1 %vm249_vm2, %v8643_v47  ;;  %v4461_v47 = vsel %vm4459_vm6, %v7887_v11, %v7888_v46 }
 0x172   : > { %7138 = vmatpush3.bf16.msra.mxu1 %v8699_v17  ;;  %6878 = vmatprep.mubr.msk.f32.mxu1 %vm249_vm2, %v8669_v39  ;;  %v7898_v39 = vunpack.i.h.bf16 %v7896_v28  ;;  %v7897_v17 = vunpack.i.l.bf16 %v7896_v28 }
 0x173   : > { %7144 = vmatprep.subr.bf16.mxu1 %v8759_v61  ;;  %6482 = vmatmul.mubr.msk.f32.gmra.mrb[2].mxu0 %vm249_vm2, %v9008_v9  ;;  %v9081_v8 = vpop.permute.xlu0 %7890 }
 0x174   : > { %v7893_v42 = vunpack.i.h.bf16 %v9081_v8  ;;  %v7892_v45 = vunpack.i.l.bf16 %v9081_v8  ;;  %v9085_v25 = vpop.permute.xlu1 %4439  ;;  %4104 = vmatprep.mubr.f32.mxu0 %v9739_v24  ;;  %v4460_v41 = vsel %vm4459_vm6, %v7897_v17, %v7887_v11 }
 0x175   : > { %6879 = vmatmul.mubr.msk.f32.gmra.mrb[10].mxu1 %vm249_vm2, %v8701_v27 }
 0x176   : > { %6885 = vmatprep.mubr.msk.f32.mxu1 %vm249_vm2, %v9740_v21  ;;  %v4463_v5 = vsel %vm4459_vm6, %v7892_v45, %v7893_v42  ;;  %v4462_v27 = vsel %vm4459_vm6, %v7898_v39, %v7892_v45  ;;  %v7159_v45 = vpack.c.bf16 %v7833_v38, %v7828_v2  ;;  %v9746_v39 = vld [vmem:[#allocation9_spill] sm:$0xff] }
 0x177   : > { %6483 = vmatmul.mubr.msk.f32.gmra.mrb[4].mxu0 %vm249_vm2, %v8995_v7  ;;  %v9100_v54 = vpop.permute.xlu0 %4220  ;;  %v7187_v12 = vpack.c.bf16 %v4463_v5, %v4461_v47  ;;  %v7189_v15 = vpack.c.bf16 %v4462_v27, %v4460_v41  ;;  %v9745_v47 = vld [vmem:[#allocation7_spill] sm:$0xff]  ;;  %v8093_v27 = vmov 0  }
 0x178   : > { %v9102_v19 = vpop.permute.xlu1 %4443  ;;  %4110 = vmatprep.mubr.f32.mxu0 %v9739_v24  ;;  %7999 = vset.pattern.permute.xlu1 %v8093_v27 }
 0x179   : > { %6886 = vmatmul.mubr.msk.f32.vlgmr.msra.gmra.mrb[8].mxu1 %vm249_vm2, %v9741_v56  ;;  %7188 = vmatprep.subr.bf16.mxu0 %v7187_v12  ;;  %v7167_v12 = vpack.c.bf16 %v7848_v23, %v7843_v48  ;;  %v5837_v56 = vld [vmem:[%s9720_s2 + $0x10] sm:$0xff] }
 0x17a   : > { %7146 = vmatpush3.bf16.msra.mxu1 %v8759_v61  ;;  %6888 = vmatprep.mubr.msk.f32.mxu1 %vm249_vm2, %v9742_v63  ;;  %v9743_v61 = vld [vmem:[#allocation6_spill] sm:$0xff] }
 0x17b   : > { %7152 = vmatprep.subr.bf16.mxu1 %v8817_v32  ;;  %6484 = vmatmul.mubr.msk.f32.gmra.mrb[6].mxu0 %vm249_vm2, %v9029_v55  ;;  %v9115_v40 = vpop.permute.xlu0 %4441 }
 0x17c   : > { %v9117_v62 = vpop.permute.xlu1 %7905  ;;  %4317 = vmatprep.mubr.f32.mxu0 %v9739_v24  ;;  %8000 = vset.pattern.permute.xlu0 %v8093_v27 }
 0x17d   : > { %v7908_v16 = vunpack.i.h.bf16 %v9117_v62  ;;  %v7907_v31 = vunpack.i.l.bf16 %v9117_v62  ;;  %6889 = vmatmul.mubr.msk.f32.gmra.mrb[10].mxu1 %vm249_vm2, %v9743_v61 }
 0x17e   : > { %6895 = vmatprep.mubr.msk.f32.mxu1 %vm249_vm2, %v9744_v43 }
 0x17f   : > { %6489 = vmatmul.mubr.msk.f32.vlgmr.msra.gmra.mrb[0].mxu0 %vm249_vm2, %v9057_v0  ;;  %v9128_v20 = vpop.permute.xlu0 %7900  ;;  %v4709_v28 = vsel %vm4704_vm7, %v7907_v31, %v7908_v16 }
 0x180   : > { %v7903_v1 = vunpack.i.h.bf16 %v9128_v20  ;;  %v7902_v50 = vunpack.i.l.bf16 %v9128_v20  ;;  %v9132_v11 = vpop.permute.xlu1 %4445  ;;  %4323 = vmatprep.mubr.f32.mxu0 %v9739_v24  ;;  %7190 = vmatpush1.bf16.msra.mxu0 %v7189_v15 }
 0x181   : > { %6896 = vmatmul.mubr.msk.f32.vlgmr.msra.gmra.mrb[8].mxu1 %vm249_vm2, %v9745_v47 }
 0x182   : > { %7154 = vmatpush3.bf16.msra.mxu1 %v8817_v32  ;;  %6898 = vmatprep.mubr.msk.f32.mxu1 %vm249_vm2, %v9746_v39  ;;  %v4706_v17 = vsel %vm4704_vm7, %v7902_v50, %v7903_v1 }
 0x183   : > { %7160 = vmatprep.subr.bf16.mxu1 %v7159_v45  ;;  %6490 = vmatmul.mubr.msk.f32.gmra.mrb[2].mxu0 %vm249_vm2, %v9044_v51  ;;  %v7911_v10 = vpop.permute.xlu0 %7910  ;;  %v7195_v21 = vpack.c.bf16 %v4709_v28, %v4706_v17  ;;  %v8050_v17 = vld [vmem:[%s9719_s1 + $0x30] sm:$0xff] }
 0x184   : > { %v9152_v52 = vpop.permute.xlu1 %4674  ;;  %4329 = vmatprep.mubr.f32.mxu0 %v9739_v24  ;;  %v7913_v2 = vunpack.i.h.bf16 %v7911_v10  ;;  %v7912_v38 = vunpack.i.l.bf16 %v7911_v10 }
 0x185   : > { %6899 = vmatmul.mubr.msk.f32.gmra.mrb[10].mxu1 %vm249_vm2, %v8826_v6  ;;  %7196 = vmatprep.subr.bf16.mxu0 %v7195_v21 }
 0x186   : > { %6905 = vmatprep.mubr.msk.f32.mxu1 %vm249_vm2, %v8838_v18  ;;  %v4705_v6 = vsel %vm4704_vm7, %v7912_v38, %v7902_v50  ;;  %v4708_v41 = vsel %vm4704_vm7, %v7913_v2, %v7907_v31  ;;  %v5835_v18 = vld [vmem:[%s9720_s2] sm:$0xff]  ;;  %v8049_v50 = vld [vmem:[%s9719_s1 + $0x10] sm:$0xff] }
 0x187   : > { %6491 = vmatmul.mubr.msk.f32.gmra.mrb[4].mxu0 %vm249_vm2, %v9068_v3  ;;  %v9161_v32 = vpop.permute.xlu0 %4672  ;;  %v7197_v23 = vpack.c.bf16 %v4708_v41, %v4705_v6  ;;  %5841 = vperm.xlu1 %7999, %v5835_v18   ;;  %v8052_v6 = vld [vmem:[%s9719_s1 + $0x70] sm:$0xff] }
 0x188   : > { %v9163_v5 = vpop.permute.xlu1 %7915  ;;  %4335 = vmatprep.mubr.f32.mxu0 %v9739_v24 }
 0x189   : > { %6906 = vmatmul.mubr.msk.f32.vlgmr.msra.gmra.mrb[8].mxu1 %vm249_vm2, %v8828_v4  ;;  %v7918_v29 = vunpack.i.h.bf16 %v9163_v5  ;;  %v7917_v48 = vunpack.i.l.bf16 %v9163_v5 }
 0x18a   : > { %7162 = vmatpush3.bf16.msra.mxu1 %v7159_v45  ;;  %6908 = vmatprep.mubr.msk.f32.mxu1 %vm249_vm2, %v8850_v44  ;;  %v5836_v44 = vld [vmem:[%s9720_s2 + $0x8] sm:$0xff] }
 0x18b   : > { %7168 = vmatprep.subr.bf16.mxu1 %v7167_v12  ;;  %6492 = vmatmul.mubr.msk.f32.gmra.mrb[6].mxu0 %vm249_vm2, %v9100_v54  ;;  %v9181_v53 = vpop.permute.xlu0 %4676 }
 0x18c   : > { %v7926_v4 = vpop.permute.xlu1 %7925  ;;  %4542 = vmatprep.mubr.f32.mxu0 %v9739_v24  ;;  %5846 = vperm.xlu0 %8000, %v5836_v44  }
 0x18d   : > { %6909 = vmatmul.mubr.msk.f32.gmra.mrb[10].mxu1 %vm249_vm2, %v8892_v60  ;;  %v7175_v60 = vpack.c.bf16 %v7863_v30, %v7858_v35  ;;  %5851 = vperm.xlu1 %7999, %v5837_v56   ;;  %v7928_v57 = vunpack.i.h.bf16 %v7926_v4  ;;  %v7927_v35 = vunpack.i.l.bf16 %v7926_v4 }
 0x18e   : > { %6915 = vmatprep.mubr.msk.f32.mxu1 %vm249_vm2, %v8871_v22  ;;  %v4937_v22 = vsel %vm4935_vm8, %v7917_v48, %v7918_v29 }
 0x18f   : > { %6497 = vmatmul.mubr.msk.f32.vlgmr.msra.gmra.mrb[0].mxu0 %vm249_vm2, %v9085_v25  ;;  %v9198_v63 = vpop.permute.xlu0 %7920  ;;  %v4936_v45 = vsel %vm4935_vm8, %v7927_v35, %v7917_v48  ;;  %v7191_v48 = vpack.c.bf16 %v7893_v42, %v7888_v46 }
 0x190   : > { %v7923_v15 = vunpack.i.h.bf16 %v9198_v63  ;;  %v7922_v31 = vunpack.i.l.bf16 %v9198_v63  ;;  %4548 = vmatprep.mubr.f32.mxu0 %v9739_v24  ;;  %7198 = vmatpush1.bf16.msra.mxu0 %v7197_v23 }
 0x191   : > { %v9210_v61 = vpop.permute.xlu1 %4911  ;;  %6916 = vmatmul.mubr.msk.f32.vlgmr.msra.gmra.mrb[8].mxu1 %vm249_vm2, %v8907_v26  ;;  %v5838_v26 = vld [vmem:[%s9720_s2 + $0x18] sm:$0xff] }
 0x192   : > { %7170 = vmatpush3.bf16.msra.mxu1 %v7167_v12  ;;  %6918 = vmatprep.mubr.msk.f32.mxu1 %vm249_vm2, %v8894_v34  ;;  %v4940_v43 = vsel %vm4935_vm8, %v7922_v31, %v7923_v15  ;;  %v4939_v47 = vsel %vm4935_vm8, %v7928_v57, %v7922_v31 }
 0x193   : > { %7176 = vmatprep.subr.bf16.mxu1 %v7175_v60  ;;  %6498 = vmatmul.mubr.msk.f32.gmra.mrb[2].mxu0 %vm249_vm2, %v9115_v40  ;;  %v9221_v59 = vpop.permute.xlu0 %4678  ;;  %v7203_v30 = vpack.c.bf16 %v4940_v43, %v4937_v22 }
 0x194   : > { %4554 = vmatprep.mubr.f32.mxu0 %v9739_v24  ;;  %5856 = vperm.xlu1 %7999, %v5838_v26  }
 0x195   : > { %v9227_v34 = vpop.permute.xlu1 %4915  ;;  %6919 = vmatmul.mubr.msk.f32.gmra.mrb[10].mxu1 %vm249_vm2, %v8928_v37  ;;  %7204 = vmatprep.subr.bf16.mxu0 %v7203_v30  ;;  %v7183_v37 = vpack.c.bf16 %v7878_v49, %v7873_v33  ;;  %v7205_v33 = vpack.c.bf16 %v4939_v47, %v4936_v45 }
 0x196   : > { %6925 = vmatprep.mubr.msk.f32.mxu1 %vm249_vm2, %v8049_v50 }
 0x197   : > { %6499 = vmatmul.mubr.msk.f32.gmra.mrb[4].mxu0 %vm249_vm2, %v9102_v19  ;;  %v9237_v28 = vpop.permute.xlu0 %4913 }
 0x198   : > { %4560 = vmatprep.mubr.f32.mxu0 %v9739_v24 }
 0x199   : > { %v9246_v39 = vpop.permute.xlu1 %7935  ;;  %6926 = vmatmul.mubr.msk.f32.vlgmr.msra.gmra.mrb[8].mxu1 %vm249_vm2, %v8050_v17 }
 0x19a   : > { %v7938_v10 = vunpack.i.h.bf16 %v9246_v39  ;;  %v7937_v36 = vunpack.i.l.bf16 %v9246_v39  ;;  %7178 = vmatpush3.bf16.msra.mxu1 %v7175_v60  ;;  %6928 = vmatprep.mubr.msk.f32.mxu1 %vm249_vm2, %v8051_v14 }
 0x19b   : > { %7184 = vmatprep.subr.bf16.mxu1 %v7183_v37  ;;  %6500 = vmatmul.mubr.msk.f32.gmra.mrb[6].mxu0 %vm249_vm2, %v9132_v11  ;;  %v9260_v49 = vpop.permute.xlu0 %7930 }
 0x19c   : > { %v7933_v21 = vunpack.i.h.bf16 %v9260_v49  ;;  %v7932_v2 = vunpack.i.l.bf16 %v9260_v49  ;;  %4789 = vmatprep.mubr.f32.mxu0 %v9739_v24  ;;  %v5171_v38 = vsel %vm5166_vm9, %v7937_v36, %v7938_v10 }
 0x19d   : > { %v7946_v12 = vpop.permute.xlu1 %7945  ;;  %6929 = vmatmul.mubr.msk.f32.gmra.mrb[10].mxu1 %vm249_vm2, %v8052_v6 }
 0x19e   : > { %6935 = vmatprep.mubr.msk.f32.mxu1 %vm249_vm2, %v8971_v58  ;;  %v5168_v41 = vsel %vm5166_vm9, %v7932_v2, %v7933_v21  ;;  %v7948_v46 = vunpack.i.h.bf16 %v7946_v12  ;;  %v7947_v8 = vunpack.i.l.bf16 %v7946_v12 }
 0x19f   : > { %6505 = vmatmul.mubr.msk.f32.vlgmr.msra.gmra.mrb[0].mxu0 %vm249_vm2, %v9161_v32  ;;  %v7941_v18 = vpop.permute.xlu0 %7940  ;;  %v7211_v23 = vpack.c.bf16 %v5171_v38, %v5168_v41 }
 0x1a0   : > { %4795 = vmatprep.mubr.f32.mxu0 %v9739_v24  ;;  %7206 = vmatpush1.bf16.msra.mxu0 %v7205_v33  ;;  %v7943_v58 = vunpack.i.h.bf16 %v7941_v18  ;;  %v7942_v27 = vunpack.i.l.bf16 %v7941_v18  ;;  %v5167_v56 = vsel %vm5166_vm9, %v7947_v8, %v7932_v2 }
 0x1a1   : > { %v9284_v4 = vpop.permute.xlu1 %5142  ;;  %6936 = vmatmul.mubr.msk.f32.vlgmr.msra.gmra.mrb[8].mxu1 %vm249_vm2, %v9008_v9  ;;  %7212 = vmatprep.subr.bf16.mxu0 %v7211_v23 }
 0x1a2   : > { %7186 = vmatpush3.bf16.msra.mxu1 %v7183_v37  ;;  %6938 = vmatprep.mubr.msk.f32.mxu1 %vm249_vm2, %v8995_v7  ;;  %v4707_v7 = vsel %vm4704_vm7, %v7903_v1, %v7942_v27  ;;  %v4710_v9 = vsel %vm4704_vm7, %v7908_v16, %v7943_v58 }
 0x1a3   : > { %7192 = vmatprep.subr.bf16.mxu1 %v7191_v48  ;;  %6506 = vmatmul.mubr.msk.f32.gmra.mrb[2].mxu0 %vm249_vm2, %v9152_v52  ;;  %v9292_v13 = vpop.permute.xlu0 %4917 }
 0x1a4   : > { %4801 = vmatprep.mubr.f32.mxu0 %v9739_v24 }
 0x1a5   : > { %v9295_v42 = vpop.permute.xlu1 %5144  ;;  %6939 = vmatmul.mubr.msk.f32.gmra.mrb[10].mxu1 %vm249_vm2, %v9029_v55  ;;  %v5170_v55 = vsel %vm5166_vm9, %v7948_v46, %v7937_v36 }
 0x1a6   : > { %6945 = vmatprep.mubr.msk.f32.mxu1 %vm249_vm2, %v9057_v0  ;;  %v7199_v0 = vpack.c.bf16 %v4710_v9, %v4707_v7  ;;  %v7213_v16 = vpack.c.bf16 %v5170_v55, %v5167_v56  ;;  %v5604_v56 = vld [vmem:[%s9719_s1 + $0x18] sm:$0xff] }
 0x1a7   : > { %6507 = vmatmul.mubr.msk.f32.gmra.mrb[4].mxu0 %vm249_vm2, %v9181_v53  ;;  %v7951_v44 = vpop.permute.xlu0 %7950  ;;  %v5605_v55 = vld [vmem:[%s9719_s1 + $0x38] sm:$0xff] }
 0x1a8   : > { %4807 = vmatprep.mubr.f32.mxu0 %v9739_v24  ;;  %v7953_v20 = vunpack.i.h.bf16 %v7951_v44  ;;  %v7952_v62 = vunpack.i.l.bf16 %v7951_v44 }
 0x1a9   : > { %v9312_v31 = vpop.permute.xlu1 %7955  ;;  %6946 = vmatmul.mubr.msk.f32.vlgmr.msra.gmra.mrb[8].mxu1 %vm249_vm2, %v9044_v51 }
 0x1aa   : > { %7194 = vmatpush3.bf16.msra.mxu1 %v7191_v48  ;;  %6948 = vmatprep.mubr.msk.f32.mxu1 %vm249_vm2, %v9068_v3  ;;  %v4938_v51 = vsel %vm4935_vm8, %v7918_v29, %v7952_v62  ;;  %v4941_v3 = vsel %vm4935_vm8, %v7923_v15, %v7953_v20  ;;  %v7958_v60 = vunpack.i.h.bf16 %v9312_v31 }
 0x1ab   : > { %6508 = vmatmul.mubr.msk.f32.gmra.mrb[6].mxu0 %vm249_vm2, %v9221_v59  ;;  %7200 = vmatprep.subr.bf16.mxu1 %v7199_v0 }
 0x1ac   : > { %5020 = vmatprep.mubr.f32.mxu0 %v9739_v24 }
 0x1ad   : > { %v7966_v1 = vpop.permute.xlu1 %7965  ;;  %6949 = vmatmul.mubr.msk.f32.gmra.mrb[10].mxu1 %vm249_vm2, %v9100_v54  ;;  %v7957_v54 = vunpack.i.l.bf16 %v9312_v31  ;;  %v5606_v31 = vld [vmem:[%s9719_s1 + $0x58] sm:$0xff] }
 0x1ae   : > { %6955 = vmatprep.mubr.msk.f32.mxu1 %vm249_vm2, %v9085_v25  ;;  %v7207_v25 = vpack.c.bf16 %v4941_v3, %v4938_v51  ;;  %v7968_v29 = vunpack.i.h.bf16 %v7966_v1  ;;  %v7967_v63 = vunpack.i.l.bf16 %v7966_v1 }
 0x1af   : > { %6513 = vmatmul.mubr.msk.f32.vlgmr.msra.gmra.mrb[0].mxu0 %vm249_vm2, %v9210_v61  ;;  %v9333_v22 = vpop.permute.xlu0 %5146 }
 0x1b0   : > { %5026 = vmatprep.mubr.f32.mxu0 %v9739_v24  ;;  %7214 = vmatpush1.bf16.msra.mxu0 %v7213_v16  ;;  %v5172_v26 = vsel %vm5166_vm9, %v7938_v10, %v7968_v29 }
 0x1b1   : > { %6956 = vmatmul.mubr.msk.f32.vlgmr.msra.gmra.mrb[8].mxu1 %vm249_vm2, %v9115_v40  ;;  %v9340_v5 = vpop.permute.xlu1 %5148  ;;  %v5399_v40 = vsel %vm5397_vm10, %v7957_v54, %v7958_v60 }
 0x1b2   : > { %7202 = vmatpush3.bf16.msra.mxu1 %v7199_v0  ;;  %6958 = vmatprep.mubr.msk.f32.mxu1 %vm249_vm2, %v9102_v19  ;;  %v5169_v19 = vsel %vm5166_vm9, %v7933_v21, %v7967_v63  ;;  %v5607_v0 = vld [vmem:[%s9719_s1 + $0x78] sm:$0xff] }
 0x1b3   : > { %6514 = vmatmul.mubr.msk.f32.gmra.mrb[2].mxu0 %vm249_vm2, %v9237_v28  ;;  %7208 = vmatprep.subr.bf16.mxu1 %v7207_v25  ;;  %v7961_v15 = vpop.permute.xlu0 %7960  ;;  %v7215_v45 = vpack.c.bf16 %v5172_v26, %v5169_v19 }
 0x1b4   : > { %5032 = vmatprep.mubr.f32.mxu0 %v9739_v24  ;;  %v7963_v43 = vunpack.i.h.bf16 %v7961_v15  ;;  %v7962_v30 = vunpack.i.l.bf16 %v7961_v15 }
 0x1b5   : > { %6959 = vmatmul.mubr.msk.f32.gmra.mrb[10].mxu1 %vm249_vm2, %v9132_v11 }
 0x1b6   : > { %6965 = vmatprep.mubr.msk.f32.mxu1 %vm249_vm2, %v9161_v32  ;;  %v5402_v57 = vsel %vm5397_vm10, %v7962_v30, %v7963_v43  ;;  %v7976_v50 = vpop.permute.xlu1 %7975 }
 0x1b7   : > { %6515 = vmatmul.mubr.msk.f32.gmra.mrb[4].mxu0 %vm249_vm2, %v9227_v34  ;;  %v7971_v35 = vpop.permute.xlu0 %7970  ;;  %v7219_v37 = vpack.c.bf16 %v5402_v57, %v5399_v40  ;;  %v7978_v17 = vunpack.i.h.bf16 %v7976_v50  ;;  %v7977_v10 = vunpack.i.l.bf16 %v7976_v50 }
 0x1b8   : > { %5038 = vmatprep.mubr.f32.mxu0 %v9739_v24  ;;  %v7973_v11 = vunpack.i.h.bf16 %v7971_v35  ;;  %v7972_v32 = vunpack.i.l.bf16 %v7971_v35 }
 0x1b9   : > { %6966 = vmatmul.mubr.msk.f32.vlgmr.msra.gmra.mrb[8].mxu1 %vm249_vm2, %v9152_v52  ;;  %7220 = vmatprep.subr.bf16.mxu0 %v7219_v37  ;;  %v5403_v14 = vsel %vm5397_vm10, %v7963_v43, %v7978_v17 }
 0x1ba   : > { %7210 = vmatpush3.bf16.msra.mxu1 %v7207_v25  ;;  %6968 = vmatprep.mubr.msk.f32.mxu1 %vm249_vm2, %v9181_v53  ;;  %v5398_v47 = vsel %vm5397_vm10, %v7972_v32, %v7957_v54  ;;  %v5401_v39 = vsel %vm5397_vm10, %v7973_v11, %v7962_v30  ;;  %v9371_v52 = vpop.permute.xlu1 %5377  ;;  %v5400_v53 = vsel %vm5397_vm10, %v7958_v60, %v7977_v10 }
 0x1bb   : > { %6516 = vmatmul.mubr.msk.f32.gmra.mrb[6].mxu0 %vm249_vm2, %v9292_v13  ;;  %7216 = vmatprep.subr.bf16.mxu1 %v7215_v45  ;;  %v7221_v36 = vpack.c.bf16 %v5401_v39, %v5398_v47  ;;  %v7223_v33 = vpack.c.bf16 %v5403_v14, %v5400_v53 }
 0x1bc   : > { %5251 = vmatprep.mubr.f32.mxu0 %v9739_v24 }
 0x1bd   : > { %6969 = vmatmul.mubr.msk.f32.gmra.mrb[10].mxu1 %vm249_vm2, %v9221_v59 }
 0x1be   : > { %6975 = vmatprep.mubr.msk.f32.mxu1 %vm249_vm2, %v9210_v61 }
 0x1bf   : > { %6521 = vmatmul.mubr.msk.f32.vlgmr.msra.gmra.mrb[0].mxu0 %vm249_vm2, %v9284_v4  ;;  %v5374_v49 = vpop.permute.xlu0 %5373 }
 0x1c0   : > { %5257 = vmatprep.mubr.f32.mxu0 %v9739_v24  ;;  %7222 = vmatpush1.bf16.msra.mxu0 %v7221_v36  ;;  %v7986_v61 = vpop.permute.xlu1 %7985 }
 0x1c1   : > { %6976 = vmatmul.mubr.msk.f32.vlgmr.msra.gmra.mrb[8].mxu1 %vm249_vm2, %v9237_v28  ;;  %v7988_v21 = vunpack.i.h.bf16 %v7986_v61  ;;  %v7987_v2 = vunpack.i.l.bf16 %v7986_v61 }
 0x1c2   : > { %7218 = vmatpush3.bf16.msra.mxu1 %v7215_v45  ;;  %6978 = vmatprep.mubr.msk.f32.mxu1 %vm249_vm2, %v9227_v34 }
 0x1c3   : > { %6522 = vmatmul.mubr.msk.f32.gmra.mrb[2].mxu0 %vm249_vm2, %v9295_v42  ;;  %7224 = vmatprep.subr.bf16.mxu1 %v7223_v33  ;;  %v5376_v59 = vpop.permute.xlu0 %5375  ;;  %v5629_v6 = vsel %vm5624_vm11, %v7987_v2, %v7988_v21 }
 0x1c4   : > { %5263 = vmatprep.mubr.f32.mxu0 %v9739_v24 }
 0x1c5   : > { %6979 = vmatmul.mubr.msk.f32.gmra.mrb[10].mxu1 %vm249_vm2, %v9292_v13 }
 0x1c6   : > { %6985 = vmatprep.mubr.msk.f32.mxu1 %vm249_vm2, %v9284_v4  ;;  %v7996_v28 = vpop.permute.xlu1 %7995 }
 0x1c7   : > { %6523 = vmatmul.mubr.msk.f32.gmra.mrb[4].mxu0 %vm249_vm2, %v9333_v22  ;;  %v7998_v41 = vunpack.i.h.bf16 %v7996_v28  ;;  %v7997_v18 = vunpack.i.l.bf16 %v7996_v28 }
 0x1c8   : > { %5269 = vmatprep.mubr.f32.mxu0 %v9739_v24  ;;  %v7981_v34 = vpop.permute.xlu0 %7980 }
 0x1c9   : > { %6986 = vmatmul.mubr.msk.f32.vlgmr.msra.gmra.mrb[8].mxu1 %vm249_vm2, %v9295_v42  ;;  %v7983_v38 = vunpack.i.h.bf16 %v7981_v34  ;;  %v7982_v12 = vunpack.i.l.bf16 %v7981_v34  ;;  %v5628_v13 = vsel %vm5624_vm11, %v7997_v18, %v7987_v2  ;;  %v5630_v46 = vsel %vm5624_vm11, %v7988_v21, %v7998_v41 }
 0x1ca   : > { %7226 = vmatpush3.bf16.msra.mxu1 %v7223_v33  ;;  %6988 = vmatprep.mubr.msk.f32.mxu1 %vm249_vm2, %v9333_v22 }
 0x1cb   : > { %6524 = vmatmul.mubr.msk.f32.gmra.mrb[6].mxu0 %vm249_vm2, %v9340_v5  ;;  %v5626_v23 = vsel %vm5624_vm11, %v7982_v12, %v7983_v38 }
 0x1cc   : > { %5482 = vmatprep.mubr.f32.mxu0 %v9739_v24  ;;  %v7227_v48 = vpack.c.bf16 %v5629_v6, %v5626_v23 }
 0x1cd   : > { %6989 = vmatmul.mubr.msk.f32.gmra.mrb[10].mxu1 %vm249_vm2, %v9340_v5 }
 0x1ce   : > { %6995 = vmatprep.mubr.msk.f32.mxu1 %vm249_vm2, %v5374_v49  ;;  %v7991_v4 = vpop.permute.xlu0 %7990  ;;  %7228 = vmatprep.subr.bf16.mxu0 %v7227_v48 }
 0x1cf   : > { %6529 = vmatmul.mubr.msk.f32.vlgmr.msra.gmra.mrb[0].mxu0 %vm249_vm2, %v5374_v49  ;;  %v7993_v58 = vunpack.i.h.bf16 %v7991_v4  ;;  %v7992_v27 = vunpack.i.l.bf16 %v7991_v4 }
 0x1d0   : > { %5488 = vmatprep.mubr.f32.mxu0 %v9739_v24 }
 0x1d1   : > { %v5625_v8 = vsel %vm5624_vm11, %v7992_v27, %v7982_v12  ;;  %6996 = vmatmul.mubr.msk.f32.vlgmr.msra.gmra.mrb[8].mxu1 %vm249_vm2, %v5376_v59  ;;  %v5627_v42 = vsel %vm5624_vm11, %v7983_v38, %v7993_v58 }
 0x1d2   : > { %v7229_v7 = vpack.c.bf16 %v5628_v13, %v5625_v8  ;;  %6998 = vmatprep.mubr.msk.f32.mxu1 %vm249_vm2, %v9371_v52  ;;  %v5380_v9 = vpop.permute.xlu0 %5379  ;;  %v7231_v44 = vpack.c.bf16 %v5630_v46, %v5627_v42 }
 0x1d3   : > { %6530 = vmatmul.mubr.msk.f32.gmra.mrb[2].mxu0 %vm249_vm2, %v5376_v59 }
 0x1d4   : > { %5494 = vmatprep.mubr.f32.mxu0 %v9739_v24  ;;  %7232 = vmatprep.subr.bf16.mxu1 %v7231_v44 }
 0x1d5   : > { %6999 = vmatmul.mubr.msk.f32.gmra.mrb[10].mxu1 %vm249_vm2, %v5380_v9  ;;  %7230 = vmatpush1.bf16.msra.mxu0 %v7229_v7 }
 0x1d6   : > { %7234 = vmatpush3.bf16.msra.mxu1 %v7231_v44  ;;  %7005 = vmatprep.mubr.msk.f32.mxu1 %vm249_vm2, %v5604_v56 }
 0x1d7   : > { %6531 = vmatmul.mubr.msk.f32.gmra.mrb[4].mxu0 %vm249_vm2, %v9371_v52 }
 0x1d8   : > { %5500 = vmatprep.mubr.f32.mxu0 %v9739_v24 }
 0x1d9   : > { %7006 = vmatmul.mubr.msk.f32.vlgmr.msra.gmra.mrb[8].mxu1 %vm249_vm2, %v5605_v55 }
 0x1da   : > { %7008 = vmatprep.mubr.msk.f32.mxu1 %vm249_vm2, %v5606_v31 }
 0x1db   : > { %6532 = vmatmul.mubr.msk.f32.gmra.mrb[6].mxu0 %vm249_vm2, %v5380_v9 }
 0x1dc   : > { %5713 = vmatprep.mubr.f32.mxu0 %v9739_v24 }
 0x1dd   : > { %7009 = vmatmul.mubr.msk.f32.gmra.mrb[10].mxu1 %vm249_vm2, %v5607_v0 }
 0x1df   : > { %6537 = vmatmul.mubr.msk.f32.vlgmr.msra.gmra.mrb[0].mxu0 %vm249_vm2, %v5604_v56 }
 0x1e0   : > { %v944_v20 = vpop.f32.mrb[0].mxu1  ;;  %5719 = vmatprep.mubr.f32.mxu0 %v9739_v24 }
 0x1e1   : > { %v946_v62 = vpop.f32.mrb[1].mxu1 }
 0x1e3   : > { %6538 = vmatmul.mubr.msk.f32.gmra.mrb[2].mxu0 %vm249_vm2, %v5605_v55  ;;  %v6065_v55 = vld [vmem:[%s9721_s3 + $0x80] sm:$0xff] }
 0x1e4   : > { %5725 = vmatprep.mubr.f32.mxu0 %v9739_v24 }
 0x1e7   : > { %6539 = vmatmul.mubr.msk.f32.gmra.mrb[4].mxu0 %vm249_vm2, %v5606_v31  ;;  %v6066_v31 = vld [vmem:[%s9721_s3 + $0x88] sm:$0xff] }
 0x1e8   : > { %5731 = vmatprep.mubr.f32.mxu0 %v9739_v24 }
 0x1eb   : > { %6540 = vmatmul.mubr.msk.f32.gmra.mrb[6].mxu0 %vm249_vm2, %v5607_v0  ;;  %v6049_v0 = vld [vmem:[%s9721_s3] sm:$0xff]  ;;  %vm6102_vm2 = vcmask 1043456  }
 0x1ff   : > { %v1175_v16 = vpop.f32.mrb[2].mxu1 }
 0x200   : > { %v1177_v1 = vpop.f32.mrb[3].mxu1 }
 0x203   : > { %v1181_v51 = vpop.f32.mrb[4].mxu1 }
 0x204   : > { %v1183_v3 = vpop.f32.mrb[5].mxu1 }
 0x206   : > { %v5842_v54 = vpop.permute.xlu1 %5841 }
 0x208   : > { %v1187_v22 = vpop.f32.mrb[6].mxu1 }
 0x209   : > { %v1189_v60 = vpop.f32.mrb[7].mxu1 }
 0x20b   : > { %v5847_v5 = vpop.permute.xlu0 %5846 }
 0x20c   : > { %v5852_v25 = vpop.permute.xlu1 %5851 }
 0x213   : > { %v5857_v30 = vpop.permute.xlu1 %5856 }
 0x2ac   : > { %v7007_v29 = vpop.f32.mrb[8].mxu1 }
 0x2ad   : > { %v5864_v63 = vadd.f32 %v7007_v29, %v5847_v5  ;;  %v5804_v15 = vpop.f32.mrb[9].mxu1  ;;  %v6070_v29 = vld [vmem:[%s9721_s3 + $0xa8] sm:$0xff] }
 0x2ae   : > { %v5861_v43 = vadd.f32 %v5842_v54, %v5804_v15 }
 0x2af   : > { %v5876_v40 = vmax.f32 %v5864_v63, 0.0 }
 0x2b0   : > { %v5873_v19 = vmax.f32 %v5861_v43, 0.0  ;;  %v7010_v26 = vpop.f32.mrb[10].mxu1 }
 0x2b1   : > { %5889 = vst.msk [vmem:[#allocation2 + $0x28] sm:$0xff] %vm5885_vm12, %v5876_v40  ;;  %v5870_v57 = vadd.f32 %v7010_v26, %v5857_v30  ;;  %v5814_v35 = vpop.f32.mrb[11].mxu1  ;;  %v6054_v40 = vld [vmem:[%s9721_s3 + $0x28] sm:$0xff]  ;;  %v6072_v26 = vld [vmem:[%s9721_s3 + $0xb8] sm:$0xff] }
 0x2b2   : > { %5898 = vst.msk [vmem:[#allocation2 + $0x28] sm:$0xff] %vm5896_vm13, %v9739_v24  ;;  %v5715_v50 = vpop.f32.mrb[0].mxu0  ;;  %v5867_v37 = vadd.f32 %v5852_v25, %v5814_v35 }
 0x2b3   : > { %5886 = vst.msk [vmem:[#allocation2 + $0x10] sm:$0xff] %vm5885_vm12, %v5873_v19  ;;  %v5882_v11 = vmax.f32 %v5870_v57, 0.0  ;;  %v7285_v32 = vadd.f32 %v5715_v50, %v944_v20  ;;  %v5717_v45 = vpop.f32.mrb[1].mxu0  ;;  %v6071_v19 = vld [vmem:[%s9721_s3 + $0xb0] sm:$0xff] }
 0x2b4   : > { %5897 = vst.msk [vmem:[#allocation2 + $0x10] sm:$0xff] %vm5896_vm13, %v9739_v24  ;;  %v5879_v47 = vmax.f32 %v5867_v37, 0.0  ;;  %v7286_v39 = vadd.f32 %v5717_v45, %v946_v62  ;;  %v7235_v62 = vpack.c.bf16 %v6066_v31, %v6065_v55  ;;  %v7247_v35 = vpack.c.bf16 %v6072_v26, %v6071_v19  ;;  %v6055_v50 = vld [vmem:[%s9721_s3 + $0x30] sm:$0xff]  ;;  %v6056_v37 = vld [vmem:[%s9721_s3 + $0x38] sm:$0xff]  ;;  %v6074_v45 = vld [vmem:[%s9721_s3 + $0xc8] sm:$0xff] }
 0x2b5   : > { %5895 = vst.msk [vmem:[#allocation2 + $0x58] sm:$0xff] %vm5885_vm12, %v5882_v11  ;;  %v9455_v17 = vadd.f32 %v7285_v32, %v5842_v54  ;;  %v7249_v11 = vpack.c.bf16 %v6056_v37, %v6055_v50  ;;  %v6073_v32 = vld [vmem:[%s9721_s3 + $0xc0] sm:$0xff]  ;;  %v6080_v55 = vld [vmem:[%s9721_s3 + $0xf8] sm:$0xff] }
 0x2b6   : > { %5900 = vst.msk [vmem:[#allocation2 + $0x58] sm:$0xff] %vm5896_vm13, %v9739_v24  ;;  %v9460_v10 = vadd.f32 %v7286_v39, %v5842_v54  ;;  %v5721_v36 = vpop.f32.mrb[2].mxu0  ;;  %v6051_v54 = vld [vmem:[%s9721_s3 + $0x10] sm:$0xff]  ;;  %7236 = vmatprep.subr.bf16.mxu1 %v7235_v62  ;;  %v6057_v39 = vld [vmem:[%s9721_s3 + $0x40] sm:$0xff]  ;;  %v6064_v62 = vld [vmem:[%s9721_s3 + $0x78] sm:$0xff] }
 0x2b7   : > { %5892 = vst.msk [vmem:[#allocation2 + $0x40] sm:$0xff] %vm5885_vm12, %v5879_v47  ;;  %v5871_v52 = vmax.f32 %v9455_v17, 0.0  ;;  %v7287_v53 = vadd.f32 %v5721_v36, %v1175_v16  ;;  %v5723_v14 = vpop.f32.mrb[3].mxu0  ;;  %v6050_v16 = vld [vmem:[%s9721_s3 + $0x8] sm:$0xff]  ;;  %v7251_v47 = vpack.c.bf16 %v6074_v45, %v6073_v32 }
 0x2b8   : > { %5899 = vst.msk [vmem:[#allocation2 + $0x40] sm:$0xff] %vm5896_vm13, %v9739_v24  ;;  %v5872_v49 = vmax.f32 %v9460_v10, 0.0  ;;  %v7288_v33 = vadd.f32 %v5723_v14, %v1177_v1  ;;  %v6067_v1 = vld [vmem:[%s9721_s3 + $0x90] sm:$0xff]  ;;  %v6058_v36 = vld [vmem:[%s9721_s3 + $0x48] sm:$0xff] }
 0x2b9   : > { %v9466_v61 = vadd.f32 %v7287_v53, %v5847_v5  ;;  %v9480_v41 = vld [vmem:[#allocation2 + $0x28] sm:$0xff]  ;;  %v7253_v53 = vpack.c.bf16 %v6058_v36, %v6057_v39  ;;  %v6075_v14 = vld [vmem:[%s9721_s3 + $0xd0] sm:$0xff] }
 0x2ba   : > { %v9468_v59 = vadd.f32 %v7288_v33, %v5847_v5  ;;  %v5727_v21 = vpop.f32.mrb[4].mxu0  ;;  %v8001_v34 = vpack.i.bf16 %v5871_v52, %v5872_v49  ;;  %v6069_v5 = vld [vmem:[%s9721_s3 + $0xa0] sm:$0xff]  ;;  %v6076_v33 = vld [vmem:[%s9721_s3 + $0xd8] sm:$0xff] }
 0x2bb   : > { %v9470_v2 = vld [vmem:[#allocation2 + $0x10] sm:$0xff]  ;;  %v5874_v28 = vmax.f32 %v9466_v61, 0.0  ;;  %v7289_v24 = vadd.f32 %v5727_v21, %v1181_v51  ;;  %v5729_v38 = vpop.f32.mrb[5].mxu0  ;;  %v6068_v51 = vld [vmem:[%s9721_s3 + $0x98] sm:$0xff]  ;;  %v7243_v43 = vpack.c.bf16 %v6070_v29, %v6069_v5  ;;  %v7255_v21 = vpack.c.bf16 %v6076_v33, %v6075_v14 }
 0x2bc   : > { %5929 = vrot.lane.b32.xlu1 %v9470_v2, %s8069_s10  ;;  %v5875_v12 = vmax.f32 %v9468_v59, 0.0  ;;  %v7290_v6 = vadd.f32 %v5729_v38, %v1183_v3  ;;  %8002 = vrot.lane.b32.xlu0 %v8001_v34, %s8069_s10  ;;  %v6059_v34 = vld [vmem:[%s9721_s3 + $0x50] sm:$0xff] }
 0x2bd   : > { %v9483_v18 = vadd.f32 %v7289_v24, %v5852_v25  ;;  %v9502_v44 = vld [vmem:[#allocation2 + $0x58] sm:$0xff] }
 0x2be   : > { %v9485_v23 = vadd.f32 %v7290_v6, %v5852_v25  ;;  %v5733_v48 = vpop.f32.mrb[6].mxu0  ;;  %v8006_v4 = vpack.i.bf16 %v5874_v28, %v5875_v12  ;;  %v6052_v25 = vld [vmem:[%s9721_s3 + $0x18] sm:$0xff]  ;;  %v6077_v6 = vld [vmem:[%s9721_s3 + $0xe0] sm:$0xff] }
 0x2bf   : > { %v5877_v58 = vmax.f32 %v9483_v18, 0.0  ;;  %v7291_v27 = vadd.f32 %v5733_v48, %v1187_v22  ;;  %v5735_v13 = vpop.f32.mrb[7].mxu0  ;;  %v9495_v42 = vld [vmem:[#allocation2 + $0x40] sm:$0xff]  ;;  %v7237_v22 = vpack.c.bf16 %v6050_v16, %v6049_v0  ;;  %v7241_v15 = vpack.c.bf16 %v6052_v25, %v6051_v54  ;;  %v6060_v24 = vld [vmem:[%s9721_s3 + $0x58] sm:$0xff]  ;;  %v6078_v48 = vld [vmem:[%s9721_s3 + $0xe8] sm:$0xff] }
 0x2c0   : > { %5935 = vrot.lane.b32.xlu1 %v9480_v41, %s8069_s10  ;;  %v5878_v46 = vmax.f32 %v9485_v23, 0.0  ;;  %v7292_v8 = vadd.f32 %v5735_v13, %v1189_v60  ;;  %8007 = vrot.lane.b32.xlu0 %v8006_v4, %s8069_s10  ;;  %v7239_v60 = vpack.c.bf16 %v6068_v51, %v6067_v1  ;;  %v7257_v38 = vpack.c.bf16 %v6060_v24, %v6059_v34  ;;  %v6062_v13 = vld [vmem:[%s9721_s3 + $0x68] sm:$0xff]  ;;  %v6063_v0 = vld [vmem:[%s9721_s3 + $0x70] sm:$0xff] }
 0x2c1   : > { %v9498_v7 = vadd.f32 %v7291_v27, %v5857_v30  ;;  %7238 = vmatpush3.bf16.msra.mxu1 %v7237_v22  ;;  %v7259_v4 = vpack.c.bf16 %v6078_v48, %v6077_v6  ;;  %v6061_v27 = vld [vmem:[%s9721_s3 + $0x60] sm:$0xff]  ;;  %v7265_v16 = vpack.c.bf16 %v6064_v62, %v6063_v0  ;;  %v6082_v22 = vld [vmem:[%s9721_s3 + $0x108] sm:$0xff]  ;;  %v6083_v6 = vld [vmem:[%s9721_s3 + $0x110] sm:$0xff] }
 0x2c2   : > { %v9500_v9 = vadd.f32 %v7292_v8, %v5857_v30  ;;  %v8011_v56 = vpack.i.bf16 %v5877_v58, %v5878_v46  ;;  %7240 = vmatprep.subr.bf16.mxu1 %v7239_v60  ;;  %v6053_v30 = vld [vmem:[%s9721_s3 + $0x20] sm:$0xff]  ;;  %v7261_v8 = vpack.c.bf16 %v6062_v13, %v6061_v27 }
 0x2c3   : > { %v5880_v20 = vmax.f32 %v9498_v7, 0.0  ;;  %v7245_v57 = vpack.c.bf16 %v6054_v40, %v6053_v30  ;;  %v6081_v51 = vld [vmem:[%s9721_s3 + $0x100] sm:$0xff]  ;;  %v6084_v7 = vld [vmem:[%s9721_s3 + $0x118] sm:$0xff] }
 0x2c4   : > { %5941 = vrot.lane.b32.xlu1 %v9495_v42, %s8069_s10  ;;  %v5881_v3 = vmax.f32 %v9500_v9, 0.0  ;;  %8012 = vrot.lane.b32.xlu0 %v8011_v56, %s8069_s10  ;;  %v6079_v56 = vld [vmem:[%s9721_s3 + $0xf0] sm:$0xff]  ;;  %v9625_v25 = vpack.c.bf16 %v6082_v22, %v6081_v51 }
 0x2c5   : > { %7242 = vmatpush3.bf16.msra.mxu1 %v7241_v15  ;;  %v7263_v31 = vpack.c.bf16 %v6080_v55, %v6079_v56  ;;  %v6085_v56 = vld [vmem:[%s9721_s3 + $0x120] sm:$0xff]  ;;  %v6086_v55 = vld [vmem:[%s9721_s3 + $0x128] sm:$0xff] }
 0x2c6   : > { %v8016_v63 = vpack.i.bf16 %v5880_v20, %v5881_v3  ;;  %7244 = vmatprep.subr.bf16.mxu1 %v7243_v43 }
 0x2c8   : > { %5947 = vrot.lane.b32.xlu1 %v9502_v44, %s8069_s10  ;;  %8017 = vrot.lane.b32.xlu0 %v8016_v63, %s8069_s10 }
 0x2c9   : > { %7246 = vmatpush3.bf16.msra.mxu1 %v7245_v57 }
 0x2ca   : > { %7248 = vmatprep.subr.bf16.mxu1 %v7247_v35 }
 0x2cd   : > { %7250 = vmatpush3.bf16.msra.mxu1 %v7249_v11 }
 0x2ce   : > { %7252 = vmatprep.subr.bf16.mxu1 %v7251_v47 }
 0x2d1   : > { %7254 = vmatpush3.bf16.msra.mxu1 %v7253_v53 }
 0x2d2   : > { %7256 = vmatprep.subr.bf16.mxu1 %v7255_v21 }
 0x2d5   : > { %7258 = vmatpush3.bf16.msra.mxu1 %v7257_v38 }
 0x2d6   : > { %7260 = vmatprep.subr.bf16.mxu1 %v7259_v4 }
 0x2d9   : > { %7262 = vmatpush3.bf16.msra.mxu1 %v7261_v8  ;;  %v7271_v8 = vpack.c.bf16 %v6084_v7, %v6083_v6 }
 0x2da   : > { %7264 = vmatprep.subr.bf16.mxu1 %v7263_v31 }
 0x2dd   : > { %7266 = vmatpush3.bf16.msra.mxu1 %v7265_v16 }
 0x2de   : > { %7268 = vmatprep.subr.bf16.mxu1 %v9625_v25 }
 0x32e   : > { %v5930_v1 = vpop.permute.xlu1 %5929  ;;  %v8003_v54 = vpop.permute.xlu0 %8002 }
 0x32f   : > { %v9623_v60 = vmax.f32 %v9470_v2, %v5930_v1  ;;  %v8005_v5 = vunpack.i.h.bf16 %v8003_v54  ;;  %v8004_v29 = vunpack.i.l.bf16 %v8003_v54 }
 0x331   : > { %5997 = vrot.lane.b32.xlu1 %v9623_v60, %s8063_s25  ;;  %v5949_v15 = vsel %vm238_vm5, %v8005_v5, %v8004_v29  ;;  %v5950_v43 = vsel %vm238_vm5, %v8004_v29, %v5930_v1  ;;  %v7275_v5 = vpack.c.bf16 %v6086_v55, %v6085_v56  ;;  %v6087_v29 = vld [vmem:[%s9721_s3 + $0x130] sm:$0xff] }
 0x332   : > { %v5936_v63 = vpop.permute.xlu1 %5935  ;;  %v5969_v2 = vmax.f32 %v5871_v52, %v5949_v15  ;;  %v5970_v40 = vmax.f32 %v5872_v49, %v5950_v43  ;;  %v8008_v19 = vpop.permute.xlu0 %8007 }
 0x333   : > { %v9633_v30 = vmax.f32 %v9480_v41, %v5936_v63  ;;  %v8010_v26 = vunpack.i.h.bf16 %v8008_v19  ;;  %v8009_v57 = vunpack.i.l.bf16 %v8008_v19 }
 0x334   : > { %v8021_v35 = vpack.i.bf16 %v5969_v2, %v5970_v40 }
 0x335   : > { %6003 = vrot.lane.b32.xlu1 %v9633_v30, %s8063_s25  ;;  %v5951_v37 = vsel %vm238_vm5, %v8010_v26, %v8009_v57  ;;  %v5952_v11 = vsel %vm238_vm5, %v8009_v57, %v5936_v63  ;;  %v6088_v63 = vld [vmem:[%s9721_s3 + $0x138] sm:$0xff] }
 0x336   : > { %v5942_v50 = vpop.permute.xlu1 %5941  ;;  %v5972_v17 = vmax.f32 %v5874_v28, %v5951_v37  ;;  %v5973_v10 = vmax.f32 %v5875_v12, %v5952_v11  ;;  %v8013_v52 = vpop.permute.xlu0 %8012  ;;  %8022 = vrot.lane.b32.xlu0 %v8021_v35, %s8063_s25  ;;  %v7279_v57 = vpack.c.bf16 %v6088_v63, %v6087_v29 }
 0x337   : > { %v9644_v41 = vmax.f32 %v9495_v42, %v5942_v50  ;;  %v8015_v49 = vunpack.i.h.bf16 %v8013_v52  ;;  %v8014_v32 = vunpack.i.l.bf16 %v8013_v52  ;;  %v6089_v52 = vld [vmem:[%s9721_s3 + $0x140] sm:$0xf] }
 0x338   : > { %v8026_v45 = vpack.i.bf16 %v5972_v17, %v5973_v10 }
 0x339   : > { %6009 = vrot.lane.b32.xlu1 %v9644_v41, %s8063_s25  ;;  %v5953_v39 = vsel %vm238_vm5, %v8015_v49, %v8014_v32  ;;  %v5954_v42 = vsel %vm238_vm5, %v8014_v32, %v5942_v50 }
 0x33a   : > { %v5948_v47 = vpop.permute.xlu1 %5947  ;;  %v5975_v59 = vmax.f32 %v5877_v58, %v5953_v39  ;;  %v5976_v28 = vmax.f32 %v5878_v46, %v5954_v42  ;;  %v8018_v12 = vpop.permute.xlu0 %8017  ;;  %8027 = vrot.lane.b32.xlu0 %v8026_v45, %s8063_s25 }
 0x33b   : > { %v9656_v61 = vmax.f32 %v9502_v44, %v5948_v47  ;;  %v8020_v36 = vunpack.i.h.bf16 %v8018_v12  ;;  %v8019_v53 = vunpack.i.l.bf16 %v8018_v12 }
 0x33c   : > { %v8031_v14 = vpack.i.bf16 %v5975_v59, %v5976_v28 }
 0x33d   : > { %6015 = vrot.lane.b32.xlu1 %v9656_v61, %s8063_s25  ;;  %v5955_v33 = vsel %vm238_vm5, %v8020_v36, %v8019_v53  ;;  %v5956_v44 = vsel %vm238_vm5, %v8019_v53, %v5948_v47 }
 0x33e   : > { %v5978_v18 = vmax.f32 %v5880_v20, %v5955_v33  ;;  %v5979_v23 = vmax.f32 %v5881_v3, %v5956_v44  ;;  %8032 = vrot.lane.b32.xlu0 %v8031_v14, %s8063_s25 }
 0x340   : > { %v8036_v58 = vpack.i.bf16 %v5978_v18, %v5979_v23 }
 0x342   : > { %8037 = vrot.lane.b32.xlu0 %v8036_v58, %s8063_s25 }
 0x3a3   : > { %v5998_v46 = vpop.permute.xlu1 %5997 }
 0x3a7   : > { %v6004_v38 = vpop.permute.xlu1 %6003 }
 0x3a8   : > { %v8023_v21 = vpop.permute.xlu0 %8022  ;;  %v6042_v49 = vmax.f32 %v9633_v30, %v6004_v38 }
 0x3a9   : > { %v8025_v34 = vunpack.i.h.bf16 %v8023_v21  ;;  %v8024_v24 = vunpack.i.l.bf16 %v8023_v21 }
 0x3ab   : > { %v6017_v9 = vsel %vm1309_vm1, %v8025_v34, %v8024_v24  ;;  %v6018_v20 = vsel %vm1309_vm1, %v8024_v24, %v5998_v46  ;;  %v6010_v62 = vpop.permute.xlu1 %6009 }
 0x3ac   : > { %v6037_v3 = vmax.f32 %v5969_v2, %v6017_v9  ;;  %v8028_v48 = vpop.permute.xlu0 %8027  ;;  %v6038_v4 = vmax.f32 %v5970_v40, %v6018_v20  ;;  %v6045_v32 = vmax.f32 %v9644_v41, %v6010_v62 }
 0x3ad   : > { %v8030_v27 = vunpack.i.h.bf16 %v8028_v48  ;;  %v8029_v13 = vunpack.i.l.bf16 %v8028_v48 }
 0x3ae   : > { %6170 = vmatprep.mubr.f32.mxu1 %v6038_v4 }
 0x3af   : > { %6171 = vmatmul.mubr.f32.vlgmr.msra.gmra.mrb[12].mxu1 %v6037_v3  ;;  %v6020_v31 = vsel %vm1309_vm1, %v8029_v13, %v6004_v38  ;;  %v6019_v0 = vsel %vm1309_vm1, %v8030_v27, %v8029_v13  ;;  %v6016_v35 = vpop.permute.xlu1 %6015 }
 0x3b0   : > { %7270 = vmatpush3.bf16.msra.mxu1 %v9625_v25  ;;  %v8033_v16 = vpop.permute.xlu0 %8032  ;;  %v6041_v1 = vmax.f32 %v5973_v10, %v6020_v31  ;;  %v6040_v51 = vmax.f32 %v5972_v17, %v6019_v0  ;;  %v6039_v10 = vmax.f32 %v9623_v60, %v5998_v46  ;;  %v6048_v60 = vmax.f32 %v9656_v61, %v6016_v35 }
 0x3b1   : > { %v8035_v22 = vunpack.i.h.bf16 %v8033_v16  ;;  %v8034_v54 = vunpack.i.l.bf16 %v8033_v16  ;;  %7272 = vmatprep.subr.bf16.mxu1 %v7271_v8 }
 0x3b2   : > { %6175 = vmatprep.mubr.f32.mxu1 %v6041_v1 }
 0x3b3   : > { %6176 = vmatmul.mubr.f32.gmra.mrb[14].mxu1 %v6040_v51  ;;  %v6022_v15 = vsel %vm1309_vm1, %v8034_v54, %v6010_v62  ;;  %v6021_v25 = vsel %vm1309_vm1, %v8035_v22, %v8034_v54 }
 0x3b4   : > { %7274 = vmatpush3.bf16.msra.mxu1 %v7271_v8  ;;  %v8038_v43 = vpop.permute.xlu0 %8037  ;;  %v6044_v2 = vmax.f32 %v5976_v28, %v6022_v15  ;;  %v6043_v40 = vmax.f32 %v5975_v59, %v6021_v25 }
 0x3b5   : > { %v8040_v19 = vunpack.i.h.bf16 %v8038_v43  ;;  %v8039_v26 = vunpack.i.l.bf16 %v8038_v43  ;;  %7276 = vmatprep.subr.bf16.mxu1 %v7275_v5 }
 0x3b6   : > { %6180 = vmatprep.mubr.f32.mxu1 %v6044_v2 }
 0x3b7   : > { %6181 = vmatmul.mubr.f32.gmra.mrb[16].mxu1 %v6043_v40  ;;  %v6024_v50 = vsel %vm1309_vm1, %v8039_v26, %v6016_v35  ;;  %v6023_v37 = vsel %vm1309_vm1, %v8040_v19, %v8039_v26  ;;  %vm6276_vm1 = vcmask 400384  }
 0x3b8   : > { %7278 = vmatpush3.bf16.msra.mxu1 %v7275_v5  ;;  %v6047_v11 = vmax.f32 %v5979_v23, %v6024_v50  ;;  %v6046_v17 = vmax.f32 %v5978_v18, %v6023_v37 }
 0x3b9   : > { %7280 = vmatprep.subr.bf16.mxu1 %v7279_v57 }
 0x3ba   : > { %6185 = vmatprep.mubr.f32.mxu1 %v6047_v11 }
 0x3bb   : > { %6186 = vmatmul.mubr.f32.gmra.mrb[18].mxu1 %v6046_v17 }
 0x3bc   : > { %7282 = vmatpush3.bf16.msra.mxu1 %v7279_v57  ;;  %7029 = vmatprep.mubr.msk.f32.mxu1 %vm5885_vm12, %v6039_v10 }
 0x3bd   : > { %7027 = vmatprep.subr.msk.mxu1 %vm6102_vm2, %v6089_v52 }
 0x3c0   : > { %7028 = vmatpush3.msk.msra.mxu1 %vm6102_vm2, %v6089_v52 }
 0x3c1   : > { %7030 = vmatmul.mubr.msk.f32.vlgmr.msra.gmra.mrb[20].mxu1 %vm5885_vm12, %v6042_v49 }
 0x3c2   : > { %7032 = vmatprep.mubr.msk.f32.mxu1 %vm5885_vm12, %v6045_v32 }
 0x3c5   : > { %7033 = vmatmul.mubr.msk.f32.gmra.mrb[22].mxu1 %vm5885_vm12, %v6048_v60 }
 0x482   : > { %v6736_v45 = vpop.f32.mrb[12].mxu1 }
 0x483   : > { %v6737_v47 = vpop.f32.mrb[13].mxu1 }
 0x484   : > { %v6738_v39 = vadd.f32 %v6737_v47, %v6736_v45 }
 0x486   : > { %v6739_v42 = vpop.f32.mrb[14].mxu1 }
 0x487   : > { %v6740_v59 = vpop.f32.mrb[15].mxu1 }
 0x488   : > { %v6741_v28 = vadd.f32 %v6740_v59, %v6739_v42 }
 0x48a   : > { %v6742_v12 = vpop.f32.mrb[16].mxu1 }
 0x48b   : > { %v6743_v30 = vpop.f32.mrb[17].mxu1 }
 0x48c   : > { %v6744_v36 = vadd.f32 %v6743_v30, %v6742_v12 }
 0x48e   : > { %v6745_v41 = vpop.f32.mrb[18].mxu1 }
 0x48f   : > { %v6746_v53 = vpop.f32.mrb[19].mxu1 }
 0x490   : > { %v6747_v14 = vadd.f32 %v6746_v53, %v6745_v41 }
 0x494   : > { %v7031_v61 = vpop.f32.mrb[20].mxu1 }
 0x495   : > { %v6263_v33 = vadd.f32 %v7031_v61, %v6741_v28  ;;  %v6257_v44 = vpop.f32.mrb[21].mxu1 }
 0x496   : > { %v6258_v18 = vadd.f32 %v6738_v39, %v6257_v44 }
 0x497   : > { %6278 = vst.msk [vmem:[%s197_s18 + $0x8] sm:$0xff] %vm6276_vm1, %v6263_v33 }
 0x498   : > { %6277 = vst.msk [vmem:[%s197_s18] sm:$0xff] %vm6276_vm1, %v6258_v18  ;;  %v7034_v23 = vpop.f32.mrb[22].mxu1 }
 0x499   : > { %v6273_v58 = vadd.f32 %v7034_v23, %v6747_v14  ;;  %v6267_v46 = vpop.f32.mrb[23].mxu1 }
 0x49a   : > { %v6268_v21 = vadd.f32 %v6744_v36, %v6267_v46 }
 0x49b   : > { %6280 = vst.msk [vmem:[%s197_s18 + $0x18] sm:$0xff] %vm6276_vm1, %v6273_v58 }
 0x49c   : > { %6279 = vst.msk [vmem:[%s197_s18 + $0x10] sm:$0xff] %vm6276_vm1, %v6268_v21 }
 0x49d PF: > { %s14_s15 = sadd.s32 1, %s8059_s15  }
 0x49e   : > { %p11_p4 = scmp.ge.s32.totalorder %s14_s15, 4  }
 0x4a0   :  { %13 = sbr.rel (!%p11_p4) target bundleno = 1 (0x1), region = 66 }

// kernel: cnn_forward.3
= control target key start
LH: loop header
LB: loop body
LE: loop exit
PB: predicated region body
PF: predicated region fallthrough
CT: control target
= control target key end

     0   :  { %9 = vsyncpa [#allocation4], 0  ;;  %s5724_s15 = smov 0   ;;  %s9307_s0 = inlined_call_operand.vmem [shape: f32[2,1,1156], index: 0, kind: input, shape index: {}]   ;;  %s9308_s1 = inlined_call_operand.vmem [shape: f32[16,25], index: 1, kind: input, shape index: {}]   ;;  %s9309_s2 = inlined_call_operand.vmem [shape: f32[16,1], index: 2, kind: input, shape index: {}]   ;;  %s9310_s3 = inlined_call_operand.hbm [shape: f32[1024,324], index: 3, kind: input, shape index: {}]   ;;  %s9311_s4 = inlined_call_operand.vmem [shape: f32[2,16,400], index: 4, kind: output, shape index: {}]  }
   0x1 LB: > { %s5730_s16 = sadd.s32 4294967295, %s5648_s15   ;;  %p4835_p0 = scmp.ge.s32.totalorder %s5648_s15, 1  ;;  %s5648_s15 = sphi %s5724_s15, %s15_s15  }
   0x2   : > { %p135_p1 = scmp.lt.s32.totalorder %s5648_s15, 3  ;;  %s5650_s17 = smov [#allocation3]  }
   0x3   : > { %s153_s18 = sshll.u32 %s5650_s17, 4  ;;  %p9312_p3 = scmp.eq.s32.totalorder %s5730_s16, 0  ;;  %s154_s18 = int_to_ptr.vmem [resolvable:$true] %s153_s18 }
   0x4   : > { %p5734_p2 = pnand %p4835_p0, %p135_p1  ;;  %s5610_s23 = scalar_lea.hbm %s9310_s3, 49152 }
   0x5   : > { %p5611_p6 = scmp.ne.s32.totalorder %s9310_s3, %s5610_s23  ;;  %p5617_p10 = scmp.lt.u32.totalorder %s5610_s23, %s9310_s3 }
   0x6   : > { %s9593_s19 = scalar_select %p5734_p2, 1, 0 }
   0x7   : > { %p5400_p4 = pneg %p5734_p2 }
   0x9   : > { %p5743_p5 = pnand %p9312_p3, %p5400_p4 }
   0xb   : > { %p5612_p7 = pneg %p5743_p5 }
   0xd   : > { %p5613_p8 = pnand %p5612_p7, %p5611_p6 }
   0xf   : > { %p5614_p9 = pneg %p5613_p8 }
  0x11   : > { %p5619_p11 = pnand %p5617_p10, %p5614_p9 }
  0x13   : > { %5622 = shalt.err (!%p5619_p11)
}
  0x14   : > { %s5623_s28 = scalar_lea.vmem %s154_s18, 49152  ;;  %p5631_p1 = scmp.lt.s32.totalorder %s154_s18, %s154_s18 }
  0x15   : > { %p5624_p12 = scmp.ne.s32.totalorder %s154_s18, %s5623_s28  ;;  %p5632_p4 = scmp.lt.s32.totalorder %s5623_s28, %s5623_s28 }
  0x17   : > { %p5626_p13 = pnand %p5624_p12, %p5612_p7  ;;  %p5633_p3 = por %p5632_p4, %p5631_p1 }
  0x19   : > { %p5627_p0 = pneg %p5626_p13 }
  0x1b   : > { %p5634_p2 = pnand %p5633_p3, %p5627_p0 }
  0x1d   : > { %5637 = shalt.err (!%p5634_p2)
}
  0x1e   : > { %s5651_s29 = smov 384   ;;  %s5652_s30 = smov 24  }
  0x1f   : > { %5403 = dma.hbm_to_vmem [thread:$0]  (!%p5743_p5), %s9310_s3, 49152, %s154_s18, [#allocation4], %s5651_s29, %s5651_s29, %s5652_s30  }
  0x20   : > { %p9595_p6 = scmp.ne.s32.totalorder %s9593_s19, 0 }
  0x22   : > { %176 = sbr.rel (%p9595_p6) target bundleno = 2648 (0xa58), region = 36 }
  0x29   : > { %p9596_p8 = scmp.eq.s32.totalorder %s5730_s16, 0 }
  0x2b   : > { %5643 = dma.done.wait (%p9596_p8), [#allocation4], 49152   ;;  %p9597_p7 = pmov %p9596_p8 }
  0x2c   : > { %v5653_v0 = vmov 1   ;;  %v9321_v1 = vmov 0   ;;  %v5773_v2 = vld [vmem:[%s9308_s1] sm:$0xff]  ;;  %v5780_v3 = vld [vmem:[%s9308_s1 + $0x8] sm:$0xff]  ;;  %v5655_v4 = vmov 2   ;;  %v5656_v5 = vmov 3  }
  0x2d   : > { %5645 = vsyncadd (%p9597_p7), [#allocation4], 4294918144  ;;  %5464 = vset.pattern.permute.xlu1 %v5653_v0  ;;  %5463 = vset.pattern.permute.xlu0 %v9321_v1  ;;  %v5657_v6 = vmov 4   ;;  %p201_p2 = scmp.lt.s32.totalorder %s5730_s16, 1  ;;  %v224_v7 = vlaneseq  ;;  %s5658_s17 = smov 127   ;;  %v5659_v42 = vmov 5  }
  0x2e   : > { %299 = vperm.xlu1 %5464, %v5773_v2   ;;  %215 = vperm.xlu0 %5463, %v5773_v2   ;;  %s5660_s18 = smov 126   ;;  %s5661_s19 = smov 125   ;;  %vm425_vm0 = vcmask 1039360   ;;  %vm554_vm1 = vcmask 1031168   ;;  %vm683_vm2 = vcmask 1022976   ;;  %vm812_vm3 = vcmask 1014784  }
  0x2f   : > { %s10116_s16 = smov (!%p201_p2, %s5730_s16), 1  ;;  %v5795_v8 = vshrl.u32 %v224_v7, 7  ;;  %s5662_s20 = smov 124   ;;  %vm941_vm4 = vcmask 785408   ;;  %vm1070_vm5 = vcmask 777216   ;;  %vm1199_vm6 = vcmask 769024  }
  0x30   : > { %s5395_s11 = smul.u32 10, %s10116_s16  ;;  %s5664_s21 = smov 96   ;;  %vm1328_vm7 = vcmask 760832   ;;  %vm1457_vm8 = vcmask 752640   ;;  %vm1586_vm9 = vcmask 523264   ;;  %vm1715_vm10 = vcmask 515072  }
  0x31   : > { %9598 = vst [vmem:[#allocation6_spill] sm:$0xff] %v5795_v8  ;;  %v9320_v9 = vsub.s32 1, %v5795_v8  ;;  %v9317_v10 = vsub.s32 0, %v5795_v8  ;;  %v9319_v14 = vsub.s32 3, %v5795_v8  ;;  %v9318_v15 = vsub.s32 2, %v5795_v8  ;;  %s5666_s22 = smov 95  }
  0x32   : > { %303 = vperm.xlu1 %5464, %v5780_v3   ;;  %220 = vperm.xlu0 %5463, %v5780_v3   ;;  %s5800_s14 = scalar_lea.vmem %s9307_s0, %s5395_s11  ;;  %v9315_v17 = vsub.s32 5, %v5795_v8  ;;  %v9316_v18 = vsub.s32 4, %v5795_v8  ;;  %v9314_v23 = vsub.s32 7, %v5795_v8  ;;  %v5831_v24 = vsub.s32 6, %v5795_v8  ;;  %s5668_s23 = smov 94  }
  0x33   : > { %v296_v11 = vld [vmem:[%s5800_s14] sm:$0xff]  ;;  %v5859_v36 = vld [vmem:[%s5800_s14 + $0x8] ss:$0 sm:$0xff]  ;;  %s5670_s24 = smov 93   ;;  %s5672_s29 = smov 92   ;;  %vm1844_vm11 = vcmask 506880  }
  0x34   : > { %v5807_v12 = vrot.slane %v296_v11, %v9320_v9  ;;  %v5811_v13 = vrot.slane %v296_v11, %v9317_v10  ;;  %v5821_v21 = vrot.slane %v296_v11, %v9319_v14  ;;  %v5825_v22 = vrot.slane %v296_v11, %v9318_v15  ;;  %9600 = vst [vmem:[#allocation8_spill] sm:$0xff] %v5831_v24  ;;  %s5675_s30 = smov 64   ;;  %s5688_s5 = smov 63  }
  0x35   : > { %v5837_v27 = vrot.slane %v296_v11, %v9315_v17  ;;  %v5841_v28 = vrot.slane %v296_v11, %v9316_v18  ;;  %v5849_v31 = vrot.slane %v296_v11, %v9314_v23  ;;  %v5852_v32 = vrot.slane %v296_v11, %v5831_v24  ;;  %s5689_s6 = smov 62   ;;  %s5690_s7 = smov 61  }
  0x36   : > { %5465 = vset.pattern.permute.xlu0 %v5655_v4  ;;  %5466 = vset.pattern.permute.xlu1 %v5655_v4  ;;  %9599 = vst [vmem:[#allocation7_spill] sm:$0xff] %v5825_v22  ;;  %s5691_s8 = smov 60   ;;  %s5692_s9 = smov 32   ;;  %vm1973_vm12 = vcmask 498688   ;;  %vm2102_vm13 = vcmask 490496   ;;  %vm2231_vm14 = vcmask 261120  }
  0x37   : > { %475 = vperm.xlu0 %5465, %v5773_v2   ;;  %479 = vperm.xlu1 %5466, %v5780_v3   ;;  %9601 = vst [vmem:[#allocation9_spill] sm:$0xff] %v5837_v27  ;;  %9602 = vst [vmem:[#allocation10_spill] sm:$0xff] %v5841_v28  ;;  %s5693_s10 = smov 31   ;;  %s5694_s11 = smov 30   ;;  %vm2360_vm15 = vcmask 252928  }
  0x38   : > { %9603 = vst [vmem:[#allocation11_spill] sm:$0xff] %v5849_v31  ;;  %9604 = vst [vmem:[#allocation12_spill] sm:$0xff] %v5852_v32  ;;  %s5695_s12 = smov 29   ;;  %s5696_s13 = smov 28  }
  0x3b   : > { %5467 = vset.pattern.permute.xlu1 %v5656_v5  ;;  %5468 = vset.pattern.permute.xlu0 %v5656_v5 }
  0x3c   : > { %604 = vperm.xlu1 %5467, %v5773_v2   ;;  %608 = vperm.xlu0 %5468, %v5780_v3  }
  0x40   : > { %5469 = vset.pattern.permute.xlu0 %v5657_v6  ;;  %5470 = vset.pattern.permute.xlu1 %v5657_v6 }
  0x41   : > { %733 = vperm.xlu0 %5469, %v5773_v2   ;;  %737 = vperm.xlu1 %5470, %v5780_v3  }
  0x45   : > { %5471 = vset.pattern.permute.xlu1 %v5659_v42  ;;  %5472 = vset.pattern.permute.xlu0 %v5659_v42 }
  0xad   : > { %v300_v16 = vpop.permute.xlu1 %299  ;;  %v5869_v41 = vpop.permute.xlu0 %215 }
  0xae   : > { %v354_v19 = vmul.f32 %v5807_v12, %v300_v16  ;;  %v353_v20 = vmul.f32 %v5811_v13, %v300_v16  ;;  %v356_v25 = vmul.f32 %v5821_v21, %v300_v16  ;;  %v355_v26 = vmul.f32 %v5825_v22, %v300_v16  ;;  %9605 = vst [vmem:[#allocation13_spill] sm:$0xff] %v5869_v41 }
  0xaf   : > { %v358_v29 = vmul.f32 %v5837_v27, %v300_v16  ;;  %v357_v30 = vmul.f32 %v5841_v28, %v300_v16  ;;  %v360_v33 = vmul.f32 %v5849_v31, %v300_v16  ;;  %v359_v34 = vmul.f32 %v5852_v32, %v300_v16 }
  0xb0   : > { %391 = vrot.lane.b32.xlu1 %v354_v19, %s5658_s17  ;;  %389 = vrot.lane.b32.xlu0 %v353_v20, %s5658_s17  ;;  %v361_v38 = vmul.f32 %v5859_v36, %v300_v16 }
  0xb1   : > { %v304_v35 = vpop.permute.xlu1 %303  ;;  %v5877_v45 = vpop.permute.xlu0 %220 }
  0xb2   : > { %v362_v37 = vmul.f32 %v5811_v13, %v304_v35  ;;  %v364_v39 = vmul.f32 %v5825_v22, %v304_v35  ;;  %v363_v40 = vmul.f32 %v5807_v12, %v304_v35  ;;  %v366_v43 = vmul.f32 %v5841_v28, %v304_v35 }
  0xb3   : > { %v365_v44 = vmul.f32 %v5821_v21, %v304_v35  ;;  %v368_v46 = vmul.f32 %v5852_v32, %v304_v35  ;;  %v367_v47 = vmul.f32 %v5837_v27, %v304_v35  ;;  %v370_v49 = vmul.f32 %v5859_v36, %v304_v35 }
  0xb4   : > { %395 = vrot.lane.b32.xlu1 %v356_v25, %s5658_s17  ;;  %393 = vrot.lane.b32.xlu0 %v355_v26, %s5658_s17  ;;  %v369_v50 = vmul.f32 %v5849_v31, %v304_v35 }
  0xb6   : > { %v476_v48 = vpop.permute.xlu0 %475  ;;  %v480_v57 = vpop.permute.xlu1 %479 }
  0xb7   : > { %v483_v51 = vmul.f32 %v476_v48, %v5807_v12  ;;  %v482_v52 = vmul.f32 %v476_v48, %v5811_v13  ;;  %v485_v53 = vmul.f32 %v476_v48, %v5821_v21  ;;  %v484_v54 = vmul.f32 %v476_v48, %v5825_v22 }
  0xb8   : > { %399 = vrot.lane.b32.xlu1 %v358_v29, %s5658_s17  ;;  %397 = vrot.lane.b32.xlu0 %v357_v30, %s5658_s17  ;;  %v487_v55 = vmul.f32 %v476_v48, %v5837_v27  ;;  %v486_v56 = vmul.f32 %v476_v48, %v5841_v28  ;;  %v489_v58 = vmul.f32 %v476_v48, %v5849_v31 }
  0xb9   : > { %v488_v59 = vmul.f32 %v476_v48, %v5852_v32  ;;  %v491_v60 = vmul.f32 %v480_v57, %v5811_v13  ;;  %v490_v61 = vmul.f32 %v5859_v36, %v476_v48  ;;  %v493_v62 = vmul.f32 %v480_v57, %v5825_v22 }
  0xba   : > { %v492_v63 = vmul.f32 %v480_v57, %v5807_v12  ;;  %v495_v0 = vmul.f32 %v480_v57, %v5841_v28  ;;  %v494_v4 = vmul.f32 %v480_v57, %v5821_v21  ;;  %v497_v5 = vmul.f32 %v480_v57, %v5852_v32 }
  0xbb   : > { %v496_v6 = vmul.f32 %v480_v57, %v5837_v27  ;;  %v605_v7 = vpop.permute.xlu1 %604  ;;  %v499_v11 = vmul.f32 %v5859_v36, %v480_v57  ;;  %v498_v16 = vmul.f32 %v480_v57, %v5849_v31 }
  0xbc   : > { %403 = vrot.lane.b32.xlu1 %v360_v33, %s5658_s17  ;;  %401 = vrot.lane.b32.xlu0 %v359_v34, %s5658_s17  ;;  %v613_v19 = vmul.f32 %v605_v7, %v5825_v22  ;;  %v611_v20 = vmul.f32 %v605_v7, %v5811_v13  ;;  %v615_v25 = vmul.f32 %v605_v7, %v5841_v28  ;;  %v609_v33 = vpop.permute.xlu0 %608 }
  0xbd   : > { %v612_v26 = vmul.f32 %v605_v7, %v5807_v12  ;;  %v617_v29 = vmul.f32 %v605_v7, %v5852_v32  ;;  %v614_v30 = vmul.f32 %v605_v7, %v5821_v21  ;;  %v619_v34 = vmul.f32 %v5859_v36, %v605_v7 }
  0xbe   : > { %v616_v35 = vmul.f32 %v605_v7, %v5837_v27  ;;  %v625_v42 = vmul.f32 %v609_v33, %v5837_v27 }
  0xc0   : > { %407 = vrot.lane.b32.xlu1 %v362_v37, %s5658_s17  ;;  %405 = vrot.lane.b32.xlu0 %v361_v38, %s5658_s17  ;;  %v621_v37 = vmul.f32 %v609_v33, %v5807_v12  ;;  %v618_v38 = vmul.f32 %v605_v7, %v5849_v31 }
  0xc4   : > { %411 = vrot.lane.b32.xlu1 %v364_v39, %s5658_s17  ;;  %409 = vrot.lane.b32.xlu0 %v363_v40, %s5658_s17  ;;  %v623_v39 = vmul.f32 %v609_v33, %v5821_v21  ;;  %v620_v40 = vmul.f32 %v609_v33, %v5811_v13 }
  0xc8   : > { %415 = vrot.lane.b32.xlu1 %v366_v43, %s5658_s17  ;;  %413 = vrot.lane.b32.xlu0 %v365_v44, %s5658_s17  ;;  %v622_v43 = vmul.f32 %v609_v33, %v5825_v22  ;;  %v734_v44 = vpop.permute.xlu0 %733 }
  0xc9   : > { %v741_v48 = vmul.f32 %v734_v44, %v5807_v12  ;;  %v747_v57 = vmul.f32 %v734_v44, %v5849_v31 }
  0xcc   : > { %419 = vrot.lane.b32.xlu1 %v368_v46, %s5658_s17  ;;  %417 = vrot.lane.b32.xlu0 %v367_v47, %s5658_s17  ;;  %v627_v46 = vmul.f32 %v609_v33, %v5849_v31  ;;  %v624_v47 = vmul.f32 %v609_v33, %v5841_v28 }
  0xd0   : > { %423 = vrot.lane.b32.xlu1 %v370_v49, %s5658_s17  ;;  %421 = vrot.lane.b32.xlu0 %v369_v50, %s5658_s17  ;;  %v626_v49 = vmul.f32 %v609_v33, %v5852_v32  ;;  %v743_v50 = vmul.f32 %v734_v44, %v5821_v21 }
  0xd4   : > { %520 = vrot.lane.b32.xlu0 %v483_v51, %s5660_s18  ;;  %518 = vrot.lane.b32.xlu1 %v482_v52, %s5660_s18  ;;  %v628_v51 = vmul.f32 %v5859_v36, %v609_v33  ;;  %v738_v52 = vpop.permute.xlu1 %737 }
  0xd5   : > { %v757_v33 = vmul.f32 %v5859_v36, %v738_v52 }
  0xd8   : > { %524 = vrot.lane.b32.xlu0 %v485_v53, %s5660_s18  ;;  %522 = vrot.lane.b32.xlu1 %v484_v54, %s5660_s18  ;;  %v745_v53 = vmul.f32 %v734_v44, %v5837_v27  ;;  %v740_v54 = vmul.f32 %v734_v44, %v5811_v13 }
  0xdc   : > { %528 = vrot.lane.b32.xlu0 %v487_v55, %s5660_s18  ;;  %526 = vrot.lane.b32.xlu1 %v486_v56, %s5660_s18 }
  0xe0   : > { %532 = vrot.lane.b32.xlu0 %v489_v58, %s5660_s18  ;;  %530 = vrot.lane.b32.xlu1 %v488_v59, %s5660_s18  ;;  %v742_v58 = vmul.f32 %v734_v44, %v5825_v22  ;;  %v749_v59 = vmul.f32 %v738_v52, %v5811_v13 }
  0xe4   : > { %536 = vrot.lane.b32.xlu0 %v491_v60, %s5660_s18  ;;  %534 = vrot.lane.b32.xlu1 %v490_v61, %s5660_s18 }
  0xe8   : > { %540 = vrot.lane.b32.xlu0 %v493_v62, %s5660_s18  ;;  %538 = vrot.lane.b32.xlu1 %v492_v63, %s5660_s18  ;;  %v744_v62 = vmul.f32 %v734_v44, %v5841_v28  ;;  %v751_v63 = vmul.f32 %v738_v52, %v5825_v22 }
  0xec   : > { %544 = vrot.lane.b32.xlu0 %v495_v0, %s5660_s18  ;;  %542 = vrot.lane.b32.xlu1 %v494_v4, %s5660_s18 }
  0xf0   : > { %548 = vrot.lane.b32.xlu0 %v497_v5, %s5660_s18  ;;  %546 = vrot.lane.b32.xlu1 %v496_v6, %s5660_s18  ;;  %v746_v5 = vmul.f32 %v734_v44, %v5852_v32 }
  0xf4   : > { %552 = vrot.lane.b32.xlu0 %v499_v11, %s5660_s18  ;;  %550 = vrot.lane.b32.xlu1 %v498_v16, %s5660_s18  ;;  %v753_v11 = vmul.f32 %v738_v52, %v5841_v28  ;;  %v748_v16 = vmul.f32 %v5859_v36, %v734_v44 }
  0xf8   : > { %651 = vrot.lane.b32.xlu0 %v613_v19, %s5661_s19  ;;  %647 = vrot.lane.b32.xlu1 %v611_v20, %s5661_s19 }
  0xfc   : > { %655 = vrot.lane.b32.xlu0 %v615_v25, %s5661_s19  ;;  %649 = vrot.lane.b32.xlu1 %v612_v26, %s5661_s19  ;;  %v755_v25 = vmul.f32 %v738_v52, %v5852_v32  ;;  %v750_v26 = vmul.f32 %v738_v52, %v5807_v12 }
 0x100   : > { %659 = vrot.lane.b32.xlu0 %v617_v29, %s5661_s19  ;;  %653 = vrot.lane.b32.xlu1 %v614_v30, %s5661_s19 }
 0x104   : > { %663 = vrot.lane.b32.xlu0 %v619_v34, %s5661_s19  ;;  %657 = vrot.lane.b32.xlu1 %v616_v35, %s5661_s19  ;;  %v752_v34 = vmul.f32 %v738_v52, %v5821_v21 }
 0x108   : > { %661 = vrot.lane.b32.xlu1 %v618_v38, %s5661_s19  ;;  %667 = vrot.lane.b32.xlu0 %v621_v37, %s5661_s19  ;;  %v754_v38 = vmul.f32 %v738_v52, %v5837_v27 }
 0x10c   : > { %671 = vrot.lane.b32.xlu0 %v623_v39, %s5661_s19  ;;  %665 = vrot.lane.b32.xlu1 %v620_v40, %s5661_s19 }
 0x110   : > { %675 = vrot.lane.b32.xlu0 %v625_v42, %s5661_s19  ;;  %669 = vrot.lane.b32.xlu1 %v622_v43, %s5661_s19  ;;  %v756_v42 = vmul.f32 %v738_v52, %v5849_v31 }
 0x114   : > { %679 = vrot.lane.b32.xlu0 %v627_v46, %s5661_s19  ;;  %673 = vrot.lane.b32.xlu1 %v624_v47, %s5661_s19 }
 0x118   : > { %677 = vrot.lane.b32.xlu1 %v626_v49, %s5661_s19  ;;  %778 = vrot.lane.b32.xlu0 %v741_v48, %s5662_s20 }
 0x11c   : > { %681 = vrot.lane.b32.xlu1 %v628_v51, %s5661_s19  ;;  %782 = vrot.lane.b32.xlu0 %v743_v50, %s5662_s20 }
 0x120   : > { %786 = vrot.lane.b32.xlu0 %v745_v53, %s5662_s20  ;;  %776 = vrot.lane.b32.xlu1 %v740_v54, %s5662_s20 }
 0x122   : > { %v5967_v55 = vpop.permute.xlu1 %391  ;;  %v5969_v56 = vpop.permute.xlu0 %389 }
 0x123   : > { %9606 = vst [vmem:[#allocation14_spill] sm:$0xff] %v5967_v55  ;;  %9607 = vst [vmem:[#allocation15_spill] sm:$0xff] %v5969_v56 }
 0x124   : > { %790 = vrot.lane.b32.xlu0 %v747_v57, %s5662_s20  ;;  %780 = vrot.lane.b32.xlu1 %v742_v58, %s5662_s20 }
 0x126   : > { %v5976_v60 = vpop.permute.xlu1 %395  ;;  %v5978_v61 = vpop.permute.xlu0 %393 }
 0x127   : > { %9608 = vst [vmem:[#allocation16_spill] sm:$0xff] %v5976_v60  ;;  %9609 = vst [vmem:[#allocation17_spill] sm:$0xff] %v5978_v61 }
 0x128   : > { %794 = vrot.lane.b32.xlu0 %v749_v59, %s5662_s20  ;;  %784 = vrot.lane.b32.xlu1 %v744_v62, %s5662_s20 }
 0x12a   : > { %v5984_v0 = vpop.permute.xlu1 %399  ;;  %v5986_v4 = vpop.permute.xlu0 %397 }
 0x12b   : > { %9610 = vst [vmem:[#allocation18_spill] sm:$0xff] %v5984_v0  ;;  %9611 = vst [vmem:[#allocation19_spill] sm:$0xff] %v5986_v4 }
 0x12c   : > { %798 = vrot.lane.b32.xlu0 %v751_v63, %s5662_s20  ;;  %788 = vrot.lane.b32.xlu1 %v746_v5, %s5662_s20 }
 0x12e   : > { %v5991_v6 = vpop.permute.xlu1 %403  ;;  %v5993_v7 = vpop.permute.xlu0 %401 }
 0x12f   : > { %9612 = vst [vmem:[#allocation20_spill] sm:$0xff] %v5993_v7 }
 0x130   : > { %802 = vrot.lane.b32.xlu0 %v753_v11, %s5662_s20  ;;  %792 = vrot.lane.b32.xlu1 %v748_v16, %s5662_s20  ;;  %v5663_v16 = vmov 6  }
 0x132   : > { %v5999_v19 = vpop.permute.xlu1 %407  ;;  %v6001_v20 = vpop.permute.xlu0 %405 }
 0x134   : > { %806 = vrot.lane.b32.xlu0 %v755_v25, %s5662_s20  ;;  %796 = vrot.lane.b32.xlu1 %v750_v26, %s5662_s20 }
 0x136   : > { %v6007_v29 = vpop.permute.xlu1 %411  ;;  %v6009_v30 = vpop.permute.xlu0 %409 }
 0x138   : > { %810 = vrot.lane.b32.xlu0 %v757_v33, %s5662_s20  ;;  %800 = vrot.lane.b32.xlu1 %v752_v34, %s5662_s20 }
 0x13a   : > { %v6015_v35 = vpop.permute.xlu1 %415  ;;  %v6017_v37 = vpop.permute.xlu0 %413 }
 0x13c   : > { %804 = vrot.lane.b32.xlu1 %v754_v38, %s5662_s20  ;;  %866 = vperm.xlu0 %5472, %v5780_v3  }
 0x13e   : > { %v6022_v39 = vpop.permute.xlu1 %419  ;;  %v6024_v40 = vpop.permute.xlu0 %417 }
 0x140   : > { %808 = vrot.lane.b32.xlu1 %v756_v42, %s5662_s20  ;;  %5473 = vset.pattern.permute.xlu0 %v5663_v16 }
 0x142   : > { %v6028_v43 = vpop.permute.xlu1 %423  ;;  %v6030_v44 = vpop.permute.xlu0 %421 }
 0x144   : > { %862 = vperm.xlu1 %5471, %v5773_v2  }
 0x146   : > { %v6033_v46 = vpop.permute.xlu1 %518  ;;  %v6035_v47 = vpop.permute.xlu0 %520 }
 0x147   : > { %9613 = vst [vmem:[#allocation21_spill] sm:$0xff] %v6033_v46  ;;  %9614 = vst [vmem:[#allocation22_spill] sm:$0xff] %v6035_v47 }
 0x148   : > { %5474 = vset.pattern.permute.xlu1 %v5663_v16 }
 0x14a   : > { %v6037_v48 = vpop.permute.xlu1 %522  ;;  %v6039_v49 = vpop.permute.xlu0 %524 }
 0x14b   : > { %9615 = vst [vmem:[#allocation23_spill] sm:$0xff] %v6037_v48  ;;  %9616 = vst [vmem:[#allocation24_spill] sm:$0xff] %v6039_v49 }
 0x14e   : > { %v6041_v50 = vpop.permute.xlu1 %526  ;;  %v6043_v51 = vpop.permute.xlu0 %528 }
 0x14f   : > { %9617 = vst [vmem:[#allocation25_spill] sm:$0xff] %v6041_v50  ;;  %9618 = vst [vmem:[#allocation26_spill] sm:$0xff] %v6043_v51 }
 0x152   : > { %v6045_v52 = vpop.permute.xlu1 %530  ;;  %v6047_v53 = vpop.permute.xlu0 %532 }
 0x156   : > { %v6049_v54 = vpop.permute.xlu1 %534  ;;  %v6051_v57 = vpop.permute.xlu0 %536 }
 0x15a   : > { %v6053_v58 = vpop.permute.xlu1 %538  ;;  %v6055_v59 = vpop.permute.xlu0 %540 }
 0x15e   : > { %v6057_v62 = vpop.permute.xlu1 %542  ;;  %v6059_v63 = vpop.permute.xlu0 %544 }
 0x162   : > { %v6061_v5 = vpop.permute.xlu1 %546  ;;  %v6063_v11 = vpop.permute.xlu0 %548 }
 0x166   : > { %v6065_v25 = vpop.permute.xlu1 %550  ;;  %v6067_v26 = vpop.permute.xlu0 %552 }
 0x16a   : > { %v6069_v33 = vpop.permute.xlu1 %647  ;;  %v6071_v34 = vpop.permute.xlu0 %651 }
 0x16b   : > { %9619 = vst [vmem:[#allocation27_spill] sm:$0xff] %v6069_v33  ;;  %9620 = vst [vmem:[#allocation28_spill] sm:$0xff] %v6071_v34 }
 0x16e   : > { %v6073_v38 = vpop.permute.xlu1 %649  ;;  %v6075_v42 = vpop.permute.xlu0 %655 }
 0x16f   : > { %9621 = vst [vmem:[#allocation29_spill] sm:$0xff] %v6073_v38  ;;  %9622 = vst [vmem:[#allocation30_spill] sm:$0xff] %v6075_v42 }
 0x172   : > { %v6077_v23 = vpop.permute.xlu1 %653  ;;  %v6081_v18 = vpop.permute.xlu0 %659 }
 0x173   : > { %9623 = vst [vmem:[#allocation31_spill] sm:$0xff] %v6077_v23 }
 0x176   : > { %v6079_v17 = vpop.permute.xlu1 %657  ;;  %v6085_v16 = vpop.permute.xlu0 %663 }
 0x177   : > { %9624 = vst [vmem:[#allocation32_spill] sm:$0xff] %v6079_v17 }
 0x17a   : > { %v6083_v10 = vpop.permute.xlu1 %661  ;;  %v6091_v9 = vpop.permute.xlu0 %667 }
 0x17e   : > { %v6087_v15 = vpop.permute.xlu1 %665  ;;  %v6095_v34 = vpop.permute.xlu0 %671 }
 0x182   : > { %v6089_v14 = vpop.permute.xlu1 %669  ;;  %v6101_v17 = vpop.permute.xlu0 %675 }
 0x183   : > { %9627 = vst [vmem:[#allocation35_spill] sm:$0xff] %v6101_v17 }
 0x186   : > { %v6093_v1 = vpop.permute.xlu1 %673  ;;  %v6105_v38 = vpop.permute.xlu0 %679 }
 0x187   : > { %9629 = vst [vmem:[#allocation37_spill] sm:$0xff] %v6105_v38 }
 0x18a   : > { %v6097_v42 = vpop.permute.xlu1 %677  ;;  %v6109_v50 = vpop.permute.xlu0 %778 }
 0x18b   : > { %9625 = vst [vmem:[#allocation33_spill] sm:$0xff] %v6097_v42  ;;  %9631 = vst [vmem:[#allocation39_spill] sm:$0xff] %v6109_v50 }
 0x18e   : > { %v6099_v23 = vpop.permute.xlu1 %681  ;;  %v6113_v48 = vpop.permute.xlu0 %782 }
 0x18f   : > { %9626 = vst [vmem:[#allocation34_spill] sm:$0xff] %v6099_v23  ;;  %9633 = vst [vmem:[#allocation41_spill] sm:$0xff] %v6113_v48 }
 0x192   : > { %v6103_v33 = vpop.permute.xlu1 %776  ;;  %v6117_v47 = vpop.permute.xlu0 %786 }
 0x193   : > { %9628 = vst [vmem:[#allocation36_spill] sm:$0xff] %v6103_v33  ;;  %9634 = vst [vmem:[#allocation42_spill] sm:$0xff] %v6117_v47 }
 0x196   : > { %v6107_v51 = vpop.permute.xlu1 %780  ;;  %v6121_v4 = vpop.permute.xlu0 %790 }
 0x197   : > { %9630 = vst [vmem:[#allocation38_spill] sm:$0xff] %v6107_v51 }
 0x19a   : > { %v6111_v49 = vpop.permute.xlu1 %784  ;;  %v6125_v33 = vpop.permute.xlu0 %794 }
 0x19b   : > { %9632 = vst [vmem:[#allocation40_spill] sm:$0xff] %v6111_v49 }
 0x19e   : > { %v6115_v46 = vpop.permute.xlu1 %788  ;;  %v6129_v51 = vpop.permute.xlu0 %798 }
 0x19f   : > { %9636 = vst [vmem:[#allocation44_spill] sm:$0xff] %v6129_v51 }
 0x1a2   : > { %v6119_v0 = vpop.permute.xlu1 %792  ;;  %v6133_v49 = vpop.permute.xlu0 %802 }
 0x1a3   : > { %9638 = vst [vmem:[#allocation46_spill] sm:$0xff] %v6133_v49 }
 0x1a6   : > { %v6123_v60 = vpop.permute.xlu1 %796  ;;  %v6139_v24 = vpop.permute.xlu0 %806 }
 0x1a7   : > { %9640 = vst [vmem:[#allocation48_spill] sm:$0xff] %v6139_v24 }
 0x1aa   : > { %v6127_v61 = vpop.permute.xlu1 %800 }
 0x1ab   : > { %9635 = vst [vmem:[#allocation43_spill] sm:$0xff] %v6127_v61 }
 0x1ae   : > { %v6131_v50 = vpop.permute.xlu1 %804 }
 0x1af   : > { %9637 = vst [vmem:[#allocation45_spill] sm:$0xff] %v6131_v50 }
 0x1b2   : > { %v6135_v48 = vpop.permute.xlu1 %808 }
 0x1b3   : > { %9639 = vst [vmem:[#allocation47_spill] sm:$0xff] %v6135_v48  ;;  %v6147_v48 = vpop.permute.xlu0 %810 }
 0x1b4   : > { %9641 = vst [vmem:[#allocation49_spill] sm:$0xff] %v6147_v48 }
 0x1c3   : > { %v863_v56 = vpop.permute.xlu1 %862 }
 0x1c4   : > { %v871_v47 = vmul.f32 %v863_v56, %v5825_v22  ;;  %v869_v55 = vmul.f32 %v863_v56, %v5811_v13  ;;  %v873_v8 = vmul.f32 %v863_v56, %v5841_v28  ;;  %v870_v23 = vmul.f32 %v863_v56, %v5807_v12 }
 0x1c5   : > { %v875_v50 = vmul.f32 %v863_v56, %v5852_v32  ;;  %v872_v49 = vmul.f32 %v863_v56, %v5821_v21  ;;  %v874_v24 = vmul.f32 %v863_v56, %v5837_v27 }
 0x1c6   : > { %909 = vrot.lane.b32.xlu0 %v871_v47, %s5664_s21  ;;  %905 = vrot.lane.b32.xlu1 %v869_v55, %s5664_s21  ;;  %v867_v47 = vpop.permute.xlu0 %866  ;;  %v877_v55 = vmul.f32 %v5859_v36, %v863_v56 }
 0x1ca   : > { %913 = vrot.lane.b32.xlu0 %v873_v8, %s5664_s21  ;;  %907 = vrot.lane.b32.xlu1 %v870_v23, %s5664_s21  ;;  %v879_v8 = vmul.f32 %v867_v47, %v5807_v12  ;;  %v876_v23 = vmul.f32 %v863_v56, %v5849_v31  ;;  %v885_v56 = vmul.f32 %v867_v47, %v5849_v31 }
 0x1ce   : > { %917 = vrot.lane.b32.xlu0 %v875_v50, %s5664_s21  ;;  %911 = vrot.lane.b32.xlu1 %v872_v49, %s5664_s21  ;;  %v881_v50 = vmul.f32 %v867_v47, %v5821_v21  ;;  %v878_v49 = vmul.f32 %v867_v47, %v5811_v13 }
 0x1d2   : > { %921 = vrot.lane.b32.xlu0 %v877_v55, %s5664_s21  ;;  %915 = vrot.lane.b32.xlu1 %v874_v24, %s5664_s21  ;;  %v883_v55 = vmul.f32 %v867_v47, %v5837_v27  ;;  %v880_v24 = vmul.f32 %v867_v47, %v5825_v22 }
 0x1d6   : > { %919 = vrot.lane.b32.xlu1 %v876_v23, %s5664_s21  ;;  %925 = vrot.lane.b32.xlu0 %v879_v8, %s5664_s21  ;;  %v882_v8 = vmul.f32 %v867_v47, %v5841_v28  ;;  %v884_v23 = vmul.f32 %v867_v47, %v5852_v32 }
 0x1da   : > { %929 = vrot.lane.b32.xlu0 %v881_v50, %s5664_s21  ;;  %923 = vrot.lane.b32.xlu1 %v878_v49, %s5664_s21  ;;  %v886_v50 = vmul.f32 %v5859_v36, %v867_v47  ;;  %v5665_v49 = vmov 7  }
 0x1de   : > { %933 = vrot.lane.b32.xlu0 %v883_v55, %s5664_s21  ;;  %927 = vrot.lane.b32.xlu1 %v880_v24, %s5664_s21 }
 0x1e2   : > { %937 = vrot.lane.b32.xlu0 %v885_v56, %s5664_s21  ;;  %931 = vrot.lane.b32.xlu1 %v882_v8, %s5664_s21 }
 0x1e6   : > { %991 = vperm.xlu0 %5473, %v5773_v2   ;;  %935 = vrot.lane.b32.xlu1 %v884_v23, %s5664_s21 }
 0x1ea   : > { %939 = vrot.lane.b32.xlu1 %v886_v50, %s5664_s21  ;;  %5476 = vset.pattern.permute.xlu0 %v5665_v49 }
 0x1ee   : > { %995 = vperm.xlu1 %5474, %v5780_v3  }
 0x1f2   : > { %5475 = vset.pattern.permute.xlu1 %v5665_v49 }
 0x238   : > { %v6179_v55 = vpop.permute.xlu1 %905  ;;  %v6181_v24 = vpop.permute.xlu0 %909 }
 0x239   : > { %9642 = vst [vmem:[#allocation50_spill] sm:$0xff] %v6179_v55  ;;  %9643 = vst [vmem:[#allocation51_spill] sm:$0xff] %v6181_v24 }
 0x23c   : > { %v6183_v56 = vpop.permute.xlu1 %907  ;;  %v6185_v8 = vpop.permute.xlu0 %913 }
 0x23d   : > { %9644 = vst [vmem:[#allocation52_spill] sm:$0xff] %v6183_v56  ;;  %9645 = vst [vmem:[#allocation53_spill] sm:$0xff] %v6185_v8 }
 0x240   : > { %v6187_v48 = vpop.permute.xlu1 %911  ;;  %v6189_v23 = vpop.permute.xlu0 %917 }
 0x241   : > { %9646 = vst [vmem:[#allocation54_spill] sm:$0xff] %v6187_v48 }
 0x244   : > { %v6191_v47 = vpop.permute.xlu1 %915  ;;  %v6193_v50 = vpop.permute.xlu0 %921 }
 0x245   : > { %9647 = vst [vmem:[#allocation55_spill] sm:$0xff] %v6191_v47 }
 0x248   : > { %v6195_v61 = vpop.permute.xlu1 %919  ;;  %v6197_v51 = vpop.permute.xlu0 %925 }
 0x249   : > { %9648 = vst [vmem:[#allocation56_spill] sm:$0xff] %v6197_v51 }
 0x24c   : > { %v6199_v49 = vpop.permute.xlu1 %923  ;;  %v6201_v55 = vpop.permute.xlu0 %929 }
 0x24d   : > { %9649 = vst [vmem:[#allocation57_spill] sm:$0xff] %v6199_v49  ;;  %9650 = vst [vmem:[#allocation58_spill] sm:$0xff] %v6201_v55 }
 0x250   : > { %v6203_v24 = vpop.permute.xlu1 %927  ;;  %v6205_v56 = vpop.permute.xlu0 %933 }
 0x251   : > { %9651 = vst [vmem:[#allocation59_spill] sm:$0xff] %v6203_v24  ;;  %9652 = vst [vmem:[#allocation60_spill] sm:$0xff] %v6205_v56 }
 0x254   : > { %v6207_v8 = vpop.permute.xlu1 %931  ;;  %v6209_v48 = vpop.permute.xlu0 %937 }
 0x255   : > { %9653 = vst [vmem:[#allocation61_spill] sm:$0xff] %v6207_v8  ;;  %9654 = vst [vmem:[#allocation62_spill] sm:$0xff] %v6209_v48 }
 0x258   : > { %v6213_v17 = vpop.permute.xlu1 %935 }
 0x259   : > { %9655 = vst [vmem:[#allocation63_spill] sm:$0xff] %v6213_v17 }
 0x25c   : > { %v6221_v48 = vpop.permute.xlu1 %939 }
 0x25d   : > { %9656 = vst [vmem:[#allocation64_spill] sm:$0xff] %v6221_v48 }
 0x265   : > { %v992_v38 = vpop.permute.xlu0 %991 }
 0x266   : > { %v999_v47 = vmul.f32 %v992_v38, %v5807_v12  ;;  %v998_v42 = vmul.f32 %v992_v38, %v5811_v13  ;;  %v1001_v55 = vmul.f32 %v992_v38, %v5821_v21  ;;  %v1000_v56 = vmul.f32 %v992_v38, %v5825_v22 }
 0x267   : > { %v1003_v8 = vmul.f32 %v992_v38, %v5837_v27  ;;  %v1002_v24 = vmul.f32 %v992_v38, %v5841_v28  ;;  %v1004_v17 = vmul.f32 %v992_v38, %v5852_v32 }
 0x268   : > { %1036 = vrot.lane.b32.xlu0 %v999_v47, %s5666_s22  ;;  %1034 = vrot.lane.b32.xlu1 %v998_v42, %s5666_s22  ;;  %v1005_v42 = vmul.f32 %v992_v38, %v5849_v31 }
 0x26c   : > { %1040 = vrot.lane.b32.xlu0 %v1001_v55, %s5666_s22  ;;  %1038 = vrot.lane.b32.xlu1 %v1000_v56, %s5666_s22  ;;  %v1006_v56 = vmul.f32 %v5859_v36, %v992_v38 }
 0x26d   : > { %v996_v47 = vpop.permute.xlu1 %995 }
 0x26e   : > { %v1007_v55 = vmul.f32 %v996_v47, %v5811_v13  ;;  %v1013_v38 = vmul.f32 %v996_v47, %v5852_v32 }
 0x270   : > { %1044 = vrot.lane.b32.xlu0 %v1003_v8, %s5666_s22  ;;  %1042 = vrot.lane.b32.xlu1 %v1002_v24, %s5666_s22  ;;  %v1009_v8 = vmul.f32 %v996_v47, %v5825_v22  ;;  %v1008_v24 = vmul.f32 %v996_v47, %v5807_v12 }
 0x274   : > { %1048 = vrot.lane.b32.xlu0 %v1005_v42, %s5666_s22  ;;  %1046 = vrot.lane.b32.xlu1 %v1004_v17, %s5666_s22  ;;  %v1011_v42 = vmul.f32 %v996_v47, %v5841_v28  ;;  %v1010_v17 = vmul.f32 %v996_v47, %v5821_v21 }
 0x278   : > { %1052 = vrot.lane.b32.xlu0 %v1007_v55, %s5666_s22  ;;  %1050 = vrot.lane.b32.xlu1 %v1006_v56, %s5666_s22  ;;  %v1012_v55 = vmul.f32 %v996_v47, %v5837_v27  ;;  %v1015_v56 = vmul.f32 %v5859_v36, %v996_v47 }
 0x27c   : > { %1056 = vrot.lane.b32.xlu0 %v1009_v8, %s5666_s22  ;;  %1054 = vrot.lane.b32.xlu1 %v1008_v24, %s5666_s22  ;;  %v1014_v8 = vmul.f32 %v996_v47, %v5849_v31  ;;  %v5667_v24 = vmov 8  }
 0x280   : > { %1060 = vrot.lane.b32.xlu0 %v1011_v42, %s5666_s22  ;;  %1058 = vrot.lane.b32.xlu1 %v1010_v17, %s5666_s22 }
 0x284   : > { %1064 = vrot.lane.b32.xlu0 %v1013_v38, %s5666_s22  ;;  %1062 = vrot.lane.b32.xlu1 %v1012_v55, %s5666_s22 }
 0x288   : > { %1068 = vrot.lane.b32.xlu0 %v1015_v56, %s5666_s22  ;;  %1066 = vrot.lane.b32.xlu1 %v1014_v8, %s5666_s22 }
 0x28c   : > { %1120 = vperm.xlu1 %5475, %v5773_v2   ;;  %1124 = vperm.xlu0 %5476, %v5780_v3  }
 0x290   : > { %5477 = vset.pattern.permute.xlu0 %v5667_v24  ;;  %5478 = vset.pattern.permute.xlu1 %v5667_v24 }
 0x2da   : > { %v6253_v42 = vpop.permute.xlu1 %1034  ;;  %v6257_v38 = vpop.permute.xlu0 %1036 }
 0x2db   : > { %9657 = vst [vmem:[#allocation65_spill] sm:$0xff] %v6253_v42  ;;  %9659 = vst [vmem:[#allocation67_spill] sm:$0xff] %v6257_v38 }
 0x2de   : > { %v6255_v17 = vpop.permute.xlu1 %1038  ;;  %v6261_v47 = vpop.permute.xlu0 %1040 }
 0x2df   : > { %9658 = vst [vmem:[#allocation66_spill] sm:$0xff] %v6255_v17  ;;  %9661 = vst [vmem:[#allocation69_spill] sm:$0xff] %v6261_v47 }
 0x2e2   : > { %v6259_v55 = vpop.permute.xlu1 %1042  ;;  %v6265_v8 = vpop.permute.xlu0 %1044 }
 0x2e3   : > { %9660 = vst [vmem:[#allocation68_spill] sm:$0xff] %v6259_v55  ;;  %9663 = vst [vmem:[#allocation71_spill] sm:$0xff] %v6265_v8 }
 0x2e6   : > { %v6263_v56 = vpop.permute.xlu1 %1046  ;;  %v6269_v49 = vpop.permute.xlu0 %1048 }
 0x2e7   : > { %9662 = vst [vmem:[#allocation70_spill] sm:$0xff] %v6263_v56  ;;  %9665 = vst [vmem:[#allocation73_spill] sm:$0xff] %v6269_v49 }
 0x2ea   : > { %v6267_v48 = vpop.permute.xlu1 %1050  ;;  %v6273_v24 = vpop.permute.xlu0 %1052 }
 0x2eb   : > { %9664 = vst [vmem:[#allocation72_spill] sm:$0xff] %v6267_v48 }
 0x2ee   : > { %v6271_v51 = vpop.permute.xlu1 %1054  ;;  %v6277_v17 = vpop.permute.xlu0 %1056 }
 0x2ef   : > { %9667 = vst [vmem:[#allocation75_spill] sm:$0xff] %v6277_v17 }
 0x2f2   : > { %v6275_v42 = vpop.permute.xlu1 %1058  ;;  %v6281_v55 = vpop.permute.xlu0 %1060 }
 0x2f3   : > { %9666 = vst [vmem:[#allocation74_spill] sm:$0xff] %v6275_v42  ;;  %9669 = vst [vmem:[#allocation77_spill] sm:$0xff] %v6281_v55 }
 0x2f6   : > { %v6279_v38 = vpop.permute.xlu1 %1062  ;;  %v6287_v49 = vpop.permute.xlu0 %1064 }
 0x2f7   : > { %9668 = vst [vmem:[#allocation76_spill] sm:$0xff] %v6279_v38  ;;  %9671 = vst [vmem:[#allocation79_spill] sm:$0xff] %v6287_v49 }
 0x2fa   : > { %v6283_v47 = vpop.permute.xlu1 %1066 }
 0x2fb   : > { %9670 = vst [vmem:[#allocation78_spill] sm:$0xff] %v6283_v47  ;;  %v6295_v47 = vpop.permute.xlu0 %1068 }
 0x30b   : > { %v1121_v56 = vpop.permute.xlu1 %1120 }
 0x30c   : > { %v1129_v8 = vmul.f32 %v1121_v56, %v5825_v22  ;;  %v1127_v48 = vmul.f32 %v1121_v56, %v5811_v13  ;;  %v1131_v42 = vmul.f32 %v1121_v56, %v5841_v28  ;;  %v1128_v38 = vmul.f32 %v1121_v56, %v5807_v12 }
 0x30d   : > { %v1133_v55 = vmul.f32 %v1121_v56, %v5852_v32  ;;  %v1130_v17 = vmul.f32 %v1121_v56, %v5821_v21  ;;  %v1132_v49 = vmul.f32 %v1121_v56, %v5837_v27 }
 0x30e   : > { %1167 = vrot.lane.b32.xlu0 %v1129_v8, %s5668_s23  ;;  %1163 = vrot.lane.b32.xlu1 %v1127_v48, %s5668_s23  ;;  %v1125_v8 = vpop.permute.xlu0 %1124  ;;  %v1135_v48 = vmul.f32 %v5859_v36, %v1121_v56 }
 0x312   : > { %1171 = vrot.lane.b32.xlu0 %v1131_v42, %s5668_s23  ;;  %1165 = vrot.lane.b32.xlu1 %v1128_v38, %s5668_s23  ;;  %v1137_v42 = vmul.f32 %v1125_v8, %v5807_v12  ;;  %v1134_v38 = vmul.f32 %v1121_v56, %v5849_v31  ;;  %v1143_v56 = vmul.f32 %v1125_v8, %v5849_v31 }
 0x316   : > { %1175 = vrot.lane.b32.xlu0 %v1133_v55, %s5668_s23  ;;  %1169 = vrot.lane.b32.xlu1 %v1130_v17, %s5668_s23  ;;  %v1139_v55 = vmul.f32 %v1125_v8, %v5821_v21  ;;  %v1136_v17 = vmul.f32 %v1125_v8, %v5811_v13 }
 0x31a   : > { %1179 = vrot.lane.b32.xlu0 %v1135_v48, %s5668_s23  ;;  %1173 = vrot.lane.b32.xlu1 %v1132_v49, %s5668_s23  ;;  %v1141_v48 = vmul.f32 %v1125_v8, %v5837_v27  ;;  %v1138_v49 = vmul.f32 %v1125_v8, %v5825_v22 }
 0x31e   : > { %1183 = vrot.lane.b32.xlu0 %v1137_v42, %s5668_s23  ;;  %1177 = vrot.lane.b32.xlu1 %v1134_v38, %s5668_s23  ;;  %v1140_v42 = vmul.f32 %v1125_v8, %v5841_v28  ;;  %v1142_v38 = vmul.f32 %v1125_v8, %v5852_v32 }
 0x322   : > { %1187 = vrot.lane.b32.xlu0 %v1139_v55, %s5668_s23  ;;  %1181 = vrot.lane.b32.xlu1 %v1136_v17, %s5668_s23  ;;  %v1144_v55 = vmul.f32 %v5859_v36, %v1125_v8  ;;  %v5669_v17 = vmov 9   ;;  %v273_v36 = vmul.f32 %v5807_v12, %v5877_v45  ;;  %v274_v8 = vmul.f32 %v5825_v22, %v5877_v45 }
 0x326   : > { %1191 = vrot.lane.b32.xlu0 %v1141_v48, %s5668_s23  ;;  %1185 = vrot.lane.b32.xlu1 %v1138_v49, %s5668_s23  ;;  %v270_v48 = vmul.f32 %v5852_v32, %v5869_v41  ;;  %v271_v49 = vmul.f32 %v5849_v31, %v5869_v41  ;;  %v434_v41 = vsel %vm425_vm0, %v5999_v19, %v6009_v30 }
 0x327   : > { %v438_v19 = vsel %vm425_vm0, %v6015_v35, %v6024_v40 }
 0x32a   : > { %1195 = vrot.lane.b32.xlu0 %v1143_v56, %s5668_s23  ;;  %1189 = vrot.lane.b32.xlu1 %v1140_v42, %s5668_s23  ;;  %v276_v56 = vmul.f32 %v5841_v28, %v5877_v45  ;;  %v432_v42 = vsel %vm425_vm0, %v5993_v7, %v5991_v6  ;;  %v435_v28 = vsel %vm425_vm0, %v6009_v30, %v6007_v29 }
 0x32b   : > { %v279_v7 = vmul.f32 %v5849_v31, %v5877_v45  ;;  %v467_v22 = vadd.f32 %v435_v28, %v273_v36  ;;  %v562_v28 = vsel %vm554_vm1, %v6047_v53, %v6049_v54  ;;  %v566_v36 = vsel %vm554_vm1, %v6057_v62, %v6059_v63 }
 0x32e   : > { %1249 = vperm.xlu0 %5477, %v5773_v2   ;;  %1193 = vrot.lane.b32.xlu1 %v1142_v38, %s5668_s23  ;;  %v272_v2 = vmul.f32 %v5811_v13, %v5877_v45  ;;  %v433_v38 = vsel %vm425_vm0, %v5991_v6, %v6001_v20  ;;  %v436_v6 = vsel %vm425_vm0, %v6007_v29, %v6017_v37 }
 0x32f   : > { %v437_v20 = vsel %vm425_vm0, %v6017_v37, %v6015_v35  ;;  %v440_v37 = vsel %vm425_vm0, %v6022_v39, %v6030_v44  ;;  %v441_v35 = vsel %vm425_vm0, %v6030_v44, %v6028_v43 }
 0x330   : > { %v466_v29 = vadd.f32 %v434_v41, %v272_v2  ;;  %v563_v41 = vsel %vm554_vm1, %v6051_v57, %v6053_v58  ;;  %v473_v44 = vadd.f32 %v441_v35, %v279_v7  ;;  %v565_v2 = vsel %vm554_vm1, %v6055_v59, %v6057_v62 }
 0x331   : > { %v567_v57 = vsel %vm554_vm1, %v6059_v63, %v6061_v5  ;;  %v568_v7 = vsel %vm554_vm1, %v6061_v5, %v6063_v11  ;;  %v690_v63 = vsel %vm683_vm2, %v6081_v18, %v6083_v10  ;;  %v691_v5 = vsel %vm683_vm2, %v6083_v10, %v6085_v16 }
 0x332   : > { %1197 = vrot.lane.b32.xlu1 %v1144_v55, %s5668_s23  ;;  %5480 = vset.pattern.permute.xlu0 %v5669_v17  ;;  %v277_v55 = vmul.f32 %v5837_v27, %v5877_v45  ;;  %v465_v27 = vadd.f32 %v433_v38, %v271_v49  ;;  %v819_v10 = vsel %vm812_vm3, %v6115_v46, %v6121_v4 }
 0x333   : > { %v820_v16 = vsel %vm812_vm3, %v6121_v4, %v6119_v0  ;;  %v949_v0 = vsel %vm941_vm4, %v6195_v61, %v6193_v50  ;;  %v9675_v50 = vld [vmem:[#allocation35_spill] sm:$0xff] }
 0x336   : > { %1253 = vperm.xlu1 %5478, %v5780_v3   ;;  %v275_v3 = vmul.f32 %v5821_v21, %v5877_v45 }
 0x338   : > { %v469_v49 = vadd.f32 %v437_v20, %v275_v3  ;;  %v595_v3 = vadd.f32 %v563_v41, %v466_v29  ;;  %v693_v20 = vsel %vm683_vm2, %v6091_v9, %v6089_v14  ;;  %v9674_v41 = vld [vmem:[#allocation72_spill] sm:$0xff] }
 0x33a   : > { %5479 = vset.pattern.permute.xlu1 %v5669_v17  ;;  %v278_v17 = vmul.f32 %v5852_v32, %v5877_v45  ;;  %v464_v32 = vadd.f32 %v432_v42, %v270_v48  ;;  %v439_v45 = vsel %vm425_vm0, %v6024_v40, %v6022_v39  ;;  %v468_v48 = vadd.f32 %v436_v6, %v274_v8 }
 0x33b   : > { %v470_v42 = vadd.f32 %v438_v19, %v276_v56  ;;  %v561_v40 = vsel %vm554_vm1, %v6045_v52, %v6047_v53  ;;  %v471_v38 = vadd.f32 %v439_v45, %v277_v55  ;;  %v564_v39 = vsel %vm554_vm1, %v6053_v58, %v6055_v59 }
 0x33c   : > { %v472_v43 = vadd.f32 %v440_v37, %v278_v17  ;;  %v593_v54 = vadd.f32 %v561_v40, %v464_v32  ;;  %v569_v58 = vsel %vm554_vm1, %v6063_v11, %v6065_v25  ;;  %v594_v59 = vadd.f32 %v562_v28, %v465_v27  ;;  %v9672_v40 = vld [vmem:[#allocation73_spill] sm:$0xff] }
 0x33d   : > { %v596_v62 = vadd.f32 %v564_v39, %v467_v22  ;;  %v570_v56 = vsel %vm554_vm1, %v6065_v25, %v6067_v26  ;;  %v597_v32 = vadd.f32 %v565_v2, %v468_v48  ;;  %v598_v55 = vadd.f32 %v566_v36, %v469_v49  ;;  %v9676_v36 = vld [vmem:[#allocation33_spill] sm:$0xff] }
 0x33e   : > { %v599_v17 = vadd.f32 %v567_v57, %v470_v42  ;;  %v600_v6 = vadd.f32 %v568_v7, %v471_v38  ;;  %v601_v11 = vadd.f32 %v569_v58, %v472_v43  ;;  %v692_v22 = vsel %vm683_vm2, %v6087_v15, %v6091_v9  ;;  %v9673_v38 = vld [vmem:[#allocation70_spill] sm:$0xff]  ;;  %v9678_v7 = vld [vmem:[#allocation44_spill] sm:$0xff] }
 0x33f   : > { %v6428_v26 = vadd.f32 %v570_v56, %v473_v44  ;;  %v722_v19 = vadd.f32 %v690_v63, %v593_v54  ;;  %v723_v15 = vadd.f32 %v691_v5, %v594_v59  ;;  %v694_v45 = vsel %vm683_vm2, %v6089_v14, %v6095_v34  ;;  %v9679_v59 = vld [vmem:[#allocation56_spill] sm:$0xff]  ;;  %v9681_v5 = vld [vmem:[#allocation43_spill] sm:$0xff] }
 0x340   : > { %v724_v29 = vadd.f32 %v692_v22, %v595_v3  ;;  %v695_v9 = vsel %vm683_vm2, %v6095_v34, %v6093_v1  ;;  %v948_v37 = vsel %vm941_vm4, %v6189_v23, %v6195_v61  ;;  %v725_v4 = vadd.f32 %v693_v20, %v596_v62  ;;  %v9680_v3 = vld [vmem:[#allocation57_spill] sm:$0xff] }
 0x341   : > { %v851_v35 = vadd.f32 %v819_v10, %v722_v19  ;;  %v852_v48 = vadd.f32 %v820_v16, %v723_v15  ;;  %v726_v42 = vadd.f32 %v694_v45, %v597_v32  ;;  %v821_v34 = vsel %vm812_vm3, %v6125_v33, %v6123_v60  ;;  %v9677_v33 = vld [vmem:[#allocation37_spill] sm:$0xff] }
 0x342   : > { %v1077_v28 = vsel %vm1070_vm5, %v9673_v38, %v9672_v40  ;;  %v1078_v61 = vsel %vm1070_vm5, %v9672_v40, %v9674_v41  ;;  %v696_v39 = vsel %vm683_vm2, %v6093_v1, %v9675_v50  ;;  %v727_v43 = vadd.f32 %v695_v9, %v598_v55 }
 0x343   : > { %v980_v44 = vadd.f32 %v948_v37, %v851_v35  ;;  %v981_v2 = vadd.f32 %v949_v0, %v852_v48  ;;  %v697_v54 = vsel %vm683_vm2, %v9675_v50, %v9676_v36  ;;  %v698_v57 = vsel %vm683_vm2, %v9676_v36, %v9677_v33  ;;  %v9682_v37 = vld [vmem:[#allocation59_spill] sm:$0xff]  ;;  %v9683_v35 = vld [vmem:[#allocation58_spill] sm:$0xff] }
 0x344   : > { %v822_v58 = vsel %vm812_vm3, %v6123_v60, %v9678_v7  ;;  %v950_v62 = vsel %vm941_vm4, %v9680_v3, %v9679_v59  ;;  %v853_v1 = vadd.f32 %v821_v34, %v724_v29  ;;  %v823_v22 = vsel %vm812_vm3, %v9678_v7, %v9681_v5  ;;  %v9684_v34 = vld [vmem:[#allocation46_spill] sm:$0xff] }
 0x345   : > { %v1109_v56 = vadd.f32 %v1077_v28, %v980_v44  ;;  %v1110_v32 = vadd.f32 %v1078_v61, %v981_v2  ;;  %v1079_v20 = vsel %vm1070_vm5, %v6273_v24, %v6271_v51  ;;  %v728_v16 = vadd.f32 %v696_v39, %v599_v17  ;;  %v9685_v61 = vld [vmem:[#allocation45_spill] sm:$0xff]  ;;  %v9687_v39 = vld [vmem:[#allocation74_spill] sm:$0xff] }
 0x346   : > { %v982_v19 = vadd.f32 %v950_v62, %v853_v1  ;;  %v729_v29 = vadd.f32 %v697_v54, %v600_v6  ;;  %v730_v9 = vadd.f32 %v698_v57, %v601_v11  ;;  %v951_v0 = vsel %vm941_vm4, %v9679_v59, %v9682_v37  ;;  %v9686_v11 = vld [vmem:[#allocation75_spill] sm:$0xff]  ;;  %v9688_v2 = vld [vmem:[#allocation34_spill] sm:$0xff]  ;;  %v9691_v62 = vld [vmem:[#allocation60_spill] sm:$0xff] }
 0x347   : > { %v952_v24 = vsel %vm941_vm4, %v9682_v37, %v9683_v35  ;;  %v854_v48 = vadd.f32 %v822_v58, %v725_v4  ;;  %v824_v17 = vsel %vm812_vm3, %v9681_v5, %v9684_v34  ;;  %v825_v6 = vsel %vm812_vm3, %v9684_v34, %v9685_v61  ;;  %v9689_v58 = vld [vmem:[#allocation48_spill] sm:$0xff] }
 0x348   : > { %v1111_v40 = vadd.f32 %v1079_v20, %v982_v19  ;;  %v1080_v50 = vsel %vm1070_vm5, %v6271_v51, %v9686_v11  ;;  %v1081_v4 = vsel %vm1070_vm5, %v9686_v11, %v9687_v39  ;;  %v856_v7 = vadd.f32 %v824_v17, %v727_v43  ;;  %v9690_v51 = vld [vmem:[#allocation61_spill] sm:$0xff] }
 0x349   : > { %v983_v36 = vadd.f32 %v951_v0, %v854_v48  ;;  %v826_v59 = vsel %vm812_vm3, %v9685_v61, %v9689_v58  ;;  %v953_v3 = vsel %vm941_vm4, %v9683_v35, %v9690_v51  ;;  %v954_v1 = vsel %vm941_vm4, %v9690_v51, %v9691_v62  ;;  %v9697_v61 = vld [vmem:[#allocation49_spill] sm:$0xff] }
 0x34a   : > { %v858_v17 = vadd.f32 %v826_v59, %v729_v29  ;;  %v9699_v29 = vld [vmem:[#allocation78_spill] sm:$0xff]  ;;  %v9700_v59 = vld [vmem:[#allocation64_spill] sm:$0xff] }
 0x380   : > { %v6371_v30 = vpop.permute.xlu0 %1167  ;;  %v6373_v31 = vpop.permute.xlu1 %1163 }
 0x384   : > { %v6399_v8 = vpop.permute.xlu0 %1171  ;;  %v6401_v53 = vpop.permute.xlu1 %1165 }
 0x388   : > { %v6424_v27 = vpop.permute.xlu0 %1175  ;;  %v6426_v25 = vpop.permute.xlu1 %1169 }
 0x38c   : > { %v1180_v49 = vpop.permute.xlu0 %1179  ;;  %v6451_v14 = vpop.permute.xlu1 %1173 }
 0x390   : > { %v1184_v55 = vpop.permute.xlu0 %1183  ;;  %v1178_v63 = vpop.permute.xlu1 %1177 }
 0x391   : > { %v1206_v60 = vsel %vm1199_vm6, %v6424_v27, %v1178_v63  ;;  %v1207_v10 = vsel %vm1199_vm6, %v1178_v63, %v1180_v49  ;;  %v855_v49 = vadd.f32 %v823_v22, %v726_v42  ;;  %v699_v42 = vsel %vm683_vm2, %v9677_v33, %v9688_v2  ;;  %v9693_v22 = vld [vmem:[#allocation77_spill] sm:$0xff] }
 0x392   : > { %v6486_v15 = vadd.f32 %v1206_v60, %v1109_v56  ;;  %v6488_v45 = vadd.f32 %v1207_v10, %v1110_v32  ;;  %v857_v56 = vadd.f32 %v825_v6, %v728_v16  ;;  %v9692_v32 = vld [vmem:[#allocation47_spill] sm:$0xff]  ;;  %v1112_v63 = vadd.f32 %v1080_v50, %v983_v36  ;;  %v9694_v60 = vld [vmem:[#allocation76_spill] sm:$0xff] }
 0x393   : > { %v984_v54 = vadd.f32 %v952_v24, %v855_v49  ;;  %v827_v33 = vsel %vm812_vm3, %v9689_v58, %v9692_v32  ;;  %v1082_v20 = vsel %vm1070_vm5, %v9687_v39, %v9693_v22  ;;  %v1083_v10 = vsel %vm1070_vm5, %v9693_v22, %v9694_v60  ;;  %v9695_v49 = vld [vmem:[#allocation63_spill] sm:$0xff] }
 0x394   : > { %v1188_v28 = vpop.permute.xlu0 %1187  ;;  %v1182_v41 = vpop.permute.xlu1 %1181  ;;  %v985_v16 = vadd.f32 %v953_v3, %v856_v7  ;;  %v986_v0 = vadd.f32 %v954_v1, %v857_v56  ;;  %v731_v34 = vadd.f32 %v699_v42, %v6428_v26  ;;  %v828_v6 = vsel %vm812_vm3, %v9692_v32, %v9697_v61  ;;  %v9704_v61 = vld [vmem:[#allocation11_spill] sm:$0xff] }
 0x395   : > { %v1208_v44 = vsel %vm1199_vm6, %v1182_v41, %v1184_v55  ;;  %v1113_v5 = vadd.f32 %v1081_v4, %v984_v54  ;;  %v9696_v41 = vld [vmem:[#allocation62_spill] sm:$0xff]  ;;  %v859_v11 = vadd.f32 %v827_v33, %v730_v9 }
 0x396   : > { %v6512_v57 = vadd.f32 %v1208_v44, %v1111_v40  ;;  %v955_v40 = vsel %vm941_vm4, %v9691_v62, %v9695_v49  ;;  %v1114_v50 = vadd.f32 %v1082_v20, %v985_v16  ;;  %v1115_v39 = vadd.f32 %v1083_v10, %v986_v0  ;;  %v9698_v44 = vld [vmem:[#allocation79_spill] sm:$0xff] }
 0x397   : > { %v1084_v26 = vsel %vm1070_vm5, %v9694_v60, %v9698_v44  ;;  %v1085_v2 = vsel %vm1070_vm5, %v9698_v44, %v9699_v29  ;;  %v987_v54 = vadd.f32 %v955_v40, %v858_v17  ;;  %v957_v51 = vsel %vm941_vm4, %v9696_v41, %v9700_v59  ;;  %v9702_v17 = vld [vmem:[#allocation9_spill] sm:$0xff]  ;;  %v9703_v40 = vld [vmem:[#allocation10_spill] sm:$0xff] }
 0x398   : > { %v1186_v43 = vpop.permute.xlu1 %1185  ;;  %v1192_v35 = vpop.permute.xlu0 %1191  ;;  %v860_v3 = vadd.f32 %v828_v6, %v731_v34 }
 0x399   : > { %v1209_v19 = vsel %vm1199_vm6, %v1184_v55, %v1186_v43  ;;  %v1210_v37 = vsel %vm1199_vm6, %v1186_v43, %v1188_v28  ;;  %v956_v55 = vsel %vm941_vm4, %v9695_v49, %v9696_v41  ;;  %v1116_v62 = vadd.f32 %v1084_v26, %v987_v54 }
 0x39a   : > { %v6534_v24 = vadd.f32 %v1209_v19, %v1112_v63  ;;  %v6536_v48 = vadd.f32 %v1210_v37, %v1113_v5  ;;  %v988_v7 = vadd.f32 %v956_v55, %v859_v11  ;;  %v989_v5 = vadd.f32 %v957_v51, %v860_v3  ;;  %v9705_v11 = vld [vmem:[#allocation12_spill] sm:$0xff]  ;;  %v6623_v3 = vld [vmem:[%s9308_s1 + $0x8] sm:$0xff] }
 0x39b   : > { %v6617_v51 = vld [vmem:[%s9308_s1] sm:$0xff] }
 0x39c   : > { %v1190_v4 = vpop.permute.xlu1 %1189  ;;  %v1117_v1 = vadd.f32 %v1085_v2, %v988_v7  ;;  %v1196_v56 = vpop.permute.xlu0 %1195 }
 0x39d   : > { %v1211_v42 = vsel %vm1199_vm6, %v1188_v28, %v1190_v4  ;;  %v1212_v36 = vsel %vm1199_vm6, %v1190_v4, %v1192_v35  ;;  %v1086_v28 = vsel %vm1070_vm5, %v9699_v29, %v6295_v47  ;;  %v6593_v4 = vld [vmem:[%s5800_s14 + $0x8] ss:$0 sm:$0xff] }
 0x39e   : > { %v6556_v58 = vadd.f32 %v1211_v42, %v1114_v50  ;;  %v6558_v9 = vadd.f32 %v1212_v36, %v1115_v39  ;;  %v1118_v20 = vadd.f32 %v1086_v28, %v989_v5 }
 0x3a0   : > { %v1194_v32 = vpop.permute.xlu1 %1193 }
 0x3a1   : > { %v1213_v33 = vsel %vm1199_vm6, %v1192_v35, %v1194_v32  ;;  %v1214_v63 = vsel %vm1199_vm6, %v1194_v32, %v1196_v56  ;;  %v9701_v35 = vld [vmem:[#allocation7_spill] sm:$0xff] }
 0x3a2   : > { %v6568_v43 = vadd.f32 %v1213_v33, %v1116_v62  ;;  %v6570_v22 = vadd.f32 %v1214_v63, %v1117_v1  ;;  %v5671_v62 = vmov 10  }
 0x3a4   : > { %v1198_v60 = vpop.permute.xlu1 %1197 }
 0x3a5   : > { %v1215_v10 = vsel %vm1199_vm6, %v1196_v56, %v1198_v60 }
 0x3a6   : > { %v6573_v19 = vadd.f32 %v1215_v10, %v1118_v20 }
 0x3ad   : > { %v1250_v37 = vpop.permute.xlu0 %1249 }
 0x3ae   : > { %v1257_v16 = vmul.f32 %v1250_v37, %v5807_v12  ;;  %v1256_v47 = vmul.f32 %v1250_v37, %v5811_v13  ;;  %v1259_v0 = vmul.f32 %v1250_v37, %v5821_v21  ;;  %v1258_v34 = vmul.f32 %v1250_v37, %v9701_v35 }
 0x3af   : > { %v1261_v49 = vmul.f32 %v1250_v37, %v9702_v17  ;;  %v1260_v41 = vmul.f32 %v1250_v37, %v9703_v40  ;;  %v1263_v6 = vmul.f32 %v1250_v37, %v9704_v61  ;;  %v1262_v50 = vmul.f32 %v1250_v37, %v9705_v11 }
 0x3b0   : > { %1294 = vrot.lane.b32.xlu0 %v1257_v16, %s5670_s24  ;;  %1292 = vrot.lane.b32.xlu1 %v1256_v47, %s5670_s24  ;;  %v1264_v44 = vmul.f32 %v6593_v4, %v1250_v37 }
 0x3b4   : > { %1298 = vrot.lane.b32.xlu0 %v1259_v0, %s5670_s24  ;;  %1296 = vrot.lane.b32.xlu1 %v1258_v34, %s5670_s24 }
 0x3b5   : > { %v1254_v55 = vpop.permute.xlu1 %1253 }
 0x3b6   : > { %v1265_v39 = vmul.f32 %v1254_v55, %v5811_v13  ;;  %v1266_v26 = vmul.f32 %v1254_v55, %v5807_v12  ;;  %v1267_v29 = vmul.f32 %v1254_v55, %v9701_v35  ;;  %v1268_v2 = vmul.f32 %v1254_v55, %v5821_v21 }
 0x3b7   : > { %v1269_v42 = vmul.f32 %v1254_v55, %v9703_v40  ;;  %v1270_v36 = vmul.f32 %v1254_v55, %v9702_v17  ;;  %v1271_v54 = vmul.f32 %v1254_v55, %v9705_v11  ;;  %v1272_v7 = vmul.f32 %v1254_v55, %v9704_v61 }
 0x3b8   : > { %1302 = vrot.lane.b32.xlu0 %v1261_v49, %s5670_s24  ;;  %1300 = vrot.lane.b32.xlu1 %v1260_v41, %s5670_s24  ;;  %v1273_v59 = vmul.f32 %v6593_v4, %v1254_v55 }
 0x3bc   : > { %1306 = vrot.lane.b32.xlu0 %v1263_v6, %s5670_s24  ;;  %1304 = vrot.lane.b32.xlu1 %v1262_v50, %s5670_s24 }
 0x3c0   : > { %1308 = vrot.lane.b32.xlu1 %v1264_v44, %s5670_s24  ;;  %1310 = vrot.lane.b32.xlu0 %v1265_v39, %s5670_s24 }
 0x3c4   : > { %1312 = vrot.lane.b32.xlu1 %v1266_v26, %s5670_s24  ;;  %1314 = vrot.lane.b32.xlu0 %v1267_v29, %s5670_s24 }
 0x3c8   : > { %1316 = vrot.lane.b32.xlu1 %v1268_v2, %s5670_s24  ;;  %1318 = vrot.lane.b32.xlu0 %v1269_v42, %s5670_s24 }
 0x3cc   : > { %1320 = vrot.lane.b32.xlu1 %v1270_v36, %s5670_s24  ;;  %1322 = vrot.lane.b32.xlu0 %v1271_v54, %s5670_s24 }
 0x3d0   : > { %1324 = vrot.lane.b32.xlu1 %v1272_v7, %s5670_s24  ;;  %1326 = vrot.lane.b32.xlu0 %v1273_v59, %s5670_s24 }
 0x3d4   : > { %1378 = vperm.xlu1 %5479, %v6617_v51   ;;  %1382 = vperm.xlu0 %5480, %v6623_v3  }
 0x3d8   : > { %5481 = vset.pattern.permute.xlu0 %v5671_v62  ;;  %5482 = vset.pattern.permute.xlu1 %v5671_v62 }
 0x422   : > { %v6626_v1 = vpop.permute.xlu0 %1294  ;;  %v6628_v56 = vpop.permute.xlu1 %1292 }
 0x426   : > { %v6630_v32 = vpop.permute.xlu0 %1298  ;;  %v6632_v28 = vpop.permute.xlu1 %1296 }
 0x42a   : > { %v6634_v33 = vpop.permute.xlu0 %1302  ;;  %v6636_v63 = vpop.permute.xlu1 %1300 }
 0x42e   : > { %v1307_v5 = vpop.permute.xlu0 %1306  ;;  %v6638_v20 = vpop.permute.xlu1 %1304 }
 0x42f   : > { %v1335_v60 = vsel %vm1328_vm7, %v6638_v20, %v1307_v5 }
 0x430   : > { %v6643_v10 = vadd.f32 %v1335_v60, %v6486_v15 }
 0x432   : > { %v1311_v37 = vpop.permute.xlu0 %1310  ;;  %v1309_v16 = vpop.permute.xlu1 %1308 }
 0x433   : > { %v1336_v47 = vsel %vm1328_vm7, %v1307_v5, %v1309_v16 }
 0x434   : > { %v6647_v0 = vadd.f32 %v1336_v47, %v6488_v45 }
 0x436   : > { %v1315_v34 = vpop.permute.xlu0 %1314  ;;  %v1313_v49 = vpop.permute.xlu1 %1312 }
 0x437   : > { %v1337_v41 = vsel %vm1328_vm7, %v1311_v37, %v1313_v49  ;;  %v1338_v55 = vsel %vm1328_vm7, %v1313_v49, %v1315_v34 }
 0x438   : > { %v6652_v6 = vadd.f32 %v1337_v41, %v6512_v57  ;;  %v6655_v50 = vadd.f32 %v1338_v55, %v6534_v24 }
 0x43a   : > { %v1319_v15 = vpop.permute.xlu0 %1318  ;;  %v1317_v39 = vpop.permute.xlu1 %1316 }
 0x43b   : > { %v1339_v44 = vsel %vm1328_vm7, %v1315_v34, %v1317_v39  ;;  %v1340_v26 = vsel %vm1328_vm7, %v1317_v39, %v1319_v15 }
 0x43c   : > { %v6660_v45 = vadd.f32 %v1339_v44, %v6536_v48  ;;  %v6663_v29 = vadd.f32 %v1340_v26, %v6556_v58 }
 0x43e   : > { %v1323_v2 = vpop.permute.xlu0 %1322  ;;  %v1321_v42 = vpop.permute.xlu1 %1320 }
 0x43f   : > { %v1341_v57 = vsel %vm1328_vm7, %v1319_v15, %v1321_v42  ;;  %v1342_v36 = vsel %vm1328_vm7, %v1321_v42, %v1323_v2 }
 0x440   : > { %v6668_v24 = vadd.f32 %v1341_v57, %v6558_v9  ;;  %v6671_v54 = vadd.f32 %v1342_v36, %v6568_v43 }
 0x442   : > { %v1327_v7 = vpop.permute.xlu0 %1326  ;;  %v1325_v59 = vpop.permute.xlu1 %1324 }
 0x443   : > { %v1343_v48 = vsel %vm1328_vm7, %v1323_v2, %v1325_v59  ;;  %v1344_v62 = vsel %vm1328_vm7, %v1325_v59, %v1327_v7  ;;  %v5673_v7 = vmov 11   ;;  %v5674_v59 = vmov 12  }
 0x444   : > { %v6676_v58 = vadd.f32 %v1343_v48, %v6570_v22  ;;  %v6679_v5 = vadd.f32 %v1344_v62, %v6573_v19 }
 0x453   : > { %v1379_v60 = vpop.permute.xlu1 %1378  ;;  %v1383_v47 = vpop.permute.xlu0 %1382 }
 0x454   : > { %v1387_v37 = vmul.f32 %v1379_v60, %v9701_v35  ;;  %v1385_v9 = vmul.f32 %v1379_v60, %v5811_v13  ;;  %v1389_v43 = vmul.f32 %v1379_v60, %v9703_v40  ;;  %v1386_v16 = vmul.f32 %v1379_v60, %v5807_v12 }
 0x455   : > { %v1391_v22 = vmul.f32 %v1379_v60, %v9705_v11  ;;  %v1388_v19 = vmul.f32 %v1379_v60, %v5821_v21  ;;  %v1393_v34 = vmul.f32 %v6593_v4, %v1379_v60  ;;  %v1390_v49 = vmul.f32 %v1379_v60, %v9702_v17 }
 0x456   : > { %1425 = vrot.lane.b32.xlu0 %v1387_v37, %s5672_s29  ;;  %1421 = vrot.lane.b32.xlu1 %v1385_v9, %s5672_s29  ;;  %v1395_v41 = vmul.f32 %v1383_v47, %v5807_v12  ;;  %v1392_v55 = vmul.f32 %v1379_v60, %v9704_v61  ;;  %v1397_v15 = vmul.f32 %v1383_v47, %v5821_v21 }
 0x457   : > { %v1394_v39 = vmul.f32 %v1383_v47, %v5811_v13  ;;  %v1399_v44 = vmul.f32 %v1383_v47, %v9702_v17  ;;  %v1396_v26 = vmul.f32 %v1383_v47, %v9701_v35  ;;  %v1401_v2 = vmul.f32 %v1383_v47, %v9704_v61 }
 0x458   : > { %v1398_v42 = vmul.f32 %v1383_v47, %v9703_v40  ;;  %v1400_v57 = vmul.f32 %v1383_v47, %v9705_v11  ;;  %v1402_v36 = vmul.f32 %v6593_v4, %v1383_v47 }
 0x45a   : > { %1429 = vrot.lane.b32.xlu0 %v1389_v43, %s5672_s29  ;;  %1423 = vrot.lane.b32.xlu1 %v1386_v16, %s5672_s29 }
 0x45e   : > { %1433 = vrot.lane.b32.xlu0 %v1391_v22, %s5672_s29  ;;  %1427 = vrot.lane.b32.xlu1 %v1388_v19, %s5672_s29 }
 0x462   : > { %1437 = vrot.lane.b32.xlu0 %v1393_v34, %s5672_s29  ;;  %1431 = vrot.lane.b32.xlu1 %v1390_v49, %s5672_s29 }
 0x466   : > { %1441 = vrot.lane.b32.xlu0 %v1395_v41, %s5672_s29  ;;  %1435 = vrot.lane.b32.xlu1 %v1392_v55, %s5672_s29 }
 0x46a   : > { %1445 = vrot.lane.b32.xlu0 %v1397_v15, %s5672_s29  ;;  %1439 = vrot.lane.b32.xlu1 %v1394_v39, %s5672_s29 }
 0x46e   : > { %1449 = vrot.lane.b32.xlu0 %v1399_v44, %s5672_s29  ;;  %1443 = vrot.lane.b32.xlu1 %v1396_v26, %s5672_s29 }
 0x472   : > { %1453 = vrot.lane.b32.xlu0 %v1401_v2, %s5672_s29  ;;  %1447 = vrot.lane.b32.xlu1 %v1398_v42, %s5672_s29 }
 0x476   : > { %1507 = vperm.xlu0 %5481, %v6617_v51   ;;  %1451 = vrot.lane.b32.xlu1 %v1400_v57, %s5672_s29 }
 0x47a   : > { %1455 = vrot.lane.b32.xlu1 %v1402_v36, %s5672_s29  ;;  %5484 = vset.pattern.permute.xlu0 %v5674_v59 }
 0x47e   : > { %1511 = vperm.xlu1 %5482, %v6623_v3  }
 0x482   : > { %5483 = vset.pattern.permute.xlu1 %v5673_v7 }
 0x4c8   : > { %v6721_v48 = vpop.permute.xlu0 %1425  ;;  %v6723_v62 = vpop.permute.xlu1 %1421 }
 0x4cc   : > { %v6725_v60 = vpop.permute.xlu0 %1429  ;;  %v6727_v37 = vpop.permute.xlu1 %1423 }
 0x4d0   : > { %v6729_v9 = vpop.permute.xlu0 %1433  ;;  %v6731_v4 = vpop.permute.xlu1 %1427 }
 0x4d4   : > { %v1438_v43 = vpop.permute.xlu0 %1437  ;;  %v6733_v16 = vpop.permute.xlu1 %1431 }
 0x4d8   : > { %v1442_v22 = vpop.permute.xlu0 %1441  ;;  %v1436_v19 = vpop.permute.xlu1 %1435 }
 0x4d9   : > { %v1464_v47 = vsel %vm1457_vm8, %v6729_v9, %v1436_v19  ;;  %v1465_v34 = vsel %vm1457_vm8, %v1436_v19, %v1438_v43 }
 0x4da   : > { %v6739_v49 = vadd.f32 %v1464_v47, %v6643_v10  ;;  %v6742_v41 = vadd.f32 %v1465_v34, %v6647_v0 }
 0x4dc   : > { %9706 = vst [vmem:[#allocation73_spill] sm:$0xff] %v6739_v49  ;;  %9707 = vst [vmem:[#allocation70_spill] sm:$0xff] %v6742_v41  ;;  %v1446_v55 = vpop.permute.xlu0 %1445  ;;  %v1440_v15 = vpop.permute.xlu1 %1439 }
 0x4dd   : > { %v1466_v39 = vsel %vm1457_vm8, %v1440_v15, %v1442_v22 }
 0x4de   : > { %v6746_v44 = vadd.f32 %v1466_v39, %v6652_v6 }
 0x4e0   : > { %9708 = vst [vmem:[#allocation72_spill] sm:$0xff] %v6746_v44  ;;  %v1444_v26 = vpop.permute.xlu1 %1443  ;;  %v1450_v57 = vpop.permute.xlu0 %1449 }
 0x4e1   : > { %v1467_v2 = vsel %vm1457_vm8, %v1442_v22, %v1444_v26  ;;  %v1468_v42 = vsel %vm1457_vm8, %v1444_v26, %v1446_v55 }
 0x4e2   : > { %v6751_v36 = vadd.f32 %v1467_v2, %v6655_v50  ;;  %v6754_v10 = vadd.f32 %v1468_v42, %v6660_v45 }
 0x4e4   : > { %9709 = vst [vmem:[#allocation35_spill] sm:$0xff] %v6751_v36  ;;  %9710 = vst [vmem:[#allocation33_spill] sm:$0xff] %v6754_v10  ;;  %v1448_v0 = vpop.permute.xlu1 %1447  ;;  %v1454_v22 = vpop.permute.xlu0 %1453 }
 0x4e5   : > { %v1469_v43 = vsel %vm1457_vm8, %v1446_v55, %v1448_v0  ;;  %v1470_v19 = vsel %vm1457_vm8, %v1448_v0, %v1450_v57  ;;  %v5676_v0 = vmov 13  }
 0x4e6   : > { %v6759_v6 = vadd.f32 %v1469_v43, %v6663_v29  ;;  %v6762_v47 = vadd.f32 %v1470_v19, %v6668_v24  ;;  %v5677_v43 = vmov 15   ;;  %v5678_v19 = vmov 14  }
 0x4e8   : > { %9711 = vst [vmem:[#allocation37_spill] sm:$0xff] %v6759_v6  ;;  %9712 = vst [vmem:[#allocation44_spill] sm:$0xff] %v6762_v47  ;;  %v1452_v34 = vpop.permute.xlu1 %1451 }
 0x4e9   : > { %v1471_v15 = vsel %vm1457_vm8, %v1450_v57, %v1452_v34  ;;  %v1472_v50 = vsel %vm1457_vm8, %v1452_v34, %v1454_v22  ;;  %v5680_v34 = vmov 16  }
 0x4ea   : > { %v6767_v45 = vadd.f32 %v1471_v15, %v6671_v54  ;;  %v6770_v39 = vadd.f32 %v1472_v50, %v6676_v58  ;;  %v5681_v15 = vmov 22   ;;  %v5682_v50 = vmov 17  }
 0x4ec   : > { %9713 = vst [vmem:[#allocation56_spill] sm:$0xff] %v6767_v45  ;;  %9714 = vst [vmem:[#allocation57_spill] sm:$0xff] %v6770_v39  ;;  %v1456_v55 = vpop.permute.xlu1 %1455 }
 0x4ed   : > { %v1473_v26 = vsel %vm1457_vm8, %v1454_v22, %v1456_v55  ;;  %v5679_v22 = vmov 18   ;;  %v5683_v55 = vmov 19  }
 0x4ee   : > { %v6774_v29 = vadd.f32 %v1473_v26, %v6679_v5  ;;  %v5684_v26 = vmov 21  }
 0x4f0   : > { %9715 = vst [vmem:[#allocation43_spill] sm:$0xff] %v6774_v29 }
 0x4f5   : > { %v6776_v24 = vpop.permute.xlu0 %1507 }
 0x4f6   : > { %9716 = vst [vmem:[#allocation59_spill] sm:$0xff] %v6776_v24  ;;  %v1515_v2 = vmul.f32 %v6776_v24, %v5807_v12  ;;  %v1514_v42 = vmul.f32 %v6776_v24, %v5811_v13  ;;  %v1517_v54 = vmul.f32 %v6776_v24, %v5821_v21  ;;  %v1516_v58 = vmul.f32 %v6776_v24, %v9701_v35 }
 0x4f7   : > { %v1519_v5 = vmul.f32 %v6776_v24, %v9702_v17  ;;  %v1518_v57 = vmul.f32 %v6776_v24, %v9703_v40 }
 0x4f8   : > { %1552 = vrot.lane.b32.xlu0 %v1515_v2, %s5675_s30  ;;  %1550 = vrot.lane.b32.xlu1 %v1514_v42, %s5675_s30  ;;  %v5685_v2 = vmov 23   ;;  %v1520_v42 = vmul.f32 %v6776_v24, %v9705_v11 }
 0x4fc   : > { %1556 = vrot.lane.b32.xlu0 %v1517_v54, %s5675_s30  ;;  %1554 = vrot.lane.b32.xlu1 %v1516_v58, %s5675_s30  ;;  %v9717_v54 = vmov 0  }
 0x4fd   : > { %v6829_v58 = vpop.permute.xlu1 %1511 }
 0x4fe   : > { %9718 = vst [vmem:[#allocation58_spill] sm:$0xff] %v6829_v58 }
 0x500   : > { %1560 = vrot.lane.b32.xlu0 %v1519_v5, %s5675_s30  ;;  %1558 = vrot.lane.b32.xlu1 %v1518_v57, %s5675_s30 }
 0x504   : > { %1636 = vperm.xlu1 %5483, %v6617_v51   ;;  %1765 = vperm.xlu0 %5484, %v6617_v51  }
 0x508   : > { %5485 = vset.pattern.permute.xlu1 %v5676_v0  ;;  %5487 = vset.pattern.permute.xlu0 %v5677_v43 }
 0x509   : > { %1894 = vperm.xlu1 %5485, %v6617_v51   ;;  %2152 = vperm.xlu0 %5487, %v6617_v51  }
 0x50d   : > { %5486 = vset.pattern.permute.xlu1 %v5678_v19  ;;  %5490 = vset.pattern.permute.xlu0 %v5679_v22 }
 0x50e   : > { %2023 = vperm.xlu1 %5486, %v6617_v51   ;;  %2539 = vperm.xlu0 %5490, %v6617_v51  }
 0x512   : > { %5488 = vset.pattern.permute.xlu1 %v5680_v34  ;;  %5493 = vset.pattern.permute.xlu0 %v5681_v15 }
 0x513   : > { %2281 = vperm.xlu1 %5488, %v6617_v51   ;;  %3056 = vperm.xlu0 %5493, %v6617_v51  }
 0x517   : > { %5489 = vset.pattern.permute.xlu1 %v5682_v50  ;;  %5496 = vset.pattern.permute.xlu0 %v5673_v7  ;;  %v5686_v7 = vmov 24  }
 0x518   : > { %2410 = vperm.xlu1 %5489, %v6617_v51   ;;  %1640 = vperm.xlu0 %5496, %v6623_v3  }
 0x51c   : > { %5491 = vset.pattern.permute.xlu1 %v5683_v55  ;;  %5499 = vset.pattern.permute.xlu0 %v5678_v19 }
 0x51d   : > { %2668 = vperm.xlu1 %5491, %v6617_v51   ;;  %2027 = vperm.xlu0 %5499, %v6623_v3  }
 0x521   : > { %5492 = vset.pattern.permute.xlu1 %v5684_v26  ;;  %5502 = vset.pattern.permute.xlu0 %v5682_v50 }
 0x522   : > { %2881 = vperm.xlu1 %5492, %v6617_v51   ;;  %2414 = vperm.xlu0 %5502, %v6623_v3  }
 0x526   : > { %5494 = vset.pattern.permute.xlu1 %v5685_v2  ;;  %5505 = vset.pattern.permute.xlu0 %v5684_v26 }
 0x527   : > { %3184 = vperm.xlu1 %5494, %v6617_v51   ;;  %2885 = vperm.xlu0 %5505, %v6623_v3  }
 0x52b   : > { %5495 = vset.pattern.permute.xlu1 %v5686_v7  ;;  %5508 = vset.pattern.permute.xlu0 %v5686_v7 }
 0x52c   : > { %3312 = vperm.xlu1 %5495, %v6617_v51   ;;  %3316 = vperm.xlu0 %5508, %v6623_v3  }
 0x530   : > { %5497 = vset.pattern.permute.xlu1 %v5674_v59  ;;  %v9394_v59 = vmov 20  }
 0x531   : > { %1769 = vperm.xlu1 %5497, %v6623_v3   ;;  %5509 = vset.pattern.permute.xlu0 %v9394_v59 }
 0x535   : > { %5498 = vset.pattern.permute.xlu1 %v5676_v0 }
 0x536   : > { %1898 = vperm.xlu1 %5498, %v6623_v3  }
 0x53a   : > { %5500 = vset.pattern.permute.xlu1 %v5677_v43 }
 0x53b   : > { %2156 = vperm.xlu1 %5500, %v6623_v3  }
 0x53f   : > { %5501 = vset.pattern.permute.xlu1 %v5680_v34 }
 0x540   : > { %2285 = vperm.xlu1 %5501, %v6623_v3  }
 0x544   : > { %5503 = vset.pattern.permute.xlu1 %v5679_v22 }
 0x545   : > { %2543 = vperm.xlu1 %5503, %v6623_v3  }
 0x549   : > { %5504 = vset.pattern.permute.xlu1 %v5683_v55 }
 0x54a   : > { %2672 = vperm.xlu1 %5504, %v6623_v3  }
 0x54e   : > { %5506 = vset.pattern.permute.xlu1 %v5681_v15 }
 0x54f   : > { %3060 = vperm.xlu1 %5506, %v6623_v3  }
 0x553   : > { %5507 = vset.pattern.permute.xlu1 %v5685_v2 }
 0x554   : > { %3188 = vperm.xlu1 %5507, %v6623_v3  }
 0x558   : > { %1562 = vrot.lane.b32.xlu1 %v1520_v42, %s5675_s30 }
 0x559   : > { %5510 = vset.pattern.permute.xlu1 %v9717_v54 }
 0x56a   : > { %v6831_v5 = vpop.permute.xlu1 %1550  ;;  %v6835_v0 = vpop.permute.xlu0 %1552 }
 0x56b   : > { %9719 = vst [vmem:[#allocation46_spill] sm:$0xff] %v6831_v5 }
 0x56e   : > { %v6833_v57 = vpop.permute.xlu1 %1554  ;;  %v6839_v19 = vpop.permute.xlu0 %1556 }
 0x56f   : > { %9720 = vst [vmem:[#allocation45_spill] sm:$0xff] %v6833_v57  ;;  %9722 = vst [vmem:[#allocation74_spill] sm:$0xff] %v6839_v19 }
 0x572   : > { %v6837_v43 = vpop.permute.xlu1 %1558  ;;  %v6849_v15 = vpop.permute.xlu0 %1560 }
 0x573   : > { %9721 = vst [vmem:[#allocation75_spill] sm:$0xff] %v6837_v43  ;;  %9724 = vst [vmem:[#allocation48_spill] sm:$0xff] %v6849_v15 }
 0x583   : > { %v6841_v3 = vpop.permute.xlu1 %1636  ;;  %v6857_v26 = vpop.permute.xlu0 %1765 }
 0x584   : > { %9723 = vst [vmem:[#allocation34_spill] sm:$0xff] %v6841_v3  ;;  %v1645_v22 = vmul.f32 %v6841_v3, %v9701_v35  ;;  %v1644_v34 = vmul.f32 %v6841_v3, %v5807_v12  ;;  %v1647_v50 = vmul.f32 %v6841_v3, %v9703_v40  ;;  %v1646_v55 = vmul.f32 %v6841_v3, %v5821_v21 }
 0x585   : > { %9725 = vst [vmem:[#allocation61_spill] sm:$0xff] %v6857_v26  ;;  %v1648_v2 = vmul.f32 %v6841_v3, %v9702_v17  ;;  %v1643_v7 = vmul.f32 %v6841_v3, %v5811_v13  ;;  %v1773_v42 = vmul.f32 %v6857_v26, %v5807_v12 }
 0x586   : > { %1683 = vrot.lane.b32.xlu0 %v1645_v22, %s5688_s5  ;;  %1681 = vrot.lane.b32.xlu1 %v1644_v34, %s5688_s5  ;;  %v1649_v22 = vmul.f32 %v6841_v3, %v9705_v11  ;;  %v1775_v34 = vmul.f32 %v6857_v26, %v5821_v21 }
 0x58a   : > { %1687 = vrot.lane.b32.xlu0 %v1647_v50, %s5688_s5  ;;  %1685 = vrot.lane.b32.xlu1 %v1646_v55, %s5688_s5  ;;  %v1774_v50 = vmul.f32 %v6857_v26, %v9701_v35  ;;  %v6875_v55 = vpop.permute.xlu1 %1894 }
 0x58b   : > { %9726 = vst [vmem:[#allocation60_spill] sm:$0xff] %v6875_v55  ;;  %v1906_v29 = vmul.f32 %v6875_v55, %v9702_v17 }
 0x58e   : > { %1689 = vrot.lane.b32.xlu0 %v1648_v2, %s5688_s5  ;;  %1679 = vrot.lane.b32.xlu1 %v1643_v7, %s5688_s5  ;;  %v1772_v2 = vmul.f32 %v6857_v26, %v5811_v13  ;;  %v1776_v7 = vmul.f32 %v6857_v26, %v9703_v40 }
 0x592   : > { %1810 = vrot.lane.b32.xlu0 %v1773_v42, %s5689_s6  ;;  %1691 = vrot.lane.b32.xlu1 %v1649_v22, %s5688_s5  ;;  %v6885_v42 = vpop.permute.xlu1 %2023  ;;  %v1778_v22 = vmul.f32 %v6857_v26, %v9705_v11 }
 0x593   : > { %9727 = vst [vmem:[#allocation47_spill] sm:$0xff] %v6885_v42  ;;  %v2034_v49 = vmul.f32 %v6885_v42, %v9703_v40  ;;  %v2035_v47 = vmul.f32 %v6885_v42, %v9702_v17 }
 0x596   : > { %1814 = vrot.lane.b32.xlu0 %v1775_v34, %s5689_s6  ;;  %1812 = vrot.lane.b32.xlu1 %v1774_v50, %s5689_s6  ;;  %v1777_v34 = vmul.f32 %v6857_v26, %v9702_v17  ;;  %v1903_v50 = vmul.f32 %v6875_v55, %v9701_v35  ;;  %v6897_v59 = vpop.permute.xlu1 %2281 }
 0x597   : > { %9728 = vst [vmem:[#allocation77_spill] sm:$0xff] %v6897_v59  ;;  %v2288_v36 = vmul.f32 %v6897_v59, %v5811_v13 }
 0x59a   : > { %1808 = vrot.lane.b32.xlu0 %v1772_v2, %s5689_s6  ;;  %1816 = vrot.lane.b32.xlu1 %v1776_v7, %s5689_s6  ;;  %v1902_v2 = vmul.f32 %v6875_v55, %v5807_v12  ;;  %v1905_v7 = vmul.f32 %v6875_v55, %v9703_v40 }
 0x59e   : > { %1820 = vrot.lane.b32.xlu0 %v1778_v22, %s5689_s6  ;;  %1818 = vrot.lane.b32.xlu1 %v1777_v34, %s5689_s6  ;;  %v1904_v22 = vmul.f32 %v6875_v55, %v5821_v21  ;;  %v6905_v34 = vpop.permute.xlu1 %2410 }
 0x59f   : > { %9729 = vst [vmem:[#allocation76_spill] sm:$0xff] %v6905_v34 }
 0x5a2   : > { %1941 = vrot.lane.b32.xlu0 %v1903_v50, %s5690_s7  ;;  %1939 = vrot.lane.b32.xlu1 %v1902_v2, %s5690_s7  ;;  %v1901_v50 = vmul.f32 %v6875_v55, %v5811_v13  ;;  %v2031_v2 = vmul.f32 %v6885_v42, %v5807_v12  ;;  %v6917_v39 = vpop.permute.xlu1 %2668 }
 0x5a3   : > { %9730 = vst [vmem:[#allocation63_spill] sm:$0xff] %v6917_v39 }
 0x5a6   : > { %1945 = vrot.lane.b32.xlu0 %v1905_v7, %s5690_s7  ;;  %1943 = vrot.lane.b32.xlu1 %v1904_v22, %s5690_s7  ;;  %v1907_v7 = vmul.f32 %v6875_v55, %v9705_v11  ;;  %v2032_v22 = vmul.f32 %v6885_v42, %v9701_v35 }
 0x5aa   : > { %1947 = vrot.lane.b32.xlu0 %v1906_v29, %s5690_s7  ;;  %1937 = vrot.lane.b32.xlu1 %v1901_v50, %s5690_s7  ;;  %v2033_v29 = vmul.f32 %v6885_v42, %v5821_v21  ;;  %v6927_v50 = vpop.permute.xlu1 %2881 }
 0x5ab   : > { %9731 = vst [vmem:[#allocation62_spill] sm:$0xff] %v6927_v50 }
 0x5ae   : > { %1949 = vrot.lane.b32.xlu1 %v1907_v7, %s5690_s7  ;;  %2068 = vrot.lane.b32.xlu0 %v2031_v2, %s5691_s8  ;;  %v2030_v7 = vmul.f32 %v6885_v42, %v5811_v13  ;;  %v6937_v2 = vpop.permute.xlu0 %2152  ;;  %v6939_v45 = vpop.permute.xlu1 %3184 }
 0x5af   : > { %9732 = vst [vmem:[#allocation49_spill] sm:$0xff] %v6937_v2  ;;  %9733 = vst [vmem:[#allocation79_spill] sm:$0xff] %v6939_v45  ;;  %v2162_v41 = vmul.f32 %v6937_v2, %v5821_v21  ;;  %v2159_v44 = vmul.f32 %v6937_v2, %v5811_v13 }
 0x5b2   : > { %2070 = vrot.lane.b32.xlu1 %v2032_v22, %s5691_s8  ;;  %2072 = vrot.lane.b32.xlu0 %v2033_v29, %s5691_s8  ;;  %v2036_v22 = vmul.f32 %v6885_v42, %v9705_v11  ;;  %v2160_v29 = vmul.f32 %v6937_v2, %v5807_v12 }
 0x5b6   : > { %2074 = vrot.lane.b32.xlu1 %v2034_v49, %s5691_s8  ;;  %2066 = vrot.lane.b32.xlu0 %v2030_v7, %s5691_s8  ;;  %v2161_v49 = vmul.f32 %v6937_v2, %v9701_v35  ;;  %v6951_v7 = vpop.permute.xlu1 %3312 }
 0x5b7   : > { %9734 = vst [vmem:[#allocation78_spill] sm:$0xff] %v6951_v7 }
 0x5ba   : > { %2076 = vrot.lane.b32.xlu1 %v2035_v47, %s5691_s8  ;;  %2078 = vrot.lane.b32.xlu0 %v2036_v22, %s5691_s8  ;;  %v2163_v47 = vmul.f32 %v6937_v2, %v9703_v40  ;;  %v6961_v22 = vpop.permute.xlu1 %1769 }
 0x5bb   : > { %9735 = vst [vmem:[#allocation64_spill] sm:$0xff] %v6961_v22 }
 0x5be   : > { %2197 = vrot.lane.b32.xlu1 %v2160_v29, %s5692_s9  ;;  %2199 = vrot.lane.b32.xlu0 %v2161_v49, %s5692_s9  ;;  %v2164_v29 = vmul.f32 %v6937_v2, %v9702_v17  ;;  %v2165_v49 = vmul.f32 %v6937_v2, %v9705_v11  ;;  %v6973_v6 = vpop.permute.xlu1 %1898 }
 0x5bf   : > { %9736 = vst [vmem:[#allocation7_spill] sm:$0xff] %v6973_v6 }
 0x5c2   : > { %2201 = vrot.lane.b32.xlu1 %v2162_v41, %s5692_s9  ;;  %2203 = vrot.lane.b32.xlu0 %v2163_v47, %s5692_s9  ;;  %v2289_v41 = vmul.f32 %v6897_v59, %v5807_v12  ;;  %v2290_v47 = vmul.f32 %v6897_v59, %v9701_v35  ;;  %v6985_v10 = vpop.permute.xlu1 %2156 }
 0x5c3   : > { %9738 = vst [vmem:[#allocation80_spill] sm:$0xff] %v6985_v10 }
 0x5c6   : > { %2195 = vrot.lane.b32.xlu1 %v2159_v44, %s5692_s9  ;;  %2205 = vrot.lane.b32.xlu0 %v2164_v29, %s5692_s9  ;;  %v2291_v44 = vmul.f32 %v6897_v59, %v5821_v21  ;;  %v6983_v29 = vpop.permute.xlu0 %2539 }
 0x5c7   : > { %9737 = vst [vmem:[#allocation10_spill] sm:$0xff] %v6983_v29  ;;  %v2547_v26 = vmul.f32 %v6983_v29, %v5807_v12 }
 0x5ca   : > { %2207 = vrot.lane.b32.xlu1 %v2165_v49, %s5692_s9  ;;  %2326 = vrot.lane.b32.xlu0 %v2289_v41, %s5693_s10  ;;  %v2292_v49 = vmul.f32 %v6897_v59, %v9703_v40  ;;  %v2294_v41 = vmul.f32 %v6897_v59, %v9705_v11 }
 0x5ce   : > { %2328 = vrot.lane.b32.xlu1 %v2290_v47, %s5693_s10  ;;  %2330 = vrot.lane.b32.xlu0 %v2291_v44, %s5693_s10  ;;  %v6995_v47 = vpop.permute.xlu0 %3056  ;;  %v6997_v44 = vpop.permute.xlu1 %2285 }
 0x5cf   : > { %9739 = vst [vmem:[#allocation81_spill] sm:$0xff] %v6995_v47  ;;  %9740 = vst [vmem:[#allocation82_spill] sm:$0xff] %v6997_v44 }
 0x5d2   : > { %2332 = vrot.lane.b32.xlu1 %v2292_v49, %s5693_s10  ;;  %2798 = vperm.xlu0 %5509, %v6617_v51   ;;  %v2293_v49 = vmul.f32 %v6897_v59, %v9702_v17  ;;  %v2419_v51 = vmul.f32 %v6905_v34, %v9701_v35  ;;  %v7008_v2 = vpop.permute.xlu0 %1640  ;;  %v7010_v42 = vpop.permute.xlu1 %2543 }
 0x5d3   : > { %9741 = vst [vmem:[#allocation83_spill] sm:$0xff] %v7008_v2  ;;  %9742 = vst [vmem:[#allocation84_spill] sm:$0xff] %v7010_v42 }
 0x5d6   : > { %2336 = vrot.lane.b32.xlu0 %v2294_v41, %s5693_s10  ;;  %2324 = vrot.lane.b32.xlu1 %v2288_v36, %s5693_s10  ;;  %v2421_v36 = vmul.f32 %v6905_v34, %v9703_v40  ;;  %v2418_v41 = vmul.f32 %v6905_v34, %v5807_v12  ;;  %v7022_v59 = vpop.permute.xlu0 %2027  ;;  %v7024_v55 = vpop.permute.xlu1 %2672 }
 0x5d7   : > { %5593 = vset.pattern.permute.xlu0 %v9717_v54  ;;  %9743 = vst [vmem:[#allocation85_spill] sm:$0xff] %v7022_v59  ;;  %9744 = vst [vmem:[#allocation86_spill] sm:$0xff] %v7024_v55  ;;  %v2878_v55 = vld [vmem:[%s5800_s14 + $0x1] sm:$0xff] }
 0x5da   : > { %2334 = vrot.lane.b32.xlu1 %v2293_v49, %s5693_s10  ;;  %2457 = vrot.lane.b32.xlu0 %v2419_v51, %s5694_s11  ;;  %v2422_v49 = vmul.f32 %v6905_v34, %v9702_v17  ;;  %v2420_v51 = vmul.f32 %v6905_v34, %v5821_v21  ;;  %v7036_v3 = vpop.permute.xlu0 %2414  ;;  %v7038_v61 = vpop.permute.xlu1 %3060 }
 0x5db   : > { %9745 = vst [vmem:[#allocation87_spill] sm:$0xff] %v7036_v3  ;;  %9746 = vst [vmem:[#allocation88_spill] sm:$0xff] %v7038_v61 }
 0x5de   : > { %2461 = vrot.lane.b32.xlu0 %v2421_v36, %s5694_s11  ;;  %2455 = vrot.lane.b32.xlu1 %v2418_v41, %s5694_s11  ;;  %v2417_v36 = vmul.f32 %v6905_v34, %v5811_v13  ;;  %v2549_v41 = vmul.f32 %v6983_v29, %v5821_v21  ;;  %v7050_v24 = vpop.permute.xlu1 %3188 }
 0x5df   : > { %9748 = vst [vmem:[#allocation90_spill] sm:$0xff] %v7050_v24 }
 0x5e2   : > { %2463 = vrot.lane.b32.xlu0 %v2422_v49, %s5694_s11  ;;  %2459 = vrot.lane.b32.xlu1 %v2420_v51, %s5694_s11  ;;  %v2423_v49 = vmul.f32 %v6905_v34, %v9705_v11  ;;  %v2546_v51 = vmul.f32 %v6983_v29, %v5811_v13  ;;  %v7062_v61 = vpop.permute.xlu1 %1562 }
 0x5e3   : > { %9750 = vst [vmem:[#allocation92_spill] sm:$0xff] %v7062_v61  ;;  %v2676_v61 = vmul.f32 %v6917_v39, %v5807_v12 }
 0x5e6   : > { %2584 = vrot.lane.b32.xlu0 %v2547_v26, %s5695_s12  ;;  %2453 = vrot.lane.b32.xlu1 %v2417_v36, %s5694_s11  ;;  %v2548_v26 = vmul.f32 %v6983_v29, %v9701_v35  ;;  %v7048_v36 = vpop.permute.xlu0 %2885 }
 0x5e7   : > { %9747 = vst [vmem:[#allocation89_spill] sm:$0xff] %v7048_v36 }
 0x5ea   : > { %2588 = vrot.lane.b32.xlu0 %v2549_v41, %s5695_s12  ;;  %2465 = vrot.lane.b32.xlu1 %v2423_v49, %s5694_s11  ;;  %v2552_v41 = vmul.f32 %v6983_v29, %v9705_v11  ;;  %v2550_v49 = vmul.f32 %v6983_v29, %v9703_v40  ;;  %v7060_v34 = vpop.permute.xlu0 %3316 }
 0x5eb   : > { %9749 = vst [vmem:[#allocation91_spill] sm:$0xff] %v7060_v34 }
 0x5ee   : > { %2582 = vrot.lane.b32.xlu0 %v2546_v51, %s5695_s12  ;;  %2586 = vrot.lane.b32.xlu1 %v2548_v26, %s5695_s12  ;;  %v2551_v51 = vmul.f32 %v6983_v29, %v9702_v17  ;;  %v2677_v26 = vmul.f32 %v6917_v39, %v9701_v35 }
 0x5f2   : > { %2594 = vrot.lane.b32.xlu0 %v2552_v41, %s5695_s12  ;;  %2590 = vrot.lane.b32.xlu1 %v2550_v49, %s5695_s12  ;;  %v2679_v49 = vmul.f32 %v6917_v39, %v9703_v40 }
 0x5f6   : > { %2592 = vrot.lane.b32.xlu1 %v2551_v51, %s5695_s12  ;;  %2715 = vrot.lane.b32.xlu0 %v2677_v26, %s5696_s13  ;;  %v2680_v26 = vmul.f32 %v6917_v39, %v9702_v17 }
 0x5f8   : > { %v7070_v24 = vpop.permute.xlu0 %1683  ;;  %v7072_v41 = vpop.permute.xlu1 %1681 }
 0x5f9   : > { %9751 = vst [vmem:[#allocation93_spill] sm:$0xff] %v7070_v24  ;;  %9752 = vst [vmem:[#allocation94_spill] sm:$0xff] %v7072_v41  ;;  %v2678_v41 = vmul.f32 %v6917_v39, %v5821_v21  ;;  %v9755_v24 = vld [vmem:[#allocation6_spill] sm:$0xff] }
 0x5fa   : > { %2719 = vrot.lane.b32.xlu0 %v2679_v49, %s5696_s13  ;;  %2713 = vrot.lane.b32.xlu1 %v2676_v61, %s5696_s13  ;;  %v9756_v34 = vsub.s32 1, %v9755_v24  ;;  %v9760_v15 = vsub.s32 3, %v9755_v24 }
 0x5fc   : > { %v7081_v29 = vpop.permute.xlu0 %1687  ;;  %v7083_v51 = vpop.permute.xlu1 %1685  ;;  %v7091_v36 = vrot.slane %v2878_v55, %v9756_v34  ;;  %v7105_v43 = vrot.slane %v2878_v55, %v9760_v15  ;;  %v9766_v15 = vsub.s32 0, %v9755_v24 }
 0x5fd   : > { %9753 = vst [vmem:[#allocation95_spill] sm:$0xff] %v7081_v29  ;;  %9754 = vst [vmem:[#allocation96_spill] sm:$0xff] %v7083_v51  ;;  %v2675_v29 = vmul.f32 %v6917_v39, %v5811_v13 }
 0x5fe   : > { %9757 = vst [vmem:[#allocation97_spill] sm:$0xff] %v7091_v36  ;;  %2721 = vrot.lane.b32.xlu0 %v2680_v26, %s5696_s13  ;;  %2717 = vrot.lane.b32.xlu1 %v2678_v41, %s5696_s13  ;;  %v2936_v51 = vmul.f32 %v7091_v36, %v6927_v50  ;;  %9761 = vst [vmem:[#allocation100_spill] sm:$0xff] %v7105_v43  ;;  %v2681_v26 = vmul.f32 %v6917_v39, %v9705_v11 }
 0x5ff   : > { %v7123_v57 = vrot.slane %v2878_v55, %v9766_v15  ;;  %v9772_v15 = vld [vmem:[#allocation8_spill] sm:$0xff] }
 0x600   : > { %v7095_v49 = vpop.permute.xlu0 %1689  ;;  %v7097_v61 = vpop.permute.xlu1 %1679 }
 0x601   : > { %9758 = vst [vmem:[#allocation98_spill] sm:$0xff] %v7095_v49  ;;  %9759 = vst [vmem:[#allocation99_spill] sm:$0xff] %v7097_v61  ;;  %v2938_v61 = vmul.f32 %v7105_v43, %v6927_v50  ;;  %v9764_v49 = vsub.s32 2, %v9755_v24  ;;  %v2935_v11 = vmul.f32 %v7123_v57, %v6927_v50 }
 0x602   : > { %2711 = vrot.lane.b32.xlu1 %v2675_v29, %s5696_s13  ;;  %2973 = vrot.lane.b32.xlu0 %v2936_v51, %s5658_s17  ;;  %9767 = vst [vmem:[#allocation104_spill] sm:$0xff] %v7123_v57 }
 0x603   : > { %v7119_v19 = vrot.slane %v2878_v55, %v9764_v49  ;;  %v9770_v49 = vsub.s32 4, %v9755_v24 }
 0x604   : > { %v7109_v34 = vpop.permute.xlu0 %1810  ;;  %v7111_v41 = vpop.permute.xlu1 %1691 }
 0x605   : > { %9762 = vst [vmem:[#allocation101_spill] sm:$0xff] %v7109_v34  ;;  %9763 = vst [vmem:[#allocation102_spill] sm:$0xff] %v7111_v41  ;;  %v2937_v39 = vmul.f32 %v7119_v19, %v6927_v50  ;;  %v7137_v34 = vrot.slane %v2878_v55, %v9770_v49  ;;  %v7140_v41 = vrot.slane %v2878_v55, %v9772_v15  ;;  %v9776_v49 = vsub.s32 5, %v9755_v24 }
 0x606   : > { %9765 = vst [vmem:[#allocation103_spill] sm:$0xff] %v7119_v19  ;;  %2723 = vrot.lane.b32.xlu1 %v2681_v26, %s5696_s13  ;;  %2977 = vrot.lane.b32.xlu0 %v2938_v61, %s5658_s17 }
 0x607   : > { %9771 = vst [vmem:[#allocation107_spill] sm:$0xff] %v7137_v34  ;;  %9773 = vst [vmem:[#allocation108_spill] sm:$0xff] %v7140_v41  ;;  %v7154_v5 = vrot.slane %v2878_v55, %v9776_v49 }
 0x608   : > { %v7127_v29 = vpop.permute.xlu0 %1814  ;;  %v7129_v51 = vpop.permute.xlu1 %1812 }
 0x609   : > { %9768 = vst [vmem:[#allocation105_spill] sm:$0xff] %v7127_v29  ;;  %9769 = vst [vmem:[#allocation106_spill] sm:$0xff] %v7129_v51  ;;  %v2939_v29 = vmul.f32 %v7137_v34, %v6927_v50  ;;  %v2941_v51 = vmul.f32 %v7140_v41, %v6927_v50  ;;  %v2940_v15 = vmul.f32 %v7154_v5, %v6927_v50 }
 0x60a   : > { %2975 = vrot.lane.b32.xlu1 %v2937_v39, %s5658_s17  ;;  %2971 = vrot.lane.b32.xlu0 %v2935_v11, %s5658_s17  ;;  %9777 = vst [vmem:[#allocation111_spill] sm:$0xff] %v7154_v5 }
 0x60c   : > { %v7144_v61 = vpop.permute.xlu0 %1808  ;;  %v7146_v26 = vpop.permute.xlu1 %1816 }
 0x60d   : > { %9774 = vst [vmem:[#allocation109_spill] sm:$0xff] %v7144_v61  ;;  %9775 = vst [vmem:[#allocation110_spill] sm:$0xff] %v7146_v26  ;;  %v3065_v26 = vmul.f32 %v6995_v47, %v7119_v19  ;;  %v9835_v61 = vld [vmem:[#allocation21_spill] sm:$0xff] }
 0x60e   : > { %2979 = vrot.lane.b32.xlu1 %v2939_v29, %s5658_s17  ;;  %2983 = vrot.lane.b32.xlu0 %v2941_v51, %s5658_s17  ;;  %v3064_v29 = vmul.f32 %v6995_v47, %v7091_v36  ;;  %v3067_v51 = vmul.f32 %v6995_v47, %v7137_v34 }
 0x610   : > { %v7158_v39 = vpop.permute.xlu0 %1820  ;;  %v7160_v11 = vpop.permute.xlu1 %1818 }
 0x611   : > { %9778 = vst [vmem:[#allocation112_spill] sm:$0xff] %v7158_v39  ;;  %9779 = vst [vmem:[#allocation113_spill] sm:$0xff] %v7160_v11  ;;  %v9834_v11 = vld [vmem:[#allocation22_spill] sm:$0xff] }
 0x612   : > { %2981 = vrot.lane.b32.xlu1 %v2940_v15, %s5658_s17  ;;  %3103 = vrot.lane.b32.xlu0 %v3065_v26, %s5660_s18  ;;  %v3066_v15 = vmul.f32 %v6995_v47, %v7105_v43  ;;  %v3063_v26 = vmul.f32 %v6995_v47, %v7123_v57 }
 0x614   : > { %v7168_v55 = vpop.permute.xlu0 %1941  ;;  %v7170_v49 = vpop.permute.xlu1 %1939 }
 0x615   : > { %9780 = vst [vmem:[#allocation114_spill] sm:$0xff] %v7168_v55  ;;  %9781 = vst [vmem:[#allocation115_spill] sm:$0xff] %v7170_v49 }
 0x616   : > { %3101 = vrot.lane.b32.xlu1 %v3064_v29, %s5660_s18  ;;  %3107 = vrot.lane.b32.xlu0 %v3067_v51, %s5660_s18  ;;  %v3439_v29 = vld [vmem:[%s9309_s2] sm:$0xff] }
 0x618   : > { %v7178_v50 = vpop.permute.xlu0 %1945  ;;  %v7180_v24 = vpop.permute.xlu1 %1943 }
 0x619   : > { %9782 = vst [vmem:[#allocation116_spill] sm:$0xff] %v7178_v50  ;;  %9783 = vst [vmem:[#allocation117_spill] sm:$0xff] %v7180_v24  ;;  %v3069_v50 = vmul.f32 %v6995_v47, %v7140_v41 }
 0x61a   : > { %3105 = vrot.lane.b32.xlu1 %v3066_v15, %s5660_s18  ;;  %3099 = vrot.lane.b32.xlu0 %v3063_v26, %s5660_s18  ;;  %v3193_v15 = vmul.f32 %v6939_v45, %v7119_v19  ;;  %v3068_v26 = vmul.f32 %v6995_v47, %v7154_v5 }
 0x61c   : > { %v7191_v49 = vpop.permute.xlu0 %1947  ;;  %v7193_v51 = vpop.permute.xlu1 %1937 }
 0x61d   : > { %9784 = vst [vmem:[#allocation118_spill] sm:$0xff] %v7191_v49  ;;  %9785 = vst [vmem:[#allocation119_spill] sm:$0xff] %v7193_v51  ;;  %v9788_v51 = vmov 20  }
 0x61e   : > { %3111 = vrot.lane.b32.xlu0 %v3069_v50, %s5660_s18  ;;  %3443 = vperm.xlu1 %5510, %v3439_v29   ;;  %v3195_v29 = vmul.f32 %v6939_v45, %v7137_v34 }
 0x620   : > { %v7198_v24 = vpop.permute.xlu0 %2068  ;;  %v7200_v55 = vpop.permute.xlu1 %1949 }
 0x621   : > { %9786 = vst [vmem:[#allocation120_spill] sm:$0xff] %v7198_v24  ;;  %9787 = vst [vmem:[#allocation121_spill] sm:$0xff] %v7200_v55  ;;  %v3192_v24 = vmul.f32 %v6939_v45, %v7091_v36 }
 0x622   : > { %3231 = vrot.lane.b32.xlu0 %v3193_v15, %s5661_s19  ;;  %3109 = vrot.lane.b32.xlu1 %v3068_v26, %s5660_s18  ;;  %v1524_v15 = vmul.f32 %v6829_v58, %v5807_v12 }
 0x623   : > { %5511 = vset.pattern.permute.xlu1 %v9788_v51  ;;  %v3194_v51 = vmul.f32 %v6939_v45, %v7105_v43 }
 0x624   : > { %v7209_v49 = vpop.permute.xlu0 %2072  ;;  %v7211_v50 = vpop.permute.xlu1 %2070 }
 0x625   : > { %9789 = vst [vmem:[#allocation122_spill] sm:$0xff] %v7209_v49  ;;  %9790 = vst [vmem:[#allocation123_spill] sm:$0xff] %v7211_v50 }
 0x626   : > { %3235 = vrot.lane.b32.xlu0 %v3195_v29, %s5661_s19  ;;  %3229 = vrot.lane.b32.xlu1 %v3192_v24, %s5661_s19  ;;  %v1526_v29 = vmul.f32 %v6829_v58, %v5821_v21  ;;  %v3191_v24 = vmul.f32 %v6939_v45, %v7123_v57 }
 0x628   : > { %v7219_v47 = vpop.permute.xlu1 %2074  ;;  %v7225_v26 = vpop.permute.xlu0 %2066 }
 0x629   : > { %9791 = vst [vmem:[#allocation124_spill] sm:$0xff] %v7219_v47  ;;  %9792 = vst [vmem:[#allocation125_spill] sm:$0xff] %v7225_v26 }
 0x62a   : > { %1570 = vrot.lane.b32.xlu0 %v1524_v15, %s5675_s30  ;;  %3233 = vrot.lane.b32.xlu1 %v3194_v51, %s5661_s19  ;;  %v3196_v15 = vmul.f32 %v6939_v45, %v7154_v5  ;;  %v1525_v51 = vmul.f32 %v6829_v58, %v9701_v35 }
 0x62c   : > { %v7229_v49 = vpop.permute.xlu1 %2076  ;;  %v7237_v47 = vpop.permute.xlu0 %2078 }
 0x62d   : > { %9793 = vst [vmem:[#allocation126_spill] sm:$0xff] %v7229_v49  ;;  %9794 = vst [vmem:[#allocation127_spill] sm:$0xff] %v7237_v47 }
 0x62e   : > { %1574 = vrot.lane.b32.xlu0 %v1526_v29, %s5675_s30  ;;  %3227 = vrot.lane.b32.xlu1 %v3191_v24, %s5661_s19  ;;  %v3320_v29 = vmul.f32 %v6951_v7, %v7091_v36  ;;  %v1527_v24 = vmul.f32 %v6829_v58, %v9703_v40  ;;  %v9837_v36 = vld [vmem:[#allocation24_spill] sm:$0xff] }
 0x630   : > { %v7239_v50 = vpop.permute.xlu1 %2197  ;;  %v7253_v47 = vpop.permute.xlu0 %2199 }
 0x631   : > { %9795 = vst [vmem:[#allocation128_spill] sm:$0xff] %v7239_v50  ;;  %9797 = vst [vmem:[#allocation130_spill] sm:$0xff] %v7253_v47  ;;  %v9832_v47 = vld [vmem:[#allocation18_spill] sm:$0xff] }
 0x632   : > { %3237 = vrot.lane.b32.xlu0 %v3196_v15, %s5661_s19  ;;  %1572 = vrot.lane.b32.xlu1 %v1525_v51, %s5675_s30  ;;  %v3322_v15 = vmul.f32 %v6951_v7, %v7105_v43  ;;  %v3197_v51 = vmul.f32 %v6939_v45, %v7140_v41  ;;  %v9836_v43 = vld [vmem:[#allocation23_spill] sm:$0xff] }
 0x634   : > { %v7247_v49 = vpop.permute.xlu1 %2201 }
 0x635   : > { %9796 = vst [vmem:[#allocation129_spill] sm:$0xff] %v7247_v49  ;;  %v7265_v49 = vpop.permute.xlu0 %2203 }
 0x636   : > { %3357 = vrot.lane.b32.xlu0 %v3320_v29, %s5662_s20  ;;  %1576 = vrot.lane.b32.xlu1 %v1527_v24, %s5675_s30  ;;  %9799 = vst [vmem:[#allocation132_spill] sm:$0xff] %v7265_v49  ;;  %v1523_v29 = vmul.f32 %v6829_v58, %v5811_v13  ;;  %v3321_v24 = vmul.f32 %v6951_v7, %v7119_v19  ;;  %v9830_v49 = vld [vmem:[#allocation19_spill] sm:$0xff] }
 0x637   : > { %v430_v55 = vsel %vm425_vm0, %v9830_v49, %v9832_v47 }
 0x638   : > { %v7257_v50 = vpop.permute.xlu1 %2195 }
 0x639   : > { %9798 = vst [vmem:[#allocation131_spill] sm:$0xff] %v7257_v50  ;;  %v7281_v45 = vpop.permute.xlu0 %2205 }
 0x63a   : > { %3361 = vrot.lane.b32.xlu0 %v3322_v15, %s5662_s20  ;;  %3239 = vrot.lane.b32.xlu1 %v3197_v51, %s5661_s19  ;;  %v1653_v15 = vmul.f32 %v7008_v2, %v5807_v12  ;;  %v3323_v51 = vmul.f32 %v6951_v7, %v7137_v34  ;;  %9802 = vst [vmem:[#allocation135_spill] sm:$0xff] %v7281_v45 }
 0x63b   : > { %v555_v34 = vsel %vm554_vm1, %v9835_v61, %v9834_v11  ;;  %v2170_v61 = vmul.f32 %v6985_v10, %v9701_v35 }
 0x63c   : > { %v7267_v26 = vpop.permute.xlu1 %2207 }
 0x63d   : > { %9800 = vst [vmem:[#allocation133_spill] sm:$0xff] %v7267_v26  ;;  %v7293_v26 = vpop.permute.xlu0 %2326 }
 0x63e   : > { %1568 = vrot.lane.b32.xlu0 %v1523_v29, %s5675_s30  ;;  %3359 = vrot.lane.b32.xlu1 %v3321_v24, %s5662_s20  ;;  %v1655_v29 = vmul.f32 %v7008_v2, %v5821_v21  ;;  %v3319_v24 = vmul.f32 %v6951_v7, %v7123_v57  ;;  %9804 = vst [vmem:[#allocation137_spill] sm:$0xff] %v7293_v26 }
 0x640   : > { %v7275_v50 = vpop.permute.xlu1 %2328 }
 0x641   : > { %9801 = vst [vmem:[#allocation134_spill] sm:$0xff] %v7275_v50  ;;  %v7309_v26 = vpop.permute.xlu0 %2330 }
 0x642   : > { %1699 = vrot.lane.b32.xlu0 %v1653_v15, %s5688_s5  ;;  %3363 = vrot.lane.b32.xlu1 %v3323_v51, %s5662_s20  ;;  %v3324_v15 = vmul.f32 %v6951_v7, %v7154_v5  ;;  %v1654_v51 = vmul.f32 %v7008_v2, %v9701_v35  ;;  %9807 = vst [vmem:[#allocation140_spill] sm:$0xff] %v7309_v26 }
 0x643   : > { %v2039_v26 = vmul.f32 %v7022_v59, %v5811_v13 }
 0x644   : > { %v7285_v58 = vpop.permute.xlu1 %2332 }
 0x645   : > { %9803 = vst [vmem:[#allocation136_spill] sm:$0xff] %v7285_v58 }
 0x646   : > { %1703 = vrot.lane.b32.xlu0 %v1655_v29, %s5688_s5  ;;  %3355 = vrot.lane.b32.xlu1 %v3319_v24, %s5662_s20  ;;  %v1652_v29 = vmul.f32 %v7008_v2, %v5811_v13  ;;  %v1656_v24 = vmul.f32 %v7008_v2, %v9703_v40 }
 0x648   : > { %v7295_v50 = vpop.permute.xlu1 %2324 }
 0x649   : > { %9805 = vst [vmem:[#allocation138_spill] sm:$0xff] %v7295_v50 }
 0x64a   : > { %3365 = vrot.lane.b32.xlu0 %v3324_v15, %s5662_s20  ;;  %1701 = vrot.lane.b32.xlu1 %v1654_v51, %s5688_s5  ;;  %v1783_v15 = vmul.f32 %v6961_v22, %v9701_v35  ;;  %v3325_v51 = vmul.f32 %v6951_v7, %v7140_v41 }
 0x64c   : > { %v7303_v58 = vpop.permute.xlu1 %2334 }
 0x64d   : > { %9806 = vst [vmem:[#allocation139_spill] sm:$0xff] %v7303_v58 }
 0x64e   : > { %1697 = vrot.lane.b32.xlu0 %v1652_v29, %s5688_s5  ;;  %1705 = vrot.lane.b32.xlu1 %v1656_v24, %s5688_s5  ;;  %v1785_v29 = vmul.f32 %v6961_v22, %v9703_v40  ;;  %v1782_v24 = vmul.f32 %v6961_v22, %v5807_v12 }
 0x650   : > { %v7313_v5 = vpop.permute.xlu1 %2455 }
 0x651   : > { %9808 = vst [vmem:[#allocation141_spill] sm:$0xff] %v7313_v5  ;;  %v7319_v58 = vpop.permute.xlu0 %2798 }
 0x652   : > { %9809 = vst [vmem:[#allocation142_spill] sm:$0xff] %v7319_v58  ;;  %1830 = vrot.lane.b32.xlu0 %v1783_v15, %s5689_s6  ;;  %3367 = vrot.lane.b32.xlu1 %v3325_v51, %s5662_s20  ;;  %v1911_v15 = vmul.f32 %v6973_v6, %v5807_v12  ;;  %v1784_v51 = vmul.f32 %v6961_v22, %v5821_v21 }
 0x654   : > { %v7323_v2 = vpop.permute.xlu1 %2459 }
 0x655   : > { %9810 = vst [vmem:[#allocation143_spill] sm:$0xff] %v7323_v2  ;;  %v7329_v50 = vpop.permute.xlu0 %2336  ;;  %v9827_v2 = vld [vmem:[#allocation17_spill] sm:$0xff] }
 0x656   : > { %9811 = vst [vmem:[#allocation144_spill] sm:$0xff] %v7329_v50  ;;  %1834 = vrot.lane.b32.xlu0 %v1785_v29, %s5689_s6  ;;  %1828 = vrot.lane.b32.xlu1 %v1782_v24, %s5689_s6  ;;  %v1913_v29 = vmul.f32 %v6973_v6, %v5821_v21  ;;  %v1781_v24 = vmul.f32 %v6961_v22, %v5811_v13 }
 0x658   : > { %v7333_v7 = vpop.permute.xlu1 %2453 }
 0x659   : > { %9812 = vst [vmem:[#allocation145_spill] sm:$0xff] %v7333_v7  ;;  %v7339_v41 = vpop.permute.xlu0 %2457 }
 0x65a   : > { %9813 = vst [vmem:[#allocation146_spill] sm:$0xff] %v7339_v41  ;;  %1957 = vrot.lane.b32.xlu0 %v1911_v15, %s5690_s7  ;;  %1832 = vrot.lane.b32.xlu1 %v1784_v51, %s5689_s6  ;;  %v1910_v15 = vmul.f32 %v6973_v6, %v5811_v13  ;;  %v1912_v51 = vmul.f32 %v6973_v6, %v9701_v35  ;;  %v9828_v41 = vld [vmem:[#allocation16_spill] sm:$0xff] }
 0x65c   : > { %v7343_v58 = vpop.permute.xlu1 %2465 }
 0x65d   : > { %9814 = vst [vmem:[#allocation147_spill] sm:$0xff] %v7343_v58  ;;  %v7349_v50 = vpop.permute.xlu0 %2461 }
 0x65e   : > { %9815 = vst [vmem:[#allocation148_spill] sm:$0xff] %v7349_v50  ;;  %1961 = vrot.lane.b32.xlu0 %v1913_v29, %s5690_s7  ;;  %1826 = vrot.lane.b32.xlu1 %v1781_v24, %s5689_s6  ;;  %v2041_v29 = vmul.f32 %v7022_v59, %v9701_v35  ;;  %v1914_v24 = vmul.f32 %v6973_v6, %v9703_v40 }
 0x660   : > { %v7353_v7 = vpop.permute.xlu1 %2586 }
 0x661   : > { %9816 = vst [vmem:[#allocation149_spill] sm:$0xff] %v7353_v7  ;;  %v7359_v58 = vpop.permute.xlu0 %2463 }
 0x662   : > { %9817 = vst [vmem:[#allocation150_spill] sm:$0xff] %v7359_v58  ;;  %1955 = vrot.lane.b32.xlu0 %v1910_v15, %s5690_s7  ;;  %1959 = vrot.lane.b32.xlu1 %v1912_v51, %s5690_s7  ;;  %v2043_v15 = vmul.f32 %v7022_v59, %v9703_v40  ;;  %v2040_v51 = vmul.f32 %v7022_v59, %v5807_v12  ;;  %v9824_v58 = vld [vmem:[#allocation13_spill] sm:$0xff] }
 0x663   : > { %v267_v45 = vmul.f32 %v5821_v21, %v9824_v58 }
 0x664   : > { %v7363_v22 = vpop.permute.xlu1 %2590 }
 0x665   : > { %9818 = vst [vmem:[#allocation151_spill] sm:$0xff] %v7363_v22  ;;  %v7369_v50 = vpop.permute.xlu0 %2584 }
 0x666   : > { %9819 = vst [vmem:[#allocation152_spill] sm:$0xff] %v7369_v50  ;;  %2088 = vrot.lane.b32.xlu0 %v2041_v29, %s5691_s8  ;;  %1963 = vrot.lane.b32.xlu1 %v1914_v24, %s5690_s7  ;;  %v2169_v29 = vmul.f32 %v6985_v10, %v5807_v12  ;;  %v2042_v24 = vmul.f32 %v7022_v59, %v5821_v21  ;;  %v9826_v50 = vld [vmem:[#allocation15_spill] sm:$0xff]  ;;  %v9833_v59 = vld [vmem:[#allocation20_spill] sm:$0xff] }
 0x667   : > { %v431_v39 = vsel %vm425_vm0, %v9832_v47, %v9833_v59  ;;  %v557_v59 = vsel %vm554_vm1, %v9836_v43, %v9837_v36  ;;  %v2168_v47 = vmul.f32 %v6985_v10, %v5811_v13 }
 0x668   : > { %v7373_v7 = vpop.permute.xlu1 %2592 }
 0x669   : > { %9820 = vst [vmem:[#allocation153_spill] sm:$0xff] %v7373_v7  ;;  %v7379_v22 = vpop.permute.xlu0 %2588 }
 0x66a   : > { %9821 = vst [vmem:[#allocation154_spill] sm:$0xff] %v7379_v22  ;;  %2092 = vrot.lane.b32.xlu0 %v2043_v15, %s5691_s8  ;;  %2086 = vrot.lane.b32.xlu1 %v2040_v51, %s5691_s8  ;;  %v264_v22 = vmul.f32 %v5811_v13, %v9824_v58  ;;  %v9825_v15 = vld [vmem:[#allocation14_spill] sm:$0xff] }
 0x66b   : > { %v426_v51 = vsel %vm425_vm0, %v9826_v50, %v9825_v15  ;;  %v427_v5 = vsel %vm425_vm0, %v9825_v15, %v9827_v2  ;;  %v266_v50 = vmul.f32 %v9701_v35, %v9824_v58  ;;  %v268_v15 = vmul.f32 %v9703_v40, %v9824_v58 }
 0x66c   : > { %v7383_v6 = vpop.permute.xlu1 %2713  ;;  %v458_v19 = vadd.f32 %v426_v51, %v264_v22 }
 0x66d   : > { %9822 = vst [vmem:[#allocation155_spill] sm:$0xff] %v7383_v6  ;;  %v7389_v7 = vpop.permute.xlu0 %2582  ;;  %v265_v6 = vmul.f32 %v5807_v12, %v9824_v58 }
 0x66e   : > { %9823 = vst [vmem:[#allocation156_spill] sm:$0xff] %v7389_v7  ;;  %2215 = vrot.lane.b32.xlu0 %v2169_v29, %s5692_s9  ;;  %2090 = vrot.lane.b32.xlu1 %v2042_v24, %s5691_s8  ;;  %v428_v29 = vsel %vm425_vm0, %v9827_v2, %v9828_v41  ;;  %v2171_v24 = vmul.f32 %v6985_v10, %v5821_v21 }
 0x66f   : > { %v429_v2 = vsel %vm425_vm0, %v9828_v41, %v9830_v49  ;;  %v459_v41 = vadd.f32 %v427_v5, %v265_v6  ;;  %v460_v57 = vadd.f32 %v428_v29, %v266_v50  ;;  %v556_v49 = vsel %vm554_vm1, %v9834_v11, %v9836_v43  ;;  %v9839_v29 = vld [vmem:[#allocation25_spill] sm:$0xff] }
 0x670   : > { %v7406_v7 = vpop.permute.xlu1 %2717  ;;  %v461_v22 = vadd.f32 %v429_v2, %v267_v45  ;;  %v462_v6 = vadd.f32 %v430_v55, %v268_v15  ;;  %v558_v11 = vsel %vm554_vm1, %v9837_v36, %v9839_v29  ;;  %v9843_v55 = vld [vmem:[#allocation28_spill] sm:$0xff]  ;;  %v9844_v15 = vld [vmem:[#allocation31_spill] sm:$0xff] }
 0x671   : > { %9829 = vst [vmem:[#allocation13_spill] sm:$0xff] %v7406_v7  ;;  %v7421_v7 = vpop.permute.xlu0 %2594  ;;  %v588_v45 = vadd.f32 %v556_v49, %v459_v41  ;;  %v686_v2 = vsel %vm683_vm2, %v9843_v55, %v9844_v15  ;;  %v2299_v41 = vmul.f32 %v6997_v44, %v9701_v35 }
 0x672   : > { %9831 = vst [vmem:[#allocation14_spill] sm:$0xff] %v7421_v7  ;;  %2219 = vrot.lane.b32.xlu0 %v2171_v24, %s5692_s9  ;;  %2084 = vrot.lane.b32.xlu1 %v2039_v26, %s5691_s8  ;;  %v269_v7 = vmul.f32 %v9702_v17, %v9824_v58  ;;  %v587_v26 = vadd.f32 %v555_v34, %v458_v19  ;;  %v9840_v24 = vld [vmem:[#allocation26_spill] sm:$0xff]  ;;  %v9842_v34 = vld [vmem:[#allocation27_spill] sm:$0xff] }
 0x673   : > { %v559_v43 = vsel %vm554_vm1, %v9839_v29, %v9840_v24  ;;  %v560_v50 = vsel %vm554_vm1, %v9840_v24, %v6045_v52  ;;  %v589_v19 = vadd.f32 %v557_v59, %v460_v57  ;;  %v9845_v29 = vld [vmem:[#allocation30_spill] sm:$0xff]  ;;  %v2172_v57 = vmul.f32 %v6985_v10, %v9703_v40 }
 0x674   : > { %v463_v5 = vadd.f32 %v431_v39, %v269_v7  ;;  %v7446_v51 = vpop.permute.xlu1 %2711  ;;  %v9841_v7 = vld [vmem:[#allocation29_spill] sm:$0xff]  ;;  %v687_v52 = vsel %vm683_vm2, %v9844_v15, %v9845_v29  ;;  %v590_v49 = vadd.f32 %v558_v11, %v461_v22  ;;  %v591_v59 = vadd.f32 %v559_v43, %v462_v6  ;;  %v9848_v15 = vld [vmem:[#allocation36_spill] sm:$0xff] }
 0x675   : > { %9838 = vst [vmem:[#allocation15_spill] sm:$0xff] %v7446_v51  ;;  %v7448_v58 = vpop.permute.xlu0 %2715  ;;  %v684_v39 = vsel %vm683_vm2, %v9842_v34, %v9841_v7  ;;  %v685_v36 = vsel %vm683_vm2, %v9841_v7, %v9843_v55  ;;  %v9847_v55 = vld [vmem:[#allocation39_spill] sm:$0xff]  ;;  %v9849_v51 = vld [vmem:[#allocation38_spill] sm:$0xff]  ;;  %v718_v11 = vadd.f32 %v686_v2, %v589_v19 }
 0x676   : > { %2213 = vrot.lane.b32.xlu0 %v2168_v47, %s5692_s9  ;;  %2217 = vrot.lane.b32.xlu1 %v2170_v61, %s5692_s9  ;;  %v592_v47 = vadd.f32 %v560_v50, %v463_v5  ;;  %v9846_v61 = vld [vmem:[#allocation32_spill] sm:$0xff]  ;;  %v813_v17 = vsel %vm812_vm3, %v9848_v15, %v9847_v55  ;;  %v814_v22 = vsel %vm812_vm3, %v9847_v55, %v9849_v51  ;;  %v9853_v2 = vld [vmem:[#allocation42_spill] sm:$0xff] }
 0x677   : > { %v688_v24 = vsel %vm683_vm2, %v9845_v29, %v9846_v61  ;;  %v689_v34 = vsel %vm683_vm2, %v9846_v61, %v6081_v18  ;;  %v716_v6 = vadd.f32 %v684_v39, %v587_v26  ;;  %v717_v5 = vadd.f32 %v685_v36, %v588_v45  ;;  %v9851_v29 = vld [vmem:[#allocation41_spill] sm:$0xff]  ;;  %v9852_v61 = vld [vmem:[#allocation40_spill] sm:$0xff] }
 0x678   : > { %v719_v43 = vadd.f32 %v687_v52, %v590_v49  ;;  %v7493_v50 = vpop.permute.xlu1 %2723  ;;  %v815_v18 = vsel %vm812_vm3, %v9849_v51, %v9851_v29  ;;  %v816_v15 = vsel %vm812_vm3, %v9851_v29, %v9852_v61  ;;  %v2301_v55 = vmul.f32 %v6997_v44, %v9703_v40  ;;  %v9855_v49 = vld [vmem:[#allocation50_spill] sm:$0xff] }
 0x679   : > { %v7480_v7 = vpop.permute.xlu0 %2719  ;;  %9850 = vst [vmem:[#allocation17_spill] sm:$0xff] %v7493_v50  ;;  %v720_v26 = vadd.f32 %v688_v24, %v591_v59  ;;  %v721_v45 = vadd.f32 %v689_v34, %v592_v47  ;;  %v845_v19 = vadd.f32 %v813_v17, %v716_v6  ;;  %v846_v39 = vadd.f32 %v814_v22, %v717_v5  ;;  %v9856_v47 = vld [vmem:[#allocation51_spill] sm:$0xff]  ;;  %v9857_v34 = vld [vmem:[#allocation54_spill] sm:$0xff]  ;;  %v9858_v6 = vld [vmem:[#allocation53_spill] sm:$0xff] }
 0x67a   : > { %2346 = vrot.lane.b32.xlu0 %v2299_v41, %s5693_s10  ;;  %2221 = vrot.lane.b32.xlu1 %v2172_v57, %s5692_s9  ;;  %v2298_v41 = vmul.f32 %v6997_v44, %v5807_v12  ;;  %v817_v51 = vsel %vm812_vm3, %v9852_v61, %v9853_v2  ;;  %v818_v52 = vsel %vm812_vm3, %v9853_v2, %v6115_v46  ;;  %v9854_v57 = vld [vmem:[#allocation52_spill] sm:$0xff]  ;;  %v9859_v5 = vld [vmem:[#allocation55_spill] sm:$0xff]  ;;  %v9896_v50 = vld [vmem:[#allocation105_spill] sm:$0xff] }
 0x67b   : > { %v942_v29 = vsel %vm941_vm4, %v9855_v49, %v9854_v57  ;;  %v847_v17 = vadd.f32 %v815_v18, %v718_v11  ;;  %v848_v59 = vadd.f32 %v816_v15, %v719_v43  ;;  %v943_v24 = vsel %vm941_vm4, %v9854_v57, %v9856_v47  ;;  %v9860_v49 = vld [vmem:[#allocation67_spill] sm:$0xff] }
 0x67c   : > { %v944_v22 = vsel %vm941_vm4, %v9856_v47, %v9857_v34  ;;  %v945_v46 = vsel %vm941_vm4, %v9857_v34, %v9858_v6  ;;  %v946_v61 = vsel %vm941_vm4, %v9858_v6, %v9859_v5  ;;  %v2297_v11 = vmul.f32 %v6997_v44, %v5811_v13  ;;  %v7537_v2 = vpop.permute.xlu1 %2975  ;;  %v9861_v47 = vld [vmem:[#allocation65_spill] sm:$0xff]  ;;  %v9862_v6 = vld [vmem:[#allocation66_spill] sm:$0xff] }
 0x67d   : > { %v7505_v36 = vpop.permute.xlu0 %2721  ;;  %v2300_v43 = vmul.f32 %v6997_v44, %v5821_v21  ;;  %v849_v18 = vadd.f32 %v817_v51, %v720_v26  ;;  %v850_v15 = vadd.f32 %v818_v52, %v721_v45  ;;  %v1071_v34 = vsel %vm1070_vm5, %v9861_v47, %v9860_v49  ;;  %v9863_v44 = vld [vmem:[#allocation69_spill] sm:$0xff]  ;;  %v9864_v52 = vld [vmem:[#allocation68_spill] sm:$0xff] }
 0x67e   : > { %2350 = vrot.lane.b32.xlu0 %v2301_v55, %s5693_s10  ;;  %2344 = vrot.lane.b32.xlu1 %v2298_v41, %s5693_s10  ;;  %v974_v55 = vadd.f32 %v942_v29, %v845_v19  ;;  %v947_v41 = vsel %vm941_vm4, %v9859_v5, %v6189_v23  ;;  %v1072_v10 = vsel %vm1070_vm5, %v9860_v49, %v9862_v6  ;;  %v9865_v5 = vld [vmem:[#allocation71_spill] sm:$0xff] }
 0x67f   : > { %v1073_v26 = vsel %vm1070_vm5, %v9862_v6, %v9863_v44  ;;  %v975_v23 = vadd.f32 %v943_v24, %v846_v39  ;;  %v976_v45 = vadd.f32 %v944_v22, %v847_v17  ;;  %v977_v19 = vadd.f32 %v945_v46, %v848_v59 }
 0x680   : > { %v978_v51 = vadd.f32 %v946_v61, %v849_v18  ;;  %v1074_v29 = vsel %vm1070_vm5, %v9863_v44, %v9864_v52  ;;  %v1075_v49 = vsel %vm1070_vm5, %v9864_v52, %v9865_v5  ;;  %v1076_v47 = vsel %vm1070_vm5, %v9865_v5, %v9673_v38 }
 0x681   : > { %v7539_v57 = vpop.permute.xlu0 %2973  ;;  %v1103_v39 = vadd.f32 %v1071_v34, %v974_v55  ;;  %v1104_v17 = vadd.f32 %v1072_v10, %v975_v23  ;;  %v1105_v59 = vadd.f32 %v1073_v26, %v976_v45  ;;  %v1200_v44 = vsel %vm1199_vm6, %v6373_v31, %v6401_v53  ;;  %v5597_v10 = vld [vmem:[%s9308_s1 + $0x8] sm:$0xff] }
 0x682   : > { %2342 = vrot.lane.b32.xlu0 %v2297_v11, %s5693_s10  ;;  %2348 = vrot.lane.b32.xlu1 %v2300_v43, %s5693_s10  ;;  %v2428_v11 = vmul.f32 %v7036_v3, %v9701_v35  ;;  %v979_v43 = vadd.f32 %v947_v41, %v850_v15  ;;  %v1201_v22 = vsel %vm1199_vm6, %v6401_v53, %v6371_v30  ;;  %v7581_v15 = vpop.permute.xlu1 %2979  ;;  %vm2489_vm5 = vcmask 244736  }
 0x683   : > { %v1202_v38 = vsel %vm1199_vm6, %v6371_v30, %v6426_v25  ;;  %v1106_v46 = vadd.f32 %v1074_v29, %v977_v19  ;;  %v1107_v61 = vadd.f32 %v1075_v49, %v978_v51  ;;  %v1203_v31 = vsel %vm1199_vm6, %v6426_v25, %v6399_v8 }
 0x684   : > { %v1108_v18 = vadd.f32 %v1076_v47, %v979_v43  ;;  %v1204_v30 = vsel %vm1199_vm6, %v6399_v8, %v6451_v14  ;;  %v1205_v53 = vsel %vm1199_vm6, %v6451_v14, %v6424_v27  ;;  %v2430_v55 = vmul.f32 %v7036_v3, %v9703_v40 }
 0x685   : > { %v7563_v24 = vpop.permute.xlu0 %2977  ;;  %v2427_v41 = vmul.f32 %v7036_v3, %v5807_v12  ;;  %v1232_v34 = vadd.f32 %v1200_v44, %v1103_v39  ;;  %v1233_v6 = vadd.f32 %v1201_v22, %v1104_v17  ;;  %v1234_v26 = vadd.f32 %v1202_v38, %v1105_v59  ;;  %v9867_v17 = vld [vmem:[#allocation46_spill] sm:$0xff]  ;;  %v9868_v38 = vld [vmem:[#allocation45_spill] sm:$0xff] }
 0x686   : > { %2475 = vrot.lane.b32.xlu0 %v2428_v11, %s5694_s11  ;;  %2802 = vperm.xlu1 %5511, %v5597_v10   ;;  %v1329_v25 = vsel %vm1328_vm7, %v6628_v56, %v6626_v1  ;;  %v1330_v8 = vsel %vm1328_vm7, %v6626_v1, %v6632_v28  ;;  %v1331_v27 = vsel %vm1328_vm7, %v6632_v28, %v6630_v32  ;;  %v7620_v47 = vpop.permute.xlu1 %2981  ;;  %v9869_v10 = vld [vmem:[#allocation74_spill] sm:$0xff]  ;;  %vm2618_vm6 = vcmask 236544  }
 0x687   : > { %v1332_v14 = vsel %vm1328_vm7, %v6630_v32, %v6636_v63  ;;  %v1235_v45 = vadd.f32 %v1203_v31, %v1106_v46  ;;  %v1236_v56 = vadd.f32 %v1204_v30, %v1107_v61  ;;  %v1237_v19 = vadd.f32 %v1205_v53, %v1108_v18  ;;  %v9870_v61 = vld [vmem:[#allocation75_spill] sm:$0xff]  ;;  %v9871_v31 = vld [vmem:[#allocation48_spill] sm:$0xff] }
 0x688   : > { %v1333_v51 = vsel %vm1328_vm7, %v6636_v63, %v6634_v33  ;;  %v1361_v1 = vadd.f32 %v1329_v25, %v1232_v34  ;;  %v1334_v28 = vsel %vm1328_vm7, %v6634_v33, %v6638_v20  ;;  %v2556_v32 = vmul.f32 %v7010_v42, %v5807_v12 }
 0x689   : > { %v7596_v23 = vpop.permute.xlu0 %2971  ;;  %v2429_v52 = vmul.f32 %v7036_v3, %v5821_v21  ;;  %v1362_v29 = vadd.f32 %v1330_v8, %v1233_v6  ;;  %v1363_v5 = vadd.f32 %v1331_v27, %v1234_v26  ;;  %v1364_v49 = vadd.f32 %v1332_v14, %v1235_v45 }
 0x68a   : > { %2479 = vrot.lane.b32.xlu0 %v2430_v55, %s5694_s11  ;;  %2473 = vrot.lane.b32.xlu1 %v2427_v41, %s5694_s11  ;;  %v1458_v11 = vsel %vm1457_vm8, %v6723_v62, %v6727_v37  ;;  %v1459_v33 = vsel %vm1457_vm8, %v6727_v37, %v6721_v48  ;;  %v1366_v20 = vadd.f32 %v1334_v28, %v1237_v19  ;;  %v7667_v34 = vpop.permute.xlu1 %3101  ;;  %v9873_v19 = vld [vmem:[#allocation97_spill] sm:$0xff]  ;;  %vm2747_vm7 = vcmask 228352  }
 0x68b   : > { %5512 = vset.pattern.permute.xlu1 %v9717_v54  ;;  %v1365_v54 = vadd.f32 %v1333_v51, %v1236_v56  ;;  %v1460_v43 = vsel %vm1457_vm8, %v6721_v48, %v6731_v4  ;;  %v1461_v39 = vsel %vm1457_vm8, %v6731_v4, %v6725_v60  ;;  %v1462_v62 = vsel %vm1457_vm8, %v6725_v60, %v6733_v16  ;;  %v9872_v56 = vld [vmem:[#allocation89_spill] sm:$0xff] }
 0x68c   : > { %v1463_v37 = vsel %vm1457_vm8, %v6733_v16, %v6729_v9  ;;  %v1587_v59 = vsel %vm1586_vm9, %v9867_v17, %v6835_v0  ;;  %v2558_v44 = vmul.f32 %v7010_v42, %v5821_v21  ;;  %v2426_v48 = vmul.f32 %v7036_v3, %v5811_v13 }
 0x68d   : > { %v7622_v63 = vpop.permute.xlu0 %2983  ;;  %v1490_v22 = vadd.f32 %v1458_v11, %v1361_v1  ;;  %v1491_v4 = vadd.f32 %v1459_v33, %v1362_v29  ;;  %v1588_v60 = vsel %vm1586_vm9, %v6835_v0, %v9868_v38  ;;  %v1589_v9 = vsel %vm1586_vm9, %v9868_v38, %v9869_v10  ;;  %v9874_v1 = vld [vmem:[#allocation100_spill] sm:$0xff]  ;;  %v9878_v33 = vld [vmem:[#allocation91_spill] sm:$0xff]  ;;  %v9883_v38 = vld [vmem:[#allocation93_spill] sm:$0xff] }
 0x68e   : > { %9866 = vst [vmem:[#allocation16_spill] sm:$0xff] %v7622_v63  ;;  %2602 = vrot.lane.b32.xlu0 %v2556_v32, %s5695_s12  ;;  %2477 = vrot.lane.b32.xlu1 %v2429_v52, %s5694_s11  ;;  %v1492_v46 = vadd.f32 %v1460_v43, %v1363_v5  ;;  %v1590_v18 = vsel %vm1586_vm9, %v9869_v10, %v9870_v61  ;;  %v9875_v32 = vld [vmem:[#allocation104_spill] sm:$0xff]  ;;  %v9876_v5 = vld [vmem:[#allocation103_spill] sm:$0xff]  ;;  %v9880_v43 = vld [vmem:[#allocation86_spill] sm:$0xff]  ;;  %vm3499_vm8 = vcmask 277504  }
 0x68f   : > { %v1591_v30 = vsel %vm1586_vm9, %v9870_v61, %v9871_v31  ;;  %v1493_v0 = vadd.f32 %v1461_v39, %v1364_v49  ;;  %v1494_v53 = vadd.f32 %v1462_v62, %v1365_v54  ;;  %v1495_v55 = vadd.f32 %v1463_v37, %v1366_v20  ;;  %v9877_v54 = vld [vmem:[#allocation107_spill] sm:$0xff]  ;;  %v9894_v63 = vld [vmem:[#allocation106_spill] sm:$0xff] }
 0x690   : > { %v1619_v41 = vadd.f32 %v1587_v59, %v1490_v22  ;;  %v1620_v6 = vadd.f32 %v1588_v60, %v1491_v4  ;;  %v1621_v26 = vadd.f32 %v1589_v9, %v1492_v46  ;;  %v2555_v25 = vmul.f32 %v7010_v42, %v5811_v13  ;;  %v7709_v59 = vpop.permute.xlu1 %3105  ;;  %v9881_v22 = vld [vmem:[#allocation88_spill] sm:$0xff]  ;;  %v9884_v60 = vld [vmem:[#allocation94_spill] sm:$0xff] }
 0x691   : > { %v7657_v16 = vpop.permute.xlu0 %3103  ;;  %v2557_v8 = vmul.f32 %v7010_v42, %v9701_v35  ;;  %v1622_v27 = vadd.f32 %v1590_v18, %v1493_v0  ;;  %v1623_v14 = vadd.f32 %v1591_v30, %v1494_v53  ;;  %v2945_v51 = vmul.f32 %v9873_v19, %v9872_v56  ;;  %v9885_v46 = vld [vmem:[#allocation90_spill] sm:$0xff]  ;;  %v9886_v30 = vld [vmem:[#allocation96_spill] sm:$0xff]  ;;  %v9887_v53 = vld [vmem:[#allocation95_spill] sm:$0xff] }
 0x692   : > { %2606 = vrot.lane.b32.xlu0 %v2558_v44, %s5695_s12  ;;  %2471 = vrot.lane.b32.xlu1 %v2426_v48, %s5694_s11  ;;  %v7681_v28 = vmul.f32 %v9874_v1, %v9872_v56  ;;  %v7685_v52 = vmul.f32 %v9875_v32, %v9872_v56  ;;  %v2559_v29 = vmul.f32 %v7010_v42, %v9703_v40 }
 0x693   : > { %v7691_v49 = vmul.f32 %v9876_v5, %v9872_v56  ;;  %v7695_v11 = vmul.f32 %v9877_v54, %v9872_v56  ;;  %v7699_v20 = vmul.f32 %v9878_v33, %v9873_v19  ;;  %v2686_v39 = vmul.f32 %v9880_v43, %v9701_v35 }
 0x694   : > { %v2688_v62 = vmul.f32 %v9880_v43, %v9703_v40  ;;  %v2685_v37 = vmul.f32 %v9880_v43, %v5807_v12  ;;  %v2687_v17 = vmul.f32 %v9880_v43, %v5821_v21  ;;  %v7715_v48 = vmul.f32 %v9880_v43, %v5811_v13  ;;  %v9882_v21 = vld [vmem:[#allocation92_spill] sm:$0xff]  ;;  %v9890_v43 = vld [vmem:[#allocation102_spill] sm:$0xff] }
 0x695   : > { %v7673_v45 = vpop.permute.xlu0 %3107  ;;  %9879 = vst [vmem:[#allocation19_spill] sm:$0xff] %v7699_v20  ;;  %v7719_v35 = vmul.f32 %v9881_v22, %v9876_v5  ;;  %v7723_v40 = vmul.f32 %v9881_v22, %v9877_v54  ;;  %v7727_v12 = vmul.f32 %v9881_v22, %v9873_v19  ;;  %v1592_v4 = vsel %vm1586_vm9, %v9871_v31, %v9882_v21 }
 0x696   : > { %2600 = vrot.lane.b32.xlu0 %v2555_v25, %s5695_s12  ;;  %2604 = vrot.lane.b32.xlu1 %v2557_v8, %s5695_s12  ;;  %v1717_v13 = vsel %vm1715_vm10, %v9884_v60, %v9883_v38  ;;  %v7739_v10 = vmul.f32 %v9881_v22, %v9875_v32  ;;  %v7743_v9 = vmul.f32 %v9881_v22, %v9874_v1  ;;  %v9888_v8 = vld [vmem:[#allocation98_spill] sm:$0xff] }
 0x697   : > { %v7747_v61 = vmul.f32 %v9885_v46, %v9876_v5  ;;  %v7751_v18 = vmul.f32 %v9885_v46, %v9877_v54  ;;  %v7755_v31 = vmul.f32 %v9885_v46, %v9873_v19  ;;  %v1718_v0 = vsel %vm1715_vm10, %v9883_v38, %v9886_v30 }
 0x698   : > { %v1719_v25 = vsel %vm1715_vm10, %v9886_v30, %v9887_v53  ;;  %v1624_v22 = vadd.f32 %v1592_v4, %v1495_v55  ;;  %v1749_v56 = vadd.f32 %v1717_v13, %v1620_v6  ;;  %v1721_v42 = vsel %vm1715_vm10, %v9888_v8, %v9890_v43  ;;  %v9897_v6 = vld [vmem:[#allocation109_spill] sm:$0xff]  ;;  %v9898_v43 = vld [vmem:[#allocation110_spill] sm:$0xff] }
 0x699   : > { %v7711_v44 = vpop.permute.xlu0 %3099  ;;  %v7778_v30 = vmul.f32 %v9885_v46, %v9874_v1  ;;  %v1847_v55 = vsel %vm1844_vm11, %v9894_v63, %v9896_v50  ;;  %v1751_v13 = vadd.f32 %v1719_v25, %v1622_v27  ;;  %v9899_v46 = vld [vmem:[#allocation113_spill] sm:$0xff]  ;;  %v9905_v25 = vld [vmem:[#allocation116_spill] sm:$0xff] }
 0x69a   : > { %2733 = vrot.lane.b32.xlu0 %v2686_v39, %s5696_s13  ;;  %2608 = vrot.lane.b32.xlu1 %v2559_v29, %s5695_s12  ;;  %v1720_v29 = vsel %vm1715_vm10, %v9887_v53, %v9888_v8  ;;  %v9889_v39 = vld [vmem:[#allocation99_spill] sm:$0xff]  ;;  %v9895_v53 = vld [vmem:[#allocation101_spill] sm:$0xff]  ;;  %v1753_v27 = vadd.f32 %v1721_v42, %v1624_v22 }
 0x69b   : > { %v1716_v21 = vsel %vm1715_vm10, %v9889_v39, %v9884_v60  ;;  %9893 = vst [vmem:[#allocation22_spill] sm:$0xff] %v7778_v30  ;;  %v1846_v33 = vsel %vm1844_vm11, %v9895_v53, %v9894_v63  ;;  %v1845_v4 = vsel %vm1844_vm11, %v9897_v6, %v9895_v53  ;;  %v1750_v60 = vadd.f32 %v1718_v0, %v1621_v26  ;;  %v9900_v30 = vld [vmem:[#allocation112_spill] sm:$0xff]  ;;  %v9902_v6 = vld [vmem:[#allocation115_spill] sm:$0xff] }
 0x69c   : > { %v1752_v8 = vadd.f32 %v1720_v29, %v1623_v14  ;;  %v1748_v39 = vadd.f32 %v1716_v21, %v1619_v41  ;;  %v1849_v63 = vsel %vm1844_vm11, %v9898_v43, %v9899_v46  ;;  %v1850_v53 = vsel %vm1844_vm11, %v9899_v46, %v9900_v30  ;;  %v9906_v29 = vld [vmem:[#allocation118_spill] sm:$0xff] }
 0x69d   : > { %v7772_v3 = vpop.permute.xlu0 %3111  ;;  %v7774_v38 = vpop.permute.xlu1 %3443  ;;  %v1878_v14 = vadd.f32 %v1846_v33, %v1749_v56  ;;  %v1879_v41 = vadd.f32 %v1847_v55, %v1750_v60  ;;  %v1978_v30 = vsel %vm1973_vm12, %v9905_v25, %v9906_v29  ;;  %v1882_v33 = vadd.f32 %v1850_v53, %v1753_v27  ;;  %v9907_v55 = vld [vmem:[#allocation119_spill] sm:$0xff]  ;;  %v9908_v60 = vld [vmem:[#allocation121_spill] sm:$0xff] }
 0x69e   : > { %9891 = vst [vmem:[#allocation18_spill] sm:$0xff] %v7772_v3  ;;  %9892 = vst [vmem:[#allocation20_spill] sm:$0xff] %v7774_v38  ;;  %2737 = vrot.lane.b32.xlu0 %v2688_v62, %s5696_s13  ;;  %2731 = vrot.lane.b32.xlu1 %v2685_v37, %s5696_s13  ;;  %v1848_v3 = vsel %vm1844_vm11, %v9896_v50, %v9898_v43  ;;  %v9901_v62 = vld [vmem:[#allocation114_spill] sm:$0xff]  ;;  %v1877_v37 = vadd.f32 %v1845_v4, %v1748_v39  ;;  %v9904_v50 = vld [vmem:[#allocation117_spill] sm:$0xff] }
 0x69f   : > { %v1975_v26 = vsel %vm1973_vm12, %v9902_v6, %v9901_v62  ;;  %v1976_v43 = vsel %vm1973_vm12, %v9901_v62, %v9904_v50  ;;  %v1977_v46 = vsel %vm1973_vm12, %v9904_v50, %v9905_v25  ;;  %v1880_v42 = vadd.f32 %v1848_v3, %v1751_v13  ;;  %v9909_v62 = vld [vmem:[#allocation123_spill] sm:$0xff]  ;;  %v9910_v50 = vld [vmem:[#allocation120_spill] sm:$0xff] }
 0x6a0   : > { %v1881_v56 = vadd.f32 %v1849_v63, %v1752_v8  ;;  %v2007_v22 = vadd.f32 %v1975_v26, %v1878_v14  ;;  %v1974_v4 = vsel %vm1973_vm12, %v9907_v55, %v9902_v6  ;;  %v1979_v39 = vsel %vm1973_vm12, %v9906_v29, %v9908_v60  ;;  %v9912_v8 = vld [vmem:[#allocation125_spill] sm:$0xff]  ;;  %v9913_v26 = vld [vmem:[#allocation124_spill] sm:$0xff]  ;;  %v9914_v14 = vld [vmem:[#allocation126_spill] sm:$0xff] }
 0x6a1   : > { %v7803_v21 = vpop.permute.xlu0 %3231  ;;  %v7805_v0 = vpop.permute.xlu1 %3109  ;;  %v2104_v25 = vsel %vm2102_vm13, %v9910_v50, %v9909_v62  ;;  %v2008_v3 = vadd.f32 %v1976_v43, %v1879_v41  ;;  %v2103_v63 = vsel %vm2102_vm13, %v9912_v8, %v9910_v50  ;;  %v2107_v29 = vsel %vm2102_vm13, %v9913_v26, %v9914_v14  ;;  %v9915_v55 = vld [vmem:[#allocation127_spill] sm:$0xff]  ;;  %v9918_v50 = vld [vmem:[#allocation129_spill] sm:$0xff]  ;;  %v9925_v60 = vld [vmem:[#allocation140_spill] sm:$0xff] }
 0x6a2   : > { %9903 = vst [vmem:[#allocation21_spill] sm:$0xff] %v7805_v0  ;;  %2991 = vrot.lane.b32.xlu0 %v2945_v51, %s5658_s17  ;;  %2735 = vrot.lane.b32.xlu1 %v2687_v17, %s5696_s13  ;;  %v9911_v0 = vld [vmem:[#allocation122_spill] sm:$0xff]  ;;  %v2009_v17 = vadd.f32 %v1977_v46, %v1880_v42  ;;  %v2010_v13 = vadd.f32 %v1978_v30, %v1881_v56  ;;  %v9917_v56 = vld [vmem:[#allocation128_spill] sm:$0xff] }
 0x6a3   : > { %v2105_v51 = vsel %vm2102_vm13, %v9909_v62, %v9911_v0  ;;  %v2106_v27 = vsel %vm2102_vm13, %v9911_v0, %v9913_v26  ;;  %v2108_v30 = vsel %vm2102_vm13, %v9914_v14, %v9915_v55  ;;  %v2006_v41 = vadd.f32 %v1974_v4, %v1877_v37  ;;  %v9916_v0 = vld [vmem:[#allocation130_spill] sm:$0xff]  ;;  %v9919_v26 = vld [vmem:[#allocation132_spill] sm:$0xff]  ;;  %v9924_v55 = vld [vmem:[#allocation137_spill] sm:$0xff] }
 0x6a4   : > { %v2011_v43 = vadd.f32 %v1979_v39, %v1882_v33  ;;  %v2136_v46 = vadd.f32 %v2104_v25, %v2007_v22  ;;  %v2137_v42 = vadd.f32 %v2105_v51, %v2008_v3  ;;  %v2233_v62 = vsel %vm2231_vm14, %v9917_v56, %v9916_v0  ;;  %v9922_v51 = vld [vmem:[#allocation131_spill] sm:$0xff] }
 0x6a5   : > { %v7833_v53 = vpop.permute.xlu0 %3235  ;;  %v7835_v6 = vpop.permute.xlu1 %3229  ;;  %v2234_v8 = vsel %vm2231_vm14, %v9916_v0, %v9918_v50  ;;  %v2235_v14 = vsel %vm2231_vm14, %v9918_v50, %v9919_v26  ;;  %v2135_v37 = vadd.f32 %v2103_v63, %v2006_v41  ;;  %v2138_v33 = vadd.f32 %v2106_v27, %v2009_v17  ;;  %v9923_v0 = vld [vmem:[#allocation134_spill] sm:$0xff]  ;;  %v9927_v41 = vld [vmem:[#allocation136_spill] sm:$0xff] }
 0x6a6   : > { %2995 = vrot.lane.b32.xlu0 %v7681_v28, %s5658_s17  ;;  %2729 = vrot.lane.b32.xlu1 %v7715_v48, %s5696_s13  ;;  %v9920_v28 = vld [vmem:[#allocation135_spill] sm:$0xff]  ;;  %v2139_v22 = vadd.f32 %v2107_v29, %v2010_v13  ;;  %v2140_v4 = vadd.f32 %v2108_v30, %v2011_v43  ;;  %v2232_v3 = vsel %vm2231_vm14, %v9922_v51, %v9917_v56  ;;  %v9926_v29 = vld [vmem:[#allocation133_spill] sm:$0xff]  ;;  %v9928_v56 = vld [vmem:[#allocation146_spill] sm:$0xff] }
 0x6a7   : > { %v2236_v48 = vsel %vm2231_vm14, %v9919_v26, %v9920_v28  ;;  %v2362_v50 = vsel %vm2360_vm15, %v9924_v55, %v9923_v0  ;;  %v2363_v26 = vsel %vm2360_vm15, %v9923_v0, %v9925_v60  ;;  %v2265_v17 = vadd.f32 %v2233_v62, %v2136_v46  ;;  %v9929_v51 = vld [vmem:[#allocation141_spill] sm:$0xff] }
 0x6a8   : > { %v2266_v13 = vadd.f32 %v2234_v8, %v2137_v42  ;;  %v2267_v63 = vadd.f32 %v2235_v14, %v2138_v33  ;;  %v2268_v27 = vadd.f32 %v2236_v48, %v2139_v22  ;;  %v2237_v30 = vsel %vm2231_vm14, %v9920_v28, %v9926_v29  ;;  %v9931_v8 = vld [vmem:[#allocation138_spill] sm:$0xff]  ;;  %v9935_v22 = vld [vmem:[#allocation149_spill] sm:$0xff]  ;;  %v9936_v29 = vld [vmem:[#allocation152_spill] sm:$0xff] }
 0x6a9   : > { %v7862_v39 = vpop.permute.xlu0 %1570  ;;  %v7864_v25 = vpop.permute.xlu1 %3233  ;;  %v2364_v43 = vsel %vm2360_vm15, %v9925_v60, %v9927_v41  ;;  %v2491_v0 = vsel %vm2489_vm5, %v9929_v51, %v9928_v56  ;;  %v2264_v46 = vadd.f32 %v2232_v3, %v2135_v37  ;;  %v2394_v42 = vadd.f32 %v2362_v50, %v2265_v17  ;;  %v9934_v60 = vld [vmem:[#allocation139_spill] sm:$0xff] }
 0x6aa   : > { %9921 = vst [vmem:[#allocation23_spill] sm:$0xff] %v7862_v39  ;;  %2989 = vrot.lane.b32.xlu0 %v7685_v52, %s5658_s17  ;;  %2993 = vrot.lane.b32.xlu1 %v7691_v49, %s5658_s17  ;;  %v9930_v52 = vld [vmem:[#allocation143_spill] sm:$0xff]  ;;  %v2395_v62 = vadd.f32 %v2363_v26, %v2266_v13  ;;  %v2361_v14 = vsel %vm2360_vm15, %v9931_v8, %v9924_v55  ;;  %v9938_v13 = vld [vmem:[#allocation148_spill] sm:$0xff] }
 0x6ab   : > { %v2492_v49 = vsel %vm2489_vm5, %v9928_v56, %v9930_v52  ;;  %v2365_v33 = vsel %vm2360_vm15, %v9927_v41, %v9934_v60  ;;  %v2620_v39 = vsel %vm2618_vm6, %v9936_v29, %v9935_v22  ;;  %v9937_v56 = vld [vmem:[#allocation154_spill] sm:$0xff]  ;;  %v2269_v55 = vadd.f32 %v2237_v30, %v2140_v4  ;;  %v9939_v8 = vld [vmem:[#allocation155_spill] sm:$0xff] }
 0x6ac   : > { %v2621_v37 = vsel %vm2618_vm6, %v9935_v22, %v9937_v56  ;;  %v2396_v3 = vadd.f32 %v2364_v43, %v2267_v63  ;;  %v2523_v50 = vadd.f32 %v2491_v0, %v2394_v42  ;;  %v2524_v26 = vadd.f32 %v2492_v49, %v2395_v62  ;;  %v9940_v22 = vld [vmem:[#allocation13_spill] sm:$0xff]  ;;  %v9941_v4 = vld [vmem:[#allocation142_spill] sm:$0xff]  ;;  %v9943_v49 = vld [vmem:[#allocation151_spill] sm:$0xff] }
 0x6ad   : > { %v7894_v28 = vpop.permute.xlu0 %1574  ;;  %v7896_v48 = vpop.permute.xlu1 %3227  ;;  %v2393_v17 = vadd.f32 %v2361_v14, %v2264_v46  ;;  %v2493_v41 = vsel %vm2489_vm5, %v9930_v52, %v9938_v13  ;;  %v2397_v20 = vadd.f32 %v2365_v33, %v2268_v27  ;;  %v2847_v63 = vmul.f32 %v9873_v19, %v9941_v4  ;;  %v9942_v0 = vld [vmem:[#allocation150_spill] sm:$0xff]  ;;  %v9944_v14 = vld [vmem:[#allocation145_spill] sm:$0xff] }
 0x6ae   : > { %9932 = vst [vmem:[#allocation24_spill] sm:$0xff] %v7894_v28  ;;  %9933 = vst [vmem:[#allocation25_spill] sm:$0xff] %v7896_v48  ;;  %3121 = vrot.lane.b32.xlu0 %v7719_v35, %s5660_s18  ;;  %2997 = vrot.lane.b32.xlu1 %v7695_v11, %s5658_s17  ;;  %v2749_v28 = vsel %vm2747_vm7, %v9939_v8, %v7448_v58  ;;  %v2750_v35 = vsel %vm2747_vm7, %v7448_v58, %v9940_v22 }
 0x6af   : > { %v2652_v48 = vadd.f32 %v2620_v39, %v2523_v50  ;;  %v2653_v11 = vadd.f32 %v2621_v37, %v2524_v26  ;;  %v2494_v52 = vsel %vm2489_vm5, %v9938_v13, %v9942_v0  ;;  %v2622_v46 = vsel %vm2618_vm6, %v9937_v56, %v9943_v49  ;;  %v9945_v37 = vld [vmem:[#allocation144_spill] sm:$0xff] }
 0x6b0   : > { %v7934_v58 = vmul.f32 %v9877_v54, %v9941_v4  ;;  %v2525_v39 = vadd.f32 %v2493_v41, %v2396_v3  ;;  %v2848_v62 = vmul.f32 %v9876_v5, %v9941_v4  ;;  %v2490_v33 = vsel %vm2489_vm5, %v9944_v14, %v9929_v51  ;;  %v9946_v3 = vld [vmem:[#allocation153_spill] sm:$0xff]  ;;  %v9948_v41 = vld [vmem:[#allocation156_spill] sm:$0xff] }
 0x6b1   : > { %v7922_v30 = vpop.permute.xlu0 %3237  ;;  %v7924_v43 = vpop.permute.xlu1 %1572  ;;  %v2781_v27 = vadd.f32 %v2749_v28, %v2652_v48  ;;  %v2782_v42 = vadd.f32 %v2750_v35, %v2653_v11  ;;  %v2751_v56 = vsel %vm2747_vm7, %v9940_v22, %v7480_v7  ;;  %v2366_v28 = vsel %vm2360_vm15, %v9934_v60, %v9945_v37  ;;  %v9988_v37 = vld [vmem:[#allocation77_spill] sm:$0xff] }
 0x6b2   : > { %3125 = vrot.lane.b32.xlu0 %v7723_v40, %s5660_s18  ;;  %3119 = vrot.lane.b32.xlu1 %v7727_v12, %s5660_s18  ;;  %v2849_v40 = vmul.f32 %v9874_v1, %v9941_v4  ;;  %v2846_v12 = vmul.f32 %v9875_v32, %v9941_v4  ;;  %v2526_v48 = vadd.f32 %v2494_v52, %v2397_v20 }
 0x6b3   : > { %v2623_v50 = vsel %vm2618_vm6, %v9943_v49, %v9946_v3  ;;  %v2654_v51 = vadd.f32 %v2622_v46, %v2525_v39  ;;  %v2619_v22 = vsel %vm2618_vm6, %v9948_v41, %v9936_v29  ;;  %v3008_v35 = vsel %vm425_vm0, %v7539_v57, %v7537_v2  ;;  %v3440_v29 = vld [vmem:[%s9309_s2 + $0x8] sm:$0xff]  ;;  %v9949_v39 = vld [vmem:[#allocation15_spill] sm:$0xff] }
 0x6b4   : > { %v3009_v20 = vsel %vm425_vm0, %v7537_v2, %v7563_v24  ;;  %v2522_v60 = vadd.f32 %v2490_v33, %v2393_v17  ;;  %v2863_v52 = vadd.f32 %v2847_v63, %v2781_v27  ;;  %v2864_v49 = vadd.f32 %v2848_v62, %v2782_v42  ;;  %v9951_v41 = vld [vmem:[#allocation147_spill] sm:$0xff] }
 0x6b5   : > { %v7958_v26 = vpop.permute.xlu0 %3357  ;;  %v7960_v13 = vpop.permute.xlu1 %1576  ;;  %v2783_v11 = vadd.f32 %v2751_v56, %v2654_v51  ;;  %v2655_v46 = vadd.f32 %v2623_v50, %v2526_v48  ;;  %v2748_v14 = vsel %vm2747_vm7, %v9949_v39, %v9939_v8  ;;  %v3136_v2 = vsel %vm554_vm1, %v7667_v34, %v7657_v16 }
 0x6b6   : > { %9947 = vst [vmem:[#allocation26_spill] sm:$0xff] %v7960_v13  ;;  %3117 = vrot.lane.b32.xlu0 %v7739_v10, %s5660_s18  ;;  %3123 = vrot.lane.b32.xlu1 %v7743_v9, %s5660_s18  ;;  %v3137_v10 = vsel %vm554_vm1, %v7657_v16, %v7709_v59  ;;  %v2651_v9 = vadd.f32 %v2619_v22, %v2522_v60 }
 0x6b7   : > { %v2752_v17 = vsel %vm2747_vm7, %v7480_v7, %v7505_v36  ;;  %v3040_v63 = vadd.f32 %v3008_v35, %v2863_v52  ;;  %v3041_v27 = vadd.f32 %v3009_v20, %v2864_v49  ;;  %v3010_v8 = vsel %vm425_vm0, %v7563_v24, %v7581_v15 }
 0x6b8   : > { %v3264_v33 = vsel %vm683_vm2, %v7835_v6, %v7803_v21  ;;  %v3265_v16 = vsel %vm683_vm2, %v7803_v21, %v7864_v25  ;;  %v2780_v7 = vadd.f32 %v2748_v14, %v2651_v9  ;;  %v2865_v56 = vadd.f32 %v2849_v40, %v2783_v11 }
 0x6b9   : > { %v3362_v42 = vpop.permute.xlu0 %3361  ;;  %v7990_v62 = vpop.permute.xlu1 %3239  ;;  %v3168_v48 = vadd.f32 %v3136_v2, %v3040_v63  ;;  %v3169_v50 = vadd.f32 %v3137_v10, %v3041_v27  ;;  %v2398_v51 = vadd.f32 %v2366_v28, %v2269_v55  ;;  %v2495_v24 = vsel %vm2489_vm5, %v9942_v0, %v9951_v41 }
 0x6ba   : > { %9950 = vst [vmem:[#allocation29_spill] sm:$0xff] %v7990_v62  ;;  %3249 = vrot.lane.b32.xlu0 %v7747_v61, %s5661_s19  ;;  %3448 = vperm.xlu1 %5512, %v3440_v29   ;;  %v2784_v22 = vadd.f32 %v2752_v17, %v2655_v46  ;;  %v3138_v35 = vsel %vm554_vm1, %v7709_v59, %v7673_v45  ;;  %v9952_v29 = vld [vmem:[#allocation14_spill] sm:$0xff] }
 0x6bb   : > { %v3042_v20 = vadd.f32 %v3010_v8, %v2865_v56  ;;  %v3007_v61 = vsel %vm425_vm0, %v7596_v23, %v7539_v57  ;;  %v3296_v21 = vadd.f32 %v3264_v33, %v3168_v48  ;;  %v3297_v60 = vadd.f32 %v3265_v16, %v3169_v50  ;;  %v9957_v17 = vld [vmem:[#allocation22_spill] sm:$0xff]  ;;  %v9958_v16 = vld [vmem:[#allocation17_spill] sm:$0xff] }
 0x6bc   : > { %v3266_v55 = vsel %vm683_vm2, %v7864_v25, %v7833_v53  ;;  %v2862_v57 = vadd.f32 %v2846_v12, %v2780_v7  ;;  %v2527_v49 = vadd.f32 %v2495_v24, %v2398_v51  ;;  %v2624_v25 = vsel %vm2618_vm6, %v9946_v3, %v9952_v29  ;;  %v9959_v7 = vld [vmem:[#allocation21_spill] sm:$0xff]  ;;  %v9961_v48 = vld [vmem:[#allocation90_spill] sm:$0xff] }
 0x6bd   : > { %v8012_v40 = vpop.permute.xlu0 %1568  ;;  %v3360_v11 = vpop.permute.xlu1 %3359  ;;  %v3170_v23 = vadd.f32 %v3138_v35, %v3042_v20  ;;  %v2866_v46 = vadd.f32 %v7934_v58, %v2784_v22  ;;  %v3135_v39 = vsel %vm554_vm1, %v7711_v44, %v7667_v34  ;;  %v3011_v3 = vsel %vm425_vm0, %v7581_v15, %v7620_v47  ;;  %v9955_v58 = vld [vmem:[#allocation25_spill] sm:$0xff]  ;;  %v9956_v44 = vld [vmem:[#allocation19_spill] sm:$0xff] }
 0x6be   : > { %v3392_v0 = vsel %vm812_vm3, %v7958_v26, %v3360_v11  ;;  %v3393_v28 = vsel %vm812_vm3, %v3360_v11, %v3362_v42  ;;  %3253 = vrot.lane.b32.xlu0 %v7751_v18, %s5661_s19  ;;  %3247 = vrot.lane.b32.xlu1 %v7755_v31, %s5661_s19  ;;  %v3039_v14 = vadd.f32 %v3007_v61, %v2862_v57 }
 0x6bf   : > { %v3424_v59 = vadd.f32 %v3392_v0, %v3296_v21  ;;  %v3425_v52 = vadd.f32 %v3393_v28, %v3297_v60  ;;  %v3298_v18 = vadd.f32 %v3266_v55, %v3170_v23  ;;  %v3263_v9 = vsel %vm683_vm2, %v9955_v58, %v7835_v6 }
 0x6c0   : > { %v3167_v63 = vadd.f32 %v3135_v39, %v3039_v14  ;;  %v2753_v15 = vsel %vm2747_vm7, %v7505_v36, %v9958_v16  ;;  %v3139_v6 = vsel %vm554_vm1, %v7673_v45, %v9959_v7  ;;  %v3200_v50 = vmul.f32 %v9961_v48, %v9875_v32 }
 0x6c1   : > { %v8032_v2 = vadd.f32 %v7774_v38, %v3424_v59  ;;  %v8035_v31 = vadd.f32 %v7774_v38, %v3425_v52  ;;  %v8037_v12 = vpop.permute.xlu0 %1699  ;;  %v3364_v10 = vpop.permute.xlu1 %3363  ;;  %v2656_v51 = vadd.f32 %v2624_v25, %v2527_v49  ;;  %v3043_v24 = vadd.f32 %v3011_v3, %v2866_v46  ;;  %v9965_v49 = vld [vmem:[#allocation16_spill] sm:$0xff]  ;;  %v9966_v3 = vld [vmem:[#allocation18_spill] sm:$0xff] }
 0x6c2   : > { %v3394_v34 = vsel %vm812_vm3, %v3362_v42, %v3364_v10  ;;  %3375 = vrot.lane.b32.xlu0 %v9956_v44, %s5662_s20  ;;  %3251 = vrot.lane.b32.xlu1 %v9957_v17, %s5661_s19  ;;  %v9960_v42 = vld [vmem:[#allocation91_spill] sm:$0xff]  ;;  %v3295_v22 = vadd.f32 %v3263_v9, %v3167_v63  ;;  %v3267_v20 = vsel %vm683_vm2, %v7833_v53, %v7922_v30  ;;  %v9967_v9 = vld [vmem:[#allocation12_spill] sm:$0xff] }
 0x6c3   : > { %9953 = vst [vmem:[#allocation27_spill] sm:$0xff] %v8032_v2  ;;  %9954 = vst [vmem:[#allocation28_spill] sm:$0xff] %v8035_v31  ;;  %v9533_v27 = vmax.f32 %v8032_v2, 0.0  ;;  %v9532_v8 = vmax.f32 %v8035_v31, 0.0  ;;  %v3426_v33 = vadd.f32 %v3394_v34, %v3298_v18  ;;  %v3331_v56 = vmul.f32 %v9960_v42, %v9874_v1  ;;  %v9963_v53 = vld [vmem:[#allocation111_spill] sm:$0xff]  ;;  %v9968_v34 = vld [vmem:[#allocation58_spill] sm:$0xff] }
 0x6c4   : > { %v2785_v21 = vadd.f32 %v2753_v15, %v2656_v51  ;;  %v3171_v60 = vadd.f32 %v3139_v6, %v3043_v24  ;;  %v3328_v0 = vmul.f32 %v9960_v42, %v9875_v32  ;;  %v3330_v28 = vmul.f32 %v9960_v42, %v9876_v5  ;;  %v9971_v51 = vld [vmem:[#allocation9_spill] sm:$0xff] }
 0x6c5   : > { %3484 = vst [vmem:[#allocation2 + $0x8] sm:$0xff] %v9533_v27  ;;  %3485 = vst [vmem:[#allocation2 + $0x10] sm:$0xff] %v9532_v8  ;;  %v8067_v36 = vadd.f32 %v7774_v38, %v3426_v33  ;;  %v8069_v35 = vpop.permute.xlu0 %1703  ;;  %v3356_v45 = vpop.permute.xlu1 %3355  ;;  %v2851_v57 = vmul.f32 %v9963_v53, %v9941_v4  ;;  %v3012_v25 = vsel %vm425_vm0, %v7620_v47, %v9965_v49  ;;  %v9986_v4 = vld [vmem:[#allocation49_spill] sm:$0xff] }
 0x6c6   : > { %v3391_v61 = vsel %vm812_vm3, %v3356_v45, %v7958_v26  ;;  %3379 = vrot.lane.b32.xlu0 %v3331_v56, %s5662_s20  ;;  %3245 = vrot.lane.b32.xlu1 %v3200_v50, %s5661_s19  ;;  %v3299_v23 = vadd.f32 %v3267_v20, %v3171_v60  ;;  %v3140_v58 = vsel %vm554_vm1, %v9959_v7, %v9966_v3  ;;  %v9970_v56 = vld [vmem:[#allocation83_spill] sm:$0xff]  ;;  %v8343_v32 = vld [vmem:[%s5800_s14 + $0x9] ss:$0 sm:$0xff] }
 0x6c7   : > { %9962 = vst [vmem:[#allocation31_spill] sm:$0xff] %v8067_v36  ;;  %v9535_v11 = vmax.f32 %v8067_v36, 0.0  ;;  %v3423_v55 = vadd.f32 %v3391_v61, %v3295_v22  ;;  %v2867_v39 = vadd.f32 %v2851_v57, %v2785_v21  ;;  %v1529_v44 = vmul.f32 %v9968_v34, %v9967_v9  ;;  %v8136_v21 = vld [vmem:[%s5800_s14 + $0x8] ss:$0 sm:$0xff]  ;;  %v9974_v60 = vld [vmem:[#allocation59_spill] sm:$0xff] }
 0x6c8   : > { %v3332_v47 = vmul.f32 %v9960_v42, %v9877_v54  ;;  %v3268_v15 = vsel %vm683_vm2, %v7922_v30, %v7990_v62  ;;  %v1658_v50 = vmul.f32 %v9970_v56, %v9967_v9  ;;  %v1528_v24 = vmul.f32 %v9968_v34, %v9971_v51  ;;  %9973 = vst [vmem:[#allocation36_spill] sm:$0xff] %v8136_v21 }
 0x6c9   : > { %3486 = vst [vmem:[#allocation2 + $0x18] sm:$0xff] %v9535_v11  ;;  %v8088_v26 = vadd.f32 %v7774_v38, %v3423_v55  ;;  %v3366_v59 = vpop.permute.xlu0 %3365  ;;  %v8090_v52 = vpop.permute.xlu1 %1701  ;;  %v3044_v17 = vadd.f32 %v3012_v25, %v2867_v39  ;;  %v1522_v55 = vmul.f32 %v8136_v21, %v9974_v60  ;;  %v9976_v25 = vld [vmem:[#allocation64_spill] sm:$0xff]  ;;  %v9977_v39 = vld [vmem:[#allocation11_spill] sm:$0xff]  ;;  %v2167_v54 = vmul.f32 %v8136_v21, %v9986_v4 }
 0x6ca   : > { %v3395_v46 = vsel %vm812_vm3, %v3364_v10, %v3366_v59  ;;  %3373 = vrot.lane.b32.xlu0 %v3328_v0, %s5662_s20  ;;  %3377 = vrot.lane.b32.xlu1 %v3330_v28, %s5662_s20  ;;  %v1657_v0 = vmul.f32 %v9970_v56, %v9971_v51 }
 0x6cb   : > { %9964 = vst [vmem:[#allocation30_spill] sm:$0xff] %v8088_v26  ;;  %v9534_v14 = vmax.f32 %v8088_v26, 0.0  ;;  %v3427_v18 = vadd.f32 %v3395_v46, %v3299_v23  ;;  %v3172_v7 = vadd.f32 %v3140_v58, %v3044_v17  ;;  %v1787_v46 = vmul.f32 %v9976_v25, %v9967_v9 }
 0x6cd   : > { %3483 = vst [vmem:[#allocation2] sm:$0xff] %v9534_v14  ;;  %v8109_v10 = vadd.f32 %v7774_v38, %v3427_v18  ;;  %v8111_v63 = vpop.permute.xlu0 %1697  ;;  %v8113_v33 = vpop.permute.xlu1 %1705  ;;  %v3300_v22 = vadd.f32 %v3268_v15, %v3172_v7  ;;  %v1521_v18 = vmul.f32 %v9974_v60, %v9977_v39  ;;  %v1786_v15 = vmul.f32 %v9976_v25, %v9971_v51 }
 0x6ce   : > { %1580 = vrot.lane.b32.xlu0 %v1529_v44, %s5675_s30  ;;  %3381 = vrot.lane.b32.xlu1 %v3332_v47, %s5662_s20  ;;  %v9978_v47 = vld [vmem:[#allocation34_spill] sm:$0xff] }
 0x6cf   : > { %9969 = vst [vmem:[#allocation32_spill] sm:$0xff] %v8109_v10  ;;  %v9531_v6 = vmax.f32 %v8109_v10, 0.0  ;;  %v1651_v17 = vmul.f32 %v8136_v21, %v9978_v47 }
 0x6d1   : > { %3487 = vst [vmem:[#allocation2 + $0x20] sm:$0xff] %v9531_v6  ;;  %v8127_v45 = vpop.permute.xlu0 %1830  ;;  %v8129_v30 = vpop.permute.xlu1 %3367  ;;  %v9982_v6 = vld [vmem:[#allocation60_spill] sm:$0xff] }
 0x6d2   : > { %9972 = vst [vmem:[#allocation39_spill] sm:$0xff] %v8129_v30  ;;  %v3396_v20 = vsel %vm812_vm3, %v3366_v59, %v8129_v30  ;;  %1709 = vrot.lane.b32.xlu0 %v1658_v50, %s5688_s5  ;;  %1578 = vrot.lane.b32.xlu1 %v1528_v24, %s5675_s30  ;;  %v9979_v24 = vld [vmem:[#allocation7_spill] sm:$0xff]  ;;  %v1909_v8 = vmul.f32 %v8136_v21, %v9982_v6 }
 0x6d3   : > { %v3428_v61 = vadd.f32 %v3396_v20, %v3300_v22  ;;  %v1916_v22 = vmul.f32 %v9979_v24, %v9967_v9  ;;  %v1650_v20 = vmul.f32 %v9978_v47, %v9977_v39  ;;  %v9981_v47 = vld [vmem:[#allocation85_spill] sm:$0xff] }
 0x6d5   : > { %v8143_v28 = vadd.f32 %v7774_v38, %v3428_v61  ;;  %v8145_v57 = vpop.permute.xlu0 %1834  ;;  %v8147_v23 = vpop.permute.xlu1 %1828  ;;  %v9984_v38 = vld [vmem:[#allocation47_spill] sm:$0xff] }
 0x6d6   : > { %1566 = vrot.lane.b32.xlu0 %v1522_v55, %s5675_s30  ;;  %1707 = vrot.lane.b32.xlu1 %v1657_v0, %s5688_s5  ;;  %v9980_v55 = vld [vmem:[#allocation61_spill] sm:$0xff]  ;;  %v2038_v30 = vmul.f32 %v8136_v21, %v9984_v38 }
 0x6d7   : > { %9975 = vst [vmem:[#allocation38_spill] sm:$0xff] %v8143_v28  ;;  %v9530_v59 = vmax.f32 %v8143_v28, 0.0  ;;  %v1780_v0 = vmul.f32 %v8136_v21, %v9980_v55 }
 0x6d9   : > { %3488 = vst [vmem:[#allocation2 + $0x28] sm:$0xff] %v9530_v59  ;;  %v8158_v58 = vpop.permute.xlu0 %1957  ;;  %v8160_v44 = vpop.permute.xlu1 %1832 }
 0x6da   : > { %1838 = vrot.lane.b32.xlu0 %v1787_v46, %s5689_s6  ;;  %1564 = vrot.lane.b32.xlu1 %v1521_v18, %s5675_s30  ;;  %v1915_v46 = vmul.f32 %v9979_v24, %v9971_v51 }
 0x6dd   : > { %v8168_v7 = vpop.permute.xlu0 %1961  ;;  %v8170_v50 = vpop.permute.xlu1 %1826 }
 0x6de   : > { %1695 = vrot.lane.b32.xlu0 %v1651_v17, %s5688_s5  ;;  %1836 = vrot.lane.b32.xlu1 %v1786_v15, %s5689_s6  ;;  %v2045_v15 = vmul.f32 %v9981_v47, %v9967_v9 }
 0x6e1   : > { %v8178_v61 = vpop.permute.xlu0 %1955  ;;  %v8180_v60 = vpop.permute.xlu1 %1959 }
 0x6e2   : > { %1967 = vrot.lane.b32.xlu0 %v1916_v22, %s5690_s7  ;;  %1693 = vrot.lane.b32.xlu1 %v1650_v20, %s5688_s5  ;;  %v1779_v22 = vmul.f32 %v9980_v55, %v9977_v39  ;;  %v9983_v55 = vld [vmem:[#allocation80_spill] sm:$0xff] }
 0x6e3   : > { %v2174_v14 = vmul.f32 %v9983_v55, %v9967_v9 }
 0x6e5   : > { %v8188_v18 = vpop.permute.xlu0 %2088  ;;  %v8190_v17 = vpop.permute.xlu1 %1963 }
 0x6e6   : > { %1824 = vrot.lane.b32.xlu0 %v1780_v0, %s5689_s6  ;;  %1965 = vrot.lane.b32.xlu1 %v1915_v46, %s5690_s7  ;;  %v2044_v0 = vmul.f32 %v9981_v47, %v9971_v51 }
 0x6e9   : > { %v8198_v20 = vpop.permute.xlu0 %2092  ;;  %v8200_v59 = vpop.permute.xlu1 %2086 }
 0x6ea   : > { %2096 = vrot.lane.b32.xlu0 %v2045_v15, %s5691_s8  ;;  %1822 = vrot.lane.b32.xlu1 %v1779_v22, %s5689_s6  ;;  %v1908_v15 = vmul.f32 %v9982_v6, %v9977_v39  ;;  %v9985_v6 = vld [vmem:[#allocation82_spill] sm:$0xff] }
 0x6eb   : > { %v2303_v3 = vmul.f32 %v9985_v6, %v9967_v9 }
 0x6ed   : > { %v8208_v46 = vpop.permute.xlu0 %2215  ;;  %v8210_v27 = vpop.permute.xlu1 %2090 }
 0x6ee   : > { %1953 = vrot.lane.b32.xlu0 %v1909_v8, %s5690_s7  ;;  %2094 = vrot.lane.b32.xlu1 %v2044_v0, %s5691_s8  ;;  %v2173_v8 = vmul.f32 %v9983_v55, %v9971_v51 }
 0x6f1   : > { %v8218_v22 = vpop.permute.xlu0 %2219  ;;  %v8220_v11 = vpop.permute.xlu1 %2084 }
 0x6f2   : > { %2225 = vrot.lane.b32.xlu0 %v2174_v14, %s5692_s9  ;;  %1951 = vrot.lane.b32.xlu1 %v1908_v15, %s5690_s7  ;;  %v2037_v14 = vmul.f32 %v9984_v38, %v9977_v39  ;;  %v9987_v38 = vld [vmem:[#allocation87_spill] sm:$0xff] }
 0x6f3   : > { %v2432_v29 = vmul.f32 %v9987_v38, %v9967_v9 }
 0x6f5   : > { %v8228_v0 = vpop.permute.xlu0 %2213  ;;  %v8230_v62 = vpop.permute.xlu1 %2217 }
 0x6f6   : > { %2082 = vrot.lane.b32.xlu0 %v2038_v30, %s5691_s8  ;;  %2223 = vrot.lane.b32.xlu1 %v2173_v8, %s5692_s9  ;;  %v2302_v30 = vmul.f32 %v9985_v6, %v9971_v51  ;;  %v2296_v6 = vmul.f32 %v8136_v21, %v9988_v37 }
 0x6f9   : > { %v8238_v15 = vpop.permute.xlu0 %2346  ;;  %v8240_v49 = vpop.permute.xlu1 %2221 }
 0x6fa   : > { %2354 = vrot.lane.b32.xlu0 %v2303_v3, %s5693_s10  ;;  %2080 = vrot.lane.b32.xlu1 %v2037_v14, %s5691_s8  ;;  %v2166_v3 = vmul.f32 %v9986_v4, %v9977_v39  ;;  %v9990_v4 = vld [vmem:[#allocation84_spill] sm:$0xff] }
 0x6fb   : > { %v2561_v47 = vmul.f32 %v9990_v4, %v9967_v9 }
 0x6fd   : > { %v8248_v8 = vpop.permute.xlu0 %2350  ;;  %v8250_v16 = vpop.permute.xlu1 %2344 }
 0x6fe   : > { %2211 = vrot.lane.b32.xlu0 %v2167_v54, %s5692_s9  ;;  %2352 = vrot.lane.b32.xlu1 %v2302_v30, %s5693_s10  ;;  %v2431_v54 = vmul.f32 %v9987_v38, %v9971_v51  ;;  %v9991_v38 = vld [vmem:[#allocation76_spill] sm:$0xff] }
 0x6ff   : > { %v2425_v25 = vmul.f32 %v8136_v21, %v9991_v38 }
 0x701   : > { %v8258_v14 = vpop.permute.xlu0 %2342  ;;  %v8260_v41 = vpop.permute.xlu1 %2348 }
 0x702   : > { %2483 = vrot.lane.b32.xlu0 %v2432_v29, %s5694_s11  ;;  %2209 = vrot.lane.b32.xlu1 %v2166_v3, %s5692_s9  ;;  %v2295_v29 = vmul.f32 %v9988_v37, %v9977_v39  ;;  %v9992_v37 = vld [vmem:[#allocation86_spill] sm:$0xff] }
 0x703   : > { %v2690_v28 = vmul.f32 %v9992_v37, %v9967_v9 }
 0x705   : > { %v8268_v30 = vpop.permute.xlu0 %2475  ;;  %v8270_v55 = vpop.permute.xlu1 %2802 }
 0x706   : > { %9989 = vst [vmem:[#allocation41_spill] sm:$0xff] %v8270_v55  ;;  %2340 = vrot.lane.b32.xlu0 %v2296_v6, %s5693_s10  ;;  %2481 = vrot.lane.b32.xlu1 %v2431_v54, %s5694_s11  ;;  %v2560_v6 = vmul.f32 %v9990_v4, %v9971_v51  ;;  %v9994_v4 = vld [vmem:[#allocation10_spill] sm:$0xff] }
 0x707   : > { %v2554_v1 = vmul.f32 %v8136_v21, %v9994_v4  ;;  %v10009_v55 = vld [vmem:[#allocation62_spill] sm:$0xff] }
 0x709   : > { %v8278_v3 = vpop.permute.xlu0 %2479  ;;  %v8280_v24 = vpop.permute.xlu1 %2473 }
 0x70a   : > { %2612 = vrot.lane.b32.xlu0 %v2561_v47, %s5695_s12  ;;  %2338 = vrot.lane.b32.xlu1 %v2295_v29, %s5693_s10  ;;  %v2424_v47 = vmul.f32 %v9991_v38, %v9977_v39  ;;  %v9995_v38 = vld [vmem:[#allocation63_spill] sm:$0xff] }
 0x70b   : > { %v2683_v5 = vmul.f32 %v8136_v21, %v9995_v38 }
 0x70d   : > { %v8288_v54 = vpop.permute.xlu0 %2602  ;;  %v8290_v56 = vpop.permute.xlu1 %2477 }
 0x70e   : > { %2469 = vrot.lane.b32.xlu0 %v2425_v25, %s5694_s11  ;;  %2610 = vrot.lane.b32.xlu1 %v2560_v6, %s5695_s12  ;;  %v2689_v25 = vmul.f32 %v9992_v37, %v9971_v51  ;;  %v9998_v51 = vld [vmem:[#allocation89_spill] sm:$0xff] }
 0x711   : > { %v8298_v29 = vpop.permute.xlu0 %2606  ;;  %v8300_v10 = vpop.permute.xlu1 %2471 }
 0x712   : > { %9993 = vst [vmem:[#allocation40_spill] sm:$0xff] %v8298_v29  ;;  %2741 = vrot.lane.b32.xlu0 %v2690_v28, %s5696_s13  ;;  %2467 = vrot.lane.b32.xlu1 %v2424_v47, %s5694_s11  ;;  %v2553_v28 = vmul.f32 %v9994_v4, %v9977_v39  ;;  %v10002_v4 = vld [vmem:[#allocation88_spill] sm:$0xff] }
 0x715   : > { %v8308_v6 = vpop.permute.xlu0 %2600  ;;  %v8310_v9 = vpop.permute.xlu1 %2604 }
 0x716   : > { %2598 = vrot.lane.b32.xlu0 %v2554_v1, %s5695_s12  ;;  %2739 = vrot.lane.b32.xlu1 %v2689_v25, %s5696_s13  ;;  %v9999_v1 = vld [vmem:[#allocation108_spill] sm:$0xff]  ;;  %v2682_v25 = vmul.f32 %v9995_v38, %v9977_v39 }
 0x717   : > { %v2950_v37 = vmul.f32 %v9999_v1, %v9998_v51  ;;  %v3078_v31 = vmul.f32 %v10002_v4, %v9999_v1  ;;  %v8348_v38 = vld [vmem:[%s5800_s14 + $0x1] sm:$0xff]  ;;  %s4846_s14 = sshll.u32 %s10116_s16, 6  ;;  %s5698_s16 = smov 38  }
 0x718   : > { %10005 = vst [vmem:[#allocation55_spill] sm:$0xff] %v8348_v38 }
 0x719   : > { %v8318_v47 = vpop.permute.xlu0 %2733  ;;  %v8320_v19 = vpop.permute.xlu1 %2608 }
 0x71a   : > { %9996 = vst [vmem:[#allocation42_spill] sm:$0xff] %v8318_v47  ;;  %9997 = vst [vmem:[#allocation52_spill] sm:$0xff] %v8320_v19  ;;  %2727 = vrot.lane.b32.xlu0 %v2683_v5, %s5696_s13  ;;  %2596 = vrot.lane.b32.xlu1 %v2553_v28, %s5695_s12  ;;  %v2949_v5 = vmul.f32 %v9963_v53, %v9998_v51  ;;  %v2943_v51 = vmul.f32 %v8343_v32, %v10009_v55 }
 0x71d   : > { %v8328_v21 = vpop.permute.xlu0 %2737  ;;  %v8330_v34 = vpop.permute.xlu1 %2731 }
 0x71e   : > { %10000 = vst [vmem:[#allocation50_spill] sm:$0xff] %v8328_v21  ;;  %10001 = vst [vmem:[#allocation51_spill] sm:$0xff] %v8330_v34  ;;  %3001 = vrot.lane.b32.xlu0 %v2950_v37, %s5658_s17  ;;  %2725 = vrot.lane.b32.xlu1 %v2682_v25, %s5696_s13  ;;  %v10006_v37 = vld [vmem:[#allocation6_spill] sm:$0xff] }
 0x71f   : > { %v10007_v25 = vsub.s32 7, %v10006_v37 }
 0x721   : > { %v8338_v28 = vpop.permute.xlu0 %2991  ;;  %v8340_v2 = vpop.permute.xlu1 %2735  ;;  %v8353_v39 = vrot.slane %v8348_v38, %v10007_v25  ;;  %v10013_v25 = vld [vmem:[#allocation81_spill] sm:$0xff] }
 0x722   : > { %10003 = vst [vmem:[#allocation54_spill] sm:$0xff] %v8338_v28  ;;  %10004 = vst [vmem:[#allocation53_spill] sm:$0xff] %v8340_v2  ;;  %3129 = vrot.lane.b32.xlu0 %v3078_v31, %s5660_s18  ;;  %2999 = vrot.lane.b32.xlu1 %v2949_v5, %s5658_s17  ;;  %v3077_v28 = vmul.f32 %v10002_v4, %v9963_v53  ;;  %v10012_v31 = vld [vmem:[#allocation23_spill] sm:$0xff]  ;;  %v3071_v38 = vmul.f32 %v8343_v32, %v10013_v25  ;;  %v10015_v2 = vld [vmem:[#allocation24_spill] sm:$0xff] }
 0x723   : > { %10008 = vst [vmem:[#allocation67_spill] sm:$0xff] %v8353_v39  ;;  %v1596_v5 = vsel %vm1586_vm9, %v10012_v31, %v7924_v43  ;;  %v2942_v37 = vmul.f32 %v8353_v39, %v10009_v55  ;;  %v3070_v4 = vmul.f32 %v10013_v25, %v8353_v39  ;;  %v1597_v47 = vsel %vm1586_vm9, %v7924_v43, %v10015_v2  ;;  %v10016_v25 = vld [vmem:[#allocation35_spill] sm:$0xff] }
 0x724   : > { %v1595_v55 = vsel %vm1586_vm9, %v8012_v40, %v10012_v31  ;;  %v1628_v19 = vadd.f32 %v1596_v5, %v10016_v25  ;;  %v1726_v40 = vsel %vm1715_vm10, %v8090_v52, %v8069_v35  ;;  %v1724_v31 = vsel %vm1715_vm10, %v8111_v63, %v8037_v12 }
 0x725   : > { %v8359_v21 = vpop.permute.xlu0 %2995  ;;  %v8361_v26 = vpop.permute.xlu1 %2729  ;;  %v1727_v5 = vsel %vm1715_vm10, %v8069_v35, %v8113_v33  ;;  %v1855_v35 = vsel %vm1844_vm11, %v8127_v45, %v8160_v44  ;;  %v1853_v63 = vsel %vm1844_vm11, %v8170_v50, %v8147_v23 }
 0x726   : > { %10010 = vst [vmem:[#allocation65_spill] sm:$0xff] %v8359_v21  ;;  %10011 = vst [vmem:[#allocation66_spill] sm:$0xff] %v8361_v26  ;;  %2987 = vrot.lane.b32.xlu0 %v2943_v51, %s5658_s17  ;;  %3127 = vrot.lane.b32.xlu1 %v3077_v28, %s5660_s18  ;;  %v10014_v21 = vld [vmem:[#allocation79_spill] sm:$0xff]  ;;  %v1598_v51 = vsel %vm1586_vm9, %v10015_v2, %v7960_v13  ;;  %v3206_v28 = vmul.f32 %v9961_v48, %v9999_v1 }
 0x727   : > { %v8376_v36 = vmul.f32 %v8343_v32, %v10014_v21  ;;  %v1725_v26 = vsel %vm1715_vm10, %v8037_v12, %v8090_v52  ;;  %v3334_v2 = vmul.f32 %v9960_v42, %v9999_v1  ;;  %v8401_v13 = vmul.f32 %v10014_v21, %v8353_v39  ;;  %v10020_v1 = vld [vmem:[#allocation33_spill] sm:$0xff] }
 0x728   : > { %v1629_v25 = vadd.f32 %v1597_v47, %v10020_v1  ;;  %v10021_v21 = vld [vmem:[#allocation37_spill] sm:$0xff]  ;;  %v3205_v52 = vmul.f32 %v9961_v48, %v9963_v53  ;;  %v1757_v29 = vadd.f32 %v1725_v26, %v1628_v19  ;;  %v1854_v12 = vsel %vm1844_vm11, %v8147_v23, %v8127_v45 }
 0x729   : > { %v8393_v34 = vpop.permute.xlu0 %2989  ;;  %v8395_v43 = vpop.permute.xlu1 %2993  ;;  %10019 = vst [vmem:[#allocation71_spill] sm:$0xff] %v8401_v13  ;;  %v1983_v45 = vsel %vm1973_vm12, %v8158_v58, %v8180_v60 }
 0x72a   : > { %10017 = vst [vmem:[#allocation69_spill] sm:$0xff] %v8393_v34  ;;  %10018 = vst [vmem:[#allocation68_spill] sm:$0xff] %v8395_v43  ;;  %3257 = vrot.lane.b32.xlu0 %v3206_v28, %s5661_s19  ;;  %2985 = vrot.lane.b32.xlu1 %v2942_v37, %s5658_s17  ;;  %v1630_v43 = vadd.f32 %v1598_v51, %v10021_v21  ;;  %v10022_v34 = vld [vmem:[#allocation72_spill] sm:$0xff]  ;;  %v1758_v47 = vadd.f32 %v1726_v40, %v1629_v25 }
 0x72b   : > { %v1627_v13 = vadd.f32 %v1595_v55, %v10022_v34  ;;  %v1856_v34 = vsel %vm1844_vm11, %v8160_v44, %v8145_v57  ;;  %v1982_v55 = vsel %vm1973_vm12, %v8178_v61, %v8158_v58  ;;  %v1886_v23 = vadd.f32 %v1854_v12, %v1757_v29 }
 0x72c   : > { %v1759_v51 = vadd.f32 %v1727_v5, %v1630_v43  ;;  %v1887_v44 = vadd.f32 %v1855_v35, %v1758_v47  ;;  %v3333_v28 = vmul.f32 %v9960_v42, %v9963_v53  ;;  %v1985_v61 = vsel %vm1973_vm12, %v8168_v7, %v8190_v17  ;;  %v3852_v53 = vld [vmem:[#allocation3 + $0x3e0] sm:$0xff] }
 0x72d   : > { %v1756_v37 = vadd.f32 %v1724_v31, %v1627_v13  ;;  %v8431_v19 = vpop.permute.xlu0 %3121  ;;  %v8433_v26 = vpop.permute.xlu1 %2997  ;;  %v1984_v13 = vsel %vm1973_vm12, %v8180_v60, %v8168_v7  ;;  %v2112_v58 = vsel %vm2102_vm13, %v8200_v59, %v8188_v18  ;;  %v2111_v60 = vsel %vm2102_vm13, %v8220_v11, %v8200_v59 }
 0x72e   : > { %10023 = vst [vmem:[#allocation46_spill] sm:$0xff] %v8433_v26  ;;  %3115 = vrot.lane.b32.xlu0 %v3071_v38, %s5660_s18  ;;  %3255 = vrot.lane.b32.xlu1 %v3205_v52, %s5661_s19  ;;  %v1888_v43 = vadd.f32 %v1856_v34, %v1759_v51  ;;  %v2015_v29 = vadd.f32 %v1983_v45, %v1886_v23  ;;  %v10025_v52 = vld [vmem:[#allocation78_spill] sm:$0xff] }
 0x72f   : > { %v1885_v50 = vadd.f32 %v1853_v63, %v1756_v37  ;;  %v2016_v40 = vadd.f32 %v1984_v13, %v1887_v44  ;;  %v2113_v31 = vsel %vm2102_vm13, %v8188_v18, %v8210_v27  ;;  %v2114_v7 = vsel %vm2102_vm13, %v8210_v27, %v8198_v20 }
 0x730   : > { %v2240_v25 = vsel %vm2231_vm14, %v8228_v0, %v8208_v46  ;;  %v2241_v11 = vsel %vm2231_vm14, %v8208_v46, %v8230_v62  ;;  %v2017_v59 = vadd.f32 %v1985_v61, %v1888_v43  ;;  %v2144_v18 = vadd.f32 %v2112_v58, %v2015_v29  ;;  %v10027_v61 = vld [vmem:[#allocation40_spill] sm:$0xff]  ;;  %v10028_v58 = vld [vmem:[#allocation51_spill] sm:$0xff] }
 0x731   : > { %v2014_v38 = vadd.f32 %v1982_v55, %v1885_v50  ;;  %v8460_v5 = vpop.permute.xlu0 %3125  ;;  %v8462_v1 = vpop.permute.xlu1 %3119  ;;  %v3327_v12 = vmul.f32 %v8343_v32, %v10025_v52  ;;  %v2145_v35 = vadd.f32 %v2113_v31, %v2016_v40  ;;  %v2242_v27 = vsel %vm2231_vm14, %v8230_v62, %v8218_v22  ;;  %v10031_v31 = vld [vmem:[#allocation52_spill] sm:$0xff] }
 0x732   : > { %10024 = vst [vmem:[#allocation45_spill] sm:$0xff] %v8460_v5  ;;  %3385 = vrot.lane.b32.xlu0 %v3334_v2, %s5662_s20  ;;  %3113 = vrot.lane.b32.xlu1 %v3070_v4, %s5660_s18  ;;  %v2243_v0 = vsel %vm2231_vm14, %v8218_v22, %v8240_v49  ;;  %v2369_v46 = vsel %vm2360_vm15, %v8258_v14, %v8250_v16 }
 0x733   : > { %v2143_v21 = vadd.f32 %v2111_v60, %v2014_v38  ;;  %v2146_v4 = vadd.f32 %v2114_v7, %v2017_v59  ;;  %v2273_v63 = vadd.f32 %v2241_v11, %v2144_v18  ;;  %v2370_v47 = vsel %vm2360_vm15, %v8250_v16, %v8238_v15  ;;  %v10033_v11 = vld [vmem:[#allocation53_spill] sm:$0xff]  ;;  %v10034_v18 = vld [vmem:[#allocation31_spill] sm:$0xff] }
 0x734   : > { %v2371_v62 = vsel %vm2360_vm15, %v8238_v15, %v8260_v41  ;;  %v2372_v22 = vsel %vm2360_vm15, %v8260_v41, %v8248_v8  ;;  %v2498_v14 = vsel %vm2489_vm5, %v8300_v10, %v8280_v24  ;;  %v2274_v16 = vadd.f32 %v2242_v27, %v2145_v35 }
 0x735   : > { %v2272_v2 = vadd.f32 %v2240_v25, %v2143_v21  ;;  %v8489_v37 = vpop.permute.xlu0 %3117  ;;  %v8491_v51 = vpop.permute.xlu1 %3123  ;;  %v2275_v34 = vadd.f32 %v2243_v0, %v2146_v4  ;;  %v3326_v45 = vmul.f32 %v10025_v52, %v8353_v39  ;;  %v2402_v15 = vadd.f32 %v2370_v47, %v2273_v63  ;;  %v10032_v25 = vld [vmem:[#allocation42_spill] sm:$0xff] }
 0x736   : > { %3243 = vrot.lane.b32.xlu0 %v8376_v36, %s5661_s19  ;;  %3383 = vrot.lane.b32.xlu1 %v3333_v28, %s5662_s20  ;;  %v2499_v41 = vsel %vm2489_vm5, %v8280_v24, %v8268_v30  ;;  %v2500_v10 = vsel %vm2489_vm5, %v8268_v30, %v8290_v56  ;;  %v2627_v36 = vsel %vm2618_vm6, %v8308_v6, %v8288_v54  ;;  %v10029_v6 = vld [vmem:[#allocation66_spill] sm:$0xff]  ;;  %v10035_v21 = vmax.f32 %v10034_v18, 0.0 }
 0x737   : > { %v2401_v55 = vadd.f32 %v2369_v46, %v2272_v2  ;;  %v2403_v13 = vadd.f32 %v2371_v62, %v2274_v16  ;;  %v2404_v23 = vadd.f32 %v2372_v22, %v2275_v34  ;;  %v2501_v44 = vsel %vm2489_vm5, %v8290_v56, %v8278_v3  ;;  %v10030_v56 = vld [vmem:[#allocation71_spill] sm:$0xff]  ;;  %v10036_v52 = vld [vmem:[#allocation30_spill] sm:$0xff]  ;;  %v10040_v16 = vld [vmem:[#allocation41_spill] sm:$0xff] }
 0x738   : > { %v2628_v24 = vsel %vm2618_vm6, %v8288_v54, %v8310_v9  ;;  %v2629_v30 = vsel %vm2618_vm6, %v8310_v9, %v10027_v61  ;;  %v2756_v60 = vsel %vm2747_vm7, %v10029_v6, %v10028_v58  ;;  %v2531_v38 = vadd.f32 %v2499_v41, %v2402_v15  ;;  %v10038_v46 = vld [vmem:[#allocation50_spill] sm:$0xff]  ;;  %v10041_v34 = vld [vmem:[#allocation104_spill] sm:$0xff]  ;;  %v10042_v41 = vld [vmem:[#allocation27_spill] sm:$0xff] }
 0x739   : > { %v2530_v50 = vadd.f32 %v2498_v14, %v2401_v55  ;;  %v3250_v28 = vpop.permute.xlu0 %3249  ;;  %v8519_v43 = vpop.permute.xlu1 %3448  ;;  %v2532_v29 = vadd.f32 %v2500_v10, %v2403_v13  ;;  %v2630_v54 = vsel %vm2618_vm6, %v10027_v61, %v10031_v31  ;;  %v2533_v7 = vadd.f32 %v2501_v44, %v2404_v23  ;;  %v10046_v44 = vld [vmem:[#allocation11_spill] sm:$0xff] }
 0x73a   : > { %10026 = vst [vmem:[#allocation74_spill] sm:$0xff] %v8519_v43  ;;  %3371 = vrot.lane.b32.xlu0 %v3327_v12, %s5662_s20  ;;  %3241 = vrot.lane.b32.xlu1 %v10030_v56, %s5661_s19  ;;  %v2757_v9 = vsel %vm2747_vm7, %v10028_v58, %v10032_v25  ;;  %v2758_v59 = vsel %vm2747_vm7, %v10032_v25, %v10033_v11  ;;  %v10037_v12 = vmax.f32 %v10036_v52, 0.0  ;;  %v10043_v10 = vmax.f32 %v10042_v41, 0.0  ;;  %v10049_v58 = vld [vmem:[#allocation103_spill] sm:$0xff]  ;;  %v10053_v25 = vld [vmem:[#allocation68_spill] sm:$0xff] }
 0x73b   : > { %v2659_v40 = vadd.f32 %v2627_v36, %v2530_v50  ;;  %v2660_v27 = vadd.f32 %v2628_v24, %v2531_v38  ;;  %v2661_v0 = vadd.f32 %v2629_v30, %v2532_v29  ;;  %v2759_v4 = vsel %vm2747_vm7, %v10033_v11, %v10038_v46  ;;  %v10044_v36 = vld [vmem:[#allocation28_spill] sm:$0xff]  ;;  %v10047_v50 = vld [vmem:[#allocation58_spill] sm:$0xff]  ;;  %v10048_v30 = vld [vmem:[#allocation97_spill] sm:$0xff] }
 0x73c   : > { %v5518_v35 = vpack.i.bf16 %v10037_v12, %v10035_v21  ;;  %v2662_v62 = vadd.f32 %v2630_v54, %v2533_v7  ;;  %v2854_v55 = vmul.f32 %v10041_v34, %v10040_v16  ;;  %v10045_v13 = vmax.f32 %v10044_v36, 0.0  ;;  %v10052_v54 = vld [vmem:[#allocation69_spill] sm:$0xff]  ;;  %v10055_v52 = vld [vmem:[#allocation32_spill] sm:$0xff] }
 0x73d   : > { %v2788_v2 = vadd.f32 %v2756_v60, %v2659_v40  ;;  %v8549_v63 = vpop.permute.xlu0 %3253  ;;  %v3248_v47 = vpop.permute.xlu1 %3247  ;;  %v2789_v22 = vadd.f32 %v2757_v9, %v2660_v27  ;;  %v2790_v14 = vadd.f32 %v2758_v59, %v2661_v0  ;;  %v1530_v24 = vmul.f32 %v10047_v50, %v10046_v44  ;;  %v10050_v60 = vld [vmem:[#allocation100_spill] sm:$0xff]  ;;  %v10051_v40 = vld [vmem:[#allocation54_spill] sm:$0xff]  ;;  %v10054_v11 = vld [vmem:[#allocation65_spill] sm:$0xff] }
 0x73e   : > { %10039 = vst [vmem:[#allocation75_spill] sm:$0xff] %v8549_v63  ;;  %3369 = vrot.lane.b32.xlu1 %v3326_v45, %s5662_s20  ;;  %5519 = vrot.lane.b32.xlu0 %v5518_v35, %s5658_s17  ;;  %v2791_v15 = vadd.f32 %v2759_v4, %v2662_v62  ;;  %v5513_v23 = vpack.i.bf16 %v10045_v13, %v10043_v10  ;;  %v10056_v12 = vmax.f32 %v10055_v52, 0.0  ;;  %v10057_v35 = vld [vmem:[#allocation38_spill] sm:$0xff]  ;;  %v10059_v4 = vld [vmem:[#allocation83_spill] sm:$0xff] }
 0x73f   : > { %v2870_v61 = vadd.f32 %v2854_v55, %v2788_v2  ;;  %v2855_v45 = vmul.f32 %v10048_v30, %v10040_v16  ;;  %v2856_v6 = vmul.f32 %v10049_v58, %v10040_v16  ;;  %v2857_v56 = vmul.f32 %v10050_v60, %v10040_v16  ;;  %v10060_v58 = vld [vmem:[#allocation36_spill] sm:$0xff]  ;;  %v10062_v52 = vld [vmem:[#allocation7_spill] sm:$0xff]  ;;  %v3759_v16 = vld [vmem:[#allocation3 + $0xf8] sm:$0xff] }
 0x740   : > { %v3015_v7 = vsel %vm425_vm0, %v10052_v54, %v10051_v40  ;;  %v3016_v9 = vsel %vm425_vm0, %v10051_v40, %v10053_v25  ;;  %v3017_v59 = vsel %vm425_vm0, %v10053_v25, %v10054_v11  ;;  %v10058_v27 = vmax.f32 %v10057_v35, 0.0  ;;  %v10061_v60 = vld [vmem:[#allocation64_spill] sm:$0xff] }
 0x741   : > { %v3376_v38 = vpop.permute.xlu0 %3375  ;;  %v3252_v29 = vpop.permute.xlu1 %3251  ;;  %v2871_v18 = vadd.f32 %v2855_v45, %v2789_v22  ;;  %v2872_v21 = vadd.f32 %v2856_v6, %v2790_v14  ;;  %v1659_v2 = vmul.f32 %v10059_v4, %v10046_v44  ;;  %v2873_v62 = vadd.f32 %v2857_v56, %v2791_v15 }
 0x742   : > { %5514 = vrot.lane.b32.xlu1 %v5513_v23, %s5658_s17  ;;  %1582 = vrot.lane.b32.xlu0 %v1530_v24, %s5675_s30  ;;  %v5523_v0 = vpack.i.bf16 %v10058_v27, %v10056_v12  ;;  %v3144_v34 = vsel %vm554_vm1, %v8462_v1, %v8431_v19  ;;  %v3143_v55 = vsel %vm554_vm1, %v8489_v37, %v8462_v1 }
 0x743   : > { %v3145_v22 = vsel %vm554_vm1, %v8431_v19, %v8491_v51  ;;  %v3047_v14 = vadd.f32 %v3015_v7, %v2870_v61  ;;  %v3048_v41 = vadd.f32 %v3016_v9, %v2871_v18  ;;  %v3049_v10 = vadd.f32 %v3017_v59, %v2872_v21 }
 0x744   : > { %v3018_v36 = vsel %vm425_vm0, %v10054_v11, %v8433_v26  ;;  %v3272_v23 = vsel %vm683_vm2, %v3248_v47, %v3250_v28  ;;  %v3273_v24 = vsel %vm683_vm2, %v3250_v28, %v3252_v29  ;;  %v3146_v45 = vsel %vm554_vm1, %v8491_v51, %v8460_v5  ;;  %v3756_v26 = vld [vmem:[#allocation3 + $0xe0] sm:$0xff] }
 0x745   : > { %v3380_v15 = vpop.permute.xlu0 %3379  ;;  %v3246_v13 = vpop.permute.xlu1 %3245  ;;  %v3176_v19 = vadd.f32 %v3144_v34, %v3048_v41  ;;  %v3175_v1 = vadd.f32 %v3143_v55, %v3047_v14  ;;  %v3177_v37 = vadd.f32 %v3145_v22, %v3049_v10  ;;  %v3050_v61 = vadd.f32 %v3018_v36, %v2873_v62 }
 0x746   : > { %v3271_v30 = vsel %vm683_vm2, %v3246_v13, %v3248_v47  ;;  %5524 = vrot.lane.b32.xlu1 %v5523_v0, %s5658_s17  ;;  %1711 = vrot.lane.b32.xlu0 %v1659_v2, %s5688_s5  ;;  %v1531_v6 = vmul.f32 %v10060_v58, %v10047_v50  ;;  %v1788_v28 = vmul.f32 %v10061_v60, %v10046_v44 }
 0x747   : > { %v3304_v56 = vadd.f32 %v3272_v23, %v3176_v19  ;;  %v3274_v47 = vsel %vm683_vm2, %v3252_v29, %v8549_v63  ;;  %v3305_v40 = vadd.f32 %v3273_v24, %v3177_v37  ;;  %v3303_v54 = vadd.f32 %v3271_v30, %v3175_v1  ;;  %v10065_v1 = vld [vmem:[#allocation85_spill] sm:$0xff]  ;;  %v3845_v63 = vld [vmem:[#allocation3 + $0x3a8] sm:$0xff] }
 0x748   : > { %v3178_v50 = vadd.f32 %v3146_v45, %v3050_v61  ;;  %v1660_v29 = vmul.f32 %v10060_v58, %v10059_v4  ;;  %v1917_v12 = vmul.f32 %v10062_v52, %v10046_v44  ;;  %v1789_v41 = vmul.f32 %v10060_v58, %v10061_v60  ;;  %v10066_v60 = vld [vmem:[#allocation80_spill] sm:$0xff] }
 0x749   : > { %v3374_v7 = vpop.permute.xlu0 %3373  ;;  %v3378_v25 = vpop.permute.xlu1 %3377  ;;  %v1918_v24 = vmul.f32 %v10060_v58, %v10062_v52  ;;  %v2046_v37 = vmul.f32 %v10065_v1, %v10046_v44  ;;  %v10069_v52 = vld [vmem:[#allocation84_spill] sm:$0xff] }
 0x74a   : > { %v3399_v9 = vsel %vm812_vm3, %v3374_v7, %v3376_v38  ;;  %v3400_v11 = vsel %vm812_vm3, %v3376_v38, %v3378_v25  ;;  %v3401_v51 = vsel %vm812_vm3, %v3378_v25, %v3380_v15  ;;  %1584 = vrot.lane.b32.xlu1 %v1531_v6, %s5675_s30  ;;  %1840 = vrot.lane.b32.xlu0 %v1788_v28, %s5689_s6 }
 0x74b   : > { %v3431_v59 = vadd.f32 %v3399_v9, %v3303_v54  ;;  %v3432_v18 = vadd.f32 %v3400_v11, %v3304_v56  ;;  %v3433_v21 = vadd.f32 %v3401_v51, %v3305_v40  ;;  %v3306_v35 = vadd.f32 %v3274_v47, %v3178_v50  ;;  %v10067_v54 = vld [vmem:[#allocation82_spill] sm:$0xff]  ;;  %v10068_v51 = vld [vmem:[#allocation87_spill] sm:$0xff] }
 0x74c   : > { %v2175_v28 = vmul.f32 %v10066_v60, %v10046_v44  ;;  %v2047_v56 = vmul.f32 %v10060_v58, %v10065_v1  ;;  %v2304_v7 = vmul.f32 %v10067_v54, %v10046_v44  ;;  %v2176_v25 = vmul.f32 %v10060_v58, %v10066_v60  ;;  %v10073_v60 = vld [vmem:[#allocation88_spill] sm:$0xff] }
 0x74d   : > { %v3459_v27 = vadd.f32 %v8519_v43, %v3431_v59  ;;  %v3460_v38 = vadd.f32 %v8519_v43, %v3432_v18  ;;  %v3461_v0 = vadd.f32 %v8519_v43, %v3433_v21  ;;  %v8622_v2 = vpop.permute.xlu0 %1580  ;;  %v8624_v62 = vpop.permute.xlu1 %3381  ;;  %v2433_v50 = vmul.f32 %v10068_v51, %v10046_v44 }
 0x74e   : > { %10063 = vst [vmem:[#allocation48_spill] sm:$0xff] %v8622_v2  ;;  %10064 = vst [vmem:[#allocation93_spill] sm:$0xff] %v8624_v62  ;;  %v3402_v34 = vsel %vm812_vm3, %v3380_v15, %v8624_v62  ;;  %1713 = vrot.lane.b32.xlu1 %v1660_v29, %s5688_s5  ;;  %1969 = vrot.lane.b32.xlu0 %v1917_v12, %s5690_s7  ;;  %v2305_v18 = vmul.f32 %v10060_v58, %v10067_v54 }
 0x74f   : > { %v3475_v4 = vmax.f32 %v3459_v27, 0.0  ;;  %v3476_v55 = vmax.f32 %v3460_v38, 0.0  ;;  %v3477_v22 = vmax.f32 %v3461_v0, 0.0  ;;  %v3434_v14 = vadd.f32 %v3402_v34, %v3306_v35  ;;  %v10070_v27 = vld [vmem:[#allocation70_spill] sm:$0xff] }
 0x750   : > { %v2562_v12 = vmul.f32 %v10069_v52, %v10046_v44  ;;  %v2434_v0 = vmul.f32 %v10060_v58, %v10068_v51 }
 0x751   : > { %3491 = vst [vmem:[#allocation2 + $0x48] sm:$0xff] %v3475_v4  ;;  %3492 = vst [vmem:[#allocation2 + $0x50] sm:$0xff] %v3476_v55  ;;  %v3462_v10 = vadd.f32 %v8519_v43, %v3434_v14  ;;  %v8633_v36 = vpop.permute.xlu0 %1709  ;;  %v8635_v13 = vpop.permute.xlu1 %1578  ;;  %v5528_v15 = vpack.i.bf16 %v3477_v22, %v3476_v55  ;;  %v3744_v43 = vld [vmem:[#allocation3 + $0x80] sm:$0xff] }
 0x752   : > { %3493 = vst [vmem:[#allocation2 + $0x58] sm:$0xff] %v3477_v22  ;;  %1842 = vrot.lane.b32.xlu1 %v1789_v41, %s5689_s6  ;;  %v10071_v22 = vld [vmem:[#allocation86_spill] sm:$0xff] }
 0x753   : > { %v3478_v23 = vmax.f32 %v3462_v10, 0.0  ;;  %5529 = vrot.lane.b32.xlu0 %v5528_v15, %s5658_s17  ;;  %v2691_v14 = vmul.f32 %v10071_v22, %v10046_v44  ;;  %v2563_v15 = vmul.f32 %v10060_v58, %v10069_v52  ;;  %v2692_v44 = vmul.f32 %v10060_v58, %v10071_v22  ;;  %v3728_v22 = vld [vmem:[#allocation3] sm:$0xff] }
 0x754   : > { %v3207_v58 = vmul.f32 %v9961_v48, %v8353_v39  ;;  %v3336_v52 = vmul.f32 %v8343_v32, %v9960_v42 }
 0x755   : > { %3494 = vst [vmem:[#allocation2 + $0x60] sm:$0xff] %v3478_v23  ;;  %v1567_v30 = vpop.permute.xlu0 %1566  ;;  %v8641_v19 = vpop.permute.xlu1 %1707  ;;  %v5533_v61 = vpack.i.bf16 %v3475_v4, %v3478_v23 }
 0x756   : > { %1971 = vrot.lane.b32.xlu1 %v1918_v24, %s5690_s7 }
 0x757   : > { %2098 = vrot.lane.b32.xlu0 %v2046_v37, %s5691_s8 }
 0x759   : > { %v8647_v45 = vpop.permute.xlu0 %1838  ;;  %v8649_v6 = vpop.permute.xlu1 %1564 }
 0x75a   : > { %5534 = vrot.lane.b32.xlu1 %v5533_v61, %s5658_s17  ;;  %v1594_v59 = vsel %vm1586_vm9, %v8649_v6, %v1567_v30  ;;  %v10072_v30 = vld [vmem:[#allocation89_spill] sm:$0xff] }
 0x75b   : > { %2227 = vrot.lane.b32.xlu0 %v2175_v28, %s5692_s9  ;;  %v1626_v38 = vadd.f32 %v1594_v59, %v10070_v27  ;;  %v2951_v1 = vmul.f32 %v8353_v39, %v10072_v30  ;;  %v3079_v28 = vmul.f32 %v10073_v60, %v8353_v39  ;;  %v3208_v59 = vmul.f32 %v8343_v32, %v9961_v48  ;;  %v3729_v48 = vld [vmem:[#allocation3 + $0x8] sm:$0xff] }
 0x75d   : > { %v1696_v47 = vpop.permute.xlu0 %1695  ;;  %v8657_v40 = vpop.permute.xlu1 %1836 }
 0x75e   : > { %2100 = vrot.lane.b32.xlu1 %v2047_v56, %s5691_s8  ;;  %v2952_v56 = vmul.f32 %v8343_v32, %v10072_v30  ;;  %v3828_v30 = vld [vmem:[#allocation3 + $0x320] sm:$0xff] }
 0x75f   : > { %2356 = vrot.lane.b32.xlu0 %v2304_v7, %s5693_s10  ;;  %v3080_v7 = vmul.f32 %v8343_v32, %v10073_v60 }
 0x761   : > { %v8665_v9 = vpop.permute.xlu0 %1967  ;;  %v8667_v11 = vpop.permute.xlu1 %1693 }
 0x762   : > { %2229 = vrot.lane.b32.xlu1 %v2176_v25, %s5692_s9  ;;  %v1723_v35 = vsel %vm1715_vm10, %v8667_v11, %v1696_v47 }
 0x763   : > { %2485 = vrot.lane.b32.xlu0 %v2433_v50, %s5694_s11  ;;  %v1755_v34 = vadd.f32 %v1723_v35, %v1626_v38  ;;  %v3335_v50 = vmul.f32 %v9960_v42, %v8353_v39  ;;  %v3824_v42 = vld [vmem:[#allocation3 + $0x300] sm:$0xff] }
 0x765   : > { %v1825_v21 = vpop.permute.xlu0 %1824  ;;  %v8677_v29 = vpop.permute.xlu1 %1965 }
 0x766   : > { %2358 = vrot.lane.b32.xlu1 %v2305_v18, %s5693_s10 }
 0x767   : > { %2614 = vrot.lane.b32.xlu0 %v2562_v12, %s5695_s12 }
 0x769   : > { %v8688_v4 = vpop.permute.xlu0 %2096  ;;  %v8690_v55 = vpop.permute.xlu1 %1822 }
 0x76a   : > { %v1852_v41 = vsel %vm1844_vm11, %v8690_v55, %v1825_v21  ;;  %2487 = vrot.lane.b32.xlu1 %v2434_v0, %s5694_s11  ;;  %v3732_v0 = vld [vmem:[#allocation3 + $0x20] sm:$0xff] }
 0x76b   : > { %v8697_v10 = vadd.f32 %v1852_v41, %v1755_v34  ;;  %2743 = vrot.lane.b32.xlu0 %v2691_v14, %s5696_s13  ;;  %v4999_v34 = vpack.c.bf16 %v3732_v0, %v3729_v48  ;;  %v3731_v14 = vld [vmem:[#allocation3 + $0x18] sm:$0xff]  ;;  %v3834_v48 = vld [vmem:[#allocation3 + $0x350] sm:$0xff] }
 0x76c   : > { %v5001_v41 = vpack.c.bf16 %v3731_v14, %v3728_v22  ;;  %v3830_v22 = vld [vmem:[#allocation3 + $0x330] sm:$0xff]  ;;  %v3833_v14 = vld [vmem:[#allocation3 + $0x348] sm:$0xff] }
 0x76d   : > { %v8702_v23 = vpop.permute.xlu0 %1953  ;;  %v8704_v24 = vpop.permute.xlu1 %2094  ;;  %5000 = vmatprep.subr.bf16.mxu1 %v4999_v34 }
 0x76e   : > { %2616 = vrot.lane.b32.xlu1 %v2563_v15, %s5695_s12  ;;  %v3825_v15 = vld [vmem:[#allocation3 + $0x308] sm:$0xff]  ;;  %5002 = vmatpush1.bf16.msra.mxu1 %v5001_v41  ;;  %v3740_v41 = vld [vmem:[#allocation3 + $0x60] sm:$0xff] }
 0x76f   : > { %3003 = vrot.lane.b32.xlu0 %v2951_v1, %s5658_s17  ;;  %v5063_v32 = vpack.c.bf16 %v3828_v30, %v3825_v15  ;;  %v3827_v1 = vld [vmem:[#allocation3 + $0x318] sm:$0xff]  ;;  %v3741_v15 = vld [vmem:[#allocation3 + $0x68] sm:$0xff]  ;;  %v5069_v30 = vpack.c.bf16 %v3833_v14, %v3830_v22  ;;  %v3750_v22 = vld [vmem:[#allocation3 + $0xb0] sm:$0xff] }
 0x770   : > { %v3843_v14 = vld [vmem:[#allocation3 + $0x398] sm:$0xff] }
 0x771   : > { %v8712_v37 = vpop.permute.xlu0 %2225  ;;  %v8714_v61 = vpop.permute.xlu1 %1951  ;;  %5064 = vmatprep.subr.bf16.mxu0 %v5063_v32  ;;  %v5007_v32 = vpack.c.bf16 %v3744_v43, %v3741_v15  ;;  %v3749_v43 = vld [vmem:[#allocation3 + $0xa8] sm:$0xff] }
 0x772   : > { %2745 = vrot.lane.b32.xlu1 %v2692_v44, %s5696_s13 }
 0x773   : > { %3131 = vrot.lane.b32.xlu0 %v3079_v28, %s5660_s18  ;;  %v5065_v28 = vpack.c.bf16 %v3827_v1, %v3824_v42  ;;  %v3743_v42 = vld [vmem:[#allocation3 + $0x78] sm:$0xff] }
 0x775   : > { %v8722_v47 = vpop.permute.xlu0 %2082  ;;  %v8724_v54 = vpop.permute.xlu1 %2223  ;;  %5066 = vmatpush1.bf16.msra.mxu0 %v5065_v28  ;;  %v3840_v28 = vld [vmem:[#allocation3 + $0x380] sm:$0xff] }
 0x776   : > { %3005 = vrot.lane.b32.xlu1 %v2952_v56, %s5658_s17  ;;  %v3735_v56 = vld [vmem:[#allocation3 + $0x38] sm:$0xff] }
 0x777   : > { %3259 = vrot.lane.b32.xlu0 %v3207_v58, %s5661_s19  ;;  %v3738_v58 = vld [vmem:[#allocation3 + $0x50] sm:$0xff] }
 0x779   : > { %v8732_v25 = vpop.permute.xlu0 %2354  ;;  %v8734_v51 = vpop.permute.xlu1 %2080 }
 0x77a   : > { %3133 = vrot.lane.b32.xlu1 %v3080_v7, %s5660_s18  ;;  %v3734_v7 = vld [vmem:[#allocation3 + $0x30] sm:$0xff] }
 0x77b   : > { %3387 = vrot.lane.b32.xlu0 %v3335_v50, %s5662_s20  ;;  %v5003_v50 = vpack.c.bf16 %v3738_v58, %v3735_v56  ;;  %v5009_v56 = vpack.c.bf16 %v3743_v42, %v3740_v41  ;;  %v3837_v58 = vld [vmem:[#allocation3 + $0x368] sm:$0xff]  ;;  %v3846_v41 = vld [vmem:[#allocation3 + $0x3b0] sm:$0xff] }
 0x77c   : > { %v3842_v42 = vld [vmem:[#allocation3 + $0x390] sm:$0xff] }
 0x77d   : > { %v8742_v18 = vpop.permute.xlu0 %2211  ;;  %v8744_v21 = vpop.permute.xlu1 %2352  ;;  %5004 = vmatprep.subr.bf16.mxu1 %v5003_v50  ;;  %v5071_v50 = vpack.c.bf16 %v3840_v28, %v3837_v58  ;;  %v5075_v28 = vpack.c.bf16 %v3846_v41, %v3843_v14  ;;  %v3851_v14 = vld [vmem:[#allocation3 + $0x3d8] sm:$0xff] }
 0x77e   : > { %3261 = vrot.lane.b32.xlu1 %v3208_v59, %s5661_s19  ;;  %v3737_v59 = vld [vmem:[#allocation3 + $0x48] sm:$0xff]  ;;  %s9280_s19 = scalar_lea.vmem %s9311_s4, %s4846_s14 }
 0x77f   : > { %v5005_v0 = vpack.c.bf16 %v3737_v59, %v3734_v7  ;;  %v3836_v7 = vld [vmem:[#allocation3 + $0x360] sm:$0xff]  ;;  %v9586_v59 = vmov 0.0  }
 0x780   : > { %3500 = vst.msk [vmem:[#allocation2 + $0x40] sm:$0xff] %vm3499_vm8, %v9586_v59  ;;  %3501 = vst.msk [vmem:[#allocation2 + $0x88] sm:$0xff] %vm3499_vm8, %v9586_v59  ;;  %v3753_v59 = vld [vmem:[#allocation3 + $0xc8] sm:$0xff] }
 0x781   : > { %v8749_v12 = vpop.permute.xlu0 %2483  ;;  %v8751_v35 = vpop.permute.xlu1 %2209  ;;  %5006 = vmatpush1.bf16.msra.mxu1 %v5005_v0 }
 0x782   : > { %3389 = vrot.lane.b32.xlu1 %v3336_v52, %s5662_s20  ;;  %v3831_v52 = vld [vmem:[#allocation3 + $0x338] sm:$0xff]  ;;  %5008 = vmatprep.subr.bf16.mxu1 %v5007_v32  ;;  %v5015_v32 = vpack.c.bf16 %v3756_v26, %v3753_v59  ;;  %v1728_v26 = vsel %vm1715_vm10, %v8113_v33, %v8641_v19 }
 0x783   : > { %v5067_v34 = vpack.c.bf16 %v3834_v48, %v3831_v52  ;;  %v3839_v52 = vld [vmem:[#allocation3 + $0x378] sm:$0xff] }
 0x784   : > { %v3747_v48 = vld [vmem:[#allocation3 + $0x98] sm:$0xff]  ;;  %v5073_v0 = vpack.c.bf16 %v3839_v52, %v3836_v7  ;;  %v3849_v52 = vld [vmem:[#allocation3 + $0x3c8] sm:$0xff] }
 0x785   : > { %v8754_v27 = vpop.permute.xlu0 %2340  ;;  %v8756_v38 = vpop.permute.xlu1 %2481  ;;  %5068 = vmatprep.subr.bf16.mxu0 %v5067_v34  ;;  %v3746_v34 = vld [vmem:[#allocation3 + $0x90] sm:$0xff]  ;;  %v5011_v15 = vpack.c.bf16 %v3750_v22, %v3747_v48  ;;  %5010 = vmatpush1.bf16.msra.mxu1 %v5009_v56  ;;  %v3755_v7 = vld [vmem:[#allocation3 + $0xd8] sm:$0xff]  ;;  %v5077_v22 = vpack.c.bf16 %v3845_v63, %v3842_v42  ;;  %v1600_v56 = vsel %vm1586_vm9, %v8635_v13, %v8622_v2  ;;  %v3761_v2 = vld [vmem:[#allocation3 + $0x108] sm:$0xff] }
 0x786   : > { %5070 = vmatpush1.bf16.msra.mxu0 %v5069_v30  ;;  %v5013_v58 = vpack.c.bf16 %v3749_v43, %v3746_v34  ;;  %v3752_v30 = vld [vmem:[#allocation3 + $0xc0] sm:$0xff]  ;;  %v5079_v34 = vpack.c.bf16 %v3852_v53, %v3849_v52  ;;  %v3858_v42 = vld [vmem:[#allocation3 + $0x410] sm:$0xff]  ;;  %v1729_v53 = vsel %vm1715_vm10, %v8641_v19, %v8633_v36  ;;  %v1858_v19 = vsel %vm1844_vm11, %v8657_v40, %v8647_v45 }
 0x787   : > { %5072 = vmatprep.subr.bf16.mxu0 %v5071_v50  ;;  %5012 = vmatprep.subr.bf16.mxu1 %v5011_v15  ;;  %v10076_v50 = vld [vmem:[#allocation26_spill] sm:$0xff]  ;;  %v3762_v15 = vld [vmem:[#allocation3 + $0x110] sm:$0xff]  ;;  %v5017_v63 = vpack.c.bf16 %v3755_v7, %v3752_v30  ;;  %v3765_v7 = vld [vmem:[#allocation3 + $0x128] sm:$0xff] }
 0x788   : > { %v1599_v48 = vsel %vm1586_vm9, %v10076_v50, %v8635_v13  ;;  %v3848_v43 = vld [vmem:[#allocation3 + $0x3c0] sm:$0xff]  ;;  %v10078_v50 = vld [vmem:[#allocation44_spill] sm:$0xff]  ;;  %v5019_v33 = vpack.c.bf16 %v3762_v15, %v3759_v16  ;;  %v3857_v15 = vld [vmem:[#allocation3 + $0x408] sm:$0xff] }
 0x789   : > { %v8758_v44 = vpop.permute.xlu0 %2612  ;;  %v8760_v60 = vpop.permute.xlu1 %2338  ;;  %5014 = vmatpush1.bf16.msra.mxu1 %v5013_v58  ;;  %v10079_v13 = vld [vmem:[#allocation92_spill] sm:$0xff]  ;;  %v1857_v58 = vsel %vm1844_vm11, %v8145_v57, %v8657_v40  ;;  %v5081_v30 = vpack.c.bf16 %v3851_v14, %v3848_v43  ;;  %v3861_v14 = vld [vmem:[#allocation3 + $0x428] sm:$0xff] }
 0x78a   : > { %5074 = vmatpush1.bf16.msra.mxu0 %v5073_v0  ;;  %v3855_v0 = vld [vmem:[#allocation3 + $0x3f8] sm:$0xff]  ;;  %5016 = vmatprep.subr.bf16.mxu1 %v5015_v32  ;;  %v3758_v52 = vld [vmem:[#allocation3 + $0xf0] sm:$0xff] }
 0x78b   : > { %5076 = vmatprep.subr.bf16.mxu0 %v5075_v28  ;;  %v1593_v28 = vsel %vm1586_vm9, %v10079_v13, %v8649_v6  ;;  %v10081_v6 = vld [vmem:[#allocation102_spill] sm:$0xff]  ;;  %v5083_v32 = vpack.c.bf16 %v3858_v42, %v3855_v0  ;;  %v10082_v13 = vld [vmem:[#allocation73_spill] sm:$0xff]  ;;  %v5021_v40 = vpack.c.bf16 %v3761_v2, %v3758_v52  ;;  %v2115_v2 = vsel %vm2102_vm13, %v8198_v20, %v8704_v24 }
 0x78c   : > { %v1722_v16 = vsel %vm1715_vm10, %v10081_v6, %v8667_v11  ;;  %v1625_v57 = vadd.f32 %v1593_v28, %v10082_v13  ;;  %v3771_v52 = vld [vmem:[#allocation3 + $0x158] sm:$0xff]  ;;  %v1981_v20 = vsel %vm1973_vm12, %v8714_v61, %v8702_v23  ;;  %v3870_v13 = vld [vmem:[#allocation3 + $0x470] sm:$0xff] }
 0x78d   : > { %v8762_v1 = vpop.permute.xlu0 %2469  ;;  %v8764_v62 = vpop.permute.xlu1 %2610  ;;  %5018 = vmatpush1.bf16.msra.mxu1 %v5017_v63  ;;  %v3770_v23 = vld [vmem:[#allocation3 + $0x150] sm:$0xff] }
 0x78e   : > { %10074 = vst [vmem:[#allocation94_spill] sm:$0xff] %v8762_v1  ;;  %v1631_v1 = vadd.f32 %v1599_v48, %v10078_v50  ;;  %5078 = vmatpush1.bf16.msra.mxu0 %v5077_v22  ;;  %v3768_v48 = vld [vmem:[#allocation3 + $0x140] sm:$0xff]  ;;  %v1986_v22 = vsel %vm1973_vm12, %v8190_v17, %v8677_v29  ;;  %5020 = vmatprep.subr.bf16.mxu1 %v5019_v33 }
 0x78f   : > { %5080 = vmatprep.subr.bf16.mxu0 %v5079_v34  ;;  %v1987_v34 = vsel %vm1973_vm12, %v8677_v29, %v8665_v9  ;;  %v5023_v42 = vpack.c.bf16 %v3768_v48, %v3765_v7  ;;  %v3764_v17 = vld [vmem:[#allocation3 + $0x120] sm:$0xff]  ;;  %v1754_v6 = vadd.f32 %v1722_v16, %v1625_v57  ;;  %v2116_v29 = vsel %vm2102_vm13, %v8704_v24, %v8688_v4 }
 0x790   : > { %v1760_v50 = vadd.f32 %v1728_v26, %v1631_v1  ;;  %v3864_v26 = vld [vmem:[#allocation3 + $0x440] sm:$0xff] }
 0x791   : > { %v8770_v39 = vpop.permute.xlu0 %2741  ;;  %v8772_v5 = vpop.permute.xlu1 %2467  ;;  %v5087_v7 = vpack.c.bf16 %v3864_v26, %v3861_v14  ;;  %v3860_v48 = vld [vmem:[#allocation3 + $0x420] sm:$0xff]  ;;  %5022 = vmatpush1.bf16.msra.mxu1 %v5021_v40  ;;  %v10086_v14 = vld [vmem:[#allocation55_spill] sm:$0xff]  ;;  %v2245_v40 = vsel %vm2231_vm14, %v8724_v54, %v8712_v37 }
 0x792   : > { %10075 = vst [vmem:[#allocation96_spill] sm:$0xff] %v8770_v39  ;;  %v1889_v11 = vadd.f32 %v1857_v58, %v1760_v50  ;;  %5082 = vmatpush1.bf16.msra.mxu0 %v5081_v30  ;;  %v3774_v58 = vld [vmem:[#allocation3 + $0x170] sm:$0xff]  ;;  %5024 = vmatprep.subr.bf16.mxu1 %v5023_v42  ;;  %v2110_v42 = vsel %vm2102_vm13, %v8734_v51, %v8722_v47  ;;  %v3873_v47 = vld [vmem:[#allocation3 + $0x488] sm:$0xff] }
 0x793   : > { %5084 = vmatprep.subr.bf16.mxu0 %v5083_v32  ;;  %v2244_v32 = vsel %vm2231_vm14, %v8240_v49, %v8724_v54  ;;  %v2013_v49 = vadd.f32 %v1981_v20, %v8697_v10  ;;  %v2373_v54 = vsel %vm2360_vm15, %v8248_v8, %v8744_v21  ;;  %v2374_v10 = vsel %vm2360_vm15, %v8744_v21, %v8732_v25  ;;  %v3776_v21 = vld [vmem:[#allocation3 + $0x180] sm:$0xff] }
 0x794   : > { %v2018_v50 = vadd.f32 %v1986_v22, %v1889_v11  ;;  %v10085_v22 = vld [vmem:[#allocation8_spill] sm:$0xff]  ;;  %v5027_v11 = vpack.c.bf16 %v3774_v58, %v3771_v52  ;;  %v3869_v58 = vld [vmem:[#allocation3 + $0x468] sm:$0xff]  ;;  %v2239_v8 = vsel %vm2231_vm14, %v8751_v35, %v8742_v18  ;;  %v2503_v18 = vsel %vm2489_vm5, %v8756_v38, %v8749_v12 }
 0x795   : > { %v8783_v59 = vpop.permute.xlu0 %2598  ;;  %v8785_v41 = vpop.permute.xlu1 %2739  ;;  %v8839_v26 = vrot.slane %v10086_v14, %v10085_v22  ;;  %v3866_v52 = vld [vmem:[#allocation3 + $0x450] sm:$0xff]  ;;  %v2142_v20 = vadd.f32 %v2110_v42, %v2013_v49  ;;  %v3872_v14 = vld [vmem:[#allocation3 + $0x480] sm:$0xff] }
 0x796   : > { %10077 = vst [vmem:[#allocation95_spill] sm:$0xff] %v8783_v59  ;;  %v10080_v59 = vld [vmem:[#allocation56_spill] sm:$0xff]  ;;  %v2147_v57 = vadd.f32 %v2115_v2, %v2018_v50 }
 0x797   : > { %v1632_v39 = vadd.f32 %v1600_v56, %v10080_v59  ;;  %v3854_v56 = vld [vmem:[#allocation3 + $0x3f0] sm:$0xff] }
 0x798   : > { %v5085_v63 = vpack.c.bf16 %v3857_v15, %v3854_v56  ;;  %v3867_v15 = vld [vmem:[#allocation3 + $0x458] sm:$0xff]  ;;  %v2276_v50 = vadd.f32 %v2244_v32, %v2147_v57  ;;  %v3786_v57 = vld [vmem:[#allocation3 + $0x1d0] sm:$0xff] }
 0x799   : > { %v1761_v59 = vadd.f32 %v1729_v53, %v1632_v39  ;;  %v8808_v1 = vpop.permute.xlu0 %2727  ;;  %v8810_v43 = vpop.permute.xlu1 %2596  ;;  %v10083_v39 = vld [vmem:[#allocation112_spill] sm:$0xff]  ;;  %v3767_v53 = vld [vmem:[#allocation3 + $0x138] sm:$0xff]  ;;  %v5091_v2 = vpack.c.bf16 %v3870_v13, %v3867_v15  ;;  %v5093_v15 = vpack.c.bf16 %v3869_v58, %v3866_v52  ;;  %v2368_v58 = vsel %vm2360_vm15, %v8760_v60, %v8754_v27 }
 0x79a   : > { %v1851_v0 = vsel %vm1844_vm11, %v10083_v39, %v8690_v55  ;;  %v10084_v55 = vld [vmem:[#allocation121_spill] sm:$0xff]  ;;  %v5025_v24 = vpack.c.bf16 %v3767_v53, %v3764_v17  ;;  %5086 = vmatpush1.bf16.msra.mxu0 %v5085_v63  ;;  %v3777_v17 = vld [vmem:[#allocation3 + $0x188] sm:$0xff]  ;;  %v3780_v53 = vld [vmem:[#allocation3 + $0x1a0] sm:$0xff]  ;;  %v2405_v32 = vadd.f32 %v2373_v54, %v2276_v50 }
 0x79b   : > { %v1890_v28 = vadd.f32 %v1858_v19, %v1761_v59  ;;  %v1980_v33 = vsel %vm1973_vm12, %v10084_v55, %v8714_v61  ;;  %v3863_v19 = vld [vmem:[#allocation3 + $0x438] sm:$0xff]  ;;  %v1883_v59 = vadd.f32 %v1851_v0, %v1754_v6  ;;  %v3773_v61 = vld [vmem:[#allocation3 + $0x168] sm:$0xff]  ;;  %5088 = vmatprep.subr.bf16.mxu0 %v5087_v7  ;;  %v3782_v42 = vld [vmem:[#allocation3 + $0x1b0] sm:$0xff] }
 0x79c   : > { %v5089_v0 = vpack.c.bf16 %v3863_v19, %v3860_v48  ;;  %5026 = vmatpush1.bf16.msra.mxu1 %v5025_v24  ;;  %v5029_v55 = vpack.c.bf16 %v3773_v61, %v3770_v23  ;;  %v10088_v7 = vld [vmem:[#allocation133_spill] sm:$0xff]  ;;  %v5031_v19 = vpack.c.bf16 %v3780_v53, %v3777_v17  ;;  %v2502_v24 = vsel %vm2489_vm5, %v8278_v3, %v8756_v38  ;;  %v3882_v53 = vld [vmem:[#allocation3 + $0x4d0] sm:$0xff]  ;;  %v10090_v50 = vld [vmem:[#allocation147_spill] sm:$0xff] }
 0x79d   : > { %v2019_v16 = vadd.f32 %v1987_v34, %v1890_v28  ;;  %v8830_v30 = vpop.permute.xlu0 %3001  ;;  %v8832_v56 = vpop.permute.xlu1 %2725  ;;  %v2012_v39 = vadd.f32 %v1980_v33, %v1883_v59  ;;  %v10087_v28 = vld [vmem:[#allocation127_spill] sm:$0xff]  ;;  %v2238_v48 = vsel %vm2231_vm14, %v10088_v7, %v8751_v35  ;;  %5028 = vmatprep.subr.bf16.mxu1 %v5027_v11  ;;  %v3783_v13 = vld [vmem:[#allocation3 + $0x1b8] sm:$0xff]  ;;  %v2271_v61 = vadd.f32 %v2239_v8, %v2142_v20  ;;  %v3878_v27 = vld [vmem:[#allocation3 + $0x4b0] sm:$0xff] }
 0x79e   : > { %v2109_v6 = vsel %vm2102_vm13, %v10087_v28, %v8734_v51  ;;  %v3876_v51 = vld [vmem:[#allocation3 + $0x4a0] sm:$0xff]  ;;  %5090 = vmatpush1.bf16.msra.mxu0 %v5089_v0  ;;  %v3875_v11 = vld [vmem:[#allocation3 + $0x498] sm:$0xff]  ;;  %v2534_v49 = vadd.f32 %v2502_v24, %v2405_v32  ;;  %v2631_v38 = vsel %vm2618_vm6, %v10031_v31, %v8764_v62  ;;  %v2632_v28 = vsel %vm2618_vm6, %v8764_v62, %v8758_v44  ;;  %v3789_v31 = vld [vmem:[#allocation3 + $0x1e8] sm:$0xff] }
 0x79f   : > { %v2148_v34 = vadd.f32 %v2116_v29, %v2019_v16  ;;  %v3779_v16 = vld [vmem:[#allocation3 + $0x198] sm:$0xff]  ;;  %v2141_v59 = vadd.f32 %v2109_v6, %v2012_v39  ;;  %5092 = vmatprep.subr.bf16.mxu0 %v5091_v2  ;;  %v5095_v35 = vpack.c.bf16 %v3876_v51, %v3873_v47  ;;  %v5035_v6 = vpack.c.bf16 %v3786_v57, %v3783_v13  ;;  %v3785_v2 = vld [vmem:[#allocation3 + $0x1c8] sm:$0xff]  ;;  %v10091_v51 = vld [vmem:[#allocation96_spill] sm:$0xff] }
 0x7a0   : > { %5030 = vmatpush1.bf16.msra.mxu1 %v5029_v55  ;;  %v5033_v0 = vpack.c.bf16 %v3779_v16, %v3776_v21  ;;  %v3879_v17 = vld [vmem:[#allocation3 + $0x4b8] sm:$0xff]  ;;  %v2496_v54 = vsel %vm2489_vm5, %v10090_v50, %v8772_v5  ;;  %v3792_v55 = vld [vmem:[#allocation3 + $0x200] sm:$0xff]  ;;  %v2760_v62 = vsel %vm2747_vm7, %v10038_v46, %v8785_v41  ;;  %v5037_v46 = vpack.c.bf16 %v3785_v2, %v3782_v42  ;;  %v3885_v20 = vld [vmem:[#allocation3 + $0x4e8] sm:$0xff] }
 0x7a1   : > { %v8857_v63 = vpop.permute.xlu0 %3129  ;;  %v8859_v29 = vpop.permute.xlu1 %2999  ;;  %v2277_v33 = vadd.f32 %v2245_v40, %v2148_v34  ;;  %v2270_v23 = vadd.f32 %v2238_v48, %v2141_v59  ;;  %v10089_v34 = vld [vmem:[#allocation144_spill] sm:$0xff]  ;;  %5032 = vmatprep.subr.bf16.mxu1 %v5031_v19  ;;  %v5099_v7 = vpack.c.bf16 %v3882_v53, %v3879_v17  ;;  %v2663_v48 = vadd.f32 %v2631_v38, %v2534_v49  ;;  %v10092_v19 = vld [vmem:[#allocation94_spill] sm:$0xff]  ;;  %v10096_v53 = vld [vmem:[#allocation41_spill] sm:$0xff] }
 0x7a2   : > { %v2367_v3 = vsel %vm2360_vm15, %v10089_v34, %v8760_v60  ;;  %5094 = vmatpush1.bf16.msra.mxu0 %v5093_v15  ;;  %v3881_v60 = vld [vmem:[#allocation3 + $0x4c8] sm:$0xff]  ;;  %v2497_v21 = vsel %vm2489_vm5, %v8772_v5, %v10092_v19  ;;  %v3888_v24 = vld [vmem:[#allocation3 + $0x500] sm:$0xff]  ;;  %v2400_v15 = vadd.f32 %v2368_v58, %v2271_v61  ;;  %v5039_v32 = vpack.c.bf16 %v3792_v55, %v3789_v31  ;;  %v3795_v34 = vld [vmem:[#allocation3 + $0x218] sm:$0xff] }
 0x7a3   : > { %v2406_v22 = vadd.f32 %v2374_v10, %v2277_v33  ;;  %v5097_v10 = vpack.c.bf16 %v3875_v11, %v3872_v14  ;;  %v2399_v47 = vadd.f32 %v2367_v3, %v2270_v23  ;;  %v2761_v33 = vsel %vm2747_vm7, %v8785_v41, %v10091_v51  ;;  %5096 = vmatprep.subr.bf16.mxu0 %v5095_v35  ;;  %v10093_v13 = vld [vmem:[#allocation14_spill] sm:$0xff]  ;;  %v10094_v14 = vld [vmem:[#allocation95_spill] sm:$0xff]  ;;  %v3798_v3 = vld [vmem:[#allocation3 + $0x230] sm:$0xff] }
 0x7a4   : > { %5034 = vmatpush1.bf16.msra.mxu1 %v5033_v0  ;;  %v2625_v57 = vsel %vm2618_vm6, %v10093_v13, %v8810_v43  ;;  %v2792_v35 = vadd.f32 %v2760_v62, %v2663_v48  ;;  %v2626_v11 = vsel %vm2618_vm6, %v8810_v43, %v10094_v14  ;;  %v5101_v23 = vpack.c.bf16 %v3881_v60, %v3878_v27  ;;  %v10095_v0 = vld [vmem:[#allocation17_spill] sm:$0xff]  ;;  %v10097_v49 = vld [vmem:[#allocation107_spill] sm:$0xff]  ;;  %v3894_v55 = vld [vmem:[#allocation3 + $0x530] sm:$0xff] }
 0x7a5   : > { %v8876_v39 = vpop.permute.xlu0 %2987  ;;  %v8878_v40 = vpop.permute.xlu1 %3127  ;;  %v2535_v52 = vadd.f32 %v2503_v18, %v2406_v22  ;;  %v2528_v41 = vadd.f32 %v2496_v54, %v2399_v47  ;;  %5036 = vmatprep.subr.bf16.mxu1 %v5035_v6  ;;  %v3788_v22 = vld [vmem:[#allocation3 + $0x1e0] sm:$0xff]  ;;  %v3791_v18 = vld [vmem:[#allocation3 + $0x1f8] sm:$0xff]  ;;  %v2529_v61 = vadd.f32 %v2497_v21, %v2400_v15  ;;  %v2754_v17 = vsel %vm2747_vm7, %v10095_v0, %v8832_v56  ;;  %v3797_v27 = vld [vmem:[#allocation3 + $0x228] sm:$0xff] }
 0x7a6   : > { %5098 = vmatpush1.bf16.msra.mxu0 %v5097_v10  ;;  %v2858_v38 = vmul.f32 %v10097_v49, %v10096_v53  ;;  %v3884_v6 = vld [vmem:[#allocation3 + $0x4e0] sm:$0xff]  ;;  %v3887_v42 = vld [vmem:[#allocation3 + $0x4f8] sm:$0xff]  ;;  %v2755_v43 = vsel %vm2747_vm7, %v8832_v56, %v8808_v1  ;;  %v5041_v10 = vpack.c.bf16 %v3791_v18, %v3788_v22  ;;  %v5043_v1 = vpack.c.bf16 %v3798_v3, %v3795_v34  ;;  %v3794_v56 = vld [vmem:[#allocation3 + $0x210] sm:$0xff] }
 0x7a7   : > { %v2664_v8 = vadd.f32 %v2632_v28, %v2535_v52  ;;  %5100 = vmatprep.subr.bf16.mxu0 %v5099_v7  ;;  %v5103_v28 = vpack.c.bf16 %v3888_v24, %v3885_v20  ;;  %v2657_v2 = vadd.f32 %v2625_v57, %v2528_v41  ;;  %v10098_v52 = vld [vmem:[#allocation111_spill] sm:$0xff]  ;;  %v3891_v31 = vld [vmem:[#allocation3 + $0x518] sm:$0xff]  ;;  %v2658_v47 = vadd.f32 %v2626_v11, %v2529_v61  ;;  %v10099_v62 = vld [vmem:[#allocation46_spill] sm:$0xff] }
 0x7a8   : > { %v2859_v58 = vmul.f32 %v10098_v52, %v10096_v53  ;;  %5038 = vmatpush1.bf16.msra.mxu1 %v5037_v46  ;;  %v3020_v7 = vsel %vm425_vm0, %v8859_v29, %v8830_v30  ;;  %v2874_v48 = vadd.f32 %v2858_v38, %v2792_v35  ;;  %v5105_v19 = vpack.c.bf16 %v3887_v42, %v3884_v6  ;;  %v3801_v21 = vld [vmem:[#allocation3 + $0x248] sm:$0xff]  ;;  %v3804_v46 = vld [vmem:[#allocation3 + $0x260] sm:$0xff]  ;;  %v10100_v24 = vld [vmem:[#allocation45_spill] sm:$0xff] }
 0x7a9   : > { %v8901_v16 = vpop.permute.xlu0 %3257  ;;  %v8903_v59 = vpop.permute.xlu1 %2985  ;;  %v2793_v5 = vadd.f32 %v2761_v33, %v2664_v8  ;;  %v3019_v33 = vsel %vm425_vm0, %v10099_v62, %v8859_v29  ;;  %5040 = vmatprep.subr.bf16.mxu1 %v5039_v32  ;;  %v2786_v60 = vadd.f32 %v2754_v17, %v2657_v2  ;;  %v2787_v20 = vadd.f32 %v2755_v43, %v2658_v47  ;;  %v3890_v13 = vld [vmem:[#allocation3 + $0x510] sm:$0xff]  ;;  %v3893_v57 = vld [vmem:[#allocation3 + $0x528] sm:$0xff]  ;;  %v10101_v18 = vld [vmem:[#allocation142_spill] sm:$0xff] }
 0x7aa   : > { %5102 = vmatpush1.bf16.msra.mxu0 %v5101_v23  ;;  %v3147_v15 = vsel %vm554_vm1, %v10100_v24, %v8878_v40  ;;  %v3148_v29 = vsel %vm554_vm1, %v8878_v40, %v8857_v63  ;;  %v5107_v41 = vpack.c.bf16 %v3894_v55, %v3891_v31  ;;  %v3051_v32 = vadd.f32 %v3019_v33, %v2874_v48  ;;  %v3897_v23 = vld [vmem:[#allocation3 + $0x548] sm:$0xff]  ;;  %v3900_v34 = vld [vmem:[#allocation3 + $0x560] sm:$0xff]  ;;  %v3807_v43 = vld [vmem:[#allocation3 + $0x278] sm:$0xff] }
 0x7ab   : > { %v2875_v8 = vadd.f32 %v2859_v58, %v2793_v5  ;;  %5104 = vmatprep.subr.bf16.mxu0 %v5103_v28  ;;  %v2852_v35 = vmul.f32 %v8839_v26, %v10101_v18  ;;  %v5045_v11 = vpack.c.bf16 %v3797_v27, %v3794_v56  ;;  %v10102_v3 = vld [vmem:[#allocation67_spill] sm:$0xff]  ;;  %v5047_v49 = vpack.c.bf16 %v3804_v46, %v3801_v21  ;;  %v3800_v38 = vld [vmem:[#allocation3 + $0x240] sm:$0xff]  ;;  %v3803_v28 = vld [vmem:[#allocation3 + $0x258] sm:$0xff] }
 0x7ac   : > { %5042 = vmatpush1.bf16.msra.mxu1 %v5041_v10  ;;  %v2853_v61 = vmul.f32 %v10102_v3, %v10101_v18  ;;  %v10103_v40 = vld [vmem:[#allocation75_spill] sm:$0xff]  ;;  %v3179_v6 = vadd.f32 %v3147_v15, %v3051_v32  ;;  %v5109_v2 = vpack.c.bf16 %v3893_v57, %v3890_v13  ;;  %v3810_v52 = vld [vmem:[#allocation3 + $0x290] sm:$0xff]  ;;  %v5111_v31 = vpack.c.bf16 %v3900_v34, %v3897_v23  ;;  %v3896_v55 = vld [vmem:[#allocation3 + $0x540] sm:$0xff] }
 0x7ad   : > { %v8921_v50 = vpop.permute.xlu0 %3115  ;;  %v3256_v54 = vpop.permute.xlu1 %3255  ;;  %v3052_v22 = vadd.f32 %v3020_v7, %v2875_v8  ;;  %5044 = vmatprep.subr.bf16.mxu1 %v5043_v1  ;;  %v2868_v58 = vadd.f32 %v2852_v35, %v2786_v60  ;;  %v3899_v47 = vld [vmem:[#allocation3 + $0x558] sm:$0xff]  ;;  %v10104_v62 = vld [vmem:[#allocation16_spill] sm:$0xff]  ;;  %v5049_v27 = vpack.c.bf16 %v3803_v28, %v3800_v38  ;;  %v3014_v60 = vsel %vm425_vm0, %v8903_v59, %v8876_v39  ;;  %v3809_v15 = vld [vmem:[#allocation3 + $0x288] sm:$0xff] }
 0x7ae   : > { %v3275_v0 = vsel %vm683_vm2, %v10103_v40, %v3256_v54  ;;  %v3276_v17 = vsel %vm683_vm2, %v3256_v54, %v8901_v16  ;;  %5106 = vmatpush1.bf16.msra.mxu0 %v5105_v19  ;;  %v2869_v10 = vadd.f32 %v2853_v61, %v2787_v20  ;;  %v3013_v54 = vsel %vm425_vm0, %v10104_v62, %v8903_v59  ;;  %v3903_v48 = vld [vmem:[#allocation3 + $0x578] sm:$0xff]  ;;  %v3906_v8 = vld [vmem:[#allocation3 + $0x590] sm:$0xff]  ;;  %v3905_v35 = vld [vmem:[#allocation3 + $0x588] sm:$0xff] }
 0x7af   : > { %v3180_v42 = vadd.f32 %v3148_v29, %v3052_v22  ;;  %5108 = vmatprep.subr.bf16.mxu0 %v5107_v41  ;;  %v3307_v33 = vadd.f32 %v3275_v0, %v3179_v6  ;;  %v10105_v19 = vld [vmem:[#allocation93_spill] sm:$0xff]  ;;  %v5051_v20 = vpack.c.bf16 %v3810_v52, %v3807_v43  ;;  %v3806_v24 = vld [vmem:[#allocation3 + $0x270] sm:$0xff]  ;;  %v10106_v29 = vld [vmem:[#allocation18_spill] sm:$0xff]  ;;  %v5113_v32 = vpack.c.bf16 %v3899_v47, %v3896_v55 }
 0x7b0   : > { %5046 = vmatpush1.bf16.msra.mxu1 %v5045_v11  ;;  %v3045_v22 = vadd.f32 %v3013_v54, %v2868_v58  ;;  %v5115_v59 = vpack.c.bf16 %v3906_v8, %v3903_v48  ;;  %v3902_v18 = vld [vmem:[#allocation3 + $0x570] sm:$0xff]  ;;  %v3046_v11 = vadd.f32 %v3014_v60, %v2869_v10  ;;  %v10107_v23 = vld [vmem:[#allocation74_spill] sm:$0xff]  ;;  %v10108_v38 = vld [vmem:[#allocation29_spill] sm:$0xff] }
 0x7b1   : > { %v8937_v5 = vpop.permute.xlu0 %3385  ;;  %v3114_v14 = vpop.permute.xlu1 %3113  ;;  %v3308_v7 = vadd.f32 %v3276_v17, %v3180_v42  ;;  %5048 = vmatprep.subr.bf16.mxu1 %v5047_v49  ;;  %v5053_v17 = vpack.c.bf16 %v3809_v15, %v3806_v24  ;;  %v3813_v43 = vld [vmem:[#allocation3 + $0x2a8] sm:$0xff]  ;;  %v3816_v52 = vld [vmem:[#allocation3 + $0x2c0] sm:$0xff]  ;;  %v3911_v60 = vld [vmem:[#allocation3 + $0x5b8] sm:$0xff] }
 0x7b2   : > { %v3141_v41 = vsel %vm554_vm1, %v10106_v29, %v3114_v14  ;;  %5110 = vmatpush1.bf16.msra.mxu0 %v5109_v2  ;;  %v3142_v39 = vsel %vm554_vm1, %v3114_v14, %v8921_v50  ;;  %v5117_v2 = vpack.c.bf16 %v3905_v35, %v3902_v18  ;;  %v3812_v58 = vld [vmem:[#allocation3 + $0x2a0] sm:$0xff]  ;;  %v5055_v54 = vpack.c.bf16 %v3816_v52, %v3813_v43  ;;  %v3819_v15 = vld [vmem:[#allocation3 + $0x2d8] sm:$0xff]  ;;  %v3822_v29 = vld [vmem:[#allocation3 + $0x2f0] sm:$0xff] }
 0x7b3   : > { %5112 = vmatprep.subr.bf16.mxu0 %v5111_v31  ;;  %v3173_v49 = vadd.f32 %v3141_v41, %v3045_v22  ;;  %v3174_v14 = vadd.f32 %v3142_v39, %v3046_v11  ;;  %v3908_v8 = vld [vmem:[#allocation3 + $0x5a0] sm:$0xff]  ;;  %v3818_v41 = vld [vmem:[#allocation3 + $0x2d0] sm:$0xff]  ;;  %v3821_v18 = vld [vmem:[#allocation3 + $0x2e8] sm:$0xff] }
 0x7b4   : > { %5050 = vmatpush1.bf16.msra.mxu1 %v5049_v27  ;;  %v5121_v24 = vpack.c.bf16 %v3911_v60, %v3908_v8  ;;  %v3915_v35 = vld [vmem:[#allocation3 + $0x5d8] sm:$0xff]  ;;  %v3918_v11 = vld [vmem:[#allocation3 + $0x5f0] sm:$0xff] }
 0x7b5   : > { %v3244_v1 = vpop.permute.xlu0 %3243  ;;  %v3384_v56 = vpop.permute.xlu1 %3383  ;;  %5052 = vmatprep.subr.bf16.mxu1 %v5051_v20 }
 0x7b6   : > { %v3403_v21 = vsel %vm812_vm3, %v10105_v19, %v3384_v56  ;;  %v3404_v46 = vsel %vm812_vm3, %v3384_v56, %v8937_v5  ;;  %5114 = vmatpush1.bf16.msra.mxu0 %v5113_v32  ;;  %v10109_v56 = vld [vmem:[#allocation39_spill] sm:$0xff] }
 0x7b7   : > { %v3435_v13 = vadd.f32 %v3403_v21, %v3307_v33  ;;  %v3436_v57 = vadd.f32 %v3404_v46, %v3308_v7  ;;  %5116 = vmatprep.subr.bf16.mxu0 %v5115_v59  ;;  %v3815_v33 = vld [vmem:[#allocation3 + $0x2b8] sm:$0xff]  ;;  %v3909_v7 = vld [vmem:[#allocation3 + $0x5a8] sm:$0xff]  ;;  %v5059_v59 = vpack.c.bf16 %v3822_v29, %v3819_v15  ;;  %v5604_v29 = vld [vmem:[#allocation2 + $0x20] sm:$0xff] }
 0x7b8   : > { %5054 = vmatpush1.bf16.msra.mxu1 %v5053_v17  ;;  %v5057_v46 = vpack.c.bf16 %v3815_v33, %v3812_v58 }
 0x7b9   : > { %v8960_v34 = vadd.f32 %v10107_v23, %v3435_v13  ;;  %v8963_v61 = vadd.f32 %v10107_v23, %v3436_v57  ;;  %v3372_v40 = vpop.permute.xlu0 %3371  ;;  %v3242_v0 = vpop.permute.xlu1 %3241  ;;  %5056 = vmatprep.subr.bf16.mxu1 %v5055_v54  ;;  %v10110_v13 = vld [vmem:[#allocation20_spill] sm:$0xff] }
 0x7ba   : > { %v3269_v28 = vsel %vm683_vm2, %v10108_v38, %v3242_v0  ;;  %v3270_v50 = vsel %vm683_vm2, %v3242_v0, %v3244_v1  ;;  %v3912_v1 = vld [vmem:[#allocation3 + $0x5c0] sm:$0xff]  ;;  %5118 = vmatpush1.bf16.msra.mxu0 %v5117_v2  ;;  %v3914_v38 = vld [vmem:[#allocation3 + $0x5d0] sm:$0xff]  ;;  %v5123_v2 = vpack.c.bf16 %v3918_v11, %v3915_v35 }
 0x7bb   : > { %v3479_v6 = vmax.f32 %v8960_v34, 0.0  ;;  %v3480_v42 = vmax.f32 %v8963_v61, 0.0  ;;  %v3301_v10 = vadd.f32 %v3269_v28, %v3173_v49  ;;  %v3302_v31 = vadd.f32 %v3270_v50, %v3174_v14  ;;  %v3917_v28 = vld [vmem:[#allocation3 + $0x5e8] sm:$0xff]  ;;  %v3787_v34 = vld [vmem:[#allocation3 + $0x1d8] sm:$0xff] }
 0x7bc   : > { %v5119_v20 = vpack.c.bf16 %v3912_v1, %v3909_v7  ;;  %5058 = vmatpush1.bf16.msra.mxu1 %v5057_v46  ;;  %v5061_v49 = vpack.c.bf16 %v3821_v18, %v3818_v41  ;;  %v3778_v1 = vld [vmem:[#allocation3 + $0x190] sm:$0xff] }
 0x7bd   : > { %v3370_v55 = vpop.permute.xlu1 %3369  ;;  %v8970_v47 = vpop.permute.xlu0 %5519  ;;  %v5543_v62 = vpack.i.bf16 %v3480_v42, %v3479_v6  ;;  %5060 = vmatprep.subr.bf16.mxu1 %v5059_v59  ;;  %v5602_v46 = vld [vmem:[#allocation2] sm:$0xff] }
 0x7be   : > { %v3397_v27 = vsel %vm812_vm3, %v10109_v56, %v3370_v55  ;;  %v3398_v48 = vsel %vm812_vm3, %v3370_v55, %v3372_v40  ;;  %v5521_v40 = vunpack.i.l.bf16 %v8970_v47  ;;  %5120 = vmatprep.subr.bf16.mxu0 %v5119_v20  ;;  %v5522_v43 = vunpack.i.h.bf16 %v8970_v47  ;;  %v3781_v56 = vld [vmem:[#allocation3 + $0x1a8] sm:$0xff] }
 0x7bf   : > { %v3429_v19 = vadd.f32 %v3397_v27, %v3301_v10  ;;  %v3430_v21 = vadd.f32 %v3398_v48, %v3302_v31  ;;  %5544 = vrot.lane.b32.xlu1 %v5543_v62, %s5658_s17  ;;  %5122 = vmatpush1.bf16.msra.mxu0 %v5121_v24  ;;  %v5125_v10 = vpack.c.bf16 %v3917_v28, %v3914_v38  ;;  %v5600_v31 = vld [vmem:[#allocation2 + $0x8] sm:$0xff]  ;;  %v5601_v62 = vld [vmem:[#allocation2 + $0x10] sm:$0xff]  ;;  %v5603_v24 = vld [vmem:[#allocation2 + $0x18] sm:$0xff] }
 0x7c0   : > { %5062 = vmatpush1.bf16.msra.mxu1 %v5061_v49  ;;  %5124 = vmatprep.subr.bf16.mxu0 %v5123_v2  ;;  %v5255_v8 = vpack.c.bf16 %v3781_v56, %v3778_v1  ;;  %v10111_v2 = vld [vmem:[#allocation48_spill] sm:$0xff]  ;;  %v10112_v56 = vld [vmem:[#allocation57_spill] sm:$0xff] }
 0x7c1   : > { %v8981_v57 = vadd.f32 %v10110_v13, %v3429_v19  ;;  %v8984_v32 = vadd.f32 %v10110_v13, %v3430_v21  ;;  %v5515_v22 = vpop.permute.xlu1 %5514  ;;  %v8986_v39 = vpop.permute.xlu0 %1582 }
 0x7c2   : > { %v5517_v0 = vunpack.i.h.bf16 %v5515_v22  ;;  %v5516_v17 = vunpack.i.l.bf16 %v5515_v22  ;;  %5256 = vmatprep.subr.bf16.mxu1 %v5255_v8 }
 0x7c3   : > { %v3473_v50 = vmax.f32 %v8981_v57, 0.0  ;;  %v3474_v14 = vmax.f32 %v8984_v32, 0.0  ;;  %5126 = vmatpush1.bf16.msra.mxu0 %v5125_v10  ;;  %v3939_v57 = vld [vmem:[#allocation3 + $0x698] sm:$0xff] }
 0x7c4   : > { %v3575_v52 = vsel %vm425_vm0, %v5516_v17, %v5517_v0  ;;  %v3576_v58 = vsel %vm425_vm0, %v5517_v0, %v5521_v40  ;;  %v3574_v47 = vsel %vm425_vm0, %v5522_v43, %v5516_v17  ;;  %v1601_v43 = vsel %vm1586_vm9, %v10111_v2, %v8986_v39 }
 0x7c5   : > { %v8994_v55 = vmax.f32 %v5600_v31, %v3575_v52  ;;  %v8996_v54 = vmax.f32 %v5601_v62, %v3576_v58  ;;  %v8998_v33 = vpop.permute.xlu1 %5524  ;;  %v9000_v7 = vpop.permute.xlu0 %1711  ;;  %v9011_v20 = vmax.f32 %v5602_v46, %v3574_v47  ;;  %v5553_v11 = vpack.i.bf16 %v3474_v14, %v3473_v50  ;;  %v5606_v46 = vld [vmem:[#allocation2 + $0x48] sm:$0xff] }
 0x7c6   : > { %v5527_v27 = vunpack.i.h.bf16 %v8998_v33  ;;  %v5526_v48 = vunpack.i.l.bf16 %v8998_v33  ;;  %v1730_v10 = vsel %vm1715_vm10, %v8633_v36, %v9000_v7  ;;  %v1633_v47 = vadd.f32 %v1601_v43, %v10112_v56 }
 0x7c7   : > { %v5538_v60 = vpack.i.bf16 %v8996_v54, %v8994_v55 }
 0x7c8   : > { %v3577_v19 = vsel %vm425_vm0, %v5521_v40, %v5526_v48  ;;  %v3578_v21 = vsel %vm425_vm0, %v5526_v48, %v5527_v27 }
 0x7c9   : > { %v9013_v15 = vmax.f32 %v5603_v24, %v3577_v19  ;;  %v9015_v41 = vmax.f32 %v5604_v29, %v3578_v21  ;;  %v1585_v13 = vpop.permute.xlu1 %1584  ;;  %v1841_v22 = vpop.permute.xlu0 %1840  ;;  %5539 = vrot.lane.b32.xlu0 %v5538_v60, %s5664_s21  ;;  %v1762_v19 = vadd.f32 %v1730_v10, %v1633_v47  ;;  %v5605_v21 = vld [vmem:[#allocation2 + $0x50] sm:$0xff]  ;;  %v5607_v29 = vld [vmem:[#allocation2 + $0x58] sm:$0xff] }
 0x7ca   : > { %v1859_v48 = vsel %vm1844_vm11, %v8647_v45, %v1841_v22  ;;  %v1602_v2 = vsel %vm1586_vm9, %v8986_v39, %v1585_v13  ;;  %v10113_v47 = vld [vmem:[#allocation43_spill] sm:$0xff] }
 0x7cb   : > { %3652 = vrot.lane.b32.xlu1 %v9015_v41, %s5664_s21  ;;  %v5548_v59 = vpack.i.bf16 %v9013_v15, %v9011_v20 }
 0x7cd   : > { %v1714_v18 = vpop.permute.xlu1 %1713  ;;  %v1970_v35 = vpop.permute.xlu0 %1969  ;;  %5549 = vrot.lane.b32.xlu0 %v5548_v59, %s5664_s21 }
 0x7ce   : > { %v1988_v45 = vsel %vm1973_vm12, %v8665_v9, %v1970_v35  ;;  %v1731_v9 = vsel %vm1715_vm10, %v9000_v7, %v1714_v18 }
 0x7d1   : > { %v1843_v40 = vpop.permute.xlu1 %1842  ;;  %v5530_v0 = vpop.permute.xlu0 %5529  ;;  %5554 = vrot.lane.b32.xlu0 %v5553_v11, %s5658_s17 }
 0x7d2   : > { %v5532_v38 = vunpack.i.h.bf16 %v5530_v0  ;;  %v5531_v28 = vunpack.i.l.bf16 %v5530_v0 }
 0x7d4   : > { %v3583_v31 = vsel %vm425_vm0, %v5531_v28, %v5532_v38 }
 0x7d5   : > { %v1972_v17 = vpop.permute.xlu1 %1971  ;;  %v2099_v49 = vpop.permute.xlu0 %2098  ;;  %v9046_v36 = vmax.f32 %v5605_v21, %v3583_v31 }
 0x7d6   : > { %v2117_v43 = vsel %vm2102_vm13, %v8688_v4, %v2099_v49 }
 0x7d9   : > { %v9031_v52 = vpop.permute.xlu1 %5534  ;;  %v2228_v58 = vpop.permute.xlu0 %2227 }
 0x7da   : > { %v5537_v62 = vunpack.i.h.bf16 %v9031_v52  ;;  %v5536_v1 = vunpack.i.l.bf16 %v9031_v52  ;;  %v2246_v56 = vsel %vm2231_vm14, %v8712_v37, %v2228_v58 }
 0x7dc   : > { %v3582_v8 = vsel %vm425_vm0, %v5537_v62, %v5531_v28  ;;  %v3584_v60 = vsel %vm425_vm0, %v5532_v38, %v5536_v1  ;;  %v1891_v28 = vadd.f32 %v1859_v48, %v1762_v19  ;;  %v1634_v48 = vadd.f32 %v1602_v2, %v10113_v47 }
 0x7dd   : > { %v9048_v24 = vmax.f32 %v5606_v46, %v3582_v8  ;;  %v9050_v59 = vmax.f32 %v5607_v29, %v3584_v60  ;;  %v2101_v11 = vpop.permute.xlu1 %2100  ;;  %v2357_v0 = vpop.permute.xlu0 %2356  ;;  %v1860_v60 = vsel %vm1844_vm11, %v1841_v22, %v1843_v40  ;;  %v1989_v46 = vsel %vm1973_vm12, %v1970_v35, %v1972_v17 }
 0x7de   : > { %v2020_v10 = vadd.f32 %v1988_v45, %v1891_v28  ;;  %v2375_v39 = vsel %vm2360_vm15, %v8732_v25, %v2357_v0  ;;  %v1763_v4 = vadd.f32 %v1731_v9, %v1634_v48  ;;  %v2118_v37 = vsel %vm2102_vm13, %v2099_v49, %v2101_v11 }
 0x7df   : > { %3662 = vrot.lane.b32.xlu0 %v9048_v24, %s5664_s21  ;;  %v5558_v38 = vpack.i.bf16 %v9050_v59, %v9046_v36 }
 0x7e0   : > { %v2149_v8 = vadd.f32 %v2117_v43, %v2020_v10  ;;  %v1892_v18 = vadd.f32 %v1860_v60, %v1763_v4 }
 0x7e1   : > { %v2230_v31 = vpop.permute.xlu1 %2229  ;;  %v2486_v62 = vpop.permute.xlu0 %2485  ;;  %5559 = vrot.lane.b32.xlu1 %v5558_v38, %s5664_s21 }
 0x7e2   : > { %v2278_v13 = vadd.f32 %v2246_v56, %v2149_v8  ;;  %v2504_v7 = vsel %vm2489_vm5, %v8749_v12, %v2486_v62  ;;  %v2021_v22 = vadd.f32 %v1989_v46, %v1892_v18  ;;  %v2247_v38 = vsel %vm2231_vm14, %v2228_v58, %v2230_v31 }
 0x7e3   : > { %v2860_v56 = vmul.f32 %v8839_v26, %v10096_v53  ;;  %v2861_v46 = vmul.f32 %v10102_v3, %v10096_v53 }
 0x7e4   : > { %v2407_v29 = vadd.f32 %v2375_v39, %v2278_v13  ;;  %v2150_v35 = vadd.f32 %v2118_v37, %v2021_v22 }
 0x7e5   : > { %v2359_v19 = vpop.permute.xlu1 %2358  ;;  %v2615_v21 = vpop.permute.xlu0 %2614 }
 0x7e6   : > { %v2633_v45 = vsel %vm2618_vm6, %v8758_v44, %v2615_v21  ;;  %v2536_v40 = vadd.f32 %v2504_v7, %v2407_v29  ;;  %v2376_v12 = vsel %vm2360_vm15, %v2357_v0, %v2359_v19  ;;  %v2279_v43 = vadd.f32 %v2247_v38, %v2150_v35 }
 0x7e8   : > { %v2665_v17 = vadd.f32 %v2633_v45, %v2536_v40  ;;  %v2408_v44 = vadd.f32 %v2376_v12, %v2279_v43  ;;  %v3924_v12 = vld [vmem:[#allocation3 + $0x620] sm:$0xff] }
 0x7e9   : > { %v2488_v28 = vpop.permute.xlu1 %2487  ;;  %v2744_v25 = vpop.permute.xlu0 %2743 }
 0x7ea   : > { %v2762_v2 = vsel %vm2747_vm7, %v10091_v51, %v2744_v25  ;;  %v2505_v11 = vsel %vm2489_vm5, %v2486_v62, %v2488_v28 }
 0x7eb   : > { %v2794_v10 = vadd.f32 %v2762_v2, %v2665_v17  ;;  %v2537_v58 = vadd.f32 %v2505_v11, %v2408_v44  ;;  %v3921_v17 = vld [vmem:[#allocation3 + $0x608] sm:$0xff]  ;;  %v9113_v11 = vld [vmem:[#allocation2 + $0x40] sm:$0xff]  ;;  %v9117_v44 = vld [vmem:[#allocation2 + $0x88] sm:$0xff] }
 0x7ec   : > { %v5127_v43 = vpack.c.bf16 %v3924_v12, %v3921_v17 }
 0x7ed   : > { %v2617_v9 = vpop.permute.xlu1 %2616  ;;  %v3004_v49 = vpop.permute.xlu0 %3003  ;;  %v2876_v31 = vadd.f32 %v2860_v56, %v2794_v10 }
 0x7ee   : > { %v2634_v47 = vsel %vm2618_vm6, %v2615_v21, %v2617_v9  ;;  %v3021_v8 = vsel %vm425_vm0, %v8830_v30, %v3004_v49  ;;  %5128 = vmatprep.subr.bf16.mxu0 %v5127_v43  ;;  %v3793_v43 = vld [vmem:[#allocation3 + $0x208] sm:$0xff] }
 0x7ef   : > { %v2666_v60 = vadd.f32 %v2634_v47, %v2537_v58  ;;  %v3053_v62 = vadd.f32 %v3021_v8, %v2876_v31 }
 0x7f1   : > { %v2746_v48 = vpop.permute.xlu1 %2745  ;;  %v3132_v51 = vpop.permute.xlu0 %3131 }
 0x7f2   : > { %v2763_v0 = vsel %vm2747_vm7, %v2744_v25, %v2746_v48  ;;  %v3149_v39 = vsel %vm554_vm1, %v8857_v63, %v3132_v51  ;;  %v5608_v48 = vld [vmem:[#allocation2 + $0x60] sm:$0xff] }
 0x7f3   : > { %v2795_v4 = vadd.f32 %v2763_v0, %v2666_v60  ;;  %v3181_v21 = vadd.f32 %v3149_v39, %v3053_v62  ;;  %v3730_v62 = vld [vmem:[#allocation3 + $0x10] sm:$0xff] }
 0x7f5   : > { %v3006_v13 = vpop.permute.xlu1 %3005  ;;  %v3260_v19 = vpop.permute.xlu0 %3259  ;;  %v2877_v7 = vadd.f32 %v2861_v46, %v2795_v4  ;;  %v3733_v4 = vld [vmem:[#allocation3 + $0x28] sm:$0xff]  ;;  %v3920_v46 = vld [vmem:[#allocation3 + $0x600] sm:$0xff] }
 0x7f6   : > { %v3277_v26 = vsel %vm683_vm2, %v8901_v16, %v3260_v19  ;;  %v3022_v37 = vsel %vm425_vm0, %v3004_v49, %v3006_v13 }
 0x7f7   : > { %v3309_v18 = vadd.f32 %v3277_v26, %v3181_v21  ;;  %v3054_v40 = vadd.f32 %v3022_v37, %v2877_v7  ;;  %v3784_v26 = vld [vmem:[#allocation3 + $0x1c0] sm:$0xff]  ;;  %v3923_v7 = vld [vmem:[#allocation3 + $0x618] sm:$0xff]  ;;  %v3930_v37 = vld [vmem:[#allocation3 + $0x650] sm:$0xff] }
 0x7f9   : > { %v3134_v30 = vpop.permute.xlu1 %3133  ;;  %v3388_v29 = vpop.permute.xlu0 %3387 }
 0x7fa   : > { %v3405_v63 = vsel %vm812_vm3, %v8937_v5, %v3388_v29  ;;  %v3150_v22 = vsel %vm554_vm1, %v3132_v51, %v3134_v30  ;;  %v5257_v30 = vpack.c.bf16 %v3733_v4, %v3730_v62  ;;  %v3799_v62 = vld [vmem:[#allocation3 + $0x238] sm:$0xff]  ;;  %vm4758_vm1 = vcmask 1047856  }
 0x7fb   : > { %v3437_v45 = vadd.f32 %v3405_v63, %v3309_v18  ;;  %v3182_v53 = vadd.f32 %v3150_v22, %v3054_v40  ;;  %v5259_v22 = vpack.c.bf16 %v3787_v34, %v3784_v26  ;;  %v3932_v34 = vld [vmem:[#allocation3 + $0x660] sm:$0xff] }
 0x7fd   : > { %v9099_v28 = vadd.f32 %v10107_v23, %v3437_v45  ;;  %v3262_v16 = vpop.permute.xlu1 %3261 }
 0x7fe   : > { %v3278_v25 = vsel %vm683_vm2, %v3260_v19, %v3262_v16  ;;  %vm4747_vm2 = vcmask 310272  }
 0x7ff   : > { %v3481_v3 = vmax.f32 %v9099_v28, 0.0  ;;  %v3310_v38 = vadd.f32 %v3278_v25, %v3182_v53 }
 0x801   : > { %v3390_v2 = vpop.permute.xlu1 %3389 }
 0x802   : > { %v3406_v35 = vsel %vm812_vm3, %v3388_v29, %v3390_v2  ;;  %v3927_v29 = vld [vmem:[#allocation3 + $0x638] sm:$0xff]  ;;  %vm4761_vm3 = vcmask 867328  }
 0x803   : > { %v3438_v5 = vadd.f32 %v3406_v35, %v3310_v38  ;;  %v3736_v38 = vld [vmem:[#allocation3 + $0x40] sm:$0xff]  ;;  %v3739_v2 = vld [vmem:[#allocation3 + $0x58] sm:$0xff]  ;;  %v5129_v35 = vpack.c.bf16 %v3923_v7, %v3920_v46 }
 0x804   : > { %v3748_v7 = vld [vmem:[#allocation3 + $0xa0] sm:$0xff] }
 0x805   : > { %v9105_v10 = vadd.f32 %v10107_v23, %v3438_v5  ;;  %v3790_v5 = vld [vmem:[#allocation3 + $0x1f0] sm:$0xff] }
 0x806   : > { %v5263_v33 = vpack.c.bf16 %v3793_v43, %v3790_v5  ;;  %v3754_v5 = vld [vmem:[#allocation3 + $0xd0] sm:$0xff]  ;;  %v3757_v43 = vld [vmem:[#allocation3 + $0xe8] sm:$0xff] }
 0x807   : > { %v3482_v9 = vmax.f32 %v9105_v10, 0.0  ;;  %v3943_v10 = vld [vmem:[#allocation3 + $0x6b8] sm:$0xff] }
 0x809   : > { %v5563_v49 = vpack.i.bf16 %v3482_v9, %v3481_v3 }
 0x80b   : > { %5564 = vrot.lane.b32.xlu1 %v5563_v49, %s5658_s17  ;;  %v5131_v49 = vpack.c.bf16 %v3930_v37, %v3927_v29  ;;  %v3802_v29 = vld [vmem:[#allocation3 + $0x250] sm:$0xff]  ;;  %v3805_v37 = vld [vmem:[#allocation3 + $0x268] sm:$0xff] }
 0x80f   : > { %3554 = vrot.lane.b32.xlu1 %v9113_v11, %s5658_s17 }
 0x813   : > { %3572 = vrot.lane.b32.xlu1 %v9117_v44, %s5658_s17 }
 0x831   : > { %v9121_v23 = vpop.permute.xlu1 %5544 }
 0x832   : > { %v5547_v56 = vunpack.i.h.bf16 %v9121_v23  ;;  %v5546_v47 = vunpack.i.l.bf16 %v9121_v23 }
 0x834   : > { %v3585_v58 = vsel %vm425_vm0, %v5536_v1, %v5546_v47  ;;  %v3586_v31 = vsel %vm425_vm0, %v5546_v47, %v5547_v56 }
 0x835   : > { %v9131_v51 = vmax.f32 %v5608_v48, %v3585_v58  ;;  %v9135_v8 = vmax.f32 %v3479_v6, %v3586_v31  ;;  %v5261_v58 = vpack.c.bf16 %v3739_v2, %v3736_v38  ;;  %v3933_v31 = vld [vmem:[#allocation3 + $0x668] sm:$0xff]  ;;  %v3936_v48 = vld [vmem:[#allocation3 + $0x680] sm:$0xff] }
 0x836   : > { %v5135_v26 = vpack.c.bf16 %v3936_v48, %v3933_v31  ;;  %v3945_v2 = vld [vmem:[#allocation3 + $0x6c8] sm:$0xff]  ;;  %v5273_v31 = vpack.c.bf16 %v3757_v43, %v3754_v5  ;;  %v3951_v48 = vld [vmem:[#allocation3 + $0x6f8] sm:$0xff]  ;;  %v3956_v43 = vld [vmem:[#allocation3 + $0x720] sm:$0xff] }
 0x837   : > { %v5568_v0 = vpack.i.bf16 %v9135_v8, %v9131_v51 }
 0x839   : > { %5569 = vrot.lane.b32.xlu0 %v5568_v0, %s5664_s21  ;;  %v5609_v0 = vld [vmem:[#allocation2 + $0x28] sm:$0xff] }
 0x83b   : > { %v5540_v60 = vpop.permute.xlu0 %5539 }
 0x83c   : > { %v5542_v52 = vunpack.i.h.bf16 %v5540_v60  ;;  %v5541_v39 = vunpack.i.l.bf16 %v5540_v60 }
 0x83d   : > { %v9144_v18 = vpop.permute.xlu1 %3652 }
 0x83e   : > { %v3681_v1 = vsel %vm941_vm4, %v5541_v39, %v5542_v52 }
 0x83f   : > { %v5550_v13 = vpop.permute.xlu0 %5549  ;;  %v9142_v19 = vmax.f32 %v8994_v55, %v3681_v1  ;;  %v3796_v1 = vld [vmem:[#allocation3 + $0x220] sm:$0xff] }
 0x840   : > { %v5552_v6 = vunpack.i.h.bf16 %v5550_v13  ;;  %v5551_v21 = vunpack.i.l.bf16 %v5550_v13  ;;  %v5267_v46 = vpack.c.bf16 %v3799_v62, %v3796_v1  ;;  %v3763_v1 = vld [vmem:[#allocation3 + $0x118] sm:$0xff] }
 0x841   : > { %4176 = vmatprep.mubr.f32.mxu1 %v9142_v19 }
 0x842   : > { %v3680_v63 = vsel %vm941_vm4, %v5551_v21, %v5541_v39  ;;  %v3683_v45 = vsel %vm941_vm4, %v5552_v6, %v9144_v18  ;;  %v3682_v55 = vsel %vm941_vm4, %v5542_v52, %v5552_v6  ;;  %v3745_v39 = vld [vmem:[#allocation3 + $0x88] sm:$0xff]  ;;  %v3935_v6 = vld [vmem:[#allocation3 + $0x678] sm:$0xff] }
 0x843   : > { %v9151_v40 = vpop.permute.xlu0 %5554  ;;  %v9154_v16 = vmax.f32 %v9011_v20, %v3680_v63  ;;  %v9157_v25 = vmax.f32 %v9013_v15, %v3683_v45  ;;  %v9160_v53 = vmax.f32 %v8996_v54, %v3682_v55  ;;  %v3926_v20 = vld [vmem:[#allocation3 + $0x630] sm:$0xff]  ;;  %v3929_v15 = vld [vmem:[#allocation3 + $0x648] sm:$0xff]  ;;  %v5137_v63 = vpack.c.bf16 %v3935_v6, %v3932_v34 }
 0x844   : > { %v5557_v17 = vunpack.i.h.bf16 %v9151_v40  ;;  %v5556_v12 = vunpack.i.l.bf16 %v9151_v40  ;;  %v5133_v4 = vpack.c.bf16 %v3929_v15, %v3926_v20  ;;  %v3938_v55 = vld [vmem:[#allocation3 + $0x690] sm:$0xff]  ;;  %v3811_v20 = vld [vmem:[#allocation3 + $0x298] sm:$0xff] }
 0x845   : > { %4177 = vmatmul.mubr.f32.vlgmr.msra.gmra.mrb[0].mxu1 %v9154_v16  ;;  %4253 = vmatprep.mubr.f32.mxu0 %v9157_v25 }
 0x846   : > { %v3579_v54 = vsel %vm425_vm0, %v5527_v27, %v5556_v12  ;;  %v3580_v47 = vsel %vm425_vm0, %v5556_v12, %v5557_v17  ;;  %5258 = vmatpush3.bf16.msra.mxu1 %v5257_v30  ;;  %4254 = vmatmul.mubr.f32.vlgmr.msra.gmra.mrb[0].mxu0 %v9160_v53  ;;  %v3742_v27 = vld [vmem:[#allocation3 + $0x70] sm:$0xff]  ;;  %v3751_v30 = vld [vmem:[#allocation3 + $0xb8] sm:$0xff]  ;;  %v5271_v12 = vpack.c.bf16 %v3805_v37, %v3802_v29  ;;  %v3957_v29 = vld [vmem:[#allocation3 + $0x728] sm:$0xff] }
 0x847   : > { %v9173_v60 = vmax.f32 %v5609_v0, %v3579_v54  ;;  %v9177_v52 = vmax.f32 %v3473_v50, %v3580_v47  ;;  %5260 = vmatprep.subr.bf16.mxu1 %v5259_v22  ;;  %5130 = vmatpush1.bf16.msra.mxu0 %v5129_v35  ;;  %v5265_v21 = vpack.c.bf16 %v3745_v39, %v3742_v27  ;;  %v3942_v50 = vld [vmem:[#allocation3 + $0x6b0] sm:$0xff]  ;;  %v3941_v22 = vld [vmem:[#allocation3 + $0x6a8] sm:$0xff]  ;;  %v3948_v35 = vld [vmem:[#allocation3 + $0x6e0] sm:$0xff] }
 0x848   : > { %5132 = vmatprep.subr.bf16.mxu0 %v5131_v49  ;;  %v5139_v45 = vpack.c.bf16 %v3942_v50, %v3939_v57  ;;  %v5269_v38 = vpack.c.bf16 %v3751_v30, %v3748_v7  ;;  %v3808_v49 = vld [vmem:[#allocation3 + $0x280] sm:$0xff]  ;;  %v5141_v15 = vpack.c.bf16 %v3941_v22, %v3938_v55  ;;  %v5143_v54 = vpack.c.bf16 %v3948_v35, %v3945_v2  ;;  %v3954_v0 = vld [vmem:[#allocation3 + $0x710] sm:$0xff]  ;;  %v3953_v50 = vld [vmem:[#allocation3 + $0x708] sm:$0xff] }
 0x849   : > { %v5573_v13 = vpack.i.bf16 %v9177_v52, %v9173_v60  ;;  %v3944_v47 = vld [vmem:[#allocation3 + $0x6c0] sm:$0xff]  ;;  %v5275_v27 = vpack.c.bf16 %v3811_v20, %v3808_v49  ;;  %v3950_v57 = vld [vmem:[#allocation3 + $0x6f0] sm:$0xff]  ;;  %v3823_v35 = vld [vmem:[#allocation3 + $0x2f8] sm:$0xff] }
 0x84a   : > { %5262 = vmatpush3.bf16.msra.mxu1 %v5261_v58  ;;  %v3947_v58 = vld [vmem:[#allocation3 + $0x6d8] sm:$0xff]  ;;  %v3760_v39 = vld [vmem:[#allocation3 + $0x100] sm:$0xff]  ;;  %v3766_v22 = vld [vmem:[#allocation3 + $0x130] sm:$0xff] }
 0x84b   : > { %5574 = vrot.lane.b32.xlu0 %v5573_v13, %s5664_s21  ;;  %5264 = vmatprep.subr.bf16.mxu1 %v5263_v33  ;;  %v3814_v13 = vld [vmem:[#allocation3 + $0x2b0] sm:$0xff]  ;;  %v5145_v34 = vpack.c.bf16 %v3947_v58, %v3944_v47  ;;  %v5277_v7 = vpack.c.bf16 %v3763_v1, %v3760_v39  ;;  %v3960_v37 = vld [vmem:[#allocation3 + $0x740] sm:$0xff]  ;;  %v3959_v49 = vld [vmem:[#allocation3 + $0x738] sm:$0xff] }
 0x84c   : > { %5134 = vmatpush1.bf16.msra.mxu0 %v5133_v4  ;;  %v3820_v2 = vld [vmem:[#allocation3 + $0x2e0] sm:$0xff]  ;;  %v5151_v5 = vpack.c.bf16 %v3960_v37, %v3957_v29  ;;  %v3775_v47 = vld [vmem:[#allocation3 + $0x178] sm:$0xff]  ;;  %v3874_v58 = vld [vmem:[#allocation3 + $0x490] sm:$0xff] }
 0x84d   : > { %5136 = vmatprep.subr.bf16.mxu0 %v5135_v26  ;;  %v3817_v26 = vld [vmem:[#allocation3 + $0x2c8] sm:$0xff]  ;;  %v3975_v29 = vld [vmem:[#allocation3 + $0x7b8] sm:$0xff]  ;;  %v3978_v37 = vld [vmem:[#allocation3 + $0x7d0] sm:$0xff] }
 0x84e   : > { %5266 = vmatpush3.bf16.msra.mxu1 %v5265_v21  ;;  %v5147_v21 = vpack.c.bf16 %v3954_v0, %v3951_v48  ;;  %v5279_v55 = vpack.c.bf16 %v3817_v26, %v3814_v13  ;;  %v5153_v48 = vpack.c.bf16 %v3959_v49, %v3956_v43  ;;  %v3965_v39 = vld [vmem:[#allocation3 + $0x768] sm:$0xff]  ;;  %v3972_v13 = vld [vmem:[#allocation3 + $0x7a0] sm:$0xff]  ;;  %v3974_v43 = vld [vmem:[#allocation3 + $0x7b0] sm:$0xff] }
 0x84f   : > { %5268 = vmatprep.subr.bf16.mxu1 %v5267_v46  ;;  %v3977_v49 = vld [vmem:[#allocation3 + $0x7c8] sm:$0xff] }
 0x850   : > { %5138 = vmatpush1.bf16.msra.mxu0 %v5137_v63 }
 0x851   : > { %5140 = vmatprep.subr.bf16.mxu0 %v5139_v45  ;;  %v3663_v6 = vpop.permute.xlu0 %3662 }
 0x852   : > { %5270 = vmatpush3.bf16.msra.mxu1 %v5269_v38  ;;  %v3769_v38 = vld [vmem:[#allocation3 + $0x148] sm:$0xff] }
 0x853   : > { %v9182_v33 = vpop.permute.xlu1 %5559  ;;  %5272 = vmatprep.subr.bf16.mxu1 %v5271_v12  ;;  %v5149_v12 = vpack.c.bf16 %v3953_v50, %v3950_v57  ;;  %v5281_v20 = vpack.c.bf16 %v3769_v38, %v3766_v22  ;;  %v3883_v57 = vld [vmem:[#allocation3 + $0x4d8] sm:$0xff]  ;;  %v3832_v22 = vld [vmem:[#allocation3 + $0x340] sm:$0xff] }
 0x854   : > { %v5562_v62 = vunpack.i.h.bf16 %v9182_v33  ;;  %v5561_v4 = vunpack.i.l.bf16 %v9182_v33  ;;  %5142 = vmatpush1.bf16.msra.mxu0 %v5141_v15  ;;  %v3966_v15 = vld [vmem:[#allocation3 + $0x770] sm:$0xff]  ;;  %v3835_v38 = vld [vmem:[#allocation3 + $0x358] sm:$0xff] }
 0x855   : > { %5144 = vmatprep.subr.bf16.mxu0 %v5143_v54  ;;  %v3772_v54 = vld [vmem:[#allocation3 + $0x160] sm:$0xff]  ;;  %v4018_v33 = vld [vmem:[#allocation3 + $0x910] sm:$0xff] }
 0x856   : > { %5274 = vmatpush3.bf16.msra.mxu1 %v5273_v31  ;;  %v3689_v46 = vsel %vm941_vm4, %v5561_v4, %v5562_v62  ;;  %v3688_v30 = vsel %vm941_vm4, %v3663_v6, %v5561_v4  ;;  %v3877_v31 = vld [vmem:[#allocation3 + $0x4a8] sm:$0xff]  ;;  %v5285_v1 = vpack.c.bf16 %v3775_v47, %v3772_v54  ;;  %v3838_v54 = vld [vmem:[#allocation3 + $0x370] sm:$0xff] }
 0x857   : > { %5276 = vmatprep.subr.bf16.mxu1 %v5275_v27  ;;  %v9191_v63 = vmax.f32 %v9046_v36, %v3689_v46  ;;  %v9194_v45 = vmax.f32 %v9048_v24, %v3688_v30  ;;  %v3963_v36 = vld [vmem:[#allocation3 + $0x758] sm:$0xff]  ;;  %v5283_v24 = vpack.c.bf16 %v3823_v35, %v3820_v2  ;;  %v3962_v27 = vld [vmem:[#allocation3 + $0x750] sm:$0xff]  ;;  %v3969_v4 = vld [vmem:[#allocation3 + $0x788] sm:$0xff]  ;;  %v5287_v26 = vpack.c.bf16 %v3877_v31, %v3874_v58 }
 0x858   : > { %5146 = vmatpush1.bf16.msra.mxu0 %v5145_v34  ;;  %v5155_v0 = vpack.c.bf16 %v3966_v15, %v3963_v36  ;;  %v3826_v34 = vld [vmem:[#allocation3 + $0x310] sm:$0xff]  ;;  %v3829_v6 = vld [vmem:[#allocation3 + $0x328] sm:$0xff]  ;;  %v5159_v50 = vpack.c.bf16 %v3972_v13, %v3969_v4  ;;  %v3968_v46 = vld [vmem:[#allocation3 + $0x780] sm:$0xff] }
 0x859   : > { %4182 = vmatprep.mubr.f32.mxu1 %v9191_v63  ;;  %5148 = vmatprep.subr.bf16.mxu0 %v5147_v21  ;;  %v3880_v21 = vld [vmem:[#allocation3 + $0x4c0] sm:$0xff]  ;;  %v5289_v30 = vpack.c.bf16 %v3829_v6, %v3826_v34  ;;  %v3886_v2 = vld [vmem:[#allocation3 + $0x4f0] sm:$0xff]  ;;  %v3889_v35 = vld [vmem:[#allocation3 + $0x508] sm:$0xff] }
 0x85a   : > { %5278 = vmatpush3.bf16.msra.mxu1 %v5277_v7  ;;  %v3971_v7 = vld [vmem:[#allocation3 + $0x798] sm:$0xff]  ;;  %v3981_v36 = vld [vmem:[#allocation3 + $0x7e8] sm:$0xff]  ;;  %v3984_v15 = vld [vmem:[#allocation3 + $0x800] sm:$0xff] }
 0x85b   : > { %4183 = vmatmul.mubr.f32.gmra.mrb[2].mxu1 %v9194_v45  ;;  %5280 = vmatprep.subr.bf16.mxu1 %v5279_v55  ;;  %v5291_v55 = vpack.c.bf16 %v3883_v57, %v3880_v21  ;;  %v3841_v47 = vld [vmem:[#allocation3 + $0x388] sm:$0xff]  ;;  %v3892_v58 = vld [vmem:[#allocation3 + $0x520] sm:$0xff]  ;;  %v3895_v31 = vld [vmem:[#allocation3 + $0x538] sm:$0xff] }
 0x85c   : > { %4484 = vmatprep.mubr.f32.mxu1 %v9142_v19  ;;  %5150 = vmatpush1.bf16.msra.mxu0 %v5149_v12  ;;  %v5157_v19 = vpack.c.bf16 %v3965_v39, %v3962_v27  ;;  %v5161_v12 = vpack.c.bf16 %v3971_v7, %v3968_v46  ;;  %v3983_v27 = vld [vmem:[#allocation3 + $0x7f8] sm:$0xff]  ;;  %v5299_v4 = vpack.c.bf16 %v3895_v31, %v3892_v58  ;;  %v3844_v13 = vld [vmem:[#allocation3 + $0x3a0] sm:$0xff]  ;;  %v3898_v34 = vld [vmem:[#allocation3 + $0x550] sm:$0xff] }
 0x85d   : > { %5152 = vmatprep.subr.bf16.mxu0 %v5151_v5  ;;  %v5163_v5 = vpack.c.bf16 %v3978_v37, %v3975_v29  ;;  %v3987_v39 = vld [vmem:[#allocation3 + $0x818] sm:$0xff]  ;;  %v3901_v6 = vld [vmem:[#allocation3 + $0x568] sm:$0xff]  ;;  %v3986_v57 = vld [vmem:[#allocation3 + $0x810] sm:$0xff] }
 0x85e   : > { %5282 = vmatpush3.bf16.msra.mxu1 %v5281_v20  ;;  %v5293_v20 = vpack.c.bf16 %v3835_v38, %v3832_v22  ;;  %v3993_v46 = vld [vmem:[#allocation3 + $0x848] sm:$0xff]  ;;  %v3996_v7 = vld [vmem:[#allocation3 + $0x860] sm:$0xff]  ;;  %v3998_v58 = vld [vmem:[#allocation3 + $0x870] sm:$0xff] }
 0x85f   : > { %5284 = vmatprep.subr.bf16.mxu1 %v5283_v24  ;;  %v5295_v24 = vpack.c.bf16 %v3889_v35, %v3886_v2  ;;  %v3853_v29 = vld [vmem:[#allocation3 + $0x3e8] sm:$0xff]  ;;  %v3904_v37 = vld [vmem:[#allocation3 + $0x580] sm:$0xff]  ;;  %v5175_v38 = vpack.c.bf16 %v3996_v7, %v3993_v46  ;;  %v3995_v35 = vld [vmem:[#allocation3 + $0x858] sm:$0xff] }
 0x860   : > { %5154 = vmatpush1.bf16.msra.mxu0 %v5153_v48  ;;  %v5165_v48 = vpack.c.bf16 %v3977_v49, %v3974_v43  ;;  %v3992_v2 = vld [vmem:[#allocation3 + $0x840] sm:$0xff]  ;;  %v4002_v43 = vld [vmem:[#allocation3 + $0x890] sm:$0xff]  ;;  %v4001_v31 = vld [vmem:[#allocation3 + $0x888] sm:$0xff] }
 0x861   : > { %5156 = vmatprep.subr.bf16.mxu0 %v5155_v0  ;;  %v3980_v0 = vld [vmem:[#allocation3 + $0x7e0] sm:$0xff]  ;;  %v3871_v46 = vld [vmem:[#allocation3 + $0x478] sm:$0xff]  ;;  %v3970_v7 = vld [vmem:[#allocation3 + $0x790] sm:$0xff] }
 0x862   : > { %5286 = vmatpush3.bf16.msra.mxu1 %v5285_v1  ;;  %v3990_v1 = vld [vmem:[#allocation3 + $0x830] sm:$0xff]  ;;  %v5169_v21 = vpack.c.bf16 %v3983_v27, %v3980_v0  ;;  %v4008_v0 = vld [vmem:[#allocation3 + $0x8c0] sm:$0xff] }
 0x863   : > { %5288 = vmatprep.subr.bf16.mxu1 %v5287_v26  ;;  %v3847_v26 = vld [vmem:[#allocation3 + $0x3b8] sm:$0xff] }
 0x864   : > { %5158 = vmatpush1.bf16.msra.mxu0 %v5157_v19  ;;  %v3989_v19 = vld [vmem:[#allocation3 + $0x828] sm:$0xff] }
 0x865   : > { %4485 = vmatmul.mubr.f32.vlgmr.msra.gmra.mrb[4].mxu1 %v9154_v16  ;;  %5160 = vmatprep.subr.bf16.mxu0 %v5159_v50  ;;  %v5167_v16 = vpack.c.bf16 %v3984_v15, %v3981_v36  ;;  %v5301_v50 = vpack.c.bf16 %v3847_v26, %v3844_v13  ;;  %v5173_v22 = vpack.c.bf16 %v3989_v19, %v3986_v57  ;;  %v3859_v36 = vld [vmem:[#allocation3 + $0x418] sm:$0xff]  ;;  %v3910_v15 = vld [vmem:[#allocation3 + $0x5b0] sm:$0xff] }
 0x866   : > { %4489 = vmatprep.mubr.f32.mxu1 %v9191_v63  ;;  %5290 = vmatpush3.bf16.msra.mxu1 %v5289_v30  ;;  %v5297_v63 = vpack.c.bf16 %v3841_v47, %v3838_v54  ;;  %v3850_v30 = vld [vmem:[#allocation3 + $0x3d0] sm:$0xff]  ;;  %v5177_v54 = vpack.c.bf16 %v3995_v35, %v3992_v2  ;;  %v5181_v13 = vpack.c.bf16 %v4001_v31, %v3998_v58 }
 0x867   : > { %5292 = vmatprep.subr.bf16.mxu1 %v5291_v55  ;;  %v3907_v55 = vld [vmem:[#allocation3 + $0x598] sm:$0xff]  ;;  %v4014_v57 = vld [vmem:[#allocation3 + $0x8f0] sm:$0xff] }
 0x868   : > { %5162 = vmatpush1.bf16.msra.mxu0 %v5161_v12  ;;  %v5305_v12 = vpack.c.bf16 %v3853_v29, %v3850_v30  ;;  %v5307_v49 = vpack.c.bf16 %v3907_v55, %v3904_v37  ;;  %v4010_v55 = vld [vmem:[#allocation3 + $0x8d0] sm:$0xff] }
 0x869   : > { %4490 = vmatmul.mubr.f32.gmra.mrb[6].mxu1 %v9194_v45  ;;  %5164 = vmatprep.subr.bf16.mxu0 %v5163_v5  ;;  %v5171_v45 = vpack.c.bf16 %v3990_v1, %v3987_v39  ;;  %v3999_v5 = vld [vmem:[#allocation3 + $0x878] sm:$0xff]  ;;  %v3865_v39 = vld [vmem:[#allocation3 + $0x448] sm:$0xff]  ;;  %v3916_v1 = vld [vmem:[#allocation3 + $0x5e0] sm:$0xff] }
 0x86a   : > { %5294 = vmatpush3.bf16.msra.mxu1 %v5293_v20  ;;  %4559 = vmatprep.mubr.f32.mxu1 %v9157_v25  ;;  %v5303_v25 = vpack.c.bf16 %v3901_v6, %v3898_v34  ;;  %v3856_v20 = vld [vmem:[#allocation3 + $0x400] sm:$0xff]  ;;  %v5179_v47 = vpack.c.bf16 %v4002_v43, %v3999_v5  ;;  %v4007_v6 = vld [vmem:[#allocation3 + $0x8b8] sm:$0xff]  ;;  %v3925_v43 = vld [vmem:[#allocation3 + $0x628] sm:$0xff] }
 0x86b   : > { %5296 = vmatprep.subr.bf16.mxu1 %v5295_v24  ;;  %v3913_v24 = vld [vmem:[#allocation3 + $0x5c8] sm:$0xff]  ;;  %v4004_v34 = vld [vmem:[#allocation3 + $0x8a0] sm:$0xff] }
 0x86c   : > { %5166 = vmatpush1.bf16.msra.mxu0 %v5165_v48  ;;  %v5309_v48 = vpack.c.bf16 %v3859_v36, %v3856_v20  ;;  %v5311_v27 = vpack.c.bf16 %v3913_v24, %v3910_v15  ;;  %v5185_v30 = vpack.c.bf16 %v4007_v6, %v4004_v34  ;;  %v4020_v20 = vld [vmem:[#allocation3 + $0x920] sm:$0xff]  ;;  %v3991_v34 = vld [vmem:[#allocation3 + $0x838] sm:$0xff] }
 0x86d   : > { %5168 = vmatprep.subr.bf16.mxu0 %v5167_v16  ;;  %v4005_v16 = vld [vmem:[#allocation3 + $0x8a8] sm:$0xff]  ;;  %v3976_v24 = vld [vmem:[#allocation3 + $0x7c0] sm:$0xff] }
 0x86e   : > { %5298 = vmatpush3.bf16.msra.mxu1 %v5297_v63  ;;  %v3862_v63 = vld [vmem:[#allocation3 + $0x430] sm:$0xff]  ;;  %v5183_v26 = vpack.c.bf16 %v4008_v0, %v4005_v16 }
 0x86f   : > { %5300 = vmatprep.subr.bf16.mxu1 %v5299_v4  ;;  %v3919_v4 = vld [vmem:[#allocation3 + $0x5f8] sm:$0xff] }
 0x870   : > { %5170 = vmatpush1.bf16.msra.mxu0 %v5169_v21  ;;  %v5313_v21 = vpack.c.bf16 %v3865_v39, %v3862_v63  ;;  %v5315_v19 = vpack.c.bf16 %v3919_v4, %v3916_v1  ;;  %v3982_v63 = vld [vmem:[#allocation3 + $0x7f0] sm:$0xff]  ;;  %v3985_v39 = vld [vmem:[#allocation3 + $0x808] sm:$0xff] }
 0x871   : > { %5172 = vmatprep.subr.bf16.mxu0 %v5171_v45  ;;  %v4011_v45 = vld [vmem:[#allocation3 + $0x8d8] sm:$0xff]  ;;  %v3934_v4 = vld [vmem:[#allocation3 + $0x670] sm:$0xff] }
 0x872   : > { %5302 = vmatpush3.bf16.msra.mxu1 %v5301_v50  ;;  %v3868_v50 = vld [vmem:[#allocation3 + $0x460] sm:$0xff]  ;;  %v5187_v37 = vpack.c.bf16 %v4014_v57, %v4011_v45  ;;  %v3997_v57 = vld [vmem:[#allocation3 + $0x868] sm:$0xff] }
 0x873   : > { %5304 = vmatprep.subr.bf16.mxu1 %v5303_v25  ;;  %v3973_v25 = vld [vmem:[#allocation3 + $0x7a8] sm:$0xff]  ;;  %v3940_v45 = vld [vmem:[#allocation3 + $0x6a0] sm:$0xff] }
 0x874   : > { %5174 = vmatpush1.bf16.msra.mxu0 %v5173_v22  ;;  %v4013_v22 = vld [vmem:[#allocation3 + $0x8e8] sm:$0xff]  ;;  %v5319_v5 = vpack.c.bf16 %v3973_v25, %v3970_v7  ;;  %v4000_v25 = vld [vmem:[#allocation3 + $0x880] sm:$0xff] }
 0x875   : > { %5176 = vmatprep.subr.bf16.mxu0 %v5175_v38  ;;  %v5317_v38 = vpack.c.bf16 %v3871_v46, %v3868_v50  ;;  %v3946_v46 = vld [vmem:[#allocation3 + $0x6d0] sm:$0xff]  ;;  %v3949_v7 = vld [vmem:[#allocation3 + $0x6e8] sm:$0xff] }
 0x876   : > { %5306 = vmatpush3.bf16.msra.mxu1 %v5305_v12  ;;  %v3922_v12 = vld [vmem:[#allocation3 + $0x610] sm:$0xff] }
 0x877   : > { %5308 = vmatprep.subr.bf16.mxu1 %v5307_v49  ;;  %v4017_v49 = vld [vmem:[#allocation3 + $0x908] sm:$0xff]  ;;  %v5321_v16 = vpack.c.bf16 %v3925_v43, %v3922_v12 }
 0x878   : > { %5178 = vmatpush1.bf16.msra.mxu0 %v5177_v54  ;;  %v3979_v54 = vld [vmem:[#allocation3 + $0x7d8] sm:$0xff]  ;;  %v5191_v0 = vpack.c.bf16 %v4020_v20, %v4017_v49  ;;  %v3961_v43 = vld [vmem:[#allocation3 + $0x748] sm:$0xff]  ;;  %v4012_v49 = vld [vmem:[#allocation3 + $0x8e0] sm:$0xff] }
 0x879   : > { %5180 = vmatprep.subr.bf16.mxu0 %v5179_v47  ;;  %v5189_v47 = vpack.c.bf16 %v4013_v22, %v4010_v55  ;;  %v5323_v28 = vpack.c.bf16 %v3979_v54, %v3976_v24  ;;  %v3952_v55 = vld [vmem:[#allocation3 + $0x700] sm:$0xff]  ;;  %v3955_v22 = vld [vmem:[#allocation3 + $0x718] sm:$0xff] }
 0x87a   : > { %5310 = vmatpush3.bf16.msra.mxu1 %v5309_v48  ;;  %v4015_v20 = vld [vmem:[#allocation3 + $0x8f8] sm:$0xff]  ;;  %v3964_v24 = vld [vmem:[#allocation3 + $0x760] sm:$0xff] }
 0x87b   : > { %5312 = vmatprep.subr.bf16.mxu1 %v5311_v27  ;;  %v3931_v27 = vld [vmem:[#allocation3 + $0x658] sm:$0xff] }
 0x87c   : > { %5182 = vmatpush1.bf16.msra.mxu0 %v5181_v13  ;;  %v3937_v13 = vld [vmem:[#allocation3 + $0x688] sm:$0xff]  ;;  %v3967_v54 = vld [vmem:[#allocation3 + $0x778] sm:$0xff] }
 0x87d   : > { %v5565_v29 = vpop.permute.xlu1 %5564  ;;  %5184 = vmatprep.subr.bf16.mxu0 %v5183_v26  ;;  %v3988_v26 = vld [vmem:[#allocation3 + $0x820] sm:$0xff] }
 0x87e   : > { %5314 = vmatpush3.bf16.msra.mxu1 %v5313_v21  ;;  %v5567_v2 = vunpack.i.h.bf16 %v5565_v29  ;;  %v5566_v35 = vunpack.i.l.bf16 %v5565_v29  ;;  %v5329_v21 = vpack.c.bf16 %v3937_v13, %v3934_v4  ;;  %v5337_v29 = vpack.c.bf16 %v3949_v7, %v3946_v46  ;;  %v4072_v4 = vld [vmem:[#allocation3 + $0xac0] sm:$0xff]  ;;  %v4078_v46 = vld [vmem:[#allocation3 + $0xaf0] sm:$0xff]  ;;  %v4081_v7 = vld [vmem:[#allocation3 + $0xb08] sm:$0xff] }
 0x87f   : > { %5316 = vmatprep.subr.bf16.mxu1 %v5315_v19  ;;  %v5333_v19 = vpack.c.bf16 %v3943_v10, %v3940_v45 }
 0x880   : > { %v3587_v36 = vsel %vm425_vm0, %v5547_v56, %v5566_v35  ;;  %v3588_v15 = vsel %vm425_vm0, %v5566_v35, %v5567_v2  ;;  %5186 = vmatpush1.bf16.msra.mxu0 %v5185_v30  ;;  %v4003_v30 = vld [vmem:[#allocation3 + $0x898] sm:$0xff]  ;;  %v5341_v35 = vpack.c.bf16 %v3955_v22, %v3952_v55  ;;  %v5359_v55 = vpack.c.bf16 %v4081_v7, %v4078_v46  ;;  %v4030_v22 = vld [vmem:[#allocation3 + $0x970] sm:$0xff] }
 0x881   : > { %v9209_v58 = vmax.f32 %v3480_v42, %v3587_v36  ;;  %v9213_v31 = vmax.f32 %v3481_v3, %v3588_v15  ;;  %v3555_v48 = vpop.permute.xlu1 %3554  ;;  %5188 = vmatprep.subr.bf16.mxu0 %v5187_v37  ;;  %v3928_v3 = vld [vmem:[#allocation3 + $0x640] sm:$0xff]  ;;  %v5339_v37 = vpack.c.bf16 %v4003_v30, %v4000_v25  ;;  %v5347_v15 = vpack.c.bf16 %v4015_v20, %v4012_v49  ;;  %v4037_v49 = vld [vmem:[#allocation3 + $0x9a8] sm:$0xff]  ;;  %v4059_v7 = vld [vmem:[#allocation3 + $0xa58] sm:$0xff] }
 0x882   : > { %5318 = vmatpush3.bf16.msra.mxu1 %v5317_v38  ;;  %v3581_v23 = vsel %vm425_vm0, %v5557_v17, %v3555_v48  ;;  %v3624_v56 = vmax.f32 %v9113_v11, %v3555_v48  ;;  %v5325_v17 = vpack.c.bf16 %v3931_v27, %v3928_v3  ;;  %v4006_v38 = vld [vmem:[#allocation3 + $0x8b0] sm:$0xff]  ;;  %v4069_v48 = vld [vmem:[#allocation3 + $0xaa8] sm:$0xff]  ;;  %v4028_v25 = vld [vmem:[#allocation3 + $0x960] sm:$0xff] }
 0x883   : > { %v9221_v61 = vmax.f32 %v3474_v14, %v3581_v23  ;;  %v5578_v42 = vpack.i.bf16 %v9213_v31, %v9209_v58  ;;  %5320 = vmatprep.subr.bf16.mxu1 %v5319_v5  ;;  %v3958_v5 = vld [vmem:[#allocation3 + $0x730] sm:$0xff]  ;;  %v5349_v23 = vpack.c.bf16 %v3967_v54, %v3964_v24  ;;  %v4036_v54 = vld [vmem:[#allocation3 + $0x9a0] sm:$0xff] }
 0x884   : > { %5190 = vmatpush1.bf16.msra.mxu0 %v5189_v47  ;;  %v5345_v36 = vpack.c.bf16 %v3961_v43, %v3958_v5  ;;  %v4066_v47 = vld [vmem:[#allocation3 + $0xa90] sm:$0xff] }
 0x885   : > { %4560 = vmatmul.mubr.f32.vlgmr.msra.gmra.mrb[8].mxu1 %v9160_v53  ;;  %v5583_v11 = vpack.i.bf16 %v3624_v56, %v9221_v61  ;;  %v3573_v40 = vpop.permute.xlu1 %3572  ;;  %5579 = vrot.lane.b32.xlu0 %v5578_v42, %s5664_s21  ;;  %v5327_v53 = vpack.c.bf16 %v3985_v39, %v3982_v63  ;;  %v5351_v56 = vpack.c.bf16 %v4069_v48, %v4066_v47  ;;  %v4034_v43 = vld [vmem:[#allocation3 + $0x990] sm:$0xff]  ;;  %v4039_v47 = vld [vmem:[#allocation3 + $0x9b8] sm:$0xff]  ;;  %v4044_v48 = vld [vmem:[#allocation3 + $0x9e0] sm:$0xff] }
 0x886   : > { %v3589_v32 = vsel %vm425_vm0, %v5567_v2, %v3573_v40  ;;  %v3625_v14 = vmax.f32 %v9117_v44, %v3573_v40  ;;  %5322 = vmatpush3.bf16.msra.mxu1 %v5321_v16  ;;  %5192 = vmatprep.subr.bf16.mxu0 %v5191_v0  ;;  %v5331_v44 = vpack.c.bf16 %v3991_v34, %v3988_v26  ;;  %v4009_v2 = vld [vmem:[#allocation3 + $0x8c8] sm:$0xff]  ;;  %v4019_v40 = vld [vmem:[#allocation3 + $0x918] sm:$0xff]  ;;  %vm4723_vm0 = vcmask 130048  }
 0x887   : > { %v9232_v1 = vmax.f32 %v3482_v9, %v3589_v32  ;;  %5584 = vrot.lane.b32.xlu1 %v5583_v11, %s5664_s21  ;;  %5324 = vmatprep.subr.bf16.mxu1 %v5323_v28  ;;  %v3994_v9 = vld [vmem:[#allocation3 + $0x850] sm:$0xff]  ;;  %v5343_v12 = vpack.c.bf16 %v4009_v2, %v4006_v38  ;;  %v4016_v11 = vld [vmem:[#allocation3 + $0x900] sm:$0xff]  ;;  %v4033_v38 = vld [vmem:[#allocation3 + $0x988] sm:$0xff] }
 0x888   : > { %v5335_v50 = vpack.c.bf16 %v3997_v57, %v3994_v9  ;;  %v4029_v9 = vld [vmem:[#allocation3 + $0x968] sm:$0xff]  ;;  %v4038_v2 = vld [vmem:[#allocation3 + $0x9b0] sm:$0xff]  ;;  %v5361_v20 = vpack.c.bf16 %v4033_v38, %v4030_v22 }
 0x889   : > { %v5588_v6 = vpack.i.bf16 %v3625_v14, %v9232_v1  ;;  %v4058_v22 = vld [vmem:[#allocation3 + $0xa50] sm:$0xff] }
 0x88a   : > { %5326 = vmatpush3.bf16.msra.mxu1 %v5325_v17  ;;  %v4023_v17 = vld [vmem:[#allocation3 + $0x938] sm:$0xff] }
 0x88b   : > { %5589 = vrot.lane.b32.xlu0 %v5588_v6, %s5664_s21  ;;  %5328 = vmatprep.subr.bf16.mxu1 %v5327_v53  ;;  %v4021_v53 = vld [vmem:[#allocation3 + $0x928] sm:$0xff]  ;;  %v5193_v6 = vpack.c.bf16 %v4019_v40, %v4016_v11  ;;  %v4047_v11 = vld [vmem:[#allocation3 + $0x9f8] sm:$0xff] }
 0x88c   : > { %v5353_v45 = vpack.c.bf16 %v4021_v53, %v4018_v33  ;;  %v4050_v33 = vld [vmem:[#allocation3 + $0xa10] sm:$0xff]  ;;  %v4096_v53 = vld [vmem:[#allocation3 + $0xb80] sm:$0xff] }
 0x88e   : > { %5330 = vmatpush3.bf16.msra.mxu1 %v5329_v21  ;;  %v4022_v21 = vld [vmem:[#allocation3 + $0x930] sm:$0xff] }
 0x88f   : > { %5332 = vmatprep.subr.bf16.mxu1 %v5331_v44  ;;  %v4025_v44 = vld [vmem:[#allocation3 + $0x948] sm:$0xff] }
 0x892   : > { %5334 = vmatpush3.bf16.msra.mxu1 %v5333_v19  ;;  %v4024_v19 = vld [vmem:[#allocation3 + $0x940] sm:$0xff] }
 0x893   : > { %5336 = vmatprep.subr.bf16.mxu1 %v5335_v50  ;;  %v4027_v50 = vld [vmem:[#allocation3 + $0x958] sm:$0xff] }
 0x894   : > { %v5357_v30 = vpack.c.bf16 %v4027_v50, %v4024_v19  ;;  %v4052_v19 = vld [vmem:[#allocation3 + $0xa20] sm:$0xff]  ;;  %v4055_v50 = vld [vmem:[#allocation3 + $0xa38] sm:$0xff] }
 0x896   : > { %5338 = vmatpush3.bf16.msra.mxu1 %v5337_v29 }
 0x897   : > { %5340 = vmatprep.subr.bf16.mxu1 %v5339_v37  ;;  %v4035_v37 = vld [vmem:[#allocation3 + $0x998] sm:$0xff] }
 0x89a   : > { %5342 = vmatpush3.bf16.msra.mxu1 %v5341_v35  ;;  %v4084_v35 = vld [vmem:[#allocation3 + $0xb20] sm:$0xff] }
 0x89b   : > { %5344 = vmatprep.subr.bf16.mxu1 %v5343_v12  ;;  %v4087_v12 = vld [vmem:[#allocation3 + $0xb38] sm:$0xff] }
 0x89c   : > { %v5363_v24 = vpack.c.bf16 %v4087_v12, %v4084_v35  ;;  %v4061_v35 = vld [vmem:[#allocation3 + $0xa68] sm:$0xff] }
 0x89e   : > { %5346 = vmatpush3.bf16.msra.mxu1 %v5345_v36  ;;  %v5203_v36 = vpack.c.bf16 %v4038_v2, %v4035_v37  ;;  %v4111_v37 = vld [vmem:[#allocation3 + $0xbf8] sm:$0xff] }
 0x89f   : > { %5348 = vmatprep.subr.bf16.mxu1 %v5347_v15  ;;  %v4041_v15 = vld [vmem:[#allocation3 + $0x9c8] sm:$0xff] }
 0x8a2   : > { %5350 = vmatpush3.bf16.msra.mxu1 %v5349_v23  ;;  %v4090_v23 = vld [vmem:[#allocation3 + $0xb50] sm:$0xff] }
 0x8a3   : > { %5352 = vmatprep.subr.bf16.mxu1 %v5351_v56  ;;  %v4093_v56 = vld [vmem:[#allocation3 + $0xb68] sm:$0xff] }
 0x8a4   : > { %v5367_v40 = vpack.c.bf16 %v4093_v56, %v4090_v23  ;;  %v4074_v23 = vld [vmem:[#allocation3 + $0xad0] sm:$0xff] }
 0x8ab   : > { %v9237_v16 = vpop.permute.xlu0 %5569 }
 0x8ac   : > { %v5572_v0 = vunpack.i.h.bf16 %v9237_v16  ;;  %v5571_v42 = vunpack.i.l.bf16 %v9237_v16 }
 0x8ae   : > { %v3691_v28 = vsel %vm941_vm4, %v5571_v42, %v5572_v0  ;;  %v3690_v3 = vsel %vm941_vm4, %v5562_v62, %v5571_v42  ;;  %v4026_v62 = vld [vmem:[#allocation3 + $0x950] sm:$0xff]  ;;  %v5205_v42 = vpack.c.bf16 %v4037_v49, %v4034_v43  ;;  %v4063_v43 = vld [vmem:[#allocation3 + $0xa78] sm:$0xff]  ;;  %v4065_v49 = vld [vmem:[#allocation3 + $0xa88] sm:$0xff] }
 0x8af   : > { %v3723_v27 = vmax.f32 %v9131_v51, %v3691_v28  ;;  %v3722_v63 = vmax.f32 %v9050_v59, %v3690_v3  ;;  %v4075_v51 = vld [vmem:[#allocation3 + $0xad8] sm:$0xff]  ;;  %v5195_v10 = vpack.c.bf16 %v4026_v62, %v4023_v17  ;;  %v4040_v28 = vld [vmem:[#allocation3 + $0x9c0] sm:$0xff]  ;;  %v4045_v17 = vld [vmem:[#allocation3 + $0x9e8] sm:$0xff] }
 0x8b0   : > { %v5355_v57 = vpack.c.bf16 %v4075_v51, %v4072_v4  ;;  %v4043_v3 = vld [vmem:[#allocation3 + $0x9d8] sm:$0xff]  ;;  %v4046_v51 = vld [vmem:[#allocation3 + $0x9f0] sm:$0xff] }
 0x8b1   : > { %4259 = vmatprep.mubr.f32.mxu0 %v3723_v27  ;;  %4564 = vmatprep.mubr.f32.mxu1 %v3723_v27  ;;  %v5365_v27 = vpack.c.bf16 %v4039_v47, %v4036_v54  ;;  %v4099_v62 = vld [vmem:[#allocation3 + $0xb98] sm:$0xff]  ;;  %v5209_v4 = vpack.c.bf16 %v4043_v3, %v4040_v28  ;;  %v4064_v54 = vld [vmem:[#allocation3 + $0xa80] sm:$0xff]  ;;  %v4070_v28 = vld [vmem:[#allocation3 + $0xab0] sm:$0xff] }
 0x8b2   : > { %4260 = vmatmul.mubr.f32.gmra.mrb[2].mxu0 %v3722_v63  ;;  %4565 = vmatmul.mubr.f32.gmra.mrb[10].mxu1 %v3722_v63  ;;  %v5207_v63 = vpack.c.bf16 %v4044_v48, %v4041_v15  ;;  %v4067_v47 = vld [vmem:[#allocation3 + $0xa98] sm:$0xff]  ;;  %v4073_v3 = vld [vmem:[#allocation3 + $0xac8] sm:$0xff] }
 0x8b3   : > { %v4071_v48 = vld [vmem:[#allocation3 + $0xab8] sm:$0xff]  ;;  %v5225_v56 = vpack.c.bf16 %v4067_v47, %v4064_v54 }
 0x8bd   : > { %v9249_v39 = vpop.permute.xlu0 %5574 }
 0x8be   : > { %v5577_v32 = vunpack.i.h.bf16 %v9249_v39  ;;  %v5576_v14 = vunpack.i.l.bf16 %v9249_v39 }
 0x8c0   : > { %v3684_v59 = vsel %vm941_vm4, %v9144_v18, %v5576_v14  ;;  %v3685_v13 = vsel %vm941_vm4, %v5576_v14, %v5577_v32  ;;  %v4032_v18 = vld [vmem:[#allocation3 + $0x980] sm:$0xff]  ;;  %v4042_v14 = vld [vmem:[#allocation3 + $0x9d0] sm:$0xff] }
 0x8c1   : > { %v3716_v26 = vmax.f32 %v9015_v41, %v3684_v59  ;;  %v3717_v34 = vmax.f32 %v9173_v60, %v3685_v13  ;;  %v5197_v41 = vpack.c.bf16 %v4025_v44, %v4022_v21  ;;  %v4031_v60 = vld [vmem:[#allocation3 + $0x978] sm:$0xff]  ;;  %v5199_v29 = vpack.c.bf16 %v4032_v18, %v4029_v9  ;;  %v4049_v59 = vld [vmem:[#allocation3 + $0xa08] sm:$0xff]  ;;  %v4048_v21 = vld [vmem:[#allocation3 + $0xa00] sm:$0xff] }
 0x8c2   : > { %v5201_v5 = vpack.c.bf16 %v4031_v60, %v4028_v25  ;;  %v5369_v13 = vpack.c.bf16 %v4045_v17, %v4042_v14  ;;  %v4051_v44 = vld [vmem:[#allocation3 + $0xa18] sm:$0xff]  ;;  %v4105_v9 = vld [vmem:[#allocation3 + $0xbc8] sm:$0xff]  ;;  %v4054_v25 = vld [vmem:[#allocation3 + $0xa30] sm:$0xff] }
 0x8c3   : > { %4330 = vmatprep.mubr.f32.mxu0 %v3717_v34  ;;  %4634 = vmatprep.mubr.f32.mxu1 %v3717_v34  ;;  %v4053_v34 = vld [vmem:[#allocation3 + $0xa28] sm:$0xff]  ;;  %v5373_v18 = vpack.c.bf16 %v4051_v44, %v4048_v21  ;;  %v4076_v14 = vld [vmem:[#allocation3 + $0xae0] sm:$0xff]  ;;  %v4079_v17 = vld [vmem:[#allocation3 + $0xaf8] sm:$0xff] }
 0x8c4   : > { %4331 = vmatmul.mubr.f32.vlgmr.msra.gmra.mrb[0].mxu0 %v3716_v26  ;;  %4635 = vmatmul.mubr.f32.vlgmr.msra.gmra.mrb[12].mxu1 %v3716_v26  ;;  %v5211_v26 = vpack.c.bf16 %v4050_v33, %v4047_v11  ;;  %v4057_v60 = vld [vmem:[#allocation3 + $0xa48] sm:$0xff]  ;;  %v5229_v11 = vpack.c.bf16 %v4073_v3, %v4070_v28  ;;  %v4083_v33 = vld [vmem:[#allocation3 + $0xb18] sm:$0xff]  ;;  %v4088_v21 = vld [vmem:[#allocation3 + $0xb40] sm:$0xff] }
 0x8c5   : > { %5194 = vmatpush1.bf16.msra.mxu0 %v5193_v6  ;;  %5354 = vmatpush3.bf16.msra.mxu1 %v5353_v45  ;;  %v5371_v6 = vpack.c.bf16 %v4099_v62, %v4096_v53  ;;  %v4056_v45 = vld [vmem:[#allocation3 + $0xa40] sm:$0xff]  ;;  %v5377_v38 = vpack.c.bf16 %v4057_v60, %v4054_v25  ;;  %v4086_v53 = vld [vmem:[#allocation3 + $0xb30] sm:$0xff]  ;;  %v5233_v62 = vpack.c.bf16 %v4079_v17, %v4076_v14  ;;  %v4091_v44 = vld [vmem:[#allocation3 + $0xb58] sm:$0xff] }
 0x8c6   : > { %5196 = vmatprep.subr.bf16.mxu0 %v5195_v10  ;;  %5356 = vmatprep.subr.bf16.mxu1 %v5355_v57  ;;  %v4102_v10 = vld [vmem:[#allocation3 + $0xbb0] sm:$0xff]  ;;  %v5213_v57 = vpack.c.bf16 %v4049_v59, %v4046_v51  ;;  %v5215_v46 = vpack.c.bf16 %v4056_v45, %v4053_v34  ;;  %v4085_v59 = vld [vmem:[#allocation3 + $0xb28] sm:$0xff]  ;;  %v4095_v45 = vld [vmem:[#allocation3 + $0xb78] sm:$0xff] }
 0x8c7   : > { %v4082_v51 = vld [vmem:[#allocation3 + $0xb10] sm:$0xff]  ;;  %v4100_v25 = vld [vmem:[#allocation3 + $0xba0] sm:$0xff]  ;;  %v4103_v60 = vld [vmem:[#allocation3 + $0xbb8] sm:$0xff] }
 0x8c8   : > { %v5237_v34 = vpack.c.bf16 %v4085_v59, %v4082_v51 }
 0x8c9   : > { %5198 = vmatpush1.bf16.msra.mxu0 %v5197_v41  ;;  %5358 = vmatpush3.bf16.msra.mxu1 %v5357_v30  ;;  %v5375_v41 = vpack.c.bf16 %v4105_v9, %v4102_v10  ;;  %v4062_v30 = vld [vmem:[#allocation3 + $0xa70] sm:$0xff]  ;;  %v5241_v9 = vpack.c.bf16 %v4091_v44, %v4088_v21 }
 0x8ca   : > { %5200 = vmatprep.subr.bf16.mxu0 %v5199_v29  ;;  %5360 = vmatprep.subr.bf16.mxu1 %v5359_v55  ;;  %v4108_v29 = vld [vmem:[#allocation3 + $0xbe0] sm:$0xff]  ;;  %v5217_v55 = vpack.c.bf16 %v4055_v50, %v4052_v19  ;;  %v5219_v2 = vpack.c.bf16 %v4062_v30, %v4059_v7  ;;  %v4098_v10 = vld [vmem:[#allocation3 + $0xb90] sm:$0xff]  ;;  %v4097_v50 = vld [vmem:[#allocation3 + $0xb88] sm:$0xff] }
 0x8cb   : > { %v5379_v12 = vpack.c.bf16 %v4111_v37, %v4108_v29  ;;  %v4094_v19 = vld [vmem:[#allocation3 + $0xb70] sm:$0xff] }
 0x8cc   : > { %v5245_v7 = vpack.c.bf16 %v4097_v50, %v4094_v19 }
 0x8cd   : > { %5202 = vmatpush1.bf16.msra.mxu0 %v5201_v5  ;;  %5362 = vmatpush3.bf16.msra.mxu1 %v5361_v20  ;;  %v4060_v5 = vld [vmem:[#allocation3 + $0xa60] sm:$0xff] }
 0x8ce   : > { %5204 = vmatprep.subr.bf16.mxu0 %v5203_v36  ;;  %5364 = vmatprep.subr.bf16.mxu1 %v5363_v24  ;;  %v4068_v20 = vld [vmem:[#allocation3 + $0xaa0] sm:$0xff]  ;;  %v5221_v36 = vpack.c.bf16 %v4061_v35, %v4058_v22  ;;  %v5381_v15 = vpack.c.bf16 %v4063_v43, %v4060_v5  ;;  %v4110_v22 = vld [vmem:[#allocation3 + $0xbf0] sm:$0xff] }
 0x8cf   : > { %v5223_v24 = vpack.c.bf16 %v4068_v20, %v4065_v49  ;;  %v4106_v49 = vld [vmem:[#allocation3 + $0xbd0] sm:$0xff]  ;;  %v4109_v20 = vld [vmem:[#allocation3 + $0xbe8] sm:$0xff] }
 0x8d1   : > { %5206 = vmatpush1.bf16.msra.mxu0 %v5205_v42  ;;  %5366 = vmatpush3.bf16.msra.mxu1 %v5365_v27  ;;  %v5227_v42 = vpack.c.bf16 %v4074_v23, %v4071_v48  ;;  %v4077_v27 = vld [vmem:[#allocation3 + $0xae8] sm:$0xff]  ;;  %v5253_v48 = vpack.c.bf16 %v4109_v20, %v4106_v49 }
 0x8d2   : > { %5208 = vmatprep.subr.bf16.mxu0 %v5207_v63  ;;  %5368 = vmatprep.subr.bf16.mxu1 %v5367_v40  ;;  %v4080_v63 = vld [vmem:[#allocation3 + $0xb00] sm:$0xff] }
 0x8d3   : > { %v5231_v40 = vpack.c.bf16 %v4080_v63, %v4077_v27 }
 0x8d5   : > { %5210 = vmatpush1.bf16.msra.mxu0 %v5209_v4  ;;  %5370 = vmatpush3.bf16.msra.mxu1 %v5369_v13  ;;  %v5235_v4 = vpack.c.bf16 %v4086_v53, %v4083_v33  ;;  %v4089_v13 = vld [vmem:[#allocation3 + $0xb48] sm:$0xff] }
 0x8d6   : > { %5212 = vmatprep.subr.bf16.mxu0 %v5211_v26  ;;  %5372 = vmatprep.subr.bf16.mxu1 %v5371_v6  ;;  %v4092_v26 = vld [vmem:[#allocation3 + $0xb60] sm:$0xff] }
 0x8d7   : > { %v5239_v6 = vpack.c.bf16 %v4092_v26, %v4089_v13 }
 0x8d9   : > { %5214 = vmatpush1.bf16.msra.mxu0 %v5213_v57  ;;  %5374 = vmatpush3.bf16.msra.mxu1 %v5373_v18  ;;  %v5243_v57 = vpack.c.bf16 %v4098_v10, %v4095_v45  ;;  %v4101_v18 = vld [vmem:[#allocation3 + $0xba8] sm:$0xff] }
 0x8da   : > { %5216 = vmatprep.subr.bf16.mxu0 %v5215_v46  ;;  %5376 = vmatprep.subr.bf16.mxu1 %v5375_v41  ;;  %v4104_v46 = vld [vmem:[#allocation3 + $0xbc0] sm:$0xff] }
 0x8db   : > { %v5247_v41 = vpack.c.bf16 %v4104_v46, %v4101_v18 }
 0x8dd   : > { %5218 = vmatpush1.bf16.msra.mxu0 %v5217_v55  ;;  %5378 = vmatpush3.bf16.msra.mxu1 %v5377_v38  ;;  %v4107_v55 = vld [vmem:[#allocation3 + $0xbd8] sm:$0xff] }
 0x8de   : > { %5220 = vmatprep.subr.bf16.mxu0 %v5219_v2  ;;  %5380 = vmatprep.subr.bf16.mxu1 %v5379_v12  ;;  %v5249_v2 = vpack.c.bf16 %v4103_v60, %v4100_v25 }
 0x8e1   : > { %5222 = vmatpush1.bf16.msra.mxu0 %v5221_v36  ;;  %5382 = vmatpush3.bf16.msra.mxu1 %v5381_v15 }
 0x8e2   : > { %5224 = vmatprep.subr.bf16.mxu0 %v5223_v24  ;;  %v5251_v24 = vpack.c.bf16 %v4110_v22, %v4107_v55 }
 0x8e5   : > { %5226 = vmatpush1.bf16.msra.mxu0 %v5225_v56 }
 0x8e6   : > { %5228 = vmatprep.subr.bf16.mxu0 %v5227_v42 }
 0x8e9   : > { %5230 = vmatpush1.bf16.msra.mxu0 %v5229_v11 }
 0x8ea   : > { %5232 = vmatprep.subr.bf16.mxu0 %v5231_v40 }
 0x8ed   : > { %5234 = vmatpush1.bf16.msra.mxu0 %v5233_v62 }
 0x8ee   : > { %5236 = vmatprep.subr.bf16.mxu0 %v5235_v4 }
 0x8f1   : > { %5238 = vmatpush1.bf16.msra.mxu0 %v5237_v34 }
 0x8f2   : > { %5240 = vmatprep.subr.bf16.mxu0 %v5239_v6 }
 0x8f5   : > { %5242 = vmatpush1.bf16.msra.mxu0 %v5241_v9 }
 0x8f6   : > { %5244 = vmatprep.subr.bf16.mxu0 %v5243_v57 }
 0x8f7   : > { %v5580_v30 = vpop.permute.xlu0 %5579 }
 0x8f8   : > { %v5582_v29 = vunpack.i.h.bf16 %v5580_v30  ;;  %v5581_v37 = vunpack.i.l.bf16 %v5580_v30 }
 0x8f9   : > { %5246 = vmatpush1.bf16.msra.mxu0 %v5245_v7  ;;  %v5585_v38 = vpop.permute.xlu1 %5584 }
 0x8fa   : > { %v5587_v35 = vunpack.i.h.bf16 %v5585_v38  ;;  %v5586_v12 = vunpack.i.l.bf16 %v5585_v38  ;;  %5248 = vmatprep.subr.bf16.mxu0 %v5247_v41  ;;  %v3693_v5 = vsel %vm941_vm4, %v5581_v37, %v5582_v29  ;;  %v3692_v43 = vsel %vm941_vm4, %v5572_v0, %v5581_v37 }
 0x8fb   : > { %v3725_v36 = vmax.f32 %v9209_v58, %v3693_v5  ;;  %v3724_v15 = vmax.f32 %v9135_v8, %v3692_v43 }
 0x8fc   : > { %v3687_v54 = vsel %vm941_vm4, %v5586_v12, %v5587_v35  ;;  %v3686_v16 = vsel %vm941_vm4, %v5577_v32, %v5586_v12 }
 0x8fd   : > { %5250 = vmatpush1.bf16.msra.mxu0 %v5249_v2  ;;  %v5590_v47 = vpop.permute.xlu0 %5589  ;;  %4336 = vmatprep.mubr.f32.mxu0 %v3725_v36  ;;  %v3719_v23 = vmax.f32 %v9221_v61, %v3687_v54  ;;  %v3718_v58 = vmax.f32 %v9177_v52, %v3686_v16 }
 0x8fe   : > { %v5592_v0 = vunpack.i.h.bf16 %v5590_v47  ;;  %v5591_v56 = vunpack.i.l.bf16 %v5590_v47  ;;  %4639 = vmatprep.mubr.f32.mxu1 %v3725_v36  ;;  %4337 = vmatmul.mubr.f32.gmra.mrb[2].mxu0 %v3724_v15 }
 0x8ff   : > { %5252 = vmatprep.subr.bf16.mxu0 %v5251_v24  ;;  %4640 = vmatmul.mubr.f32.gmra.mrb[14].mxu1 %v3724_v15 }
 0x900   : > { %4407 = vmatprep.mubr.f32.mxu0 %v3719_v23  ;;  %4709 = vmatprep.mubr.f32.mxu1 %v3719_v23  ;;  %v3695_v8 = vsel %vm941_vm4, %v5591_v56, %v5592_v0  ;;  %v3694_v61 = vsel %vm941_vm4, %v5582_v29, %v5591_v56 }
 0x901   : > { %5254 = vmatpush1.bf16.msra.mxu0 %v5253_v48  ;;  %v3727_v42 = vmax.f32 %v9232_v1, %v3695_v8  ;;  %v3726_v39 = vmax.f32 %v9213_v31, %v3694_v61  ;;  %v10114_v31 = vmov 0.0  }
 0x902   : > { %4720 = vst [vmem:[%s9280_s19] sm:$0xff] %v10114_v31  ;;  %4724 = vst.msk [vmem:[%s9280_s19 + $0x18] sm:$0xff] %vm4723_vm0, %v10114_v31 }
 0x903   : > { %4710 = vmatmul.mubr.f32.vlgmr.msra.gmra.mrb[16].mxu1 %v3718_v58  ;;  %4728 = vst.msk [vmem:[%s9280_s19 + $0x38] sm:$0xff] %vm4723_vm0, %v10114_v31  ;;  %4722 = vst [vmem:[%s9280_s19 + $0x10] sm:$0xff] %v10114_v31 }
 0x904   : > { %4408 = vmatmul.mubr.f32.vlgmr.msra.gmra.mrb[0].mxu0 %v3718_v58  ;;  %4714 = vmatprep.mubr.f32.mxu1 %v3727_v42  ;;  %4725 = vst [vmem:[%s9280_s19 + $0x20] sm:$0xff] %v10114_v31  ;;  %4727 = vst [vmem:[%s9280_s19 + $0x30] sm:$0xff] %v10114_v31 }
 0x905   : > { %4413 = vmatprep.mubr.f32.mxu0 %v3727_v42 }
 0x907   : > { %4715 = vmatmul.mubr.f32.gmra.mrb[18].mxu1 %v3726_v39 }
 0x908   : > { %4414 = vmatmul.mubr.f32.gmra.mrb[2].mxu0 %v3726_v39 }
 0x918   : > { %v4178_v32 = vpop.f32.mrb[0].mxu1 }
 0x919   : > { %v4180_v28 = vpop.f32.mrb[1].mxu1 }
 0x92e   : > { %v4184_v3 = vpop.f32.mrb[2].mxu1 }
 0x92f   : > { %v4186_v27 = vpop.f32.mrb[3].mxu1 }
 0x938   : > { %v4879_v63 = vpop.f32.mrb[4].mxu1 }
 0x939   : > { %v4880_v52 = vpop.f32.mrb[5].mxu1 }
 0x93a   : > { %v4881_v11 = vadd.f32 %v4880_v52, %v4879_v63 }
 0x93c   : > { %v4882_v40 = vpop.f32.mrb[6].mxu1 }
 0x93d   : > { %v4883_v1 = vpop.f32.mrb[7].mxu1 }
 0x93e   : > { %v4884_v14 = vadd.f32 %v4883_v1, %v4882_v40 }
 0x958   : > { %v4917_v17 = vpop.f32.mrb[8].mxu1 }
 0x959   : > { %v4918_v33 = vpop.f32.mrb[9].mxu1 }
 0x95a   : > { %v4919_v53 = vadd.f32 %v4918_v33, %v4917_v17 }
 0x95c   : > { %v4562_v62 = vadd.f32 %v4919_v53, %v4881_v11 }
 0x985   : > { %v4920_v4 = vpop.f32.mrb[10].mxu1 }
 0x986   : > { %v4921_v51 = vpop.f32.mrb[11].mxu1 }
 0x987   : > { %v4922_v59 = vadd.f32 %v4921_v51, %v4920_v4 }
 0x989   : > { %v4567_v13 = vadd.f32 %v4922_v59, %v4884_v14 }
 0x997   : > { %v4955_v26 = vpop.f32.mrb[12].mxu1 }
 0x998   : > { %v4956_v34 = vpop.f32.mrb[13].mxu1 }
 0x999   : > { %v4957_v6 = vadd.f32 %v4956_v34, %v4955_v26 }
 0x99b   : > { %v4637_v21 = vadd.f32 %v4957_v6, %v4562_v62 }
 0x9d2   : > { %v4958_v44 = vpop.f32.mrb[14].mxu1 }
 0x9d3   : > { %v4959_v45 = vpop.f32.mrb[15].mxu1 }
 0x9d4   : > { %v4960_v10 = vadd.f32 %v4959_v45, %v4958_v44 }
 0x9d6   : > { %v4642_v9 = vadd.f32 %v4960_v10, %v4567_v13  ;;  %v4993_v57 = vpop.f32.mrb[16].mxu1 }
 0x9d7   : > { %v4409_v19 = vpop.f32.mrb[0].mxu0  ;;  %v4994_v50 = vpop.f32.mrb[17].mxu1 }
 0x9d8   : > { %v5383_v18 = vadd.f32 %v4409_v19, %v4178_v32  ;;  %v4411_v46 = vpop.f32.mrb[1].mxu0  ;;  %v4995_v7 = vadd.f32 %v4994_v50, %v4993_v57 }
 0x9d9   : > { %v5384_v41 = vadd.f32 %v4411_v46, %v4180_v28 }
 0x9da   : > { %v4712_v25 = vadd.f32 %v4995_v7, %v4637_v21  ;;  %4735 = vrot.lane.b32.xlu1 %v5383_v18, %s5698_s16  ;;  %v4996_v60 = vpop.f32.mrb[18].mxu1 }
 0x9db   : > { %v4415_v30 = vpop.f32.mrb[2].mxu0  ;;  %4737 = vrot.lane.b32.xlu0 %v5384_v41, %s5698_s16  ;;  %v4997_v29 = vpop.f32.mrb[19].mxu1 }
 0x9dc   : > { %v5385_v37 = vadd.f32 %v4415_v30, %v4184_v3  ;;  %v4417_v55 = vpop.f32.mrb[3].mxu0  ;;  %v4998_v22 = vadd.f32 %v4997_v29, %v4996_v60 }
 0x9dd   : > { %v5386_v38 = vadd.f32 %v4417_v55, %v4186_v27 }
 0x9de   : > { %v4717_v2 = vadd.f32 %v4998_v22, %v4642_v9  ;;  %4739 = vrot.lane.b32.xlu1 %v4712_v25, %s5698_s16 }
 0x9df   : > { %4741 = vrot.lane.b32.xlu0 %v5385_v37, %s5698_s16 }
 0x9e2   : > { %4743 = vrot.lane.b32.xlu1 %v5386_v38, %s5698_s16 }
 0x9e3   : > { %4745 = vrot.lane.b32.xlu0 %v4717_v2, %s5698_s16 }
 0xa4c   : > { %v4736_v35 = vpop.permute.xlu1 %4735 }
 0xa4d   : > { %4759 = vst.msk [vmem:[%s9280_s19] sm:$0xff] %vm4758_vm1, %v4736_v35  ;;  %v4738_v12 = vpop.permute.xlu0 %4737 }
 0xa4e   : > { %v4748_v5 = vsel %vm4747_vm2, %v4736_v35, %v4738_v12 }
 0xa4f   : > { %4760 = vst [vmem:[%s9280_s19 + $0x8] sm:$0xff] %v4748_v5 }
 0xa50   : > { %v4740_v43 = vpop.permute.xlu1 %4739 }
 0xa51   : > { %v4749_v49 = vsel %vm4747_vm2, %v4738_v12, %v4740_v43  ;;  %v4742_v20 = vpop.permute.xlu0 %4741 }
 0xa52   : > { %4762 = vst.msk [vmem:[%s9280_s19 + $0x10] sm:$0xff] %vm4761_vm3, %v4749_v49 }
 0xa53   : > { %4763 = vst.msk [vmem:[%s9280_s19 + $0x20] sm:$0xff] %vm4758_vm1, %v4742_v20 }
 0xa54   : > { %v4744_v36 = vpop.permute.xlu1 %4743 }
 0xa55   : > { %v4750_v15 = vsel %vm4747_vm2, %v4742_v20, %v4744_v36  ;;  %v4746_v24 = vpop.permute.xlu0 %4745 }
 0xa56   : > { %4764 = vst [vmem:[%s9280_s19 + $0x28] sm:$0xff] %v4750_v15  ;;  %v4751_v54 = vsel %vm4747_vm2, %v4744_v36, %v4746_v24 }
 0xa57   : > { %4765 = vst.msk [vmem:[%s9280_s19 + $0x30] sm:$0xff] %vm4761_vm3, %v4751_v54 }
 0xa58 PF: > { %s15_s15 = sadd.s32 1, %s5648_s15  }
 0xa59   : > { %p12_p3 = scmp.ge.s32.totalorder %s15_s15, 4  }
 0xa5b   :  { %14 = sbr.rel (!%p12_p3) target bundleno = 1 (0x1), region = 71 }
 0xa62   :  { %4787 = vsyncpa [#allocation4], 1 }
 0xa63   :  { %4789 = vsyncpa [#allocation4 + $0x1], 1 }

</bundles_post_ra>
